<compile_context>
chip_gen: v7x
topology: tpu7x:2x2x1
jax: 0.10.0
libtpu: 0.0.40
codegen_flags: <defaults>
</compile_context>

<pallas_src>
import functools

import jax
import jax.numpy as jnp
from jax.experimental import pallas as pl
from jax.experimental.pallas import tpu as pltpu


def _round_up(x, m):
    return (x + m - 1) // m * m


# ----------------------------- fused forward kernel -------------------------

def _critic_kernel(xlo_ref, xhi_ref,
                   w1hi_ref, w1lo0_ref, w1lo1_ref, b1_ref,
                   w2a_ref, w2b_ref, b2_ref,
                   w3_ref, b3_ref,
                   wfc_ref, bfc_ref,
                   wh_ref, bh_ref,
                   out_ref,
                   c1_ref, c2_ref, c3_ref):
    """One image per grid step; all activations live in VMEM scratch.

    Per-image layouts:
      xlo/xhi : (21, 11, 64) f32  space-to-depth input, 64 = (dh<4, dw<4, c<4);
                xlo holds original columns 8m+dw, xhi holds columns 8m+4+dw.
      c1      : (20, 10, 64) f32  conv1 out; lanes = (column parity)*32 + ch
      c2      : (9, 9, 64)   f32  conv2 out (h, w, ch)
      c3      : (7, 7, 64)   f32  conv3 out (h, w, ch)
    """
    f32 = jnp.float32
    bf16 = jnp.bfloat16

    # ---- conv1: Conv2d(4, 32, k=8, s=4) + ReLU as a 2-tap conv over the
    # space-to-depth input.  Even/odd output columns are produced jointly as a
    # 64-lane tile (even -> lanes [0:32), odd -> lanes [32:64)).
    def conv1_row(io, carry):
        acc = jnp.zeros((10, 64), f32)
        for d in range(2):
            lo = xlo_ref[0, io + d]            # (11, 64) f32
            hi = xhi_ref[0, io + d]            # (11, 64) f32
            acc += jnp.dot(hi[0:10].astype(bf16), w1hi_ref[d],
                           preferred_element_type=f32)
            acc += jnp.dot(lo[0:10].astype(bf16), w1lo0_ref[d],
                           preferred_element_type=f32)
            acc += jnp.dot(lo[1:11].astype(bf16), w1lo1_ref[d],
                           preferred_element_type=f32)
        c1_ref[io] = jnp.maximum(acc + b1_ref[...], 0.0)
        return carry

    jax.lax.fori_loop(0, 20, conv1_row, 0)

    # ---- conv2: Conv2d(32, 64, k=4, s=2) + ReLU.  Stride-2 column access is
    # free because conv1 stored even/odd columns in separate lane halves.
    def conv2_row(ib, carry):
        acc = jnp.zeros((9, 64), f32)
        for kh in range(4):
            row = c1_ref[2 * ib + kh]          # (10, 64) f32
            acc += jnp.dot(row[0:9].astype(bf16), w2a_ref[kh],
                           preferred_element_type=f32)
            acc += jnp.dot(row[1:10].astype(bf16), w2b_ref[kh],
                           preferred_element_type=f32)
        c2_ref[ib] = jnp.maximum(acc + b2_ref[...], 0.0)
        return carry

    jax.lax.fori_loop(0, 9, conv2_row, 0)

    # ---- conv3: Conv2d(64, 64, k=3, s=1) + ReLU (plain shift-and-matmul).
    def conv3_row(io, carry):
        acc = jnp.zeros((7, 64), f32)
        for kh in range(3):
            row = c2_ref[io + kh]              # (9, 64) f32
            for kw in range(3):
                acc += jnp.dot(row[kw:kw + 7].astype(bf16), w3_ref[kh * 3 + kw],
                               preferred_element_type=f32)
        c3_ref[io] = jnp.maximum(acc + b3_ref[...], 0.0)
        return carry

    jax.lax.fori_loop(0, 7, conv3_row, 0)

    # ---- fc: Linear(3136, 512), NO ReLU (the nn.Sequential ends with Linear).
    # wfc rows were permuted at prep time to (h, w, c) order so each spatial
    # position contracts against a contiguous 64-row block of the weight.
    acc0 = jnp.zeros((1, 512), f32)
    acc1 = jnp.zeros((1, 512), f32)
    for h in range(7):
        row = c3_ref[h]                        # (7, 64) f32
        for w in range(7):
            hw = h * 7 + w
            part = jnp.dot(row[w:w + 1].astype(bf16),
                           wfc_ref[hw * 64:(hw + 1) * 64, :],
                           preferred_element_type=f32)
            if hw % 2 == 0:
                acc0 += part
            else:
                acc1 += part
    hid = (acc0 + acc1 + bfc_ref[...]).astype(bf16)     # (1, 512)

    # ---- head: Linear(512, num_actions) (N padded to 128 lanes, sliced on host).
    logits = jnp.dot(hid, wh_ref[...], preferred_element_type=f32) + bh_ref[...]
    out_ref[0] = logits


# ------------------------------ host-side glue ------------------------------

def _space_to_depth(x_u8):
    """(B, 4, 84, 84) uint8 NCHW -> two (B, 21, 11, 64) f32 arrays.

    H grouped by 4, W grouped by 8 so the 8x8/stride-4 conv1 becomes a 2-tap
    stride-1 conv.  Grouped-channel index = dh*16 + dw*4 + c; xlo holds
    original columns 8m+dw, xhi holds columns 8m+4+dw (W zero-padded 84->88;
    the pad is never read by any weight).
    """
    # TODO(synk): the uint8 -> f32 cast + layout shuffle stays in XLA (a single
    # pass over the 28 KiB/image raw observation); doing it in-kernel would
    # need packed-uint8 slicing that is not worth the lowering risk.
    B = x_u8.shape[0]
    xp = jnp.pad(x_u8, ((0, 0), (0, 0), (0, 0), (0, 4)))       # W: 84 -> 88
    r = xp.reshape(B, 4, 21, 4, 11, 2, 4)                      # n c a dh m khi dw
    g = jnp.transpose(r, (0, 5, 2, 4, 3, 6, 1))                # n khi a m dh dw c
    g = g.reshape(B, 2, 21, 11, 64).astype(jnp.float32)
    return g[:, 0], g[:, 1]


def discrete_critic_forward(params, x_u8, *, num_actions):
    """logits = head(encoder(x)); matches DiscreteCritic.forward."""
    assert x_u8.ndim == 4 and x_u8.shape[1:] == (4, 84, 84), x_u8.shape
    assert x_u8.dtype == jnp.uint8
    B = x_u8.shape[0]
    xlo, xhi = _space_to_depth(x_u8)
    head_pad = params["wh"].shape[1]

    def const_spec(a):
        if a.ndim == 2:
            return pl.BlockSpec(a.shape, lambda n: (0, 0))
        return pl.BlockSpec(a.shape, lambda n: (0, 0, 0))

    weight_names = ("w1hi", "w1lo0", "w1lo1", "b1", "w2a", "w2b", "b2",
                    "w3", "b3", "wfc", "bfc", "wh", "bh")
    weights = [params[k] for k in weight_names]

    out = pl.pallas_call(
        _critic_kernel,
        out_shape=jax.ShapeDtypeStruct((B, 1, head_pad), jnp.float32),
        grid=(B,),
        in_specs=[pl.BlockSpec((1, 21, 11, 64), lambda n: (n, 0, 0, 0)),
                  pl.BlockSpec((1, 21, 11, 64), lambda n: (n, 0, 0, 0))]
                 + [const_spec(w) for w in weights],
        out_specs=pl.BlockSpec((1, 1, head_pad), lambda n: (n, 0, 0)),
        scratch_shapes=[pltpu.VMEM((20, 10, 64), jnp.float32),
                        pltpu.VMEM((9, 9, 64), jnp.float32),
                        pltpu.VMEM((7, 7, 64), jnp.float32)],
        compiler_params=pltpu.CompilerParams(
            dimension_semantics=("parallel",),
            vmem_limit_bytes=32 * 1024 * 1024),
    )(xlo, xhi, *weights)
    return out.reshape(B, head_pad)[:, :num_actions]


# --------------------------------- params -----------------------------------

def init_params(key, num_actions):
    """PyTorch-layout parameters with nn.Conv2d / nn.Linear style init."""
    ks = jax.random.split(key, 10)

    def unif(k, shape, fan_in):
        bound = 1.0 / (fan_in ** 0.5)
        return jax.random.uniform(k, shape, jnp.float32, -bound, bound)

    p = {}
    p["c1_w"] = unif(ks[0], (32, 4, 8, 8), 4 * 8 * 8)
    p["c1_b"] = unif(ks[1], (32,), 4 * 8 * 8)
    p["c2_w"] = unif(ks[2], (64, 32, 4, 4), 32 * 4 * 4)
    p["c2_b"] = unif(ks[3], (64,), 32 * 4 * 4)
    p["c3_w"] = unif(ks[4], (64, 64, 3, 3), 64 * 3 * 3)
    p["c3_b"] = unif(ks[5], (64,), 64 * 3 * 3)
    p["fc_w"] = unif(ks[6], (512, 3136), 3136)        # (out, in) like nn.Linear
    p["fc_b"] = unif(ks[7], (512,), 3136)
    p["head_w"] = unif(ks[8], (num_actions, 512), 512)
    p["head_b"] = unif(ks[9], (num_actions,), 512)
    return p


def prepare_params(p):
    """One-time weight preprocessing; layouts match the kernel exactly."""
    f32, bf16 = jnp.float32, jnp.bfloat16
    q = {}

    # conv1 (32,4,8,8): fold 1/255, regroup to the space-to-depth layout and
    # stack even/odd-output-column weights along N (lanes [0:32) = even cols).
    w1 = (p["c1_w"].astype(f32) * (1.0 / 255.0)).reshape(32, 4, 2, 4, 2, 4)
    # axes: oc c dha dh khi dw  ->  dha khi dh dw c oc
    w1 = jnp.transpose(w1, (2, 4, 3, 5, 1, 0)).reshape(2, 2, 64, 32)
    w1a, w1b = w1[:, 0], w1[:, 1]            # kw in [0..3] / kw in [4..7]
    zeros = jnp.zeros_like(w1a)
    q["w1hi"] = jnp.concatenate([w1b, w1a], axis=2).astype(bf16)    # (2, 64, 64)
    q["w1lo0"] = jnp.concatenate([w1a, zeros], axis=2).astype(bf16)
    q["w1lo1"] = jnp.concatenate([zeros, w1b], axis=2).astype(bf16)
    q["b1"] = jnp.concatenate([p["c1_b"], p["c1_b"]]).astype(f32).reshape(1, 64)

    # conv2 (64,32,4,4): K rows ordered (column parity)*32 + channel, matching
    # how conv1 stores its output.
    w2 = p["c2_w"].astype(f32).reshape(64, 32, 4, 2, 2)
    # axes: oc c kh khi par -> khi kh par c oc
    w2 = jnp.transpose(w2, (3, 2, 4, 1, 0)).reshape(2, 4, 64, 64).astype(bf16)
    q["w2a"], q["w2b"] = w2[0], w2[1]
    q["b2"] = p["c2_b"].astype(f32).reshape(1, 64)

    # conv3 (64,64,3,3) -> (kh*3+kw, c, oc)
    q["w3"] = jnp.transpose(p["c3_w"].astype(f32),
                            (2, 3, 1, 0)).reshape(9, 64, 64).astype(bf16)
    q["b3"] = p["c3_b"].astype(f32).reshape(1, 64)

    # fc (512, 3136): nn.Flatten order is (c, h, w); permute rows to (h, w, c)
    # so the kernel contracts a contiguous 64-row block per spatial position.
    wfc = p["fc_w"].astype(f32).reshape(512, 64, 7, 7)
    q["wfc"] = jnp.transpose(wfc, (2, 3, 1, 0)).reshape(3136, 512).astype(bf16)
    q["bfc"] = p["fc_b"].astype(f32).reshape(1, 512)

    # head: pad N (num_actions) to a lane-dense multiple of 128.
    a = p["head_w"].shape[0]
    npad = _round_up(max(a, 1), 128)
    wh = jnp.zeros((512, npad), f32).at[:, :a].set(p["head_w"].astype(f32).T)
    q["wh"] = wh.astype(bf16)
    q["bh"] = jnp.zeros((1, npad), f32).at[0, :a].set(p["head_b"].astype(f32))
    return q


# ------------------------------- reference -----------------------------------

def reference_forward(raw, x_u8):
    """Pure-XLA reference using the same bf16-rounded weights as the kernel."""
    f32 = jnp.float32
    hp = jax.lax.Precision.HIGHEST
    bf = lambda w: w.astype(jnp.bfloat16).astype(f32)
    dn = ("NCHW", "OIHW", "NCHW")
    x = x_u8.astype(f32)                     # /255 folded into conv1 weights
    h = jax.lax.conv_general_dilated(x, bf(raw["c1_w"] * (1.0 / 255.0)), (4, 4),
                                     "VALID", dimension_numbers=dn, precision=hp)
    h = jax.nn.relu(h + raw["c1_b"].reshape(1, -1, 1, 1))
    h = jax.lax.conv_general_dilated(h, bf(raw["c2_w"]), (2, 2), "VALID",
                                     dimension_numbers=dn, precision=hp)
    h = jax.nn.relu(h + raw["c2_b"].reshape(1, -1, 1, 1))
    h = jax.lax.conv_general_dilated(h, bf(raw["c3_w"]), (1, 1), "VALID",
                                     dimension_numbers=dn, precision=hp)
    h = jax.nn.relu(h + raw["c3_b"].reshape(1, -1, 1, 1))
    feat = h.reshape(h.shape[0], -1)                              # NCHW flatten
    feat = jnp.dot(feat, bf(raw["fc_w"]).T, precision=hp) + raw["fc_b"]  # no ReLU
    return jnp.dot(feat, bf(raw["head_w"]).T, precision=hp) + raw["head_b"]


# --------------------------------- main --------------------------------------

if __name__ == "__main__":
    num_actions = 6
    batch = 2
    key = jax.random.PRNGKey(0)
    k_x, k_p = jax.random.split(key)
    x = jax.random.randint(k_x, (batch, 4, 84, 84), 0, 256,
                           dtype=jnp.int32).astype(jnp.uint8)
    raw = init_params(k_p, num_actions)
    params = prepare_params(raw)

    fwd = jax.jit(functools.partial(discrete_critic_forward,
                                    num_actions=num_actions))
    logits = fwd(params, x)
    jax.block_until_ready(logits)

    assert logits.shape == (batch, num_actions), logits.shape
    assert bool(jnp.all(jnp.isfinite(logits)))

    ref = jax.jit(reference_forward)(raw, x)
    jax.block_until_ready(ref)
    err = float(jnp.max(jnp.abs(logits - ref)))
    scale = float(jnp.max(jnp.abs(ref))) + 1e-6
    assert err <= 5e-3 + 5e-2 * scale, (
        f"kernel/ref mismatch: max abs err {err:.2e} (ref scale {scale:.2e})")
    print("KERNEL_OK")
</pallas_src>

<mosaic_0001>
module attributes {stable_mosaic.version = 11 : i64} {
  func.func @_critic_kernel(%arg0: i32, %arg1: memref<1x21x11x64xf32, #tpu.memory_space<vmem>>, %arg2: memref<1x21x11x64xf32, #tpu.memory_space<vmem>>, %arg3: memref<2x64x64xbf16, #tpu.memory_space<vmem>>, %arg4: memref<2x64x64xbf16, #tpu.memory_space<vmem>>, %arg5: memref<2x64x64xbf16, #tpu.memory_space<vmem>>, %arg6: memref<1x64xf32, #tpu.memory_space<vmem>>, %arg7: memref<4x64x64xbf16, #tpu.memory_space<vmem>>, %arg8: memref<4x64x64xbf16, #tpu.memory_space<vmem>>, %arg9: memref<1x64xf32, #tpu.memory_space<vmem>>, %arg10: memref<9x64x64xbf16, #tpu.memory_space<vmem>>, %arg11: memref<1x64xf32, #tpu.memory_space<vmem>>, %arg12: memref<3136x512xbf16, #tpu.memory_space<vmem>>, %arg13: memref<1x512xf32, #tpu.memory_space<vmem>>, %arg14: memref<512x128xbf16, #tpu.memory_space<vmem>>, %arg15: memref<1x128xf32, #tpu.memory_space<vmem>>, %arg16: memref<1x1x128xf32, #tpu.memory_space<vmem>>, %arg17: memref<20x10x64xf32, #tpu.memory_space<vmem>>, %arg18: memref<9x9x64xf32, #tpu.memory_space<vmem>>, %arg19: memref<7x7x64xf32, #tpu.memory_space<vmem>>) attributes {dimension_semantics = [#tpu.dimension_semantics<parallel>], iteration_bounds = array<i64: 2>, scalar_prefetch = 0 : i64, scratch_operands = 3 : i64, tpu.core_type = #tpu.core_type<tc>, window_params = [{transform_indices = @transform_0, window_bounds = array<i64: 1, 21, 11, 64>}, {transform_indices = @transform_1, window_bounds = array<i64: 1, 21, 11, 64>}, {pipeline_mode = #tpu.pipeline_mode<synchronous>, transform_indices = @transform_2, window_bounds = array<i64: 2, 64, 64>}, {pipeline_mode = #tpu.pipeline_mode<synchronous>, transform_indices = @transform_3, window_bounds = array<i64: 2, 64, 64>}, {pipeline_mode = #tpu.pipeline_mode<synchronous>, transform_indices = @transform_4, window_bounds = array<i64: 2, 64, 64>}, {pipeline_mode = #tpu.pipeline_mode<synchronous>, transform_indices = @transform_5, window_bounds = array<i64: 1, 64>}, {pipeline_mode = #tpu.pipeline_mode<synchronous>, transform_indices = @transform_6, window_bounds = array<i64: 4, 64, 64>}, {pipeline_mode = #tpu.pipeline_mode<synchronous>, transform_indices = @transform_7, window_bounds = array<i64: 4, 64, 64>}, {pipeline_mode = #tpu.pipeline_mode<synchronous>, transform_indices = @transform_8, window_bounds = array<i64: 1, 64>}, {pipeline_mode = #tpu.pipeline_mode<synchronous>, transform_indices = @transform_9, window_bounds = array<i64: 9, 64, 64>}, {pipeline_mode = #tpu.pipeline_mode<synchronous>, transform_indices = @transform_10, window_bounds = array<i64: 1, 64>}, {pipeline_mode = #tpu.pipeline_mode<synchronous>, transform_indices = @transform_11, window_bounds = array<i64: 3136, 512>}, {pipeline_mode = #tpu.pipeline_mode<synchronous>, transform_indices = @transform_12, window_bounds = array<i64: 1, 512>}, {pipeline_mode = #tpu.pipeline_mode<synchronous>, transform_indices = @transform_13, window_bounds = array<i64: 512, 128>}, {pipeline_mode = #tpu.pipeline_mode<synchronous>, transform_indices = @transform_14, window_bounds = array<i64: 1, 128>}, {transform_indices = @transform_15, window_bounds = array<i64: 1, 1, 128>}]} {
    %c0_i32 = arith.constant 0 : i32
    %c20_i32 = arith.constant 20 : i32
    %0 = arith.addi %c0_i32, %c20_i32 : i32
    %c1_i32 = arith.constant 1 : i32
    scf.for %arg20 = %c0_i32 to %0 step %c1_i32  : i32 {
      %cst_131 = arith.constant 0.000000e+00 : f32
      %275 = vector.broadcast %cst_131 : f32 to vector<10x64xf32>
      %c0_i32_132 = arith.constant 0 : i32
      %276 = arith.addi %arg20, %c0_i32_132 : i32
      %c0_133 = arith.constant 0 : index
      %277 = arith.index_cast %276 : i32 to index
      %c0_134 = arith.constant 0 : index
      %c0_135 = arith.constant 0 : index
      %278 = vector.load %arg1[%c0_133, %277, %c0_134, %c0_135] : memref<1x21x11x64xf32, #tpu.memory_space<vmem>>, vector<1x1x11x64xf32>
      %279 = vector.shape_cast %278 : vector<1x1x11x64xf32> to vector<11x64xf32>
      %c0_i32_136 = arith.constant 0 : i32
      %280 = arith.addi %arg20, %c0_i32_136 : i32
      %c0_137 = arith.constant 0 : index
      %281 = arith.index_cast %280 : i32 to index
      %c0_138 = arith.constant 0 : index
      %c0_139 = arith.constant 0 : index
      %282 = vector.load %arg2[%c0_137, %281, %c0_138, %c0_139] : memref<1x21x11x64xf32, #tpu.memory_space<vmem>>, vector<1x1x11x64xf32>
      %283 = vector.shape_cast %282 : vector<1x1x11x64xf32> to vector<11x64xf32>
      %284 = vector.extract_strided_slice %283 {offsets = [0, 0], sizes = [10, 64], strides = [1, 1]} : vector<11x64xf32> to vector<10x64xf32>
      %285 = arith.truncf %284 : vector<10x64xf32> to vector<10x64xbf16>
      %c0_140 = arith.constant 0 : index
      %c0_141 = arith.constant 0 : index
      %c0_142 = arith.constant 0 : index
      %286 = vector.load %arg3[%c0_140, %c0_141, %c0_142] : memref<2x64x64xbf16, #tpu.memory_space<vmem>>, vector<1x64x64xbf16>
      %287 = vector.shape_cast %286 : vector<1x64x64xbf16> to vector<64x64xbf16>
      %cst_143 = arith.constant dense<0.000000e+00> : vector<10x64xf32>
      %288 = tpu.matmul %285, %287, %cst_143 {dimension_numbers = #tpu.dot_dimension_numbers<[1], [0], [0], [1], [0, 0, 1, 1], [], []>} : vector<10x64xbf16>, vector<64x64xbf16>, vector<10x64xf32> -> vector<10x64xf32>
      %289 = arith.addf %275, %288 : vector<10x64xf32>
      %290 = vector.extract_strided_slice %279 {offsets = [0, 0], sizes = [10, 64], strides = [1, 1]} : vector<11x64xf32> to vector<10x64xf32>
      %291 = arith.truncf %290 : vector<10x64xf32> to vector<10x64xbf16>
      %c0_144 = arith.constant 0 : index
      %c0_145 = arith.constant 0 : index
      %c0_146 = arith.constant 0 : index
      %292 = vector.load %arg4[%c0_144, %c0_145, %c0_146] : memref<2x64x64xbf16, #tpu.memory_space<vmem>>, vector<1x64x64xbf16>
      %293 = vector.shape_cast %292 : vector<1x64x64xbf16> to vector<64x64xbf16>
      %cst_147 = arith.constant dense<0.000000e+00> : vector<10x64xf32>
      %294 = tpu.matmul %291, %293, %cst_147 {dimension_numbers = #tpu.dot_dimension_numbers<[1], [0], [0], [1], [0, 0, 1, 1], [], []>} : vector<10x64xbf16>, vector<64x64xbf16>, vector<10x64xf32> -> vector<10x64xf32>
      %295 = arith.addf %289, %294 : vector<10x64xf32>
      %296 = vector.extract_strided_slice %279 {offsets = [1, 0], sizes = [10, 64], strides = [1, 1]} : vector<11x64xf32> to vector<10x64xf32>
      %297 = arith.truncf %296 : vector<10x64xf32> to vector<10x64xbf16>
      %c0_148 = arith.constant 0 : index
      %c0_149 = arith.constant 0 : index
      %c0_150 = arith.constant 0 : index
      %298 = vector.load %arg5[%c0_148, %c0_149, %c0_150] : memref<2x64x64xbf16, #tpu.memory_space<vmem>>, vector<1x64x64xbf16>
      %299 = vector.shape_cast %298 : vector<1x64x64xbf16> to vector<64x64xbf16>
      %cst_151 = arith.constant dense<0.000000e+00> : vector<10x64xf32>
      %300 = tpu.matmul %297, %299, %cst_151 {dimension_numbers = #tpu.dot_dimension_numbers<[1], [0], [0], [1], [0, 0, 1, 1], [], []>} : vector<10x64xbf16>, vector<64x64xbf16>, vector<10x64xf32> -> vector<10x64xf32>
      %301 = arith.addf %295, %300 : vector<10x64xf32>
      %c1_i32_152 = arith.constant 1 : i32
      %302 = arith.addi %arg20, %c1_i32_152 : i32
      %c0_153 = arith.constant 0 : index
      %303 = arith.index_cast %302 : i32 to index
      %c0_154 = arith.constant 0 : index
      %c0_155 = arith.constant 0 : index
      %304 = vector.load %arg1[%c0_153, %303, %c0_154, %c0_155] : memref<1x21x11x64xf32, #tpu.memory_space<vmem>>, vector<1x1x11x64xf32>
      %305 = vector.shape_cast %304 : vector<1x1x11x64xf32> to vector<11x64xf32>
      %c1_i32_156 = arith.constant 1 : i32
      %306 = arith.addi %arg20, %c1_i32_156 : i32
      %c0_157 = arith.constant 0 : index
      %307 = arith.index_cast %306 : i32 to index
      %c0_158 = arith.constant 0 : index
      %c0_159 = arith.constant 0 : index
      %308 = vector.load %arg2[%c0_157, %307, %c0_158, %c0_159] : memref<1x21x11x64xf32, #tpu.memory_space<vmem>>, vector<1x1x11x64xf32>
      %309 = vector.shape_cast %308 : vector<1x1x11x64xf32> to vector<11x64xf32>
      %310 = vector.extract_strided_slice %309 {offsets = [0, 0], sizes = [10, 64], strides = [1, 1]} : vector<11x64xf32> to vector<10x64xf32>
      %311 = arith.truncf %310 : vector<10x64xf32> to vector<10x64xbf16>
      %c1_160 = arith.constant 1 : index
      %c0_161 = arith.constant 0 : index
      %c0_162 = arith.constant 0 : index
      %312 = vector.load %arg3[%c1_160, %c0_161, %c0_162] : memref<2x64x64xbf16, #tpu.memory_space<vmem>>, vector<1x64x64xbf16>
      %313 = vector.shape_cast %312 : vector<1x64x64xbf16> to vector<64x64xbf16>
      %cst_163 = arith.constant dense<0.000000e+00> : vector<10x64xf32>
      %314 = tpu.matmul %311, %313, %cst_163 {dimension_numbers = #tpu.dot_dimension_numbers<[1], [0], [0], [1], [0, 0, 1, 1], [], []>} : vector<10x64xbf16>, vector<64x64xbf16>, vector<10x64xf32> -> vector<10x64xf32>
      %315 = arith.addf %301, %314 : vector<10x64xf32>
      %316 = vector.extract_strided_slice %305 {offsets = [0, 0], sizes = [10, 64], strides = [1, 1]} : vector<11x64xf32> to vector<10x64xf32>
      %317 = arith.truncf %316 : vector<10x64xf32> to vector<10x64xbf16>
      %c1_164 = arith.constant 1 : index
      %c0_165 = arith.constant 0 : index
      %c0_166 = arith.constant 0 : index
      %318 = vector.load %arg4[%c1_164, %c0_165, %c0_166] : memref<2x64x64xbf16, #tpu.memory_space<vmem>>, vector<1x64x64xbf16>
      %319 = vector.shape_cast %318 : vector<1x64x64xbf16> to vector<64x64xbf16>
      %cst_167 = arith.constant dense<0.000000e+00> : vector<10x64xf32>
      %320 = tpu.matmul %317, %319, %cst_167 {dimension_numbers = #tpu.dot_dimension_numbers<[1], [0], [0], [1], [0, 0, 1, 1], [], []>} : vector<10x64xbf16>, vector<64x64xbf16>, vector<10x64xf32> -> vector<10x64xf32>
      %321 = arith.addf %315, %320 : vector<10x64xf32>
      %322 = vector.extract_strided_slice %305 {offsets = [1, 0], sizes = [10, 64], strides = [1, 1]} : vector<11x64xf32> to vector<10x64xf32>
      %323 = arith.truncf %322 : vector<10x64xf32> to vector<10x64xbf16>
      %c1_168 = arith.constant 1 : index
      %c0_169 = arith.constant 0 : index
      %c0_170 = arith.constant 0 : index
      %324 = vector.load %arg5[%c1_168, %c0_169, %c0_170] : memref<2x64x64xbf16, #tpu.memory_space<vmem>>, vector<1x64x64xbf16>
      %325 = vector.shape_cast %324 : vector<1x64x64xbf16> to vector<64x64xbf16>
      %cst_171 = arith.constant dense<0.000000e+00> : vector<10x64xf32>
      %326 = tpu.matmul %323, %325, %cst_171 {dimension_numbers = #tpu.dot_dimension_numbers<[1], [0], [0], [1], [0, 0, 1, 1], [], []>} : vector<10x64xbf16>, vector<64x64xbf16>, vector<10x64xf32> -> vector<10x64xf32>
      %327 = arith.addf %321, %326 : vector<10x64xf32>
      %c0_172 = arith.constant 0 : index
      %c0_173 = arith.constant 0 : index
      %328 = vector.load %arg6[%c0_172, %c0_173] : memref<1x64xf32, #tpu.memory_space<vmem>>, vector<1x64xf32>
      %329 = vector.broadcast %328 : vector<1x64xf32> to vector<10x64xf32>
      %330 = arith.addf %327, %329 : vector<10x64xf32>
      %cst_174 = arith.constant 0.000000e+00 : f32
      %331 = vector.broadcast %cst_174 : f32 to vector<10x64xf32>
      %332 = arith.maximumf %330, %331 : vector<10x64xf32>
      %333 = arith.index_cast %arg20 : i32 to index
      %c0_175 = arith.constant 0 : index
      %c0_176 = arith.constant 0 : index
      %334 = vector.load %arg17[%333, %c0_175, %c0_176] : memref<20x10x64xf32, #tpu.memory_space<vmem>>, vector<1x10x64xf32>
      %335 = vector.shape_cast %334 : vector<1x10x64xf32> to vector<10x64xf32>
      %336 = vector.shape_cast %332 : vector<10x64xf32> to vector<1x10x64xf32>
      tpu.vector_store %arg17[%333, %c0_175, %c0_176], %336 {strides = array<i32>} : memref<20x10x64xf32, #tpu.memory_space<vmem>>, vector<1x10x64xf32>,
    }
    %c20_i32_0 = arith.constant 20 : i32
    %c0_i32_1 = arith.constant 0 : i32
    %c9_i32 = arith.constant 9 : i32
    %1 = arith.addi %c0_i32_1, %c9_i32 : i32
    %c1_i32_2 = arith.constant 1 : i32
    scf.for %arg20 = %c0_i32_1 to %1 step %c1_i32_2  : i32 {
      %cst_131 = arith.constant 0.000000e+00 : f32
      %275 = vector.broadcast %cst_131 : f32 to vector<9x64xf32>
      %c2_i32 = arith.constant 2 : i32
      %276 = arith.muli %c2_i32, %arg20 : i32
      %c0_i32_132 = arith.constant 0 : i32
      %277 = arith.addi %276, %c0_i32_132 : i32
      %278 = arith.index_cast %277 : i32 to index
      %c0_133 = arith.constant 0 : index
      %c0_134 = arith.constant 0 : index
      %279 = vector.load %arg17[%278, %c0_133, %c0_134] : memref<20x10x64xf32, #tpu.memory_space<vmem>>, vector<1x10x64xf32>
      %280 = vector.shape_cast %279 : vector<1x10x64xf32> to vector<10x64xf32>
      %281 = vector.extract_strided_slice %280 {offsets = [0, 0], sizes = [9, 64], strides = [1, 1]} : vector<10x64xf32> to vector<9x64xf32>
      %282 = arith.truncf %281 : vector<9x64xf32> to vector<9x64xbf16>
      %c0_135 = arith.constant 0 : index
      %c0_136 = arith.constant 0 : index
      %c0_137 = arith.constant 0 : index
      %283 = vector.load %arg7[%c0_135, %c0_136, %c0_137] : memref<4x64x64xbf16, #tpu.memory_space<vmem>>, vector<1x64x64xbf16>
      %284 = vector.shape_cast %283 : vector<1x64x64xbf16> to vector<64x64xbf16>
      %cst_138 = arith.constant dense<0.000000e+00> : vector<9x64xf32>
      %285 = tpu.matmul %282, %284, %cst_138 {dimension_numbers = #tpu.dot_dimension_numbers<[1], [0], [0], [1], [0, 0, 1, 1], [], []>} : vector<9x64xbf16>, vector<64x64xbf16>, vector<9x64xf32> -> vector<9x64xf32>
      %286 = arith.addf %275, %285 : vector<9x64xf32>
      %287 = vector.extract_strided_slice %280 {offsets = [1, 0], sizes = [9, 64], strides = [1, 1]} : vector<10x64xf32> to vector<9x64xf32>
      %288 = arith.truncf %287 : vector<9x64xf32> to vector<9x64xbf16>
      %c0_139 = arith.constant 0 : index
      %c0_140 = arith.constant 0 : index
      %c0_141 = arith.constant 0 : index
      %289 = vector.load %arg8[%c0_139, %c0_140, %c0_141] : memref<4x64x64xbf16, #tpu.memory_space<vmem>>, vector<1x64x64xbf16>
      %290 = vector.shape_cast %289 : vector<1x64x64xbf16> to vector<64x64xbf16>
      %cst_142 = arith.constant dense<0.000000e+00> : vector<9x64xf32>
      %291 = tpu.matmul %288, %290, %cst_142 {dimension_numbers = #tpu.dot_dimension_numbers<[1], [0], [0], [1], [0, 0, 1, 1], [], []>} : vector<9x64xbf16>, vector<64x64xbf16>, vector<9x64xf32> -> vector<9x64xf32>
      %292 = arith.addf %286, %291 : vector<9x64xf32>
      %c2_i32_143 = arith.constant 2 : i32
      %293 = arith.muli %c2_i32_143, %arg20 : i32
      %c1_i32_144 = arith.constant 1 : i32
      %294 = arith.addi %293, %c1_i32_144 : i32
      %295 = arith.index_cast %294 : i32 to index
      %c0_145 = arith.constant 0 : index
      %c0_146 = arith.constant 0 : index
      %296 = vector.load %arg17[%295, %c0_145, %c0_146] : memref<20x10x64xf32, #tpu.memory_space<vmem>>, vector<1x10x64xf32>
      %297 = vector.shape_cast %296 : vector<1x10x64xf32> to vector<10x64xf32>
      %298 = vector.extract_strided_slice %297 {offsets = [0, 0], sizes = [9, 64], strides = [1, 1]} : vector<10x64xf32> to vector<9x64xf32>
      %299 = arith.truncf %298 : vector<9x64xf32> to vector<9x64xbf16>
      %c1_147 = arith.constant 1 : index
      %c0_148 = arith.constant 0 : index
      %c0_149 = arith.constant 0 : index
      %300 = vector.load %arg7[%c1_147, %c0_148, %c0_149] : memref<4x64x64xbf16, #tpu.memory_space<vmem>>, vector<1x64x64xbf16>
      %301 = vector.shape_cast %300 : vector<1x64x64xbf16> to vector<64x64xbf16>
      %cst_150 = arith.constant dense<0.000000e+00> : vector<9x64xf32>
      %302 = tpu.matmul %299, %301, %cst_150 {dimension_numbers = #tpu.dot_dimension_numbers<[1], [0], [0], [1], [0, 0, 1, 1], [], []>} : vector<9x64xbf16>, vector<64x64xbf16>, vector<9x64xf32> -> vector<9x64xf32>
      %303 = arith.addf %292, %302 : vector<9x64xf32>
      %304 = vector.extract_strided_slice %297 {offsets = [1, 0], sizes = [9, 64], strides = [1, 1]} : vector<10x64xf32> to vector<9x64xf32>
      %305 = arith.truncf %304 : vector<9x64xf32> to vector<9x64xbf16>
      %c1_151 = arith.constant 1 : index
      %c0_152 = arith.constant 0 : index
      %c0_153 = arith.constant 0 : index
      %306 = vector.load %arg8[%c1_151, %c0_152, %c0_153] : memref<4x64x64xbf16, #tpu.memory_space<vmem>>, vector<1x64x64xbf16>
      %307 = vector.shape_cast %306 : vector<1x64x64xbf16> to vector<64x64xbf16>
      %cst_154 = arith.constant dense<0.000000e+00> : vector<9x64xf32>
      %308 = tpu.matmul %305, %307, %cst_154 {dimension_numbers = #tpu.dot_dimension_numbers<[1], [0], [0], [1], [0, 0, 1, 1], [], []>} : vector<9x64xbf16>, vector<64x64xbf16>, vector<9x64xf32> -> vector<9x64xf32>
      %309 = arith.addf %303, %308 : vector<9x64xf32>
      %c2_i32_155 = arith.constant 2 : i32
      %310 = arith.muli %c2_i32_155, %arg20 : i32
      %c2_i32_156 = arith.constant 2 : i32
      %311 = arith.addi %310, %c2_i32_156 : i32
      %312 = arith.index_cast %311 : i32 to index
      %c0_157 = arith.constant 0 : index
      %c0_158 = arith.constant 0 : index
      %313 = vector.load %arg17[%312, %c0_157, %c0_158] : memref<20x10x64xf32, #tpu.memory_space<vmem>>, vector<1x10x64xf32>
      %314 = vector.shape_cast %313 : vector<1x10x64xf32> to vector<10x64xf32>
      %315 = vector.extract_strided_slice %314 {offsets = [0, 0], sizes = [9, 64], strides = [1, 1]} : vector<10x64xf32> to vector<9x64xf32>
      %316 = arith.truncf %315 : vector<9x64xf32> to vector<9x64xbf16>
      %c2_159 = arith.constant 2 : index
      %c0_160 = arith.constant 0 : index
      %c0_161 = arith.constant 0 : index
      %317 = vector.load %arg7[%c2_159, %c0_160, %c0_161] : memref<4x64x64xbf16, #tpu.memory_space<vmem>>, vector<1x64x64xbf16>
      %318 = vector.shape_cast %317 : vector<1x64x64xbf16> to vector<64x64xbf16>
      %cst_162 = arith.constant dense<0.000000e+00> : vector<9x64xf32>
      %319 = tpu.matmul %316, %318, %cst_162 {dimension_numbers = #tpu.dot_dimension_numbers<[1], [0], [0], [1], [0, 0, 1, 1], [], []>} : vector<9x64xbf16>, vector<64x64xbf16>, vector<9x64xf32> -> vector<9x64xf32>
      %320 = arith.addf %309, %319 : vector<9x64xf32>
      %321 = vector.extract_strided_slice %314 {offsets = [1, 0], sizes = [9, 64], strides = [1, 1]} : vector<10x64xf32> to vector<9x64xf32>
      %322 = arith.truncf %321 : vector<9x64xf32> to vector<9x64xbf16>
      %c2_163 = arith.constant 2 : index
      %c0_164 = arith.constant 0 : index
      %c0_165 = arith.constant 0 : index
      %323 = vector.load %arg8[%c2_163, %c0_164, %c0_165] : memref<4x64x64xbf16, #tpu.memory_space<vmem>>, vector<1x64x64xbf16>
      %324 = vector.shape_cast %323 : vector<1x64x64xbf16> to vector<64x64xbf16>
      %cst_166 = arith.constant dense<0.000000e+00> : vector<9x64xf32>
      %325 = tpu.matmul %322, %324, %cst_166 {dimension_numbers = #tpu.dot_dimension_numbers<[1], [0], [0], [1], [0, 0, 1, 1], [], []>} : vector<9x64xbf16>, vector<64x64xbf16>, vector<9x64xf32> -> vector<9x64xf32>
      %326 = arith.addf %320, %325 : vector<9x64xf32>
      %c2_i32_167 = arith.constant 2 : i32
      %327 = arith.muli %c2_i32_167, %arg20 : i32
      %c3_i32 = arith.constant 3 : i32
      %328 = arith.addi %327, %c3_i32 : i32
      %329 = arith.index_cast %328 : i32 to index
      %c0_168 = arith.constant 0 : index
      %c0_169 = arith.constant 0 : index
      %330 = vector.load %arg17[%329, %c0_168, %c0_169] : memref<20x10x64xf32, #tpu.memory_space<vmem>>, vector<1x10x64xf32>
      %331 = vector.shape_cast %330 : vector<1x10x64xf32> to vector<10x64xf32>
      %332 = vector.extract_strided_slice %331 {offsets = [0, 0], sizes = [9, 64], strides = [1, 1]} : vector<10x64xf32> to vector<9x64xf32>
      %333 = arith.truncf %332 : vector<9x64xf32> to vector<9x64xbf16>
      %c3_170 = arith.constant 3 : index
      %c0_171 = arith.constant 0 : index
      %c0_172 = arith.constant 0 : index
      %334 = vector.load %arg7[%c3_170, %c0_171, %c0_172] : memref<4x64x64xbf16, #tpu.memory_space<vmem>>, vector<1x64x64xbf16>
      %335 = vector.shape_cast %334 : vector<1x64x64xbf16> to vector<64x64xbf16>
      %cst_173 = arith.constant dense<0.000000e+00> : vector<9x64xf32>
      %336 = tpu.matmul %333, %335, %cst_173 {dimension_numbers = #tpu.dot_dimension_numbers<[1], [0], [0], [1], [0, 0, 1, 1], [], []>} : vector<9x64xbf16>, vector<64x64xbf16>, vector<9x64xf32> -> vector<9x64xf32>
      %337 = arith.addf %326, %336 : vector<9x64xf32>
      %338 = vector.extract_strided_slice %331 {offsets = [1, 0], sizes = [9, 64], strides = [1, 1]} : vector<10x64xf32> to vector<9x64xf32>
      %339 = arith.truncf %338 : vector<9x64xf32> to vector<9x64xbf16>
      %c3_174 = arith.constant 3 : index
      %c0_175 = arith.constant 0 : index
      %c0_176 = arith.constant 0 : index
      %340 = vector.load %arg8[%c3_174, %c0_175, %c0_176] : memref<4x64x64xbf16, #tpu.memory_space<vmem>>, vector<1x64x64xbf16>
      %341 = vector.shape_cast %340 : vector<1x64x64xbf16> to vector<64x64xbf16>
      %cst_177 = arith.constant dense<0.000000e+00> : vector<9x64xf32>
      %342 = tpu.matmul %339, %341, %cst_177 {dimension_numbers = #tpu.dot_dimension_numbers<[1], [0], [0], [1], [0, 0, 1, 1], [], []>} : vector<9x64xbf16>, vector<64x64xbf16>, vector<9x64xf32> -> vector<9x64xf32>
      %343 = arith.addf %337, %342 : vector<9x64xf32>
      %c0_178 = arith.constant 0 : index
      %c0_179 = arith.constant 0 : index
      %344 = vector.load %arg9[%c0_178, %c0_179] : memref<1x64xf32, #tpu.memory_space<vmem>>, vector<1x64xf32>
      %345 = vector.broadcast %344 : vector<1x64xf32> to vector<9x64xf32>
      %346 = arith.addf %343, %345 : vector<9x64xf32>
      %cst_180 = arith.constant 0.000000e+00 : f32
      %347 = vector.broadcast %cst_180 : f32 to vector<9x64xf32>
      %348 = arith.maximumf %346, %347 : vector<9x64xf32>
      %349 = arith.index_cast %arg20 : i32 to index
      %c0_181 = arith.constant 0 : index
      %c0_182 = arith.constant 0 : index
      %350 = vector.load %arg18[%349, %c0_181, %c0_182] : memref<9x9x64xf32, #tpu.memory_space<vmem>>, vector<1x9x64xf32>
      %351 = vector.shape_cast %350 : vector<1x9x64xf32> to vector<9x64xf32>
      %352 = vector.shape_cast %348 : vector<9x64xf32> to vector<1x9x64xf32>
      tpu.vector_store %arg18[%349, %c0_181, %c0_182], %352 {strides = array<i32>} : memref<9x9x64xf32, #tpu.memory_space<vmem>>, vector<1x9x64xf32>,
    }
    %c9_i32_3 = arith.constant 9 : i32
    %c0_i32_4 = arith.constant 0 : i32
    %c7_i32 = arith.constant 7 : i32
    %2 = arith.addi %c0_i32_4, %c7_i32 : i32
    %c1_i32_5 = arith.constant 1 : i32
    scf.for %arg20 = %c0_i32_4 to %2 step %c1_i32_5  : i32 {
      %cst_131 = arith.constant 0.000000e+00 : f32
      %275 = vector.broadcast %cst_131 : f32 to vector<7x64xf32>
      %c0_i32_132 = arith.constant 0 : i32
      %276 = arith.addi %arg20, %c0_i32_132 : i32
      %277 = arith.index_cast %276 : i32 to index
      %c0_133 = arith.constant 0 : index
      %c0_134 = arith.constant 0 : index
      %278 = vector.load %arg18[%277, %c0_133, %c0_134] : memref<9x9x64xf32, #tpu.memory_space<vmem>>, vector<1x9x64xf32>
      %279 = vector.shape_cast %278 : vector<1x9x64xf32> to vector<9x64xf32>
      %280 = vector.extract_strided_slice %279 {offsets = [0, 0], sizes = [7, 64], strides = [1, 1]} : vector<9x64xf32> to vector<7x64xf32>
      %281 = arith.truncf %280 : vector<7x64xf32> to vector<7x64xbf16>
      %c0_135 = arith.constant 0 : index
      %c0_136 = arith.constant 0 : index
      %c0_137 = arith.constant 0 : index
      %282 = vector.load %arg10[%c0_135, %c0_136, %c0_137] : memref<9x64x64xbf16, #tpu.memory_space<vmem>>, vector<1x64x64xbf16>
      %283 = vector.shape_cast %282 : vector<1x64x64xbf16> to vector<64x64xbf16>
      %cst_138 = arith.constant dense<0.000000e+00> : vector<7x64xf32>
      %284 = tpu.matmul %281, %283, %cst_138 {dimension_numbers = #tpu.dot_dimension_numbers<[1], [0], [0], [1], [0, 0, 1, 1], [], []>} : vector<7x64xbf16>, vector<64x64xbf16>, vector<7x64xf32> -> vector<7x64xf32>
      %285 = arith.addf %275, %284 : vector<7x64xf32>
      %286 = vector.extract_strided_slice %279 {offsets = [1, 0], sizes = [7, 64], strides = [1, 1]} : vector<9x64xf32> to vector<7x64xf32>
      %287 = arith.truncf %286 : vector<7x64xf32> to vector<7x64xbf16>
      %c1_139 = arith.constant 1 : index
      %c0_140 = arith.constant 0 : index
      %c0_141 = arith.constant 0 : index
      %288 = vector.load %arg10[%c1_139, %c0_140, %c0_141] : memref<9x64x64xbf16, #tpu.memory_space<vmem>>, vector<1x64x64xbf16>
      %289 = vector.shape_cast %288 : vector<1x64x64xbf16> to vector<64x64xbf16>
      %cst_142 = arith.constant dense<0.000000e+00> : vector<7x64xf32>
      %290 = tpu.matmul %287, %289, %cst_142 {dimension_numbers = #tpu.dot_dimension_numbers<[1], [0], [0], [1], [0, 0, 1, 1], [], []>} : vector<7x64xbf16>, vector<64x64xbf16>, vector<7x64xf32> -> vector<7x64xf32>
      %291 = arith.addf %285, %290 : vector<7x64xf32>
      %292 = vector.extract_strided_slice %279 {offsets = [2, 0], sizes = [7, 64], strides = [1, 1]} : vector<9x64xf32> to vector<7x64xf32>
      %293 = arith.truncf %292 : vector<7x64xf32> to vector<7x64xbf16>
      %c2_143 = arith.constant 2 : index
      %c0_144 = arith.constant 0 : index
      %c0_145 = arith.constant 0 : index
      %294 = vector.load %arg10[%c2_143, %c0_144, %c0_145] : memref<9x64x64xbf16, #tpu.memory_space<vmem>>, vector<1x64x64xbf16>
      %295 = vector.shape_cast %294 : vector<1x64x64xbf16> to vector<64x64xbf16>
      %cst_146 = arith.constant dense<0.000000e+00> : vector<7x64xf32>
      %296 = tpu.matmul %293, %295, %cst_146 {dimension_numbers = #tpu.dot_dimension_numbers<[1], [0], [0], [1], [0, 0, 1, 1], [], []>} : vector<7x64xbf16>, vector<64x64xbf16>, vector<7x64xf32> -> vector<7x64xf32>
      %297 = arith.addf %291, %296 : vector<7x64xf32>
      %c1_i32_147 = arith.constant 1 : i32
      %298 = arith.addi %arg20, %c1_i32_147 : i32
      %299 = arith.index_cast %298 : i32 to index
      %c0_148 = arith.constant 0 : index
      %c0_149 = arith.constant 0 : index
      %300 = vector.load %arg18[%299, %c0_148, %c0_149] : memref<9x9x64xf32, #tpu.memory_space<vmem>>, vector<1x9x64xf32>
      %301 = vector.shape_cast %300 : vector<1x9x64xf32> to vector<9x64xf32>
      %302 = vector.extract_strided_slice %301 {offsets = [0, 0], sizes = [7, 64], strides = [1, 1]} : vector<9x64xf32> to vector<7x64xf32>
      %303 = arith.truncf %302 : vector<7x64xf32> to vector<7x64xbf16>
      %c3_150 = arith.constant 3 : index
      %c0_151 = arith.constant 0 : index
      %c0_152 = arith.constant 0 : index
      %304 = vector.load %arg10[%c3_150, %c0_151, %c0_152] : memref<9x64x64xbf16, #tpu.memory_space<vmem>>, vector<1x64x64xbf16>
      %305 = vector.shape_cast %304 : vector<1x64x64xbf16> to vector<64x64xbf16>
      %cst_153 = arith.constant dense<0.000000e+00> : vector<7x64xf32>
      %306 = tpu.matmul %303, %305, %cst_153 {dimension_numbers = #tpu.dot_dimension_numbers<[1], [0], [0], [1], [0, 0, 1, 1], [], []>} : vector<7x64xbf16>, vector<64x64xbf16>, vector<7x64xf32> -> vector<7x64xf32>
      %307 = arith.addf %297, %306 : vector<7x64xf32>
      %308 = vector.extract_strided_slice %301 {offsets = [1, 0], sizes = [7, 64], strides = [1, 1]} : vector<9x64xf32> to vector<7x64xf32>
      %309 = arith.truncf %308 : vector<7x64xf32> to vector<7x64xbf16>
      %c4_154 = arith.constant 4 : index
      %c0_155 = arith.constant 0 : index
      %c0_156 = arith.constant 0 : index
      %310 = vector.load %arg10[%c4_154, %c0_155, %c0_156] : memref<9x64x64xbf16, #tpu.memory_space<vmem>>, vector<1x64x64xbf16>
      %311 = vector.shape_cast %310 : vector<1x64x64xbf16> to vector<64x64xbf16>
      %cst_157 = arith.constant dense<0.000000e+00> : vector<7x64xf32>
      %312 = tpu.matmul %309, %311, %cst_157 {dimension_numbers = #tpu.dot_dimension_numbers<[1], [0], [0], [1], [0, 0, 1, 1], [], []>} : vector<7x64xbf16>, vector<64x64xbf16>, vector<7x64xf32> -> vector<7x64xf32>
      %313 = arith.addf %307, %312 : vector<7x64xf32>
      %314 = vector.extract_strided_slice %301 {offsets = [2, 0], sizes = [7, 64], strides = [1, 1]} : vector<9x64xf32> to vector<7x64xf32>
      %315 = arith.truncf %314 : vector<7x64xf32> to vector<7x64xbf16>
      %c5_158 = arith.constant 5 : index
      %c0_159 = arith.constant 0 : index
      %c0_160 = arith.constant 0 : index
      %316 = vector.load %arg10[%c5_158, %c0_159, %c0_160] : memref<9x64x64xbf16, #tpu.memory_space<vmem>>, vector<1x64x64xbf16>
      %317 = vector.shape_cast %316 : vector<1x64x64xbf16> to vector<64x64xbf16>
      %cst_161 = arith.constant dense<0.000000e+00> : vector<7x64xf32>
      %318 = tpu.matmul %315, %317, %cst_161 {dimension_numbers = #tpu.dot_dimension_numbers<[1], [0], [0], [1], [0, 0, 1, 1], [], []>} : vector<7x64xbf16>, vector<64x64xbf16>, vector<7x64xf32> -> vector<7x64xf32>
      %319 = arith.addf %313, %318 : vector<7x64xf32>
      %c2_i32 = arith.constant 2 : i32
      %320 = arith.addi %arg20, %c2_i32 : i32
      %321 = arith.index_cast %320 : i32 to index
      %c0_162 = arith.constant 0 : index
      %c0_163 = arith.constant 0 : index
      %322 = vector.load %arg18[%321, %c0_162, %c0_163] : memref<9x9x64xf32, #tpu.memory_space<vmem>>, vector<1x9x64xf32>
      %323 = vector.shape_cast %322 : vector<1x9x64xf32> to vector<9x64xf32>
      %324 = vector.extract_strided_slice %323 {offsets = [0, 0], sizes = [7, 64], strides = [1, 1]} : vector<9x64xf32> to vector<7x64xf32>
      %325 = arith.truncf %324 : vector<7x64xf32> to vector<7x64xbf16>
      %c6_164 = arith.constant 6 : index
      %c0_165 = arith.constant 0 : index
      %c0_166 = arith.constant 0 : index
      %326 = vector.load %arg10[%c6_164, %c0_165, %c0_166] : memref<9x64x64xbf16, #tpu.memory_space<vmem>>, vector<1x64x64xbf16>
      %327 = vector.shape_cast %326 : vector<1x64x64xbf16> to vector<64x64xbf16>
      %cst_167 = arith.constant dense<0.000000e+00> : vector<7x64xf32>
      %328 = tpu.matmul %325, %327, %cst_167 {dimension_numbers = #tpu.dot_dimension_numbers<[1], [0], [0], [1], [0, 0, 1, 1], [], []>} : vector<7x64xbf16>, vector<64x64xbf16>, vector<7x64xf32> -> vector<7x64xf32>
      %329 = arith.addf %319, %328 : vector<7x64xf32>
      %330 = vector.extract_strided_slice %323 {offsets = [1, 0], sizes = [7, 64], strides = [1, 1]} : vector<9x64xf32> to vector<7x64xf32>
      %331 = arith.truncf %330 : vector<7x64xf32> to vector<7x64xbf16>
      %c7 = arith.constant 7 : index
      %c0_168 = arith.constant 0 : index
      %c0_169 = arith.constant 0 : index
      %332 = vector.load %arg10[%c7, %c0_168, %c0_169] : memref<9x64x64xbf16, #tpu.memory_space<vmem>>, vector<1x64x64xbf16>
      %333 = vector.shape_cast %332 : vector<1x64x64xbf16> to vector<64x64xbf16>
      %cst_170 = arith.constant dense<0.000000e+00> : vector<7x64xf32>
      %334 = tpu.matmul %331, %333, %cst_170 {dimension_numbers = #tpu.dot_dimension_numbers<[1], [0], [0], [1], [0, 0, 1, 1], [], []>} : vector<7x64xbf16>, vector<64x64xbf16>, vector<7x64xf32> -> vector<7x64xf32>
      %335 = arith.addf %329, %334 : vector<7x64xf32>
      %336 = vector.extract_strided_slice %323 {offsets = [2, 0], sizes = [7, 64], strides = [1, 1]} : vector<9x64xf32> to vector<7x64xf32>
      %337 = arith.truncf %336 : vector<7x64xf32> to vector<7x64xbf16>
      %c8 = arith.constant 8 : index
      %c0_171 = arith.constant 0 : index
      %c0_172 = arith.constant 0 : index
      %338 = vector.load %arg10[%c8, %c0_171, %c0_172] : memref<9x64x64xbf16, #tpu.memory_space<vmem>>, vector<1x64x64xbf16>
      %339 = vector.shape_cast %338 : vector<1x64x64xbf16> to vector<64x64xbf16>
      %cst_173 = arith.constant dense<0.000000e+00> : vector<7x64xf32>
      %340 = tpu.matmul %337, %339, %cst_173 {dimension_numbers = #tpu.dot_dimension_numbers<[1], [0], [0], [1], [0, 0, 1, 1], [], []>} : vector<7x64xbf16>, vector<64x64xbf16>, vector<7x64xf32> -> vector<7x64xf32>
      %341 = arith.addf %335, %340 : vector<7x64xf32>
      %c0_174 = arith.constant 0 : index
      %c0_175 = arith.constant 0 : index
      %342 = vector.load %arg11[%c0_174, %c0_175] : memref<1x64xf32, #tpu.memory_space<vmem>>, vector<1x64xf32>
      %343 = vector.broadcast %342 : vector<1x64xf32> to vector<7x64xf32>
      %344 = arith.addf %341, %343 : vector<7x64xf32>
      %cst_176 = arith.constant 0.000000e+00 : f32
      %345 = vector.broadcast %cst_176 : f32 to vector<7x64xf32>
      %346 = arith.maximumf %344, %345 : vector<7x64xf32>
      %347 = arith.index_cast %arg20 : i32 to index
      %c0_177 = arith.constant 0 : index
      %c0_178 = arith.constant 0 : index
      %348 = vector.load %arg19[%347, %c0_177, %c0_178] : memref<7x7x64xf32, #tpu.memory_space<vmem>>, vector<1x7x64xf32>
      %349 = vector.shape_cast %348 : vector<1x7x64xf32> to vector<7x64xf32>
      %350 = vector.shape_cast %346 : vector<7x64xf32> to vector<1x7x64xf32>
      tpu.vector_store %arg19[%347, %c0_177, %c0_178], %350 {strides = array<i32>} : memref<7x7x64xf32, #tpu.memory_space<vmem>>, vector<1x7x64xf32>,
    }
    %c7_i32_6 = arith.constant 7 : i32
    %cst = arith.constant 0.000000e+00 : f32
    %3 = vector.broadcast %cst : f32 to vector<1x512xf32>
    %cst_7 = arith.constant 0.000000e+00 : f32
    %4 = vector.broadcast %cst_7 : f32 to vector<1x512xf32>
    %c0 = arith.constant 0 : index
    %c0_8 = arith.constant 0 : index
    %c0_9 = arith.constant 0 : index
    %5 = vector.load %arg19[%c0, %c0_8, %c0_9] : memref<7x7x64xf32, #tpu.memory_space<vmem>>, vector<1x7x64xf32>
    %6 = vector.shape_cast %5 : vector<1x7x64xf32> to vector<7x64xf32>
    %7 = vector.extract_strided_slice %6 {offsets = [0, 0], sizes = [1, 64], strides = [1, 1]} : vector<7x64xf32> to vector<1x64xf32>
    %8 = arith.truncf %7 : vector<1x64xf32> to vector<1x64xbf16>
    %c0_10 = arith.constant 0 : index
    %c0_11 = arith.constant 0 : index
    %9 = vector.load %arg12[%c0_10, %c0_11] : memref<3136x512xbf16, #tpu.memory_space<vmem>>, vector<64x512xbf16>
    %cst_12 = arith.constant dense<0.000000e+00> : vector<1x512xf32>
    %10 = tpu.matmul %8, %9, %cst_12 {dimension_numbers = #tpu.dot_dimension_numbers<[1], [0], [0], [1], [0, 0, 1, 1], [], []>} : vector<1x64xbf16>, vector<64x512xbf16>, vector<1x512xf32> -> vector<1x512xf32>
    %11 = arith.addf %3, %10 : vector<1x512xf32>
    %12 = vector.extract_strided_slice %6 {offsets = [1, 0], sizes = [1, 64], strides = [1, 1]} : vector<7x64xf32> to vector<1x64xf32>
    %13 = arith.truncf %12 : vector<1x64xf32> to vector<1x64xbf16>
    %c64 = arith.constant 64 : index
    %c0_13 = arith.constant 0 : index
    %14 = vector.load %arg12[%c64, %c0_13] : memref<3136x512xbf16, #tpu.memory_space<vmem>>, vector<64x512xbf16>
    %cst_14 = arith.constant dense<0.000000e+00> : vector<1x512xf32>
    %15 = tpu.matmul %13, %14, %cst_14 {dimension_numbers = #tpu.dot_dimension_numbers<[1], [0], [0], [1], [0, 0, 1, 1], [], []>} : vector<1x64xbf16>, vector<64x512xbf16>, vector<1x512xf32> -> vector<1x512xf32>
    %16 = arith.addf %4, %15 : vector<1x512xf32>
    %17 = vector.extract_strided_slice %6 {offsets = [2, 0], sizes = [1, 64], strides = [1, 1]} : vector<7x64xf32> to vector<1x64xf32>
    %18 = arith.truncf %17 : vector<1x64xf32> to vector<1x64xbf16>
    %c128 = arith.constant 128 : index
    %c0_15 = arith.constant 0 : index
    %19 = vector.load %arg12[%c128, %c0_15] : memref<3136x512xbf16, #tpu.memory_space<vmem>>, vector<64x512xbf16>
    %cst_16 = arith.constant dense<0.000000e+00> : vector<1x512xf32>
    %20 = tpu.matmul %18, %19, %cst_16 {dimension_numbers = #tpu.dot_dimension_numbers<[1], [0], [0], [1], [0, 0, 1, 1], [], []>} : vector<1x64xbf16>, vector<64x512xbf16>, vector<1x512xf32> -> vector<1x512xf32>
    %21 = arith.addf %11, %20 : vector<1x512xf32>
    %22 = vector.extract_strided_slice %6 {offsets = [3, 0], sizes = [1, 64], strides = [1, 1]} : vector<7x64xf32> to vector<1x64xf32>
    %23 = arith.truncf %22 : vector<1x64xf32> to vector<1x64xbf16>
    %c192 = arith.constant 192 : index
    %c0_17 = arith.constant 0 : index
    %24 = vector.load %arg12[%c192, %c0_17] : memref<3136x512xbf16, #tpu.memory_space<vmem>>, vector<64x512xbf16>
    %cst_18 = arith.constant dense<0.000000e+00> : vector<1x512xf32>
    %25 = tpu.matmul %23, %24, %cst_18 {dimension_numbers = #tpu.dot_dimension_numbers<[1], [0], [0], [1], [0, 0, 1, 1], [], []>} : vector<1x64xbf16>, vector<64x512xbf16>, vector<1x512xf32> -> vector<1x512xf32>
    %26 = arith.addf %16, %25 : vector<1x512xf32>
    %27 = vector.extract_strided_slice %6 {offsets = [4, 0], sizes = [1, 64], strides = [1, 1]} : vector<7x64xf32> to vector<1x64xf32>
    %28 = arith.truncf %27 : vector<1x64xf32> to vector<1x64xbf16>
    %c256 = arith.constant 256 : index
    %c0_19 = arith.constant 0 : index
    %29 = vector.load %arg12[%c256, %c0_19] : memref<3136x512xbf16, #tpu.memory_space<vmem>>, vector<64x512xbf16>
    %cst_20 = arith.constant dense<0.000000e+00> : vector<1x512xf32>
    %30 = tpu.matmul %28, %29, %cst_20 {dimension_numbers = #tpu.dot_dimension_numbers<[1], [0], [0], [1], [0, 0, 1, 1], [], []>} : vector<1x64xbf16>, vector<64x512xbf16>, vector<1x512xf32> -> vector<1x512xf32>
    %31 = arith.addf %21, %30 : vector<1x512xf32>
    %32 = vector.extract_strided_slice %6 {offsets = [5, 0], sizes = [1, 64], strides = [1, 1]} : vector<7x64xf32> to vector<1x64xf32>
    %33 = arith.truncf %32 : vector<1x64xf32> to vector<1x64xbf16>
    %c320 = arith.constant 320 : index
    %c0_21 = arith.constant 0 : index
    %34 = vector.load %arg12[%c320, %c0_21] : memref<3136x512xbf16, #tpu.memory_space<vmem>>, vector<64x512xbf16>
    %cst_22 = arith.constant dense<0.000000e+00> : vector<1x512xf32>
    %35 = tpu.matmul %33, %34, %cst_22 {dimension_numbers = #tpu.dot_dimension_numbers<[1], [0], [0], [1], [0, 0, 1, 1], [], []>} : vector<1x64xbf16>, vector<64x512xbf16>, vector<1x512xf32> -> vector<1x512xf32>
    %36 = arith.addf %26, %35 : vector<1x512xf32>
    %37 = vector.extract_strided_slice %6 {offsets = [6, 0], sizes = [1, 64], strides = [1, 1]} : vector<7x64xf32> to vector<1x64xf32>
    %38 = arith.truncf %37 : vector<1x64xf32> to vector<1x64xbf16>
    %c384 = arith.constant 384 : index
    %c0_23 = arith.constant 0 : index
    %39 = vector.load %arg12[%c384, %c0_23] : memref<3136x512xbf16, #tpu.memory_space<vmem>>, vector<64x512xbf16>
    %cst_24 = arith.constant dense<0.000000e+00> : vector<1x512xf32>
    %40 = tpu.matmul %38, %39, %cst_24 {dimension_numbers = #tpu.dot_dimension_numbers<[1], [0], [0], [1], [0, 0, 1, 1], [], []>} : vector<1x64xbf16>, vector<64x512xbf16>, vector<1x512xf32> -> vector<1x512xf32>
    %41 = arith.addf %31, %40 : vector<1x512xf32>
    %c1 = arith.constant 1 : index
    %c0_25 = arith.constant 0 : index
    %c0_26 = arith.constant 0 : index
    %42 = vector.load %arg19[%c1, %c0_25, %c0_26] : memref<7x7x64xf32, #tpu.memory_space<vmem>>, vector<1x7x64xf32>
    %43 = vector.shape_cast %42 : vector<1x7x64xf32> to vector<7x64xf32>
    %44 = vector.extract_strided_slice %43 {offsets = [0, 0], sizes = [1, 64], strides = [1, 1]} : vector<7x64xf32> to vector<1x64xf32>
    %45 = arith.truncf %44 : vector<1x64xf32> to vector<1x64xbf16>
    %c448 = arith.constant 448 : index
    %c0_27 = arith.constant 0 : index
    %46 = vector.load %arg12[%c448, %c0_27] : memref<3136x512xbf16, #tpu.memory_space<vmem>>, vector<64x512xbf16>
    %cst_28 = arith.constant dense<0.000000e+00> : vector<1x512xf32>
    %47 = tpu.matmul %45, %46, %cst_28 {dimension_numbers = #tpu.dot_dimension_numbers<[1], [0], [0], [1], [0, 0, 1, 1], [], []>} : vector<1x64xbf16>, vector<64x512xbf16>, vector<1x512xf32> -> vector<1x512xf32>
    %48 = arith.addf %36, %47 : vector<1x512xf32>
    %49 = vector.extract_strided_slice %43 {offsets = [1, 0], sizes = [1, 64], strides = [1, 1]} : vector<7x64xf32> to vector<1x64xf32>
    %50 = arith.truncf %49 : vector<1x64xf32> to vector<1x64xbf16>
    %c512 = arith.constant 512 : index
    %c0_29 = arith.constant 0 : index
    %51 = vector.load %arg12[%c512, %c0_29] : memref<3136x512xbf16, #tpu.memory_space<vmem>>, vector<64x512xbf16>
    %cst_30 = arith.constant dense<0.000000e+00> : vector<1x512xf32>
    %52 = tpu.matmul %50, %51, %cst_30 {dimension_numbers = #tpu.dot_dimension_numbers<[1], [0], [0], [1], [0, 0, 1, 1], [], []>} : vector<1x64xbf16>, vector<64x512xbf16>, vector<1x512xf32> -> vector<1x512xf32>
    %53 = arith.addf %41, %52 : vector<1x512xf32>
    %54 = vector.extract_strided_slice %43 {offsets = [2, 0], sizes = [1, 64], strides = [1, 1]} : vector<7x64xf32> to vector<1x64xf32>
    %55 = arith.truncf %54 : vector<1x64xf32> to vector<1x64xbf16>
    %c576 = arith.constant 576 : index
    %c0_31 = arith.constant 0 : index
    %56 = vector.load %arg12[%c576, %c0_31] : memref<3136x512xbf16, #tpu.memory_space<vmem>>, vector<64x512xbf16>
    %cst_32 = arith.constant dense<0.000000e+00> : vector<1x512xf32>
    %57 = tpu.matmul %55, %56, %cst_32 {dimension_numbers = #tpu.dot_dimension_numbers<[1], [0], [0], [1], [0, 0, 1, 1], [], []>} : vector<1x64xbf16>, vector<64x512xbf16>, vector<1x512xf32> -> vector<1x512xf32>
    %58 = arith.addf %48, %57 : vector<1x512xf32>
    %59 = vector.extract_strided_slice %43 {offsets = [3, 0], sizes = [1, 64], strides = [1, 1]} : vector<7x64xf32> to vector<1x64xf32>
    %60 = arith.truncf %59 : vector<1x64xf32> to vector<1x64xbf16>
    %c640 = arith.constant 640 : index
    %c0_33 = arith.constant 0 : index
    %61 = vector.load %arg12[%c640, %c0_33] : memref<3136x512xbf16, #tpu.memory_space<vmem>>, vector<64x512xbf16>
    %cst_34 = arith.constant dense<0.000000e+00> : vector<1x512xf32>
    %62 = tpu.matmul %60, %61, %cst_34 {dimension_numbers = #tpu.dot_dimension_numbers<[1], [0], [0], [1], [0, 0, 1, 1], [], []>} : vector<1x64xbf16>, vector<64x512xbf16>, vector<1x512xf32> -> vector<1x512xf32>
    %63 = arith.addf %53, %62 : vector<1x512xf32>
    %64 = vector.extract_strided_slice %43 {offsets = [4, 0], sizes = [1, 64], strides = [1, 1]} : vector<7x64xf32> to vector<1x64xf32>
    %65 = arith.truncf %64 : vector<1x64xf32> to vector<1x64xbf16>
    %c704 = arith.constant 704 : index
    %c0_35 = arith.constant 0 : index
    %66 = vector.load %arg12[%c704, %c0_35] : memref<3136x512xbf16, #tpu.memory_space<vmem>>, vector<64x512xbf16>
    %cst_36 = arith.constant dense<0.000000e+00> : vector<1x512xf32>
    %67 = tpu.matmul %65, %66, %cst_36 {dimension_numbers = #tpu.dot_dimension_numbers<[1], [0], [0], [1], [0, 0, 1, 1], [], []>} : vector<1x64xbf16>, vector<64x512xbf16>, vector<1x512xf32> -> vector<1x512xf32>
    %68 = arith.addf %58, %67 : vector<1x512xf32>
    %69 = vector.extract_strided_slice %43 {offsets = [5, 0], sizes = [1, 64], strides = [1, 1]} : vector<7x64xf32> to vector<1x64xf32>
    %70 = arith.truncf %69 : vector<1x64xf32> to vector<1x64xbf16>
    %c768 = arith.constant 768 : index
    %c0_37 = arith.constant 0 : index
    %71 = vector.load %arg12[%c768, %c0_37] : memref<3136x512xbf16, #tpu.memory_space<vmem>>, vector<64x512xbf16>
    %cst_38 = arith.constant dense<0.000000e+00> : vector<1x512xf32>
    %72 = tpu.matmul %70, %71, %cst_38 {dimension_numbers = #tpu.dot_dimension_numbers<[1], [0], [0], [1], [0, 0, 1, 1], [], []>} : vector<1x64xbf16>, vector<64x512xbf16>, vector<1x512xf32> -> vector<1x512xf32>
    %73 = arith.addf %63, %72 : vector<1x512xf32>
    %74 = vector.extract_strided_slice %43 {offsets = [6, 0], sizes = [1, 64], strides = [1, 1]} : vector<7x64xf32> to vector<1x64xf32>
    %75 = arith.truncf %74 : vector<1x64xf32> to vector<1x64xbf16>
    %c832 = arith.constant 832 : index
    %c0_39 = arith.constant 0 : index
    %76 = vector.load %arg12[%c832, %c0_39] : memref<3136x512xbf16, #tpu.memory_space<vmem>>, vector<64x512xbf16>
    %cst_40 = arith.constant dense<0.000000e+00> : vector<1x512xf32>
    %77 = tpu.matmul %75, %76, %cst_40 {dimension_numbers = #tpu.dot_dimension_numbers<[1], [0], [0], [1], [0, 0, 1, 1], [], []>} : vector<1x64xbf16>, vector<64x512xbf16>, vector<1x512xf32> -> vector<1x512xf32>
    %78 = arith.addf %68, %77 : vector<1x512xf32>
    %c2 = arith.constant 2 : index
    %c0_41 = arith.constant 0 : index
    %c0_42 = arith.constant 0 : index
    %79 = vector.load %arg19[%c2, %c0_41, %c0_42] : memref<7x7x64xf32, #tpu.memory_space<vmem>>, vector<1x7x64xf32>
    %80 = vector.shape_cast %79 : vector<1x7x64xf32> to vector<7x64xf32>
    %81 = vector.extract_strided_slice %80 {offsets = [0, 0], sizes = [1, 64], strides = [1, 1]} : vector<7x64xf32> to vector<1x64xf32>
    %82 = arith.truncf %81 : vector<1x64xf32> to vector<1x64xbf16>
    %c896 = arith.constant 896 : index
    %c0_43 = arith.constant 0 : index
    %83 = vector.load %arg12[%c896, %c0_43] : memref<3136x512xbf16, #tpu.memory_space<vmem>>, vector<64x512xbf16>
    %cst_44 = arith.constant dense<0.000000e+00> : vector<1x512xf32>
    %84 = tpu.matmul %82, %83, %cst_44 {dimension_numbers = #tpu.dot_dimension_numbers<[1], [0], [0], [1], [0, 0, 1, 1], [], []>} : vector<1x64xbf16>, vector<64x512xbf16>, vector<1x512xf32> -> vector<1x512xf32>
    %85 = arith.addf %73, %84 : vector<1x512xf32>
    %86 = vector.extract_strided_slice %80 {offsets = [1, 0], sizes = [1, 64], strides = [1, 1]} : vector<7x64xf32> to vector<1x64xf32>
    %87 = arith.truncf %86 : vector<1x64xf32> to vector<1x64xbf16>
    %c960 = arith.constant 960 : index
    %c0_45 = arith.constant 0 : index
    %88 = vector.load %arg12[%c960, %c0_45] : memref<3136x512xbf16, #tpu.memory_space<vmem>>, vector<64x512xbf16>
    %cst_46 = arith.constant dense<0.000000e+00> : vector<1x512xf32>
    %89 = tpu.matmul %87, %88, %cst_46 {dimension_numbers = #tpu.dot_dimension_numbers<[1], [0], [0], [1], [0, 0, 1, 1], [], []>} : vector<1x64xbf16>, vector<64x512xbf16>, vector<1x512xf32> -> vector<1x512xf32>
    %90 = arith.addf %78, %89 : vector<1x512xf32>
    %91 = vector.extract_strided_slice %80 {offsets = [2, 0], sizes = [1, 64], strides = [1, 1]} : vector<7x64xf32> to vector<1x64xf32>
    %92 = arith.truncf %91 : vector<1x64xf32> to vector<1x64xbf16>
    %c1024 = arith.constant 1024 : index
    %c0_47 = arith.constant 0 : index
    %93 = vector.load %arg12[%c1024, %c0_47] : memref<3136x512xbf16, #tpu.memory_space<vmem>>, vector<64x512xbf16>
    %cst_48 = arith.constant dense<0.000000e+00> : vector<1x512xf32>
    %94 = tpu.matmul %92, %93, %cst_48 {dimension_numbers = #tpu.dot_dimension_numbers<[1], [0], [0], [1], [0, 0, 1, 1], [], []>} : vector<1x64xbf16>, vector<64x512xbf16>, vector<1x512xf32> -> vector<1x512xf32>
    %95 = arith.addf %85, %94 : vector<1x512xf32>
    %96 = vector.extract_strided_slice %80 {offsets = [3, 0], sizes = [1, 64], strides = [1, 1]} : vector<7x64xf32> to vector<1x64xf32>
    %97 = arith.truncf %96 : vector<1x64xf32> to vector<1x64xbf16>
    %c1088 = arith.constant 1088 : index
    %c0_49 = arith.constant 0 : index
    %98 = vector.load %arg12[%c1088, %c0_49] : memref<3136x512xbf16, #tpu.memory_space<vmem>>, vector<64x512xbf16>
    %cst_50 = arith.constant dense<0.000000e+00> : vector<1x512xf32>
    %99 = tpu.matmul %97, %98, %cst_50 {dimension_numbers = #tpu.dot_dimension_numbers<[1], [0], [0], [1], [0, 0, 1, 1], [], []>} : vector<1x64xbf16>, vector<64x512xbf16>, vector<1x512xf32> -> vector<1x512xf32>
    %100 = arith.addf %90, %99 : vector<1x512xf32>
    %101 = vector.extract_strided_slice %80 {offsets = [4, 0], sizes = [1, 64], strides = [1, 1]} : vector<7x64xf32> to vector<1x64xf32>
    %102 = arith.truncf %101 : vector<1x64xf32> to vector<1x64xbf16>
    %c1152 = arith.constant 1152 : index
    %c0_51 = arith.constant 0 : index
    %103 = vector.load %arg12[%c1152, %c0_51] : memref<3136x512xbf16, #tpu.memory_space<vmem>>, vector<64x512xbf16>
    %cst_52 = arith.constant dense<0.000000e+00> : vector<1x512xf32>
    %104 = tpu.matmul %102, %103, %cst_52 {dimension_numbers = #tpu.dot_dimension_numbers<[1], [0], [0], [1], [0, 0, 1, 1], [], []>} : vector<1x64xbf16>, vector<64x512xbf16>, vector<1x512xf32> -> vector<1x512xf32>
    %105 = arith.addf %95, %104 : vector<1x512xf32>
    %106 = vector.extract_strided_slice %80 {offsets = [5, 0], sizes = [1, 64], strides = [1, 1]} : vector<7x64xf32> to vector<1x64xf32>
    %107 = arith.truncf %106 : vector<1x64xf32> to vector<1x64xbf16>
    %c1216 = arith.constant 1216 : index
    %c0_53 = arith.constant 0 : index
    %108 = vector.load %arg12[%c1216, %c0_53] : memref<3136x512xbf16, #tpu.memory_space<vmem>>, vector<64x512xbf16>
    %cst_54 = arith.constant dense<0.000000e+00> : vector<1x512xf32>
    %109 = tpu.matmul %107, %108, %cst_54 {dimension_numbers = #tpu.dot_dimension_numbers<[1], [0], [0], [1], [0, 0, 1, 1], [], []>} : vector<1x64xbf16>, vector<64x512xbf16>, vector<1x512xf32> -> vector<1x512xf32>
    %110 = arith.addf %100, %109 : vector<1x512xf32>
    %111 = vector.extract_strided_slice %80 {offsets = [6, 0], sizes = [1, 64], strides = [1, 1]} : vector<7x64xf32> to vector<1x64xf32>
    %112 = arith.truncf %111 : vector<1x64xf32> to vector<1x64xbf16>
    %c1280 = arith.constant 1280 : index
    %c0_55 = arith.constant 0 : index
    %113 = vector.load %arg12[%c1280, %c0_55] : memref<3136x512xbf16, #tpu.memory_space<vmem>>, vector<64x512xbf16>
    %cst_56 = arith.constant dense<0.000000e+00> : vector<1x512xf32>
    %114 = tpu.matmul %112, %113, %cst_56 {dimension_numbers = #tpu.dot_dimension_numbers<[1], [0], [0], [1], [0, 0, 1, 1], [], []>} : vector<1x64xbf16>, vector<64x512xbf16>, vector<1x512xf32> -> vector<1x512xf32>
    %115 = arith.addf %105, %114 : vector<1x512xf32>
    %c3 = arith.constant 3 : index
    %c0_57 = arith.constant 0 : index
    %c0_58 = arith.constant 0 : index
    %116 = vector.load %arg19[%c3, %c0_57, %c0_58] : memref<7x7x64xf32, #tpu.memory_space<vmem>>, vector<1x7x64xf32>
    %117 = vector.shape_cast %116 : vector<1x7x64xf32> to vector<7x64xf32>
    %118 = vector.extract_strided_slice %117 {offsets = [0, 0], sizes = [1, 64], strides = [1, 1]} : vector<7x64xf32> to vector<1x64xf32>
    %119 = arith.truncf %118 : vector<1x64xf32> to vector<1x64xbf16>
    %c1344 = arith.constant 1344 : index
    %c0_59 = arith.constant 0 : index
    %120 = vector.load %arg12[%c1344, %c0_59] : memref<3136x512xbf16, #tpu.memory_space<vmem>>, vector<64x512xbf16>
    %cst_60 = arith.constant dense<0.000000e+00> : vector<1x512xf32>
    %121 = tpu.matmul %119, %120, %cst_60 {dimension_numbers = #tpu.dot_dimension_numbers<[1], [0], [0], [1], [0, 0, 1, 1], [], []>} : vector<1x64xbf16>, vector<64x512xbf16>, vector<1x512xf32> -> vector<1x512xf32>
    %122 = arith.addf %110, %121 : vector<1x512xf32>
    %123 = vector.extract_strided_slice %117 {offsets = [1, 0], sizes = [1, 64], strides = [1, 1]} : vector<7x64xf32> to vector<1x64xf32>
    %124 = arith.truncf %123 : vector<1x64xf32> to vector<1x64xbf16>
    %c1408 = arith.constant 1408 : index
    %c0_61 = arith.constant 0 : index
    %125 = vector.load %arg12[%c1408, %c0_61] : memref<3136x512xbf16, #tpu.memory_space<vmem>>, vector<64x512xbf16>
    %cst_62 = arith.constant dense<0.000000e+00> : vector<1x512xf32>
    %126 = tpu.matmul %124, %125, %cst_62 {dimension_numbers = #tpu.dot_dimension_numbers<[1], [0], [0], [1], [0, 0, 1, 1], [], []>} : vector<1x64xbf16>, vector<64x512xbf16>, vector<1x512xf32> -> vector<1x512xf32>
    %127 = arith.addf %115, %126 : vector<1x512xf32>
    %128 = vector.extract_strided_slice %117 {offsets = [2, 0], sizes = [1, 64], strides = [1, 1]} : vector<7x64xf32> to vector<1x64xf32>
    %129 = arith.truncf %128 : vector<1x64xf32> to vector<1x64xbf16>
    %c1472 = arith.constant 1472 : index
    %c0_63 = arith.constant 0 : index
    %130 = vector.load %arg12[%c1472, %c0_63] : memref<3136x512xbf16, #tpu.memory_space<vmem>>, vector<64x512xbf16>
    %cst_64 = arith.constant dense<0.000000e+00> : vector<1x512xf32>
    %131 = tpu.matmul %129, %130, %cst_64 {dimension_numbers = #tpu.dot_dimension_numbers<[1], [0], [0], [1], [0, 0, 1, 1], [], []>} : vector<1x64xbf16>, vector<64x512xbf16>, vector<1x512xf32> -> vector<1x512xf32>
    %132 = arith.addf %122, %131 : vector<1x512xf32>
    %133 = vector.extract_strided_slice %117 {offsets = [3, 0], sizes = [1, 64], strides = [1, 1]} : vector<7x64xf32> to vector<1x64xf32>
    %134 = arith.truncf %133 : vector<1x64xf32> to vector<1x64xbf16>
    %c1536 = arith.constant 1536 : index
    %c0_65 = arith.constant 0 : index
    %135 = vector.load %arg12[%c1536, %c0_65] : memref<3136x512xbf16, #tpu.memory_space<vmem>>, vector<64x512xbf16>
    %cst_66 = arith.constant dense<0.000000e+00> : vector<1x512xf32>
    %136 = tpu.matmul %134, %135, %cst_66 {dimension_numbers = #tpu.dot_dimension_numbers<[1], [0], [0], [1], [0, 0, 1, 1], [], []>} : vector<1x64xbf16>, vector<64x512xbf16>, vector<1x512xf32> -> vector<1x512xf32>
    %137 = arith.addf %127, %136 : vector<1x512xf32>
    %138 = vector.extract_strided_slice %117 {offsets = [4, 0], sizes = [1, 64], strides = [1, 1]} : vector<7x64xf32> to vector<1x64xf32>
    %139 = arith.truncf %138 : vector<1x64xf32> to vector<1x64xbf16>
    %c1600 = arith.constant 1600 : index
    %c0_67 = arith.constant 0 : index
    %140 = vector.load %arg12[%c1600, %c0_67] : memref<3136x512xbf16, #tpu.memory_space<vmem>>, vector<64x512xbf16>
    %cst_68 = arith.constant dense<0.000000e+00> : vector<1x512xf32>
    %141 = tpu.matmul %139, %140, %cst_68 {dimension_numbers = #tpu.dot_dimension_numbers<[1], [0], [0], [1], [0, 0, 1, 1], [], []>} : vector<1x64xbf16>, vector<64x512xbf16>, vector<1x512xf32> -> vector<1x512xf32>
    %142 = arith.addf %132, %141 : vector<1x512xf32>
    %143 = vector.extract_strided_slice %117 {offsets = [5, 0], sizes = [1, 64], strides = [1, 1]} : vector<7x64xf32> to vector<1x64xf32>
    %144 = arith.truncf %143 : vector<1x64xf32> to vector<1x64xbf16>
    %c1664 = arith.constant 1664 : index
    %c0_69 = arith.constant 0 : index
    %145 = vector.load %arg12[%c1664, %c0_69] : memref<3136x512xbf16, #tpu.memory_space<vmem>>, vector<64x512xbf16>
    %cst_70 = arith.constant dense<0.000000e+00> : vector<1x512xf32>
    %146 = tpu.matmul %144, %145, %cst_70 {dimension_numbers = #tpu.dot_dimension_numbers<[1], [0], [0], [1], [0, 0, 1, 1], [], []>} : vector<1x64xbf16>, vector<64x512xbf16>, vector<1x512xf32> -> vector<1x512xf32>
    %147 = arith.addf %137, %146 : vector<1x512xf32>
    %148 = vector.extract_strided_slice %117 {offsets = [6, 0], sizes = [1, 64], strides = [1, 1]} : vector<7x64xf32> to vector<1x64xf32>
    %149 = arith.truncf %148 : vector<1x64xf32> to vector<1x64xbf16>
    %c1728 = arith.constant 1728 : index
    %c0_71 = arith.constant 0 : index
    %150 = vector.load %arg12[%c1728, %c0_71] : memref<3136x512xbf16, #tpu.memory_space<vmem>>, vector<64x512xbf16>
    %cst_72 = arith.constant dense<0.000000e+00> : vector<1x512xf32>
    %151 = tpu.matmul %149, %150, %cst_72 {dimension_numbers = #tpu.dot_dimension_numbers<[1], [0], [0], [1], [0, 0, 1, 1], [], []>} : vector<1x64xbf16>, vector<64x512xbf16>, vector<1x512xf32> -> vector<1x512xf32>
    %152 = arith.addf %142, %151 : vector<1x512xf32>
    %c4 = arith.constant 4 : index
    %c0_73 = arith.constant 0 : index
    %c0_74 = arith.constant 0 : index
    %153 = vector.load %arg19[%c4, %c0_73, %c0_74] : memref<7x7x64xf32, #tpu.memory_space<vmem>>, vector<1x7x64xf32>
    %154 = vector.shape_cast %153 : vector<1x7x64xf32> to vector<7x64xf32>
    %155 = vector.extract_strided_slice %154 {offsets = [0, 0], sizes = [1, 64], strides = [1, 1]} : vector<7x64xf32> to vector<1x64xf32>
    %156 = arith.truncf %155 : vector<1x64xf32> to vector<1x64xbf16>
    %c1792 = arith.constant 1792 : index
    %c0_75 = arith.constant 0 : index
    %157 = vector.load %arg12[%c1792, %c0_75] : memref<3136x512xbf16, #tpu.memory_space<vmem>>, vector<64x512xbf16>
    %cst_76 = arith.constant dense<0.000000e+00> : vector<1x512xf32>
    %158 = tpu.matmul %156, %157, %cst_76 {dimension_numbers = #tpu.dot_dimension_numbers<[1], [0], [0], [1], [0, 0, 1, 1], [], []>} : vector<1x64xbf16>, vector<64x512xbf16>, vector<1x512xf32> -> vector<1x512xf32>
    %159 = arith.addf %147, %158 : vector<1x512xf32>
    %160 = vector.extract_strided_slice %154 {offsets = [1, 0], sizes = [1, 64], strides = [1, 1]} : vector<7x64xf32> to vector<1x64xf32>
    %161 = arith.truncf %160 : vector<1x64xf32> to vector<1x64xbf16>
    %c1856 = arith.constant 1856 : index
    %c0_77 = arith.constant 0 : index
    %162 = vector.load %arg12[%c1856, %c0_77] : memref<3136x512xbf16, #tpu.memory_space<vmem>>, vector<64x512xbf16>
    %cst_78 = arith.constant dense<0.000000e+00> : vector<1x512xf32>
    %163 = tpu.matmul %161, %162, %cst_78 {dimension_numbers = #tpu.dot_dimension_numbers<[1], [0], [0], [1], [0, 0, 1, 1], [], []>} : vector<1x64xbf16>, vector<64x512xbf16>, vector<1x512xf32> -> vector<1x512xf32>
    %164 = arith.addf %152, %163 : vector<1x512xf32>
    %165 = vector.extract_strided_slice %154 {offsets = [2, 0], sizes = [1, 64], strides = [1, 1]} : vector<7x64xf32> to vector<1x64xf32>
    %166 = arith.truncf %165 : vector<1x64xf32> to vector<1x64xbf16>
    %c1920 = arith.constant 1920 : index
    %c0_79 = arith.constant 0 : index
    %167 = vector.load %arg12[%c1920, %c0_79] : memref<3136x512xbf16, #tpu.memory_space<vmem>>, vector<64x512xbf16>
    %cst_80 = arith.constant dense<0.000000e+00> : vector<1x512xf32>
    %168 = tpu.matmul %166, %167, %cst_80 {dimension_numbers = #tpu.dot_dimension_numbers<[1], [0], [0], [1], [0, 0, 1, 1], [], []>} : vector<1x64xbf16>, vector<64x512xbf16>, vector<1x512xf32> -> vector<1x512xf32>
    %169 = arith.addf %159, %168 : vector<1x512xf32>
    %170 = vector.extract_strided_slice %154 {offsets = [3, 0], sizes = [1, 64], strides = [1, 1]} : vector<7x64xf32> to vector<1x64xf32>
    %171 = arith.truncf %170 : vector<1x64xf32> to vector<1x64xbf16>
    %c1984 = arith.constant 1984 : index
    %c0_81 = arith.constant 0 : index
    %172 = vector.load %arg12[%c1984, %c0_81] : memref<3136x512xbf16, #tpu.memory_space<vmem>>, vector<64x512xbf16>
    %cst_82 = arith.constant dense<0.000000e+00> : vector<1x512xf32>
    %173 = tpu.matmul %171, %172, %cst_82 {dimension_numbers = #tpu.dot_dimension_numbers<[1], [0], [0], [1], [0, 0, 1, 1], [], []>} : vector<1x64xbf16>, vector<64x512xbf16>, vector<1x512xf32> -> vector<1x512xf32>
    %174 = arith.addf %164, %173 : vector<1x512xf32>
    %175 = vector.extract_strided_slice %154 {offsets = [4, 0], sizes = [1, 64], strides = [1, 1]} : vector<7x64xf32> to vector<1x64xf32>
    %176 = arith.truncf %175 : vector<1x64xf32> to vector<1x64xbf16>
    %c2048 = arith.constant 2048 : index
    %c0_83 = arith.constant 0 : index
    %177 = vector.load %arg12[%c2048, %c0_83] : memref<3136x512xbf16, #tpu.memory_space<vmem>>, vector<64x512xbf16>
    %cst_84 = arith.constant dense<0.000000e+00> : vector<1x512xf32>
    %178 = tpu.matmul %176, %177, %cst_84 {dimension_numbers = #tpu.dot_dimension_numbers<[1], [0], [0], [1], [0, 0, 1, 1], [], []>} : vector<1x64xbf16>, vector<64x512xbf16>, vector<1x512xf32> -> vector<1x512xf32>
    %179 = arith.addf %169, %178 : vector<1x512xf32>
    %180 = vector.extract_strided_slice %154 {offsets = [5, 0], sizes = [1, 64], strides = [1, 1]} : vector<7x64xf32> to vector<1x64xf32>
    %181 = arith.truncf %180 : vector<1x64xf32> to vector<1x64xbf16>
    %c2112 = arith.constant 2112 : index
    %c0_85 = arith.constant 0 : index
    %182 = vector.load %arg12[%c2112, %c0_85] : memref<3136x512xbf16, #tpu.memory_space<vmem>>, vector<64x512xbf16>
    %cst_86 = arith.constant dense<0.000000e+00> : vector<1x512xf32>
    %183 = tpu.matmul %181, %182, %cst_86 {dimension_numbers = #tpu.dot_dimension_numbers<[1], [0], [0], [1], [0, 0, 1, 1], [], []>} : vector<1x64xbf16>, vector<64x512xbf16>, vector<1x512xf32> -> vector<1x512xf32>
    %184 = arith.addf %174, %183 : vector<1x512xf32>
    %185 = vector.extract_strided_slice %154 {offsets = [6, 0], sizes = [1, 64], strides = [1, 1]} : vector<7x64xf32> to vector<1x64xf32>
    %186 = arith.truncf %185 : vector<1x64xf32> to vector<1x64xbf16>
    %c2176 = arith.constant 2176 : index
    %c0_87 = arith.constant 0 : index
    %187 = vector.load %arg12[%c2176, %c0_87] : memref<3136x512xbf16, #tpu.memory_space<vmem>>, vector<64x512xbf16>
    %cst_88 = arith.constant dense<0.000000e+00> : vector<1x512xf32>
    %188 = tpu.matmul %186, %187, %cst_88 {dimension_numbers = #tpu.dot_dimension_numbers<[1], [0], [0], [1], [0, 0, 1, 1], [], []>} : vector<1x64xbf16>, vector<64x512xbf16>, vector<1x512xf32> -> vector<1x512xf32>
    %189 = arith.addf %179, %188 : vector<1x512xf32>
    %c5 = arith.constant 5 : index
    %c0_89 = arith.constant 0 : index
    %c0_90 = arith.constant 0 : index
    %190 = vector.load %arg19[%c5, %c0_89, %c0_90] : memref<7x7x64xf32, #tpu.memory_space<vmem>>, vector<1x7x64xf32>
    %191 = vector.shape_cast %190 : vector<1x7x64xf32> to vector<7x64xf32>
    %192 = vector.extract_strided_slice %191 {offsets = [0, 0], sizes = [1, 64], strides = [1, 1]} : vector<7x64xf32> to vector<1x64xf32>
    %193 = arith.truncf %192 : vector<1x64xf32> to vector<1x64xbf16>
    %c2240 = arith.constant 2240 : index
    %c0_91 = arith.constant 0 : index
    %194 = vector.load %arg12[%c2240, %c0_91] : memref<3136x512xbf16, #tpu.memory_space<vmem>>, vector<64x512xbf16>
    %cst_92 = arith.constant dense<0.000000e+00> : vector<1x512xf32>
    %195 = tpu.matmul %193, %194, %cst_92 {dimension_numbers = #tpu.dot_dimension_numbers<[1], [0], [0], [1], [0, 0, 1, 1], [], []>} : vector<1x64xbf16>, vector<64x512xbf16>, vector<1x512xf32> -> vector<1x512xf32>
    %196 = arith.addf %184, %195 : vector<1x512xf32>
    %197 = vector.extract_strided_slice %191 {offsets = [1, 0], sizes = [1, 64], strides = [1, 1]} : vector<7x64xf32> to vector<1x64xf32>
    %198 = arith.truncf %197 : vector<1x64xf32> to vector<1x64xbf16>
    %c2304 = arith.constant 2304 : index
    %c0_93 = arith.constant 0 : index
    %199 = vector.load %arg12[%c2304, %c0_93] : memref<3136x512xbf16, #tpu.memory_space<vmem>>, vector<64x512xbf16>
    %cst_94 = arith.constant dense<0.000000e+00> : vector<1x512xf32>
    %200 = tpu.matmul %198, %199, %cst_94 {dimension_numbers = #tpu.dot_dimension_numbers<[1], [0], [0], [1], [0, 0, 1, 1], [], []>} : vector<1x64xbf16>, vector<64x512xbf16>, vector<1x512xf32> -> vector<1x512xf32>
    %201 = arith.addf %189, %200 : vector<1x512xf32>
    %202 = vector.extract_strided_slice %191 {offsets = [2, 0], sizes = [1, 64], strides = [1, 1]} : vector<7x64xf32> to vector<1x64xf32>
    %203 = arith.truncf %202 : vector<1x64xf32> to vector<1x64xbf16>
    %c2368 = arith.constant 2368 : index
    %c0_95 = arith.constant 0 : index
    %204 = vector.load %arg12[%c2368, %c0_95] : memref<3136x512xbf16, #tpu.memory_space<vmem>>, vector<64x512xbf16>
    %cst_96 = arith.constant dense<0.000000e+00> : vector<1x512xf32>
    %205 = tpu.matmul %203, %204, %cst_96 {dimension_numbers = #tpu.dot_dimension_numbers<[1], [0], [0], [1], [0, 0, 1, 1], [], []>} : vector<1x64xbf16>, vector<64x512xbf16>, vector<1x512xf32> -> vector<1x512xf32>
    %206 = arith.addf %196, %205 : vector<1x512xf32>
    %207 = vector.extract_strided_slice %191 {offsets = [3, 0], sizes = [1, 64], strides = [1, 1]} : vector<7x64xf32> to vector<1x64xf32>
    %208 = arith.truncf %207 : vector<1x64xf32> to vector<1x64xbf16>
    %c2432 = arith.constant 2432 : index
    %c0_97 = arith.constant 0 : index
    %209 = vector.load %arg12[%c2432, %c0_97] : memref<3136x512xbf16, #tpu.memory_space<vmem>>, vector<64x512xbf16>
    %cst_98 = arith.constant dense<0.000000e+00> : vector<1x512xf32>
    %210 = tpu.matmul %208, %209, %cst_98 {dimension_numbers = #tpu.dot_dimension_numbers<[1], [0], [0], [1], [0, 0, 1, 1], [], []>} : vector<1x64xbf16>, vector<64x512xbf16>, vector<1x512xf32> -> vector<1x512xf32>
    %211 = arith.addf %201, %210 : vector<1x512xf32>
    %212 = vector.extract_strided_slice %191 {offsets = [4, 0], sizes = [1, 64], strides = [1, 1]} : vector<7x64xf32> to vector<1x64xf32>
    %213 = arith.truncf %212 : vector<1x64xf32> to vector<1x64xbf16>
    %c2496 = arith.constant 2496 : index
    %c0_99 = arith.constant 0 : index
    %214 = vector.load %arg12[%c2496, %c0_99] : memref<3136x512xbf16, #tpu.memory_space<vmem>>, vector<64x512xbf16>
    %cst_100 = arith.constant dense<0.000000e+00> : vector<1x512xf32>
    %215 = tpu.matmul %213, %214, %cst_100 {dimension_numbers = #tpu.dot_dimension_numbers<[1], [0], [0], [1], [0, 0, 1, 1], [], []>} : vector<1x64xbf16>, vector<64x512xbf16>, vector<1x512xf32> -> vector<1x512xf32>
    %216 = arith.addf %206, %215 : vector<1x512xf32>
    %217 = vector.extract_strided_slice %191 {offsets = [5, 0], sizes = [1, 64], strides = [1, 1]} : vector<7x64xf32> to vector<1x64xf32>
    %218 = arith.truncf %217 : vector<1x64xf32> to vector<1x64xbf16>
    %c2560 = arith.constant 2560 : index
    %c0_101 = arith.constant 0 : index
    %219 = vector.load %arg12[%c2560, %c0_101] : memref<3136x512xbf16, #tpu.memory_space<vmem>>, vector<64x512xbf16>
    %cst_102 = arith.constant dense<0.000000e+00> : vector<1x512xf32>
    %220 = tpu.matmul %218, %219, %cst_102 {dimension_numbers = #tpu.dot_dimension_numbers<[1], [0], [0], [1], [0, 0, 1, 1], [], []>} : vector<1x64xbf16>, vector<64x512xbf16>, vector<1x512xf32> -> vector<1x512xf32>
    %221 = arith.addf %211, %220 : vector<1x512xf32>
    %222 = vector.extract_strided_slice %191 {offsets = [6, 0], sizes = [1, 64], strides = [1, 1]} : vector<7x64xf32> to vector<1x64xf32>
    %223 = arith.truncf %222 : vector<1x64xf32> to vector<1x64xbf16>
    %c2624 = arith.constant 2624 : index
    %c0_103 = arith.constant 0 : index
    %224 = vector.load %arg12[%c2624, %c0_103] : memref<3136x512xbf16, #tpu.memory_space<vmem>>, vector<64x512xbf16>
    %cst_104 = arith.constant dense<0.000000e+00> : vector<1x512xf32>
    %225 = tpu.matmul %223, %224, %cst_104 {dimension_numbers = #tpu.dot_dimension_numbers<[1], [0], [0], [1], [0, 0, 1, 1], [], []>} : vector<1x64xbf16>, vector<64x512xbf16>, vector<1x512xf32> -> vector<1x512xf32>
    %226 = arith.addf %216, %225 : vector<1x512xf32>
    %c6 = arith.constant 6 : index
    %c0_105 = arith.constant 0 : index
    %c0_106 = arith.constant 0 : index
    %227 = vector.load %arg19[%c6, %c0_105, %c0_106] : memref<7x7x64xf32, #tpu.memory_space<vmem>>, vector<1x7x64xf32>
    %228 = vector.shape_cast %227 : vector<1x7x64xf32> to vector<7x64xf32>
    %229 = vector.extract_strided_slice %228 {offsets = [0, 0], sizes = [1, 64], strides = [1, 1]} : vector<7x64xf32> to vector<1x64xf32>
    %230 = arith.truncf %229 : vector<1x64xf32> to vector<1x64xbf16>
    %c2688 = arith.constant 2688 : index
    %c0_107 = arith.constant 0 : index
    %231 = vector.load %arg12[%c2688, %c0_107] : memref<3136x512xbf16, #tpu.memory_space<vmem>>, vector<64x512xbf16>
    %cst_108 = arith.constant dense<0.000000e+00> : vector<1x512xf32>
    %232 = tpu.matmul %230, %231, %cst_108 {dimension_numbers = #tpu.dot_dimension_numbers<[1], [0], [0], [1], [0, 0, 1, 1], [], []>} : vector<1x64xbf16>, vector<64x512xbf16>, vector<1x512xf32> -> vector<1x512xf32>
    %233 = arith.addf %221, %232 : vector<1x512xf32>
    %234 = vector.extract_strided_slice %228 {offsets = [1, 0], sizes = [1, 64], strides = [1, 1]} : vector<7x64xf32> to vector<1x64xf32>
    %235 = arith.truncf %234 : vector<1x64xf32> to vector<1x64xbf16>
    %c2752 = arith.constant 2752 : index
    %c0_109 = arith.constant 0 : index
    %236 = vector.load %arg12[%c2752, %c0_109] : memref<3136x512xbf16, #tpu.memory_space<vmem>>, vector<64x512xbf16>
    %cst_110 = arith.constant dense<0.000000e+00> : vector<1x512xf32>
    %237 = tpu.matmul %235, %236, %cst_110 {dimension_numbers = #tpu.dot_dimension_numbers<[1], [0], [0], [1], [0, 0, 1, 1], [], []>} : vector<1x64xbf16>, vector<64x512xbf16>, vector<1x512xf32> -> vector<1x512xf32>
    %238 = arith.addf %226, %237 : vector<1x512xf32>
    %239 = vector.extract_strided_slice %228 {offsets = [2, 0], sizes = [1, 64], strides = [1, 1]} : vector<7x64xf32> to vector<1x64xf32>
    %240 = arith.truncf %239 : vector<1x64xf32> to vector<1x64xbf16>
    %c2816 = arith.constant 2816 : index
    %c0_111 = arith.constant 0 : index
    %241 = vector.load %arg12[%c2816, %c0_111] : memref<3136x512xbf16, #tpu.memory_space<vmem>>, vector<64x512xbf16>
    %cst_112 = arith.constant dense<0.000000e+00> : vector<1x512xf32>
    %242 = tpu.matmul %240, %241, %cst_112 {dimension_numbers = #tpu.dot_dimension_numbers<[1], [0], [0], [1], [0, 0, 1, 1], [], []>} : vector<1x64xbf16>, vector<64x512xbf16>, vector<1x512xf32> -> vector<1x512xf32>
    %243 = arith.addf %233, %242 : vector<1x512xf32>
    %244 = vector.extract_strided_slice %228 {offsets = [3, 0], sizes = [1, 64], strides = [1, 1]} : vector<7x64xf32> to vector<1x64xf32>
    %245 = arith.truncf %244 : vector<1x64xf32> to vector<1x64xbf16>
    %c2880 = arith.constant 2880 : index
    %c0_113 = arith.constant 0 : index
    %246 = vector.load %arg12[%c2880, %c0_113] : memref<3136x512xbf16, #tpu.memory_space<vmem>>, vector<64x512xbf16>
    %cst_114 = arith.constant dense<0.000000e+00> : vector<1x512xf32>
    %247 = tpu.matmul %245, %246, %cst_114 {dimension_numbers = #tpu.dot_dimension_numbers<[1], [0], [0], [1], [0, 0, 1, 1], [], []>} : vector<1x64xbf16>, vector<64x512xbf16>, vector<1x512xf32> -> vector<1x512xf32>
    %248 = arith.addf %238, %247 : vector<1x512xf32>
    %249 = vector.extract_strided_slice %228 {offsets = [4, 0], sizes = [1, 64], strides = [1, 1]} : vector<7x64xf32> to vector<1x64xf32>
    %250 = arith.truncf %249 : vector<1x64xf32> to vector<1x64xbf16>
    %c2944 = arith.constant 2944 : index
    %c0_115 = arith.constant 0 : index
    %251 = vector.load %arg12[%c2944, %c0_115] : memref<3136x512xbf16, #tpu.memory_space<vmem>>, vector<64x512xbf16>
    %cst_116 = arith.constant dense<0.000000e+00> : vector<1x512xf32>
    %252 = tpu.matmul %250, %251, %cst_116 {dimension_numbers = #tpu.dot_dimension_numbers<[1], [0], [0], [1], [0, 0, 1, 1], [], []>} : vector<1x64xbf16>, vector<64x512xbf16>, vector<1x512xf32> -> vector<1x512xf32>
    %253 = arith.addf %243, %252 : vector<1x512xf32>
    %254 = vector.extract_strided_slice %228 {offsets = [5, 0], sizes = [1, 64], strides = [1, 1]} : vector<7x64xf32> to vector<1x64xf32>
    %255 = arith.truncf %254 : vector<1x64xf32> to vector<1x64xbf16>
    %c3008 = arith.constant 3008 : index
    %c0_117 = arith.constant 0 : index
    %256 = vector.load %arg12[%c3008, %c0_117] : memref<3136x512xbf16, #tpu.memory_space<vmem>>, vector<64x512xbf16>
    %cst_118 = arith.constant dense<0.000000e+00> : vector<1x512xf32>
    %257 = tpu.matmul %255, %256, %cst_118 {dimension_numbers = #tpu.dot_dimension_numbers<[1], [0], [0], [1], [0, 0, 1, 1], [], []>} : vector<1x64xbf16>, vector<64x512xbf16>, vector<1x512xf32> -> vector<1x512xf32>
    %258 = arith.addf %248, %257 : vector<1x512xf32>
    %259 = vector.extract_strided_slice %228 {offsets = [6, 0], sizes = [1, 64], strides = [1, 1]} : vector<7x64xf32> to vector<1x64xf32>
    %260 = arith.truncf %259 : vector<1x64xf32> to vector<1x64xbf16>
    %c3072 = arith.constant 3072 : index
    %c0_119 = arith.constant 0 : index
    %261 = vector.load %arg12[%c3072, %c0_119] : memref<3136x512xbf16, #tpu.memory_space<vmem>>, vector<64x512xbf16>
    %cst_120 = arith.constant dense<0.000000e+00> : vector<1x512xf32>
    %262 = tpu.matmul %260, %261, %cst_120 {dimension_numbers = #tpu.dot_dimension_numbers<[1], [0], [0], [1], [0, 0, 1, 1], [], []>} : vector<1x64xbf16>, vector<64x512xbf16>, vector<1x512xf32> -> vector<1x512xf32>
    %263 = arith.addf %253, %262 : vector<1x512xf32>
    %264 = arith.addf %263, %258 : vector<1x512xf32>
    %c0_121 = arith.constant 0 : index
    %c0_122 = arith.constant 0 : index
    %265 = vector.load %arg13[%c0_121, %c0_122] : memref<1x512xf32, #tpu.memory_space<vmem>>, vector<1x512xf32>
    %266 = arith.addf %264, %265 : vector<1x512xf32>
    %267 = arith.truncf %266 : vector<1x512xf32> to vector<1x512xbf16>
    %c0_123 = arith.constant 0 : index
    %c0_124 = arith.constant 0 : index
    %268 = vector.load %arg14[%c0_123, %c0_124] : memref<512x128xbf16, #tpu.memory_space<vmem>>, vector<512x128xbf16>
    %cst_125 = arith.constant dense<0.000000e+00> : vector<1x128xf32>
    %269 = tpu.matmul %267, %268, %cst_125 {dimension_numbers = #tpu.dot_dimension_numbers<[1], [0], [0], [1], [0, 0, 1, 1], [], []>} : vector<1x512xbf16>, vector<512x128xbf16>, vector<1x128xf32> -> vector<1x128xf32>
    %c0_126 = arith.constant 0 : index
    %c0_127 = arith.constant 0 : index
    %270 = vector.load %arg15[%c0_126, %c0_127] : memref<1x128xf32, #tpu.memory_space<vmem>>, vector<1x128xf32>
    %271 = arith.addf %269, %270 : vector<1x128xf32>
    %c0_128 = arith.constant 0 : index
    %c0_129 = arith.constant 0 : index
    %c0_130 = arith.constant 0 : index
    %272 = vector.load %arg16[%c0_128, %c0_129, %c0_130] : memref<1x1x128xf32, #tpu.memory_space<vmem>>, vector<1x1x128xf32>
    %273 = vector.shape_cast %272 : vector<1x1x128xf32> to vector<1x128xf32>
    %274 = vector.shape_cast %271 : vector<1x128xf32> to vector<1x1x128xf32>
    tpu.vector_store %arg16[%c0_128, %c0_129, %c0_130], %274 {strides = array<i32>} : memref<1x1x128xf32, #tpu.memory_space<vmem>>, vector<1x1x128xf32>,
    return
  }
  func.func @transform_0(%arg0: i32) -> (i32, i32, i32, i32) {
    %c0_i32 = arith.constant 0 : i32
    %c0_i32_0 = arith.constant 0 : i32
    %c0_i32_1 = arith.constant 0 : i32
    %c0_i32_2 = arith.constant 0 : i32
    return %arg0, %c0_i32, %c0_i32_0, %c0_i32_1 : i32, i32, i32, i32
  }
  func.func @transform_1(%arg0: i32) -> (i32, i32, i32, i32) {
    %c0_i32 = arith.constant 0 : i32
    %c0_i32_0 = arith.constant 0 : i32
    %c0_i32_1 = arith.constant 0 : i32
    %c0_i32_2 = arith.constant 0 : i32
    return %arg0, %c0_i32, %c0_i32_0, %c0_i32_1 : i32, i32, i32, i32
  }
  func.func @transform_2(%arg0: i32) -> (i32, i32, i32) {
    %c0_i32 = arith.constant 0 : i32
    %c0_i32_0 = arith.constant 0 : i32
    %c0_i32_1 = arith.constant 0 : i32
    %c0_i32_2 = arith.constant 0 : i32
    return %c0_i32, %c0_i32_0, %c0_i32_1 : i32, i32, i32
  }
  func.func @transform_3(%arg0: i32) -> (i32, i32, i32) {
    %c0_i32 = arith.constant 0 : i32
    %c0_i32_0 = arith.constant 0 : i32
    %c0_i32_1 = arith.constant 0 : i32
    %c0_i32_2 = arith.constant 0 : i32
    return %c0_i32, %c0_i32_0, %c0_i32_1 : i32, i32, i32
  }
  func.func @transform_4(%arg0: i32) -> (i32, i32, i32) {
    %c0_i32 = arith.constant 0 : i32
    %c0_i32_0 = arith.constant 0 : i32
    %c0_i32_1 = arith.constant 0 : i32
    %c0_i32_2 = arith.constant 0 : i32
    return %c0_i32, %c0_i32_0, %c0_i32_1 : i32, i32, i32
  }
  func.func @transform_5(%arg0: i32) -> (i32, i32) {
    %c0_i32 = arith.constant 0 : i32
    %c0_i32_0 = arith.constant 0 : i32
    %c0_i32_1 = arith.constant 0 : i32
    return %c0_i32, %c0_i32_0 : i32, i32
  }
  func.func @transform_6(%arg0: i32) -> (i32, i32, i32) {
    %c0_i32 = arith.constant 0 : i32
    %c0_i32_0 = arith.constant 0 : i32
    %c0_i32_1 = arith.constant 0 : i32
    %c0_i32_2 = arith.constant 0 : i32
    return %c0_i32, %c0_i32_0, %c0_i32_1 : i32, i32, i32
  }
  func.func @transform_7(%arg0: i32) -> (i32, i32, i32) {
    %c0_i32 = arith.constant 0 : i32
    %c0_i32_0 = arith.constant 0 : i32
    %c0_i32_1 = arith.constant 0 : i32
    %c0_i32_2 = arith.constant 0 : i32
    return %c0_i32, %c0_i32_0, %c0_i32_1 : i32, i32, i32
  }
  func.func @transform_8(%arg0: i32) -> (i32, i32) {
    %c0_i32 = arith.constant 0 : i32
    %c0_i32_0 = arith.constant 0 : i32
    %c0_i32_1 = arith.constant 0 : i32
    return %c0_i32, %c0_i32_0 : i32, i32
  }
  func.func @transform_9(%arg0: i32) -> (i32, i32, i32) {
    %c0_i32 = arith.constant 0 : i32
    %c0_i32_0 = arith.constant 0 : i32
    %c0_i32_1 = arith.constant 0 : i32
    %c0_i32_2 = arith.constant 0 : i32
    return %c0_i32, %c0_i32_0, %c0_i32_1 : i32, i32, i32
  }
  func.func @transform_10(%arg0: i32) -> (i32, i32) {
    %c0_i32 = arith.constant 0 : i32
    %c0_i32_0 = arith.constant 0 : i32
    %c0_i32_1 = arith.constant 0 : i32
    return %c0_i32, %c0_i32_0 : i32, i32
  }
  func.func @transform_11(%arg0: i32) -> (i32, i32) {
    %c0_i32 = arith.constant 0 : i32
    %c0_i32_0 = arith.constant 0 : i32
    %c0_i32_1 = arith.constant 0 : i32
    return %c0_i32, %c0_i32_0 : i32, i32
  }
  func.func @transform_12(%arg0: i32) -> (i32, i32) {
    %c0_i32 = arith.constant 0 : i32
    %c0_i32_0 = arith.constant 0 : i32
    %c0_i32_1 = arith.constant 0 : i32
    return %c0_i32, %c0_i32_0 : i32, i32
  }
  func.func @transform_13(%arg0: i32) -> (i32, i32) {
    %c0_i32 = arith.constant 0 : i32
    %c0_i32_0 = arith.constant 0 : i32
    %c0_i32_1 = arith.constant 0 : i32
    return %c0_i32, %c0_i32_0 : i32, i32
  }
  func.func @transform_14(%arg0: i32) -> (i32, i32) {
    %c0_i32 = arith.constant 0 : i32
    %c0_i32_0 = arith.constant 0 : i32
    %c0_i32_1 = arith.constant 0 : i32
    return %c0_i32, %c0_i32_0 : i32, i32
  }
  func.func @transform_15(%arg0: i32) -> (i32, i32, i32) {
    %c0_i32 = arith.constant 0 : i32
    %c0_i32_0 = arith.constant 0 : i32
    %c0_i32_1 = arith.constant 0 : i32
    return %arg0, %c0_i32, %c0_i32_0 : i32, i32, i32
  }
}

</mosaic_0001>

<bundles_post_ra>
// kernel: discrete_critic_forward.1
= control target key start
LH: loop header
LB: loop body
LE: loop exit
PB: predicated region body
PF: predicated region fallthrough
CT: control target
= control target key end

     0   :  { %s19093_s0 = inlined_call_operand.vmem [shape: f32[2,21,11,64], index: 0, kind: input, shape index: {}]   ;;  %s19094_s1 = inlined_call_operand.vmem [shape: f32[2,21,11,64], index: 1, kind: input, shape index: {}]   ;;  %s19095_s2 = inlined_call_operand.vmem [shape: bf16[2,64,64], index: 2, kind: input, shape index: {}]   ;;  %s19096_s3 = inlined_call_operand.vmem [shape: bf16[2,64,64], index: 3, kind: input, shape index: {}]   ;;  %s19097_s4 = inlined_call_operand.vmem [shape: bf16[2,64,64], index: 4, kind: input, shape index: {}]   ;;  %s19098_s5 = inlined_call_operand.vmem [shape: f32[1,64], index: 5, kind: input, shape index: {}]   ;;  %s19099_s6 = inlined_call_operand.vmem [shape: bf16[4,64,64], index: 6, kind: input, shape index: {}]   ;;  %s19100_s7 = inlined_call_operand.vmem [shape: bf16[4,64,64], index: 7, kind: input, shape index: {}]   ;;  %s19101_s8 = inlined_call_operand.vmem [shape: f32[1,64], index: 8, kind: input, shape index: {}]   ;;  %s19102_s9 = inlined_call_operand.vmem [shape: bf16[9,64,64], index: 9, kind: input, shape index: {}]   ;;  %s19103_s10 = inlined_call_operand.vmem [shape: f32[1,64], index: 10, kind: input, shape index: {}]   ;;  %s19104_s11 = inlined_call_operand.vmem [shape: bf16[3136,512], index: 11, kind: input, shape index: {}]   ;;  %s19105_s12 = inlined_call_operand.vmem [shape: f32[1,512], index: 12, kind: input, shape index: {}]   ;;  %s19106_s13 = inlined_call_operand.vmem [shape: bf16[512,128], index: 13, kind: input, shape index: {}]   ;;  %s19107_s14 = inlined_call_operand.vmem [shape: f32[1,128], index: 14, kind: input, shape index: {}]   ;;  %s19108_s15 = inlined_call_operand.hbm [shape: f32[2,1,128], index: 15, kind: output, shape index: {}]  }
   0x1   :  { %19116 = sst [smem:[#allocation14_spill]] %s19093_s0 }
   0x2   :  { %20 = vsyncpa [#allocation6], 0 }
   0x3   :  { %22 = vsyncpa [#allocation6 + $0x1], 0  ;;  %s15308_s18 = smov 0   ;;  %s15310_s19 = smov 0  }
   0x4   :  { %s15312_s20 = smov 0   ;;  %s15314_s21 = smov 0  }
   0x5 LB: > { %19117 = sst [smem:[#allocation8_spill]] %s15194_s18  ;;  %s15329_s22 = sadd.s32 4294967295, %s15206_s21   ;;  %s15206_s21 = sphi %s15314_s21, %s19130_s21   ;;  %s15202_s20 = sphi %s15312_s20, %s19132_s20   ;;  %s15198_s19 = sphi %s15310_s19, %s19134_s19   ;;  %s15194_s18 = sphi %s15308_s18, %s19133_s18  }
   0x6   : > { %19118 = sst [smem:[#allocation9_spill]] %s15202_s20  ;;  %s12115_s23 = sadd.s32 4294967294, %s15206_s21  }
   0x7   : > { %19119 = sst [smem:[#allocation10_spill]] %s15206_s21  ;;  %s15333_s24 = sadd.s32 1, %s15206_s21  }
   0x8   : > { %19120 = sst [smem:[#allocation11_spill]] %s15333_s24  ;;  %s360_s25 = sadd.s32 1, %s15202_s20 }
   0x9   : > { %s357_s26 = ssub.s32 %s15206_s21, %s15333_s24  ;;  %p370_p0 = scmp.ne.s32.totalorder %s15202_s20, %s15198_s19 }
   0xa   : > { %p358_p1 = scmp.eq.s32.totalorder %s357_s26, 0  ;;  %p371_p2 = scmp.eq.s32.totalorder %s15329_s22, 1 }
   0xb   : > { %p376_p3 = scmp.ne.s32.totalorder %s15198_s19, %s15194_s18  ;;  %p377_p4 = scmp.eq.s32.totalorder %s12115_s23, 1 }
   0xc   : > { %s15344_s27 = scalar_select %p358_p1, %s15202_s20, %s360_s25  }
   0xd   : > { %p15346_p5 = por %p371_p2, %p370_p0  ;;  %p15350_p6 = por %p377_p4, %p376_p3 }
   0xe   : > { %19121 = sst [smem:[#allocation12_spill]] %s15344_s27  ;;  %p12118_p7 = scmp.ge.s32.totalorder %s15206_s21, 1 }
   0xf   : > { %s19123_s29 = scalar_select %p15350_p6, 1, 0 }
  0x10   : > { %p450_p8 = scmp.lt.s32.totalorder %s15206_s21, 3 }
  0x11   : > { %19124 = sst [smem:[#allocation13_spill]] %s19123_s29 }
  0x12   : > { %p451_p9 = pnand %p12118_p7, %p450_p8 }
  0x13   : > { %s19115_s30 = sand.u32 (!%p451_p9), 1, %s15198_s19   ;;  %p502_p10 = scmp.lt.s32.totalorder (!%p451_p9), %s15329_s22, 1 }
  0x14   : > { %454 = sbr.rel (%p451_p9) target bundleno = 2126 (0x84e), region = 80  ;;  %s19125_s0 = sld [smem:[#allocation14_spill]] (!%p451_p9) }
  0x15   : > { %s15371_s29 = scalar_lea.vmem (!%p451_p9), [#allocation5], %s19115_s30  ;;  %s15373_s18 = smov (!%p451_p9), 0  }
  0x1b   : > { %s503_s16 = scalar_select %p502_p10, %s15329_s22, 1 }
  0x1d   : > { %s13761_s17 = smul.u32 336, %s503_s16 }
  0x1f   : > { %s15362_s26 = scalar_lea.vmem %s19125_s0, %s13761_s17  ;;  %s15367_s24 = scalar_lea.vmem %s19094_s1, %s13761_s17 }
  0x20 LB: >> { %v13832_v0 = vld [vmem:[%s19096_s3] sm:$0xff]   ;;  %v15220_v1 = vmov 0.0   ;;  %v13834_v3 = vld [vmem:[%s19096_s3 + $0x8] sm:$0xff]   ;;  %vm15221_vm0 = vmmov 0   ;;  %s15396_s16 = sshll.u32 %s15210_s18, 4  ;;  %v13836_v5 = vld [vmem:[%s19096_s3 + $0x10] sm:$0xff]   ;;  %s15210_s18 = sphi %s15373_s18, %s518_s18  }
  0x21   : >> { %13485 = vmatprep.subr.bf16.mxu0 %v15220_v1  ;;  %13497 = vmatprep.subr.bf16.mxu1 %v15220_v1  ;;  %v13833_v2 = vld [vmem:[%s19095_s2] sm:$0xff]   ;;  %v13835_v4 = vld [vmem:[%s19095_s2 + $0x8] sm:$0xff]   ;;  %s15406_s17 = scalar_lea.vmem %s15362_s26, %s15396_s16  ;;  %v13837_v6 = vld [vmem:[%s19095_s2 + $0x10] sm:$0xff]   ;;  %s15418_s0 = scalar_lea.vmem %s15367_s24, %s15396_s16  ;;  %vm568_vm1 = vcmask 523264   ;;  %vm1031_vm2 = vcmask 517120  }
  0x22   : >> { %13486 = vmatpush3.bf16.msra.mxu0 %v13832_v0  ;;  %13493 = vmatprep.mubr.msk.bf16.mxu0 %vm15221_vm0, %v15220_v1  ;;  %v13838_v7 = vld [vmem:[%s19096_s3 + $0x18] sm:$0xff]   ;;  %v521_v9 = vld [vmem:[%s15406_s17] sm:$0xff]  ;;  %v522_v10 = vld [vmem:[%s15406_s17 + $0x8] sm:$0x7]  ;;  %s1029_s30 = scalar_lea.vmem [#allocation2], %s15396_s16  ;;  %s518_s18 = sadd.s32 1, %s15210_s18  }
  0x23   : >> { %13498 = vmatpush3.bf16.msra.mxu1 %v13833_v2  ;;  %13487 = vmatprep.subr.bf16.mxu0 %v15220_v1  ;;  %v13839_v8 = vld [vmem:[%s19095_s2 + $0x18] sm:$0xff]   ;;  %v524_v11 = vld [vmem:[%s15418_s0] sm:$0xff]  ;;  %v525_v12 = vld [vmem:[%s15418_s0 + $0x8] sm:$0x7]  ;;  %v535_v13 = vpack.c.bf16 %v522_v10, %v521_v9  ;;  %p515_p11 = scmp.ge.s32.totalorder %s518_s18, 20  }
  0x24   : >> { %13499 = vmatprep.subr.bf16.mxu1 %v15220_v1  ;;  %13505 = vmatprep.mubr.msk.bf16.mxu1 %vm15221_vm0, %v15220_v1  ;;  %v526_v14 = vpack.c.bf16 %v525_v12, %v524_v11  ;;  %v13840_v15 = vld [vmem:[%s19097_s4] sm:$0xff]   ;;  %v13842_v17 = vld [vmem:[%s19097_s4 + $0x8] sm:$0xff]   ;;  %v13844_v20 = vld [vmem:[%s19097_s4 + $0x10] sm:$0xff]   ;;  %s15519_s23 = smov (%p515_p11), 0  }
  0x25   : >> { %v13841_v16 = vld [vmem:[%s19095_s2 + $0x20] sm:$0xff]   ;;  %v13843_v18 = vld [vmem:[%s19095_s2 + $0x28] sm:$0xff]   ;;  %v691_v19 = vshll.u32 %v535_v13, 16  ;;  %v13845_v21 = vld [vmem:[%s19095_s2 + $0x30] sm:$0xff]   ;;  %v689_v22 = vshrl.u32 %v535_v13, 16 }
  0x26   : >> { %13488 = vmatpush3.bf16.msra.mxu0 %v13834_v3  ;;  %v13846_v24 = vld [vmem:[%s19097_s4 + $0x18] sm:$0xff]   ;;  %v12141_v26 = vld [vmem:[%s15418_s0 + $0x10] sm:$0xff]  ;;  %v13848_v30 = vld [vmem:[%s19096_s3 + $0x20] sm:$0xff]  }
  0x27   : >> { %13500 = vmatpush3.bf16.msra.mxu1 %v13835_v4  ;;  %13489 = vmatprep.subr.bf16.mxu0 %v15220_v1  ;;  %v693_v23 = vrot.slane %v691_v19, 1  ;;  %v13847_v25 = vld [vmem:[%s19095_s2 + $0x38] sm:$0xff]   ;;  %v13849_v31 = vld [vmem:[%s19097_s4 + $0x20] sm:$0xff]   ;;  %v12138_v32 = vld [vmem:[%s15406_s17 + $0x10] sm:$0xff] }
  0x28   : >> { %13501 = vmatprep.subr.bf16.mxu1 %v15220_v1  ;;  %v12142_v27 = vld [vmem:[%s15418_s0 + $0x18] sm:$0x7]  ;;  %v13850_v34 = vld [vmem:[%s19096_s3 + $0x28] sm:$0xff]   ;;  %v13852_v37 = vld [vmem:[%s19096_s3 + $0x30] sm:$0xff]  }
  0x29   : >> { %v694_v28 = vor.u32 %v693_v23, %v689_v22  ;;  %v773_v29 = vpack.c.bf16 %v12142_v27, %v12141_v26  ;;  %v12139_v33 = vld [vmem:[%s15406_s17 + $0x18] sm:$0x7]  ;;  %v13851_v36 = vld [vmem:[%s19097_s4 + $0x28] sm:$0xff]   ;;  %v13853_v39 = vld [vmem:[%s19097_s4 + $0x30] sm:$0xff]  }
  0x2a   : >> { %13490 = vmatpush3.bf16.msra.mxu0 %v13836_v5  ;;  %v853_v35 = vpack.c.bf16 %v12139_v33, %v12138_v32  ;;  %v13854_v40 = vld [vmem:[%s19096_s3 + $0x38] sm:$0xff]  }
  0x2b   : >> { %13502 = vmatpush3.bf16.msra.mxu1 %v13837_v6  ;;  %13491 = vmatprep.subr.bf16.mxu0 %v15220_v1  ;;  %v13855_v43 = vld [vmem:[%s19097_s4 + $0x38] sm:$0xff]  }
  0x2c   : >> { %13503 = vmatprep.subr.bf16.mxu1 %v15220_v1  ;;  %v944_v38 = vshll.u32 %v853_v35, 16  ;;  %v942_v41 = vshrl.u32 %v853_v35, 16 }
  0x2e   : >> { %13492 = vmatpush3.bf16.msra.mxu0 %v13838_v7  ;;  %v946_v42 = vrot.slane %v944_v38, 1  ;;  %v12182_v7 = vld [vmem:[%s19098_s5] ss:$0 sm:$0xff] }
  0x2f   : >> { %13504 = vmatpush3.bf16.msra.mxu1 %v13839_v8  ;;  %13509 = vmatprep.subr.bf16.mxu0 %v15220_v1 }
  0x30   : >> { %13521 = vmatprep.subr.bf16.mxu1 %v15220_v1  ;;  %v947_v44 = vor.u32 %v946_v42, %v942_v41 }
  0x31   : >> { %13494 = vmatmul.mubr.msk.bf16.vlgmr.msra.gmra.mrb[0].mxu0 %vm568_vm1, %v535_v13 }
  0x32   : >> { %13506 = vmatmul.mubr.msk.bf16.vlgmr.msra.gmra.mrb[0].mxu1 %vm568_vm1, %v526_v14  ;;  %13510 = vmatpush3.bf16.msra.mxu0 %v13840_v15 }
  0x33   : >> { %13522 = vmatpush3.bf16.msra.mxu1 %v13841_v16  ;;  %13511 = vmatprep.subr.bf16.mxu0 %v15220_v1 }
  0x34   : >> { %13523 = vmatprep.subr.bf16.mxu1 %v15220_v1  ;;  %13517 = vmatprep.mubr.msk.bf16.mxu0 %vm15221_vm0, %v15220_v1 }
  0x35   : >> { %13529 = vmatprep.mubr.msk.bf16.mxu1 %vm15221_vm0, %v15220_v1 }
  0x36   : >> { %13512 = vmatpush3.bf16.msra.mxu0 %v13842_v17 }
  0x37   : >> { %13524 = vmatpush3.bf16.msra.mxu1 %v13843_v18  ;;  %13513 = vmatprep.subr.bf16.mxu0 %v15220_v1 }
  0x38   : >> { %13525 = vmatprep.subr.bf16.mxu1 %v15220_v1 }
  0x3a   : >> { %13514 = vmatpush3.bf16.msra.mxu0 %v13844_v20 }
  0x3b   : >> { %13526 = vmatpush3.bf16.msra.mxu1 %v13845_v21  ;;  %13515 = vmatprep.subr.bf16.mxu0 %v15220_v1 }
  0x3c   : >> { %13527 = vmatprep.subr.bf16.mxu1 %v15220_v1 }
  0x3e   : >> { %13516 = vmatpush3.bf16.msra.mxu0 %v13846_v24 }
  0x3f   : >> { %13528 = vmatpush3.bf16.msra.mxu1 %v13847_v25  ;;  %13533 = vmatprep.subr.bf16.mxu0 %v15220_v1 }
  0x40   : >> { %13545 = vmatprep.subr.bf16.mxu1 %v15220_v1 }
  0x41   : >> { %13518 = vmatmul.mubr.msk.bf16.vlgmr.msra.gmra.mrb[4].mxu0 %vm568_vm1, %v694_v28 }
  0x42   : >> { %13530 = vmatmul.mubr.msk.bf16.vlgmr.msra.gmra.mrb[4].mxu1 %vm568_vm1, %v773_v29  ;;  %13534 = vmatpush3.bf16.msra.mxu0 %v13848_v30 }
  0x43   : >> { %13546 = vmatpush3.bf16.msra.mxu1 %v13849_v31  ;;  %13535 = vmatprep.subr.bf16.mxu0 %v15220_v1 }
  0x44   : >> { %13547 = vmatprep.subr.bf16.mxu1 %v15220_v1  ;;  %13541 = vmatprep.mubr.msk.bf16.mxu0 %vm15221_vm0, %v15220_v1 }
  0x45   : >> { %13553 = vmatprep.mubr.msk.bf16.mxu1 %vm15221_vm0, %v15220_v1 }
  0x46   : >> { %13536 = vmatpush3.bf16.msra.mxu0 %v13850_v34 }
  0x47   : >> { %13548 = vmatpush3.bf16.msra.mxu1 %v13851_v36  ;;  %13537 = vmatprep.subr.bf16.mxu0 %v15220_v1 }
  0x48   : >> { %13549 = vmatprep.subr.bf16.mxu1 %v15220_v1 }
  0x4a   : >> { %13538 = vmatpush3.bf16.msra.mxu0 %v13852_v37 }
  0x4b   : >> { %13550 = vmatpush3.bf16.msra.mxu1 %v13853_v39  ;;  %13539 = vmatprep.subr.bf16.mxu0 %v15220_v1 }
  0x4c   : >> { %13551 = vmatprep.subr.bf16.mxu1 %v15220_v1 }
  0x4e   : >> { %13540 = vmatpush3.bf16.msra.mxu0 %v13854_v40 }
  0x4f   : >> { %13552 = vmatpush3.bf16.msra.mxu1 %v13855_v43 }
  0x51   : >> { %13542 = vmatmul.mubr.msk.bf16.vlgmr.msra.gmra.mrb[8].mxu0 %vm568_vm1, %v853_v35 }
  0x52   : >> { %13554 = vmatmul.mubr.msk.bf16.vlgmr.msra.gmra.mrb[8].mxu1 %vm568_vm1, %v947_v44 }
 0x104   : >> { %v606_v45 = vpop.f32.mrb[0].mxu0 }
 0x105   : >> { %v674_v46 = vpop.f32.mrb[0].mxu1  ;;  %v13495_v47 = vpop.f32.mrb[1].mxu0 }
 0x106   : >> { %v675_v48 = vadd.f32 %v674_v46, %v606_v45  ;;  %v13507_v49 = vpop.f32.mrb[1].mxu1  ;;  %v609_v50 = vpop.f32.mrb[2].mxu0 }
 0x107   : >> { %v677_v51 = vpop.f32.mrb[2].mxu1  ;;  %v13496_v52 = vpop.f32.mrb[3].mxu0 }
 0x108   : >> { %v678_v53 = vadd.f32 %v677_v51, %v609_v50  ;;  %v13508_v54 = vpop.f32.mrb[3].mxu1 }
 0x114   : >> { %v756_v55 = vpop.f32.mrb[4].mxu0 }
 0x115   : >> { %v763_v56 = vadd.f32 %v756_v55, %v675_v48  ;;  %v844_v57 = vpop.f32.mrb[4].mxu1  ;;  %v13519_v58 = vpop.f32.mrb[5].mxu0 }
 0x116   : >> { %v13531_v59 = vpop.f32.mrb[5].mxu1  ;;  %v759_v60 = vpop.f32.mrb[6].mxu0 }
 0x117   : >> { %v851_v61 = vadd.f32 %v844_v57, %v763_v56  ;;  %v764_v62 = vadd.f32 %v759_v60, %v678_v53  ;;  %v847_v63 = vpop.f32.mrb[6].mxu1  ;;  %v13520_v0 = vpop.f32.mrb[7].mxu0 }
 0x118   : >> { %v13532_v1 = vpop.f32.mrb[7].mxu1 }
 0x119   : >> { %v852_v2 = vadd.f32 %v847_v63, %v764_v62 }
 0x124   : >> { %v924_v3 = vpop.f32.mrb[8].mxu0 }
 0x125   : >> { %v931_v4 = vadd.f32 %v924_v3, %v851_v61  ;;  %v1009_v5 = vpop.f32.mrb[8].mxu1  ;;  %v13543_v6 = vpop.f32.mrb[9].mxu0 }
 0x126   : >> { %v13555_v8 = vpop.f32.mrb[9].mxu1  ;;  %v927_v9 = vpop.f32.mrb[10].mxu0 }
 0x127   : >> { %v1016_v10 = vadd.f32 %v1009_v5, %v931_v4  ;;  %v932_v11 = vadd.f32 %v927_v9, %v852_v2  ;;  %v1012_v12 = vpop.f32.mrb[10].mxu1  ;;  %v13544_v13 = vpop.f32.mrb[11].mxu0 }
 0x128   : >> { %v13556_v14 = vpop.f32.mrb[11].mxu1 }
 0x129   : >> { %v1025_v15 = vadd.f32 %v12182_v7, %v1016_v10  ;;  %v1017_v16 = vadd.f32 %v1012_v12, %v932_v11  ;;  %517 = sbr.rel (!%p515_p11) target bundleno = 32 (0x20), region = 176 }
 0x12b   : >> { %v1027_v17 = vmax.f32 %v1025_v15, 0.0  ;;  %v1026_v18 = vadd.f32 %v12182_v7, %v1017_v16 }
 0x12d   : >> { %1030 = vst.msk [vmem:[%s1029_s30] sm:$0xff] %vm568_vm1, %v1027_v17  ;;  %v1028_v19 = vmax.f32 %v1026_v18, 0.0 }
 0x12f   : >> { %1032 = vst.msk [vmem:[%s1029_s30 + $0x8] sm:$0x3] %vm1031_vm2, %v1028_v19 }
 0x130 LB: >> { %v13856_v20 = vld [vmem:[%s19100_s7] sm:$0xff]   ;;  %v15222_v21 = vmov 0.0   ;;  %v13858_v23 = vld [vmem:[%s19100_s7 + $0x8] sm:$0xff]   ;;  %vm15223_vm3 = vmmov 0   ;;  %s13322_s25 = sshll.u32 %s15214_s23, 5  ;;  %v13860_v25 = vld [vmem:[%s19100_s7 + $0x10] sm:$0xff]   ;;  %s15214_s23 = sphi %s15519_s23, %s1038_s23  }
 0x131   : >> { %13557 = vmatprep.subr.bf16.mxu0 %v15222_v21  ;;  %13569 = vmatprep.subr.bf16.mxu1 %v15222_v21  ;;  %v13857_v22 = vld [vmem:[%s19099_s6] sm:$0xff]   ;;  %v13859_v24 = vld [vmem:[%s19099_s6 + $0x8] sm:$0xff]   ;;  %v13861_v26 = vld [vmem:[%s19099_s6 + $0x10] sm:$0xff]   ;;  %s15553_s16 = scalar_lea.vmem [#allocation2], %s13322_s25  ;;  %s12286_s20 = sshll.u32 %s15214_s23, 4  ;;  %vm1728_vm4 = vcmask 516096  }
 0x132   : >> { %13558 = vmatpush3.bf16.msra.mxu0 %v13856_v20  ;;  %13565 = vmatprep.mubr.msk.bf16.mxu0 %vm15223_vm3, %v15222_v21  ;;  %v13862_v30 = vld [vmem:[%s19100_s7 + $0x18] sm:$0xff]   ;;  %v13864_v35 = vld [vmem:[%s19099_s6 + $0x20] sm:$0xff]   ;;  %v13866_v40 = vld [vmem:[%s19099_s6 + $0x28] sm:$0xff]   ;;  %s1038_s23 = sadd.s32 1, %s15214_s23  }
 0x133   : >> { %13570 = vmatpush3.bf16.msra.mxu1 %v13857_v22  ;;  %13559 = vmatprep.subr.bf16.mxu0 %v15222_v21  ;;  %v13863_v31 = vld [vmem:[%s19099_s6 + $0x18] sm:$0xff]   ;;  %v13865_v37 = vld [vmem:[%s19100_s7 + $0x20] sm:$0xff]   ;;  %v13867_v42 = vld [vmem:[%s19100_s7 + $0x28] sm:$0xff]   ;;  %p1035_p12 = scmp.ge.s32.totalorder %s1038_s23, 9  }
 0x134   : >> { %13571 = vmatprep.subr.bf16.mxu1 %v15222_v21  ;;  %13577 = vmatprep.mubr.msk.bf16.mxu1 %vm15223_vm3, %v15222_v21  ;;  %v13868_v43 = vld [vmem:[%s19099_s6 + $0x30] sm:$0xff]   ;;  %v13870_v46 = vld [vmem:[%s19099_s6 + $0x38] sm:$0xff]   ;;  %v13872_v50 = vld [vmem:[%s19099_s6 + $0x40] sm:$0xff]   ;;  %s15695_s25 = smov (%p1035_p12), 0  }
 0x135   : >> { %v13869_v45 = vld [vmem:[%s19100_s7 + $0x30] sm:$0xff]   ;;  %v13871_v49 = vld [vmem:[%s19100_s7 + $0x38] sm:$0xff]   ;;  %v13873_v51 = vld [vmem:[%s19100_s7 + $0x40] sm:$0xff]  }
 0x136   : >> { %13560 = vmatpush3.bf16.msra.mxu0 %v13858_v23  ;;  %v1042_v27 = vld [vmem:[%s15553_s16] sm:$0xff]  ;;  %v1043_v28 = vld [vmem:[%s15553_s16 + $0x8] sm:$0x3]  ;;  %v12197_v38 = vld [vmem:[%s15553_s16 + $0x10] sm:$0xff] }
 0x137   : >> { %13572 = vmatpush3.bf16.msra.mxu1 %v13859_v24  ;;  %13561 = vmatprep.subr.bf16.mxu0 %v15222_v21  ;;  %v1044_v29 = vpack.c.bf16 %v1043_v28, %v1042_v27  ;;  %v12198_v39 = vld [vmem:[%s15553_s16 + $0x18] sm:$0x3]  ;;  %v12227_v53 = vld [vmem:[%s15553_s16 + $0x20] sm:$0xff]  ;;  %v12228_v54 = vld [vmem:[%s15553_s16 + $0x28] sm:$0x3] }
 0x138   : >> { %13573 = vmatprep.subr.bf16.mxu1 %v15222_v21  ;;  %v1209_v41 = vpack.c.bf16 %v12198_v39, %v12197_v38  ;;  %v13874_v55 = vld [vmem:[%s19099_s6 + $0x48] sm:$0xff]   ;;  %v1379_v56 = vpack.c.bf16 %v12228_v54, %v12227_v53  ;;  %v13876_v58 = vld [vmem:[%s19099_s6 + $0x50] sm:$0xff]   ;;  %v13878_v61 = vld [vmem:[%s19099_s6 + $0x58] sm:$0xff]  }
 0x139   : >> { %v1062_v32 = vshrl.u32 %v1044_v29, 16  ;;  %v1064_v33 = vshll.u32 %v1044_v29, 16  ;;  %v13875_v57 = vld [vmem:[%s19100_s7 + $0x48] sm:$0xff]   ;;  %v13877_v60 = vld [vmem:[%s19100_s7 + $0x50] sm:$0xff]   ;;  %v13879_v0 = vld [vmem:[%s19100_s7 + $0x58] sm:$0xff]  }
 0x13a   : >> { %13562 = vmatpush3.bf16.msra.mxu0 %v13860_v25  ;;  %v1300_v44 = vshll.u32 %v1209_v41, 16  ;;  %v1298_v47 = vshrl.u32 %v1209_v41, 16  ;;  %v1470_v59 = vshll.u32 %v1379_v56, 16  ;;  %v1468_v62 = vshrl.u32 %v1379_v56, 16  ;;  %v13880_v2 = vld [vmem:[%s19099_s6 + $0x60] sm:$0xff]   ;;  %v12257_v4 = vld [vmem:[%s15553_s16 + $0x30] sm:$0xff] }
 0x13b   : >> { %13574 = vmatpush3.bf16.msra.mxu1 %v13861_v26  ;;  %13563 = vmatprep.subr.bf16.mxu0 %v15222_v21  ;;  %v1066_v34 = vrot.slane %v1064_v33, 1  ;;  %v13881_v3 = vld [vmem:[%s19100_s7 + $0x60] sm:$0xff]   ;;  %v12258_v5 = vld [vmem:[%s15553_s16 + $0x38] sm:$0x3]  ;;  %v13882_v6 = vld [vmem:[%s19099_s6 + $0x68] sm:$0xff]   ;;  %s1726_s16 = scalar_lea.vmem [#allocation3], %s12286_s20 }
 0x13c   : >> { %13575 = vmatprep.subr.bf16.mxu1 %v15222_v21  ;;  %v1302_v48 = vrot.slane %v1300_v44, 1  ;;  %v1472_v63 = vrot.slane %v1470_v59, 1  ;;  %v1549_v7 = vpack.c.bf16 %v12258_v5, %v12257_v4  ;;  %v13883_v8 = vld [vmem:[%s19100_s7 + $0x68] sm:$0xff]   ;;  %v13884_v9 = vld [vmem:[%s19099_s6 + $0x70] sm:$0xff]   ;;  %v13886_v12 = vld [vmem:[%s19099_s6 + $0x78] sm:$0xff]  }
 0x13d   : >> { %v1067_v36 = vor.u32 %v1066_v34, %v1062_v32  ;;  %v13885_v11 = vld [vmem:[%s19100_s7 + $0x70] sm:$0xff]   ;;  %v13887_v15 = vld [vmem:[%s19100_s7 + $0x78] sm:$0xff]  }
 0x13e   : >> { %13564 = vmatpush3.bf16.msra.mxu0 %v13862_v30  ;;  %v1303_v52 = vor.u32 %v1302_v48, %v1298_v47  ;;  %v1473_v1 = vor.u32 %v1472_v63, %v1468_v62  ;;  %v1640_v10 = vshll.u32 %v1549_v7, 16  ;;  %v1638_v13 = vshrl.u32 %v1549_v7, 16 }
 0x13f   : >> { %13576 = vmatpush3.bf16.msra.mxu1 %v13863_v31  ;;  %13581 = vmatprep.subr.bf16.mxu0 %v15222_v21 }
 0x140   : >> { %13593 = vmatprep.subr.bf16.mxu1 %v15222_v21  ;;  %v1642_v14 = vrot.slane %v1640_v10, 1 }
 0x141   : >> { %13566 = vmatmul.mubr.msk.bf16.vlgmr.msra.gmra.mrb[0].mxu0 %vm568_vm1, %v1067_v36 }
 0x142   : >> { %13578 = vmatmul.mubr.msk.bf16.vlgmr.msra.gmra.mrb[0].mxu1 %vm568_vm1, %v1044_v29  ;;  %13582 = vmatpush3.bf16.msra.mxu0 %v13864_v35  ;;  %v1643_v16 = vor.u32 %v1642_v14, %v1638_v13 }
 0x143   : >> { %13594 = vmatpush3.bf16.msra.mxu1 %v13865_v37  ;;  %13583 = vmatprep.subr.bf16.mxu0 %v15222_v21 }
 0x144   : >> { %13595 = vmatprep.subr.bf16.mxu1 %v15222_v21  ;;  %13589 = vmatprep.mubr.msk.bf16.mxu0 %vm15223_vm3, %v15222_v21 }
 0x145   : >> { %13601 = vmatprep.mubr.msk.bf16.mxu1 %vm15223_vm3, %v15222_v21 }
 0x146   : >> { %13584 = vmatpush3.bf16.msra.mxu0 %v13866_v40 }
 0x147   : >> { %13596 = vmatpush3.bf16.msra.mxu1 %v13867_v42  ;;  %13585 = vmatprep.subr.bf16.mxu0 %v15222_v21 }
 0x148   : >> { %13597 = vmatprep.subr.bf16.mxu1 %v15222_v21 }
 0x14a   : >> { %13586 = vmatpush3.bf16.msra.mxu0 %v13868_v43 }
 0x14b   : >> { %13598 = vmatpush3.bf16.msra.mxu1 %v13869_v45  ;;  %13587 = vmatprep.subr.bf16.mxu0 %v15222_v21 }
 0x14c   : >> { %13599 = vmatprep.subr.bf16.mxu1 %v15222_v21 }
 0x14e   : >> { %13588 = vmatpush3.bf16.msra.mxu0 %v13870_v46 }
 0x14f   : >> { %13600 = vmatpush3.bf16.msra.mxu1 %v13871_v49  ;;  %13605 = vmatprep.subr.bf16.mxu0 %v15222_v21 }
 0x150   : >> { %13617 = vmatprep.subr.bf16.mxu1 %v15222_v21 }
 0x151   : >> { %13590 = vmatmul.mubr.msk.bf16.vlgmr.msra.gmra.mrb[4].mxu0 %vm568_vm1, %v1209_v41 }
 0x152   : >> { %13602 = vmatmul.mubr.msk.bf16.vlgmr.msra.gmra.mrb[4].mxu1 %vm568_vm1, %v1303_v52  ;;  %13606 = vmatpush3.bf16.msra.mxu0 %v13872_v50 }
 0x153   : >> { %13618 = vmatpush3.bf16.msra.mxu1 %v13873_v51  ;;  %13607 = vmatprep.subr.bf16.mxu0 %v15222_v21 }
 0x154   : >> { %13619 = vmatprep.subr.bf16.mxu1 %v15222_v21  ;;  %13613 = vmatprep.mubr.msk.bf16.mxu0 %vm15223_vm3, %v15222_v21 }
 0x155   : >> { %13625 = vmatprep.mubr.msk.bf16.mxu1 %vm15223_vm3, %v15222_v21 }
 0x156   : >> { %13608 = vmatpush3.bf16.msra.mxu0 %v13874_v55  ;;  %v12285_v55 = vld [vmem:[%s19101_s8] ss:$0 sm:$0xff] }
 0x157   : >> { %13620 = vmatpush3.bf16.msra.mxu1 %v13875_v57  ;;  %13609 = vmatprep.subr.bf16.mxu0 %v15222_v21 }
 0x158   : >> { %13621 = vmatprep.subr.bf16.mxu1 %v15222_v21 }
 0x15a   : >> { %13610 = vmatpush3.bf16.msra.mxu0 %v13876_v58 }
 0x15b   : >> { %13622 = vmatpush3.bf16.msra.mxu1 %v13877_v60  ;;  %13611 = vmatprep.subr.bf16.mxu0 %v15222_v21 }
 0x15c   : >> { %13623 = vmatprep.subr.bf16.mxu1 %v15222_v21 }
 0x15e   : >> { %13612 = vmatpush3.bf16.msra.mxu0 %v13878_v61 }
 0x15f   : >> { %13624 = vmatpush3.bf16.msra.mxu1 %v13879_v0  ;;  %13629 = vmatprep.subr.bf16.mxu0 %v15222_v21 }
 0x160   : >> { %13641 = vmatprep.subr.bf16.mxu1 %v15222_v21 }
 0x161   : >> { %13614 = vmatmul.mubr.msk.bf16.vlgmr.msra.gmra.mrb[8].mxu0 %vm568_vm1, %v1379_v56 }
 0x162   : >> { %13626 = vmatmul.mubr.msk.bf16.vlgmr.msra.gmra.mrb[8].mxu1 %vm568_vm1, %v1473_v1  ;;  %13630 = vmatpush3.bf16.msra.mxu0 %v13880_v2 }
 0x163   : >> { %13642 = vmatpush3.bf16.msra.mxu1 %v13881_v3  ;;  %13631 = vmatprep.subr.bf16.mxu0 %v15222_v21 }
 0x164   : >> { %13643 = vmatprep.subr.bf16.mxu1 %v15222_v21  ;;  %13637 = vmatprep.mubr.msk.bf16.mxu0 %vm15223_vm3, %v15222_v21 }
 0x165   : >> { %13649 = vmatprep.mubr.msk.bf16.mxu1 %vm15223_vm3, %v15222_v21 }
 0x166   : >> { %13632 = vmatpush3.bf16.msra.mxu0 %v13882_v6 }
 0x167   : >> { %13644 = vmatpush3.bf16.msra.mxu1 %v13883_v8  ;;  %13633 = vmatprep.subr.bf16.mxu0 %v15222_v21 }
 0x168   : >> { %13645 = vmatprep.subr.bf16.mxu1 %v15222_v21 }
 0x16a   : >> { %13634 = vmatpush3.bf16.msra.mxu0 %v13884_v9 }
 0x16b   : >> { %13646 = vmatpush3.bf16.msra.mxu1 %v13885_v11  ;;  %13635 = vmatprep.subr.bf16.mxu0 %v15222_v21 }
 0x16c   : >> { %13647 = vmatprep.subr.bf16.mxu1 %v15222_v21 }
 0x16e   : >> { %13636 = vmatpush3.bf16.msra.mxu0 %v13886_v12 }
 0x16f   : >> { %13648 = vmatpush3.bf16.msra.mxu1 %v13887_v15 }
 0x171   : >> { %13638 = vmatmul.mubr.msk.bf16.vlgmr.msra.gmra.mrb[12].mxu0 %vm568_vm1, %v1549_v7 }
 0x172   : >> { %13650 = vmatmul.mubr.msk.bf16.vlgmr.msra.gmra.mrb[12].mxu1 %vm568_vm1, %v1643_v16 }
 0x214   : >> { %v1130_v17 = vpop.f32.mrb[0].mxu0 }
 0x215   : >> { %v1197_v18 = vpop.f32.mrb[0].mxu1  ;;  %v13567_v19 = vpop.f32.mrb[1].mxu0 }
 0x216   : >> { %v1198_v20 = vadd.f32 %v1197_v18, %v1130_v17  ;;  %v13579_v22 = vpop.f32.mrb[1].mxu1  ;;  %v1133_v23 = vpop.f32.mrb[2].mxu0 }
 0x217   : >> { %v1200_v24 = vpop.f32.mrb[2].mxu1  ;;  %v13568_v25 = vpop.f32.mrb[3].mxu0 }
 0x218   : >> { %v1201_v26 = vadd.f32 %v1200_v24, %v1133_v23  ;;  %v13580_v27 = vpop.f32.mrb[3].mxu1 }
 0x224   : >> { %v1280_v28 = vpop.f32.mrb[4].mxu0 }
 0x225   : >> { %v1287_v29 = vadd.f32 %v1280_v28, %v1198_v20  ;;  %v1365_v21 = vpop.f32.mrb[4].mxu1  ;;  %v13591_v30 = vpop.f32.mrb[5].mxu0 }
 0x226   : >> { %v13603_v31 = vpop.f32.mrb[5].mxu1  ;;  %v1283_v32 = vpop.f32.mrb[6].mxu0 }
 0x227   : >> { %v1372_v33 = vadd.f32 %v1365_v21, %v1287_v29  ;;  %v1288_v34 = vadd.f32 %v1283_v32, %v1201_v26  ;;  %v1368_v35 = vpop.f32.mrb[6].mxu1  ;;  %v13592_v36 = vpop.f32.mrb[7].mxu0 }
 0x228   : >> { %v13604_v37 = vpop.f32.mrb[7].mxu1 }
 0x229   : >> { %v1373_v38 = vadd.f32 %v1368_v35, %v1288_v34 }
 0x234   : >> { %v1450_v39 = vpop.f32.mrb[8].mxu0 }
 0x235   : >> { %v1457_v40 = vadd.f32 %v1450_v39, %v1372_v33  ;;  %v1535_v41 = vpop.f32.mrb[8].mxu1  ;;  %v13615_v42 = vpop.f32.mrb[9].mxu0 }
 0x236   : >> { %v13627_v43 = vpop.f32.mrb[9].mxu1  ;;  %v1453_v44 = vpop.f32.mrb[10].mxu0 }
 0x237   : >> { %v1542_v45 = vadd.f32 %v1535_v41, %v1457_v40  ;;  %v1458_v46 = vadd.f32 %v1453_v44, %v1373_v38  ;;  %v1538_v47 = vpop.f32.mrb[10].mxu1  ;;  %v13616_v48 = vpop.f32.mrb[11].mxu0 }
 0x238   : >> { %v13628_v49 = vpop.f32.mrb[11].mxu1 }
 0x239   : >> { %v1543_v50 = vadd.f32 %v1538_v47, %v1458_v46 }
 0x244   : >> { %v1620_v51 = vpop.f32.mrb[12].mxu0 }
 0x245   : >> { %v1627_v52 = vadd.f32 %v1620_v51, %v1542_v45  ;;  %v1705_v53 = vpop.f32.mrb[12].mxu1  ;;  %v13639_v54 = vpop.f32.mrb[13].mxu0 }
 0x246   : >> { %v13651_v56 = vpop.f32.mrb[13].mxu1  ;;  %v1623_v57 = vpop.f32.mrb[14].mxu0 }
 0x247   : >> { %v1712_v58 = vadd.f32 %v1705_v53, %v1627_v52  ;;  %v1628_v59 = vadd.f32 %v1623_v57, %v1543_v50  ;;  %v1708_v60 = vpop.f32.mrb[14].mxu1  ;;  %v13640_v61 = vpop.f32.mrb[15].mxu0 }
 0x248   : >> { %v13652_v62 = vpop.f32.mrb[15].mxu1 }
 0x249   : >> { %v1721_v63 = vadd.f32 %v12285_v55, %v1712_v58  ;;  %v1713_v0 = vadd.f32 %v1708_v60, %v1628_v59  ;;  %1037 = sbr.rel (!%p1035_p12) target bundleno = 304 (0x130), region = 187 }
 0x24b   : >> { %v1723_v1 = vmax.f32 %v1721_v63, 0.0  ;;  %v1722_v2 = vadd.f32 %v12285_v55, %v1713_v0 }
 0x24d   : >> { %1727 = vst.msk [vmem:[%s1726_s16] sm:$0xff] %vm568_vm1, %v1723_v1  ;;  %v1724_v3 = vmax.f32 %v1722_v2, 0.0 }
 0x24f   : >> { %1729 = vst.msk [vmem:[%s1726_s16 + $0x8] sm:$0x1] %vm1728_vm4, %v1724_v3 }
 0x250 LB: >> { %v13888_v4 = vld [vmem:[%s19102_s9 + $0x20] sm:$0xff]   ;;  %v15224_v5 = vmov 0.0   ;;  %v13890_v7 = vld [vmem:[%s19102_s9 + $0x28] sm:$0xff]   ;;  %vm15225_vm5 = vmmov 0   ;;  %s12287_s18 = sshll.u32 %s15218_s25, 4  ;;  %v13892_v9 = vld [vmem:[%s19102_s9 + $0x30] sm:$0xff]   ;;  %s15218_s25 = sphi %s15695_s25, %s1735_s25  }
 0x251   : >> { %13653 = vmatprep.subr.bf16.mxu0 %v15224_v5  ;;  %13665 = vmatprep.subr.bf16.mxu1 %v15224_v5  ;;  %v13889_v6 = vld [vmem:[%s19102_s9] sm:$0xff]   ;;  %v13891_v8 = vld [vmem:[%s19102_s9 + $0x8] sm:$0xff]   ;;  %v13893_v10 = vld [vmem:[%s19102_s9 + $0x10] sm:$0xff]   ;;  %s15729_s30 = scalar_lea.vmem [#allocation3], %s12287_s18  ;;  %s12404_s0 = sshll.u32 %s15218_s25, 3  ;;  %vm2482_vm6 = vcmask 522240  }
 0x252   : >> { %13654 = vmatpush3.bf16.msra.mxu0 %v13888_v4  ;;  %13661 = vmatprep.mubr.msk.bf16.mxu0 %vm15225_vm5, %v15224_v5  ;;  %v13894_v13 = vld [vmem:[%s19102_s9 + $0x38] sm:$0xff]   ;;  %v13896_v18 = vld [vmem:[%s19102_s9 + $0x40] sm:$0xff]   ;;  %v13898_v22 = vld [vmem:[%s19102_s9 + $0x48] sm:$0xff]   ;;  %s2481_s21 = scalar_lea.vmem [#allocation4], %s12404_s0  ;;  %s1735_s25 = sadd.s32 1, %s15218_s25  }
 0x253   : >> { %13666 = vmatpush3.bf16.msra.mxu1 %v13889_v6  ;;  %13655 = vmatprep.subr.bf16.mxu0 %v15224_v5  ;;  %v13895_v14 = vld [vmem:[%s19102_s9 + $0x18] sm:$0xff]   ;;  %v13897_v20 = vld [vmem:[%s19102_s9 + $0x60] sm:$0xff]   ;;  %v13899_v23 = vld [vmem:[%s19102_s9 + $0x68] sm:$0xff]   ;;  %p1732_p13 = scmp.ge.s32.totalorder %s1735_s25, 7  }
 0x254   : >> { %13667 = vmatprep.subr.bf16.mxu1 %v15224_v5  ;;  %13673 = vmatprep.mubr.msk.bf16.mxu1 %vm15225_vm5, %v15224_v5  ;;  %v13900_v24 = vld [vmem:[%s19102_s9 + $0x50] sm:$0xff]   ;;  %v13902_v27 = vld [vmem:[%s19102_s9 + $0x58] sm:$0xff]   ;;  %v13904_v31 = vld [vmem:[%s19102_s9 + $0x80] sm:$0xff]   ;;  %s13319_s16 = sshll.u32 (%p1732_p13), %s15329_s22, 4  ;;  %s11995_s17 = sshll.u32 (%p1732_p13), %s15371_s29, 4  ;;  %s19050_s17 = int_to_ptr.vmem [resolvable:$true] %s11995_s17 }
 0x255   : >> { %v13901_v26 = vld [vmem:[%s19102_s9 + $0x70] sm:$0xff]   ;;  %v13903_v29 = vld [vmem:[%s19102_s9 + $0x78] sm:$0xff]   ;;  %v13905_v33 = vld [vmem:[%s19102_s9 + $0xa0] sm:$0xff]   ;;  %s19126_s23 = sand.u32 (%p1732_p13), 1, %s15198_s19   ;;  %s15227_s22 = smov (%p1732_p13), [#allocation5]  }
 0x256   : >> { %13656 = vmatpush3.bf16.msra.mxu0 %v13890_v7  ;;  %v1738_v11 = vld [vmem:[%s15729_s30] sm:$0xff]  ;;  %v1739_v25 = vld [vmem:[%s15729_s30 + $0x8] sm:$0x1]  ;;  %v12320_v21 = vld [vmem:[%s15729_s30 + $0x10] sm:$0xff]  ;;  %s11983_s0 = scalar_lea.sflag (%p1732_p13), [#allocation6], %s19126_s23  ;;  %s15136_s24 = sshll.u32 (%p1732_p13), %s15227_s22, 4  ;;  %s15137_s24 = int_to_ptr.vmem [resolvable:$false] %s15136_s24 }
 0x257   : >> { %13668 = vmatpush3.bf16.msra.mxu1 %v13891_v8  ;;  %13657 = vmatprep.subr.bf16.mxu0 %v15224_v5  ;;  %v1740_v12 = vpack.c.bf16 %v1738_v11, %v1738_v11  ;;  %v1899_v28 = vpack.c.bf16 %v1739_v25, %v1738_v11  ;;  %v1984_v32 = vpack.c.bf16 %v12320_v21, %v12320_v21  ;;  %v13906_v34 = vld [vmem:[%s19102_s9 + $0x88] sm:$0xff]   ;;  %v13908_v37 = vld [vmem:[%s19102_s9 + $0x90] sm:$0xff]   ;;  %v12321_v39 = vld [vmem:[%s15729_s30 + $0x18] sm:$0x1]  ;;  %s15138_s18 = scalar_lea.vmem (%p1732_p13), %s15137_s24, 32  ;;  %p15139_p3 = scmp.lt.s32.totalorder (%p1732_p13), %s19050_s17, %s15137_s24 }
 0x258   : >> { %13669 = vmatprep.subr.bf16.mxu1 %v15224_v5  ;;  %v13907_v35 = vld [vmem:[%s19102_s9 + $0xa8] sm:$0xff]   ;;  %v13909_v38 = vld [vmem:[%s19102_s9 + $0xb0] sm:$0xff]   ;;  %v13910_v42 = vld [vmem:[%s19102_s9 + $0x98] sm:$0xff]   ;;  %v2145_v43 = vpack.c.bf16 %v12321_v39, %v12320_v21 }
 0x259   : >> { %v1759_v15 = vshrl.u32 %v1740_v12, 16  ;;  %v1761_v16 = vshll.u32 %v1740_v12, 16  ;;  %v1910_v30 = vrot.slane %v1899_v28, 1  ;;  %v2073_v36 = vshll.u32 %v1984_v32, 16  ;;  %v13911_v44 = vld [vmem:[%s19102_s9 + $0xb8] sm:$0xff]   ;;  %v13912_v46 = vld [vmem:[%s19102_s9 + $0xc0] sm:$0xff]  }
 0x25a   : >> { %13658 = vmatpush3.bf16.msra.mxu0 %v13892_v9  ;;  %v2071_v40 = vshrl.u32 %v1984_v32, 16  ;;  %v2156_v47 = vrot.slane %v2145_v43, 1  ;;  %v13913_v48 = vld [vmem:[%s19102_s9 + $0xe0] sm:$0xff]   ;;  %v13914_v50 = vld [vmem:[%s19102_s9 + $0xc8] sm:$0xff]   ;;  %v13916_v53 = vld [vmem:[%s19102_s9 + $0xd0] sm:$0xff]  }
 0x25b   : >> { %13670 = vmatpush3.bf16.msra.mxu1 %v13893_v10  ;;  %13659 = vmatprep.subr.bf16.mxu0 %v15224_v5  ;;  %v1763_v17 = vrot.slane %v1761_v16, 1  ;;  %v2075_v41 = vrot.slane %v2073_v36, 1  ;;  %v12362_v49 = vld [vmem:[%s15729_s30 + $0x20] sm:$0xff]  ;;  %v13915_v52 = vld [vmem:[%s19102_s9 + $0xe8] sm:$0xff]   ;;  %v13917_v55 = vld [vmem:[%s19102_s9 + $0xf0] sm:$0xff]  }
 0x25c   : >> { %13671 = vmatprep.subr.bf16.mxu1 %v15224_v5  ;;  %v2230_v51 = vpack.c.bf16 %v12362_v49, %v12362_v49  ;;  %v13918_v56 = vld [vmem:[%s19102_s9 + $0xd8] sm:$0xff]   ;;  %v13920_v60 = vld [vmem:[%s19102_s9 + $0x100] sm:$0xff]   ;;  %v13921_v62 = vld [vmem:[%s19102_s9 + $0x108] sm:$0xff]  }
 0x25d   : >> { %v1764_v19 = vor.u32 %v1763_v17, %v1759_v15  ;;  %v2076_v45 = vor.u32 %v2075_v41, %v2071_v40  ;;  %v13919_v59 = vld [vmem:[%s19102_s9 + $0xf8] sm:$0xff]   ;;  %v13922_v63 = vld [vmem:[%s19102_s9 + $0x110] sm:$0xff]   ;;  %v12363_v0 = vld [vmem:[%s15729_s30 + $0x28] sm:$0x1]  ;;  %s19048_s30 = scalar_lea.hbm (%p1732_p13), %s19108_s15, %s13319_s16 }
 0x25e   : >> { %13660 = vmatpush3.bf16.msra.mxu0 %v13894_v13  ;;  %v2319_v54 = vshll.u32 %v2230_v51, 16  ;;  %v2317_v57 = vshrl.u32 %v2230_v51, 16  ;;  %v2391_v1 = vpack.c.bf16 %v12363_v0, %v12362_v49  ;;  %v13923_v2 = vld [vmem:[%s19102_s9 + $0x118] sm:$0xff]   ;;  %v13942_v0 = vld [vmem:[%s19104_s11 + $0x164] ss:$16 sps:$4 sm:$0xff] (%p1732_p13)  }
 0x25f   : >> { %13672 = vmatpush3.bf16.msra.mxu1 %v13895_v14  ;;  %13677 = vmatprep.subr.bf16.mxu0 %v15224_v5 }
 0x260   : >> { %13689 = vmatprep.subr.bf16.mxu1 %v15224_v5  ;;  %v2321_v58 = vrot.slane %v2319_v54, 1  ;;  %v2402_v3 = vrot.slane %v2391_v1, 1  ;;  %v13928_v54 = vld [vmem:[%s19104_s11 + $0x100] ss:$16 sps:$4 sm:$0xff] (%p1732_p13)   ;;  %v13944_v1 = vld [vmem:[%s19104_s11 + $0x16c] ss:$16 sps:$4 sm:$0xff] (%p1732_p13)  }
 0x261   : >> { %13662 = vmatmul.mubr.msk.bf16.vlgmr.msra.gmra.mrb[0].mxu0 %vm568_vm1, %v1764_v19 }
 0x262   : >> { %13674 = vmatmul.mubr.msk.bf16.vlgmr.msra.gmra.mrb[0].mxu1 %vm568_vm1, %v1740_v12  ;;  %13678 = vmatpush3.bf16.msra.mxu0 %v13896_v18  ;;  %v2322_v61 = vor.u32 %v2321_v58, %v2317_v57  ;;  %v13932_v57 = vld [vmem:[%s19104_s11 + $0x12c] ss:$16 sps:$4 sm:$0xff] (%p1732_p13)   ;;  %v13934_v58 = vld [vmem:[%s19104_s11 + $0x120] ss:$16 sps:$4 sm:$0xff] (%p1732_p13)  }
 0x263   : >> { %13690 = vmatpush3.bf16.msra.mxu1 %v13897_v20  ;;  %13679 = vmatprep.subr.bf16.mxu0 %v15224_v5 }
 0x264   : >> { %13691 = vmatprep.subr.bf16.mxu1 %v15224_v5  ;;  %13685 = vmatprep.mubr.msk.bf16.mxu0 %vm15225_vm5, %v15224_v5 }
 0x265   : >> { %13697 = vmatprep.mubr.msk.bf16.mxu1 %vm15225_vm5, %v15224_v5 }
 0x266   : >> { %13680 = vmatpush3.bf16.msra.mxu0 %v13898_v22 }
 0x267   : >> { %13692 = vmatpush3.bf16.msra.mxu1 %v13899_v23  ;;  %13681 = vmatprep.subr.bf16.mxu0 %v15224_v5 }
 0x268   : >> { %13693 = vmatprep.subr.bf16.mxu1 %v15224_v5 }
 0x26a   : >> { %13682 = vmatpush3.bf16.msra.mxu0 %v13900_v24 }
 0x26b   : >> { %13694 = vmatpush3.bf16.msra.mxu1 %v13901_v26  ;;  %13683 = vmatprep.subr.bf16.mxu0 %v15224_v5 }
 0x26c   : >> { %13695 = vmatprep.subr.bf16.mxu1 %v15224_v5 }
 0x26e   : >> { %13684 = vmatpush3.bf16.msra.mxu0 %v13902_v27 }
 0x26f   : >> { %13696 = vmatpush3.bf16.msra.mxu1 %v13903_v29  ;;  %13701 = vmatprep.subr.bf16.mxu0 %v15224_v5 }
 0x270   : >> { %13713 = vmatprep.subr.bf16.mxu1 %v15224_v5 }
 0x271   : >> { %13686 = vmatmul.mubr.msk.bf16.vlgmr.msra.gmra.mrb[4].mxu0 %vm568_vm1, %v1910_v30 }
 0x272   : >> { %13702 = vmatpush3.bf16.msra.mxu0 %v13904_v31  ;;  %13698 = vmatmul.mubr.msk.bf16.vlgmr.msra.gmra.mrb[4].mxu1 %vm568_vm1, %v1984_v32 }
 0x273   : >> { %13714 = vmatpush3.bf16.msra.mxu1 %v13905_v33  ;;  %13703 = vmatprep.subr.bf16.mxu0 %v15224_v5 }
 0x274   : >> { %13715 = vmatprep.subr.bf16.mxu1 %v15224_v5  ;;  %13709 = vmatprep.mubr.msk.bf16.mxu0 %vm15225_vm5, %v15224_v5 }
 0x275   : >> { %13721 = vmatprep.mubr.msk.bf16.mxu1 %vm15225_vm5, %v15224_v5 }
 0x276   : >> { %13704 = vmatpush3.bf16.msra.mxu0 %v13906_v34 }
 0x277   : >> { %13716 = vmatpush3.bf16.msra.mxu1 %v13907_v35  ;;  %13705 = vmatprep.subr.bf16.mxu0 %v15224_v5 }
 0x278   : >> { %13717 = vmatprep.subr.bf16.mxu1 %v15224_v5 }
 0x27a   : >> { %13706 = vmatpush3.bf16.msra.mxu0 %v13908_v37 }
 0x27b   : >> { %13718 = vmatpush3.bf16.msra.mxu1 %v13909_v38  ;;  %13707 = vmatprep.subr.bf16.mxu0 %v15224_v5 }
 0x27c   : >> { %13719 = vmatprep.subr.bf16.mxu1 %v15224_v5 }
 0x27e   : >> { %13708 = vmatpush3.bf16.msra.mxu0 %v13910_v42 }
 0x27f   : >> { %13720 = vmatpush3.bf16.msra.mxu1 %v13911_v44  ;;  %13725 = vmatprep.subr.bf16.mxu0 %v15224_v5  ;;  %v12403_v44 = vld [vmem:[%s19103_s10] ss:$0 sm:$0xff] }
 0x280   : >> { %13737 = vmatprep.subr.bf16.mxu1 %v15224_v5 }
 0x281   : >> { %13710 = vmatmul.mubr.msk.bf16.vlgmr.msra.gmra.mrb[8].mxu0 %vm568_vm1, %v2076_v45 }
 0x282   : >> { %13726 = vmatpush3.bf16.msra.mxu0 %v13912_v46  ;;  %13722 = vmatmul.mubr.msk.bf16.vlgmr.msra.gmra.mrb[8].mxu1 %vm568_vm1, %v2156_v47 }
 0x283   : >> { %13738 = vmatpush3.bf16.msra.mxu1 %v13913_v48  ;;  %13727 = vmatprep.subr.bf16.mxu0 %v15224_v5 }
 0x284   : >> { %13739 = vmatprep.subr.bf16.mxu1 %v15224_v5  ;;  %13733 = vmatprep.mubr.msk.bf16.mxu0 %vm15225_vm5, %v15224_v5 }
 0x285   : >> { %13745 = vmatprep.mubr.msk.bf16.mxu1 %vm15225_vm5, %v15224_v5 }
 0x286   : >> { %13728 = vmatpush3.bf16.msra.mxu0 %v13914_v50 }
 0x287   : >> { %13740 = vmatpush3.bf16.msra.mxu1 %v13915_v52  ;;  %13729 = vmatprep.subr.bf16.mxu0 %v15224_v5  ;;  %v13926_v52 = vld [vmem:[%s19104_s11 + $0x10c] ss:$16 sps:$4 sm:$0xff] (%p1732_p13)  }
 0x288   : >> { %13741 = vmatprep.subr.bf16.mxu1 %v15224_v5 }
 0x28a   : >> { %13730 = vmatpush3.bf16.msra.mxu0 %v13916_v53  ;;  %v15226_v53 = vmov (%p1732_p13), 0  }
 0x28b   : >> { %13742 = vmatpush3.bf16.msra.mxu1 %v13917_v55  ;;  %13731 = vmatprep.subr.bf16.mxu0 %v15224_v5  ;;  %v13929_v55 = vld [vmem:[%s19104_s11 + $0x108] ss:$16 sps:$4 sm:$0xff] (%p1732_p13)  }
 0x28c   : >> { %13743 = vmatprep.subr.bf16.mxu1 %v15224_v5 }
 0x28e   : >> { %13732 = vmatpush3.bf16.msra.mxu0 %v13918_v56  ;;  %v13930_v56 = vld [vmem:[%s19104_s11 + $0x124] ss:$16 sps:$4 sm:$0xff] (%p1732_p13)  }
 0x28f   : >> { %13744 = vmatpush3.bf16.msra.mxu1 %v13919_v59  ;;  %13749 = vmatprep.subr.bf16.mxu0 %v15224_v5  ;;  %v13935_v59 = vld [vmem:[%s19104_s11 + $0x128] ss:$16 sps:$4 sm:$0xff] (%p1732_p13)  }
 0x290   : > { %2661 = vmatprep.subr.bf16.mxu1 (%p1732_p13), %v13926_v52  ;;  %v14011_v52 = vld [vmem:[%s19104_s11 + $0xc8] ss:$16 sps:$4 sm:$0xff] (%p1732_p13)  }
 0x291   : >> { %13734 = vmatmul.mubr.msk.bf16.vlgmr.msra.gmra.mrb[12].mxu0 %vm568_vm1, %v2230_v51  ;;  %v13924_v51 = vld [vmem:[%s19104_s11 + $0x104] ss:$16 sps:$4 sm:$0xff] (%p1732_p13)  }
 0x292   : >> { %13750 = vmatpush3.bf16.msra.mxu0 %v13920_v60  ;;  %13746 = vmatmul.mubr.msk.bf16.vlgmr.msra.gmra.mrb[12].mxu1 %vm568_vm1, %v2322_v61  ;;  %v13936_v60 = vld [vmem:[%s19104_s11 + $0x144] ss:$16 sps:$4 sm:$0xff] (%p1732_p13)   ;;  %v13938_v61 = vld [vmem:[%s19104_s11 + $0x14c] ss:$16 sps:$4 sm:$0xff] (%p1732_p13)  }
 0x293   : >> { %13751 = vmatprep.subr.bf16.mxu0 %v15224_v5  ;;  %13757 = vmatprep.mubr.msk.bf16.mxu0 %vm15225_vm5, %v15224_v5 }
 0x294   : > { %2693 = vmatprep.mubr.bf16.mxu1 (%p1732_p13), %v15226_v53  ;;  %2662 = vmatpush1.bf16.msra.mxu1 (%p1732_p13), %v13929_v55  ;;  %v14019_v55 = vld [vmem:[%s19104_s11 + $0xec] ss:$16 sps:$4 sm:$0xff] (%p1732_p13)  }
 0x295   : > { %2663 = vmatprep.subr.bf16.mxu1 (%p1732_p13), %v13932_v57  ;;  %v14017_v57 = vld [vmem:[%s19104_s11 + $0xe8] ss:$16 sps:$4 sm:$0xff] (%p1732_p13)  }
 0x296   : >> { %13752 = vmatpush3.bf16.msra.mxu0 %v13921_v62  ;;  %v13940_v62 = vld [vmem:[%s19104_s11 + $0x140] ss:$16 sps:$4 sm:$0xff] (%p1732_p13)  }
 0x297   : >> { %13753 = vmatprep.subr.bf16.mxu0 %v15224_v5 }
 0x298   : > { %2664 = vmatpush1.bf16.msra.mxu1 (%p1732_p13), %v13935_v59  ;;  %v14025_v59 = vld [vmem:[%s19104_s11 + $0x20c] ss:$16 sps:$4 sm:$0xff] (%p1732_p13)  }
 0x299   : > { %2665 = vmatprep.subr.bf16.mxu1 (%p1732_p13), %v13938_v61  ;;  %v14023_v61 = vld [vmem:[%s19104_s11 + $0x208] ss:$16 sps:$4 sm:$0xff] (%p1732_p13)  }
 0x29a   : >> { %13754 = vmatpush3.bf16.msra.mxu0 %v13922_v63  ;;  %v13941_v63 = vld [vmem:[%s19104_s11 + $0x148] ss:$16 sps:$4 sm:$0xff] (%p1732_p13)  }
 0x29b   : >> { %13755 = vmatprep.subr.bf16.mxu0 %v15224_v5 }
 0x29c   : > { %2666 = vmatpush1.bf16.msra.mxu1 (%p1732_p13), %v13941_v63  ;;  %v14031_v63 = vld [vmem:[%s19104_s11 + $0x22c] ss:$16 sps:$4 sm:$0xff] (%p1732_p13)  }
 0x29d   : > { %2667 = vmatprep.subr.bf16.mxu1 (%p1732_p13), %v13944_v1  ;;  %v14029_v1 = vld [vmem:[%s19104_s11 + $0x228] ss:$16 sps:$4 sm:$0xff] (%p1732_p13)  }
 0x29e   : >> { %13756 = vmatpush3.bf16.msra.mxu0 %v13923_v2 }
 0x29f   : > { %2620 = vmatprep.subr.bf16.mxu0 (%p1732_p13), %v13924_v51  ;;  %v14008_v51 = vld [vmem:[%s19104_s11 + $0xc0] ss:$16 sps:$4 sm:$0xff] (%p1732_p13)  }
 0x2a1   : >> { %13758 = vmatmul.mubr.msk.bf16.vlgmr.msra.gmra.mrb[16].mxu0 %vm568_vm1, %v2402_v3  ;;  %v13946_v3 = vld [vmem:[%s19104_s11 + $0x160] ss:$16 sps:$4 sm:$0xff] (%p1732_p13)  }
 0x2a2   : > { %2652 = vmatprep.mubr.bf16.mxu0 (%p1732_p13), %v15226_v53  ;;  %2621 = vmatpush1.bf16.msra.mxu0 (%p1732_p13), %v13928_v54  ;;  %v14016_v54 = vld [vmem:[%s19104_s11 + $0xe4] ss:$16 sps:$4 sm:$0xff] (%p1732_p13)  }
 0x2a3   : > { %2622 = vmatprep.subr.bf16.mxu0 (%p1732_p13), %v13930_v56  ;;  %v14014_v56 = vld [vmem:[%s19104_s11 + $0xe0] ss:$16 sps:$4 sm:$0xff] (%p1732_p13)  }
 0x2a6   : > { %2623 = vmatpush1.bf16.msra.mxu0 (%p1732_p13), %v13934_v58  ;;  %v14022_v58 = vld [vmem:[%s19104_s11 + $0x204] ss:$16 sps:$4 sm:$0xff] (%p1732_p13)  }
 0x2a7   : > { %2624 = vmatprep.subr.bf16.mxu0 (%p1732_p13), %v13936_v60  ;;  %v14020_v60 = vld [vmem:[%s19104_s11 + $0x200] ss:$16 sps:$4 sm:$0xff] (%p1732_p13)  }
 0x2aa   : > { %2625 = vmatpush1.bf16.msra.mxu0 (%p1732_p13), %v13940_v62  ;;  %v14028_v62 = vld [vmem:[%s19104_s11 + $0x224] ss:$16 sps:$4 sm:$0xff] (%p1732_p13)  }
 0x2ab   : > { %2626 = vmatprep.subr.bf16.mxu0 (%p1732_p13), %v13942_v0  ;;  %v14026_v0 = vld [vmem:[%s19104_s11 + $0x220] ss:$16 sps:$4 sm:$0xff] (%p1732_p13)  }
 0x2ae   : > { %2627 = vmatpush1.bf16.msra.mxu0 (%p1732_p13), %v13946_v3  ;;  %v14037_v3 = vld [vmem:[%s19104_s11 + $0x24c] ss:$16 sps:$4 sm:$0xff] (%p1732_p13)  }
 0x334   : >> { %v1827_v4 = vpop.f32.mrb[0].mxu0 }
 0x335   : >> { %v13663_v6 = vpop.f32.mrb[1].mxu0  ;;  %v1893_v7 = vpop.f32.mrb[0].mxu1 }
 0x336   : >> { %v1894_v8 = vadd.f32 %v1893_v7, %v1827_v4  ;;  %v1830_v9 = vpop.f32.mrb[2].mxu0  ;;  %v13675_v10 = vpop.f32.mrb[1].mxu1  ;;  %v13947_v6 = vld [vmem:[%s19104_s11 + $0x168] ss:$16 sps:$4 sm:$0xff] (%p1732_p13)   ;;  %v13950_v7 = vld [vmem:[%s19104_s11 + $0x4] ss:$16 sps:$4 sm:$0xff] (%p1732_p13)  }
 0x337   : >> { %v13664_v11 = vpop.f32.mrb[3].mxu0  ;;  %v1896_v12 = vpop.f32.mrb[2].mxu1  ;;  %v13948_v10 = vld [vmem:[%s19104_s11] ss:$16 sps:$4 sm:$0xff] (%p1732_p13)   ;;  %2668 = vmatpush1.bf16.msra.mxu1 (%p1732_p13), %v13947_v6  ;;  %2785 = vmatprep.subr.bf16.mxu0 (%p1732_p13), %v13950_v7  ;;  %v14035_v7 = vld [vmem:[%s19104_s11 + $0x248] ss:$16 sps:$4 sm:$0xff] (%p1732_p13)  }
 0x338   : >> { %v13676_v13 = vpop.f32.mrb[3].mxu1  ;;  %v13951_v11 = vld [vmem:[%s19104_s11 + $0x8] ss:$16 sps:$4 sm:$0xff] (%p1732_p13)   ;;  %v13956_v12 = vld [vmem:[%s19104_s11 + $0x24] ss:$16 sps:$4 sm:$0xff] (%p1732_p13)  }
 0x339   : > { %v13959_v13 = vld [vmem:[%s19104_s11 + $0x2c] ss:$16 sps:$4 sm:$0xff] (%p1732_p13)   ;;  %v14032_v6 = vld [vmem:[%s19104_s11 + $0x240] ss:$16 sps:$4 sm:$0xff] (%p1732_p13)  }
 0x344   : >> { %v1972_v14 = vpop.f32.mrb[4].mxu0 }
 0x345   : >> { %v1978_v15 = vadd.f32 %v1972_v14, %v1894_v8  ;;  %v13687_v16 = vpop.f32.mrb[5].mxu0  ;;  %v2055_v17 = vpop.f32.mrb[4].mxu1  ;;  %v13953_v8 = vld [vmem:[%s19104_s11 + $0xc] ss:$16 sps:$4 sm:$0xff] (%p1732_p13)   ;;  %v13954_v14 = vld [vmem:[%s19104_s11 + $0x20] ss:$16 sps:$4 sm:$0xff] (%p1732_p13)  }
 0x346   : >> { %v1975_v18 = vpop.f32.mrb[6].mxu0  ;;  %v13699_v19 = vpop.f32.mrb[5].mxu1  ;;  %2826 = vmatprep.subr.bf16.mxu1 (%p1732_p13), %v13953_v8  ;;  %v13962_v16 = vld [vmem:[%s19104_s11 + $0x44] ss:$16 sps:$4 sm:$0xff] (%p1732_p13)  }
 0x347   : >> { %v2061_v5 = vadd.f32 %v2055_v17, %v1978_v15  ;;  %v13688_v20 = vpop.f32.mrb[7].mxu0  ;;  %v2058_v22 = vpop.f32.mrb[6].mxu1  ;;  %v13957_v15 = vld [vmem:[%s19104_s11 + $0x28] ss:$16 sps:$4 sm:$0xff] (%p1732_p13)   ;;  %v13965_v17 = vld [vmem:[%s19104_s11 + $0x4c] ss:$16 sps:$4 sm:$0xff] (%p1732_p13)  }
 0x348   : >> { %v13700_v23 = vpop.f32.mrb[7].mxu1  ;;  %v13960_v18 = vld [vmem:[%s19104_s11 + $0x40] ss:$16 sps:$4 sm:$0xff] (%p1732_p13)   ;;  %v13963_v19 = vld [vmem:[%s19104_s11 + $0x48] ss:$16 sps:$4 sm:$0xff] (%p1732_p13)  }
 0x349   : > { %v13971_v20 = vld [vmem:[%s19104_s11 + $0x6c] ss:$16 sps:$4 sm:$0xff] (%p1732_p13)   ;;  %v13966_v22 = vld [vmem:[%s19104_s11 + $0x60] ss:$16 sps:$4 sm:$0xff] (%p1732_p13)   ;;  %v13969_v23 = vld [vmem:[%s19104_s11 + $0x68] ss:$16 sps:$4 sm:$0xff] (%p1732_p13)  }
 0x34a   : > { %v14040_v8 = vld [vmem:[%s19104_s11 + $0x264] ss:$16 sps:$4 sm:$0xff] (%p1732_p13)  }
 0x354   : >> { %v2138_v24 = vpop.f32.mrb[8].mxu0 }
 0x355   : >> { %v2144_v25 = vadd.f32 %v2138_v24, %v2061_v5  ;;  %v13711_v26 = vpop.f32.mrb[9].mxu0  ;;  %v2218_v27 = vpop.f32.mrb[8].mxu1  ;;  %v13968_v5 = vld [vmem:[%s19104_s11 + $0x64] ss:$16 sps:$4 sm:$0xff] (%p1732_p13)  }
 0x356   : >> { %v2141_v28 = vpop.f32.mrb[10].mxu0  ;;  %v13723_v29 = vpop.f32.mrb[9].mxu1  ;;  %v13974_v24 = vld [vmem:[%s19104_s11 + $0x184] ss:$16 sps:$4 sm:$0xff] (%p1732_p13)   ;;  %v13972_v26 = vld [vmem:[%s19104_s11 + $0x180] ss:$16 sps:$4 sm:$0xff] (%p1732_p13)  }
 0x357   : >> { %v2224_v21 = vadd.f32 %v2218_v27, %v2144_v25  ;;  %v13712_v30 = vpop.f32.mrb[11].mxu0  ;;  %v2221_v31 = vpop.f32.mrb[10].mxu1  ;;  %v13977_v25 = vld [vmem:[%s19104_s11 + $0x18c] ss:$16 sps:$4 sm:$0xff] (%p1732_p13)   ;;  %v13975_v27 = vld [vmem:[%s19104_s11 + $0x188] ss:$16 sps:$4 sm:$0xff] (%p1732_p13)  }
 0x358   : >> { %v13724_v32 = vpop.f32.mrb[11].mxu1  ;;  %v13980_v28 = vld [vmem:[%s19104_s11 + $0x1a4] ss:$16 sps:$4 sm:$0xff] (%p1732_p13)   ;;  %v13983_v29 = vld [vmem:[%s19104_s11 + $0x1ac] ss:$16 sps:$4 sm:$0xff] (%p1732_p13)  }
 0x359   : > { %v13981_v30 = vld [vmem:[%s19104_s11 + $0x1a8] ss:$16 sps:$4 sm:$0xff] (%p1732_p13)   ;;  %v13986_v31 = vld [vmem:[%s19104_s11 + $0x1c4] ss:$16 sps:$4 sm:$0xff] (%p1732_p13)   ;;  %v13989_v32 = vld [vmem:[%s19104_s11 + $0x1cc] ss:$16 sps:$4 sm:$0xff] (%p1732_p13)  }
 0x364   : >> { %v2301_v33 = vpop.f32.mrb[12].mxu0 }
 0x365   : >> { %v2307_v34 = vadd.f32 %v2301_v33, %v2224_v21  ;;  %v13735_v35 = vpop.f32.mrb[13].mxu0  ;;  %v2384_v36 = vpop.f32.mrb[12].mxu1  ;;  %v13978_v21 = vld [vmem:[%s19104_s11 + $0x1a0] ss:$16 sps:$4 sm:$0xff] (%p1732_p13)  }
 0x366   : >> { %v2304_v37 = vpop.f32.mrb[14].mxu0  ;;  %v13747_v38 = vpop.f32.mrb[13].mxu1  ;;  %v13984_v33 = vld [vmem:[%s19104_s11 + $0x1c0] ss:$16 sps:$4 sm:$0xff] (%p1732_p13)   ;;  %v13992_v35 = vld [vmem:[%s19104_s11 + $0x1e4] ss:$16 sps:$4 sm:$0xff] (%p1732_p13)  }
 0x367   : >> { %v2390_v39 = vadd.f32 %v2384_v36, %v2307_v34  ;;  %v13736_v40 = vpop.f32.mrb[15].mxu0  ;;  %v2387_v41 = vpop.f32.mrb[14].mxu1  ;;  %v13987_v34 = vld [vmem:[%s19104_s11 + $0x1c8] ss:$16 sps:$4 sm:$0xff] (%p1732_p13)   ;;  %v13995_v36 = vld [vmem:[%s19104_s11 + $0x1ec] ss:$16 sps:$4 sm:$0xff] (%p1732_p13)  }
 0x368   : >> { %v13748_v42 = vpop.f32.mrb[15].mxu1  ;;  %v13990_v37 = vld [vmem:[%s19104_s11 + $0x1e0] ss:$16 sps:$4 sm:$0xff] (%p1732_p13)   ;;  %v13998_v40 = vld [vmem:[%s19104_s11 + $0x84] ss:$16 sps:$4 sm:$0xff] (%p1732_p13)  }
 0x369   : > { %v14001_v41 = vld [vmem:[%s19104_s11 + $0x8c] ss:$16 sps:$4 sm:$0xff] (%p1732_p13)  }
 0x374   : >> { %v2464_v43 = vpop.f32.mrb[16].mxu0 }
 0x375   : >> { %v2470_v45 = vadd.f32 %v2464_v43, %v2390_v39  ;;  %v13759_v46 = vpop.f32.mrb[17].mxu0  ;;  %1734 = sbr.rel (!%p1732_p13) target bundleno = 592 (0x250), region = 198  ;;  %v13993_v39 = vld [vmem:[%s19104_s11 + $0x1e8] ss:$16 sps:$4 sm:$0xff] (%p1732_p13)   ;;  %v13996_v43 = vld [vmem:[%s19104_s11 + $0x80] ss:$16 sps:$4 sm:$0xff] (%p1732_p13)  }
 0x376   : >> { %v2467_v47 = vpop.f32.mrb[18].mxu0  ;;  %v14007_v46 = vld [vmem:[%s19104_s11 + $0xac] ss:$16 sps:$4 sm:$0xff] (%p1732_p13)  }
 0x377   : >> { %v2478_v48 = vadd.f32 %v12403_v44, %v2470_v45  ;;  %v13760_v49 = vpop.f32.mrb[19].mxu0  ;;  %v13999_v44 = vld [vmem:[%s19104_s11 + $0x88] ss:$16 sps:$4 sm:$0xff] (%p1732_p13)   ;;  %v14004_v45 = vld [vmem:[%s19104_s11 + $0xa4] ss:$16 sps:$4 sm:$0xff] (%p1732_p13)  }
 0x378   : > { %v14002_v47 = vld [vmem:[%s19104_s11 + $0xa0] ss:$16 sps:$4 sm:$0xff] (%p1732_p13)   ;;  %v14010_v49 = vld [vmem:[%s19104_s11 + $0xc4] ss:$16 sps:$4 sm:$0xff] (%p1732_p13)  }
 0x379   : >> { %v2479_v50 = vmax.f32 %v2478_v48, 0.0  ;;  %v14005_v48 = vld [vmem:[%s19104_s11 + $0xa8] ss:$16 sps:$4 sm:$0xff] (%p1732_p13)  }
 0x37b   : >> { %2483 = vst.msk [vmem:[%s2481_s21] sm:$0x7f] %vm2482_vm6, %v2479_v50  ;;  %v14013_v50 = vld [vmem:[%s19104_s11 + $0xcc] ss:$16 sps:$4 sm:$0xff] (%p1732_p13)   ;;  %s15132_s21 = scalar_lea.vmem (%p1732_p13), %s19050_s17, 16 }
 0x37c   : > { %p15133_p0 = scmp.ne.s32.totalorder %s19050_s17, %s15132_s21  ;;  %p15140_p4 = scmp.lt.s32.totalorder %s15138_s18, %s15132_s21 }
 0x37e   : > { %p15134_p1 = pnand %p15133_p0, %p15346_p5  ;;  %p15141_p7 = por %p15140_p4, %p15139_p3 }
 0x380   : > { %p15135_p2 = pneg %p15134_p1 }
 0x382   : > { %v2484_v2 = vld [vmem:[#allocation4] sm:$0x7f]  ;;  %p15142_p8 = pnand %p15141_p7, %p15135_p2 }
 0x383   : > { %v15934_v4 = vpack.c.bf16 %v2484_v2, %v2484_v2  ;;  %v14034_v2 = vld [vmem:[%s19104_s11 + $0x244] ss:$16 sps:$4 sm:$0xff]  }
 0x385   : > { %v2535_v9 = vrot.slane %v15934_v4, 1  ;;  %v16044_v38 = vshrl.u32 %v15934_v4, 16 }
 0x387   : > { %12421 = vmatmul.mubr.msk.bf16.vlgmr.msra.gmra.mrb[0].mxu0 %vm568_vm1, %v2535_v9  ;;  %12422 = vmatmul.mubr.msk.bf16.vlgmr.msra.gmra.mrb[0].mxu1 %vm568_vm1, %v2535_v9  ;;  %v2885_v42 = vrot.slane %v16044_v38, 1  ;;  %v14043_v9 = vld [vmem:[%s19104_s11 + $0x26c] ss:$16 sps:$4 sm:$0xff]  }
 0x388   : > { %2786 = vmatpush1.bf16.msra.mxu0 %v13948_v10  ;;  %2827 = vmatpush1.bf16.msra.mxu1 %v13951_v11  ;;  %v14038_v10 = vld [vmem:[%s19104_s11 + $0x260] ss:$16 sps:$4 sm:$0xff]   ;;  %v14041_v11 = vld [vmem:[%s19104_s11 + $0x268] ss:$16 sps:$4 sm:$0xff]  }
 0x389   : > { %2787 = vmatprep.subr.bf16.mxu0 %v13956_v12  ;;  %2828 = vmatprep.subr.bf16.mxu1 %v13959_v13  ;;  %v14046_v12 = vld [vmem:[%s19104_s11 + $0x284] ss:$16 sps:$4 sm:$0xff]   ;;  %v14049_v13 = vld [vmem:[%s19104_s11 + $0x28c] ss:$16 sps:$4 sm:$0xff]  }
 0x38a   : > { %2817 = vmatprep.mubr.bf16.mxu0 %v15226_v53  ;;  %2858 = vmatprep.mubr.bf16.mxu1 %v15226_v53 }
 0x38c   : > { %2788 = vmatpush1.bf16.msra.mxu0 %v13954_v14  ;;  %2829 = vmatpush1.bf16.msra.mxu1 %v13957_v15  ;;  %v3232_v14 = vrot.slane %v15934_v4, 2  ;;  %v14044_v15 = vld [vmem:[%s19104_s11 + $0x280] ss:$16 sps:$4 sm:$0xff]  }
 0x38d   : > { %2789 = vmatprep.subr.bf16.mxu0 %v13962_v16  ;;  %2830 = vmatprep.subr.bf16.mxu1 %v13965_v17  ;;  %v14047_v16 = vld [vmem:[%s19104_s11 + $0x288] ss:$16 sps:$4 sm:$0xff]   ;;  %v14052_v17 = vld [vmem:[%s19104_s11 + $0x2a4] ss:$16 sps:$4 sm:$0xff]  }
 0x390   : > { %2790 = vmatpush1.bf16.msra.mxu0 %v13960_v18  ;;  %2831 = vmatpush1.bf16.msra.mxu1 %v13963_v19  ;;  %v14055_v18 = vld [vmem:[%s19104_s11 + $0x2ac] ss:$16 sps:$4 sm:$0xff]   ;;  %v14050_v19 = vld [vmem:[%s19104_s11 + $0x2a0] ss:$16 sps:$4 sm:$0xff]  }
 0x391   : > { %2791 = vmatprep.subr.bf16.mxu0 %v13968_v5  ;;  %2832 = vmatprep.subr.bf16.mxu1 %v13971_v20  ;;  %v14053_v5 = vld [vmem:[%s19104_s11 + $0x2a8] ss:$16 sps:$4 sm:$0xff]   ;;  %v14058_v20 = vld [vmem:[%s19104_s11 + $0x2c4] ss:$16 sps:$4 sm:$0xff]  }
 0x394   : > { %2792 = vmatpush1.bf16.msra.mxu0 %v13966_v22  ;;  %2833 = vmatpush1.bf16.msra.mxu1 %v13969_v23  ;;  %v14061_v22 = vld [vmem:[%s19104_s11 + $0x2cc] ss:$16 sps:$4 sm:$0xff]   ;;  %v14056_v23 = vld [vmem:[%s19104_s11 + $0x2c0] ss:$16 sps:$4 sm:$0xff]  }
 0x395   : > { %2969 = vmatprep.subr.bf16.mxu0 %v13974_v24  ;;  %3010 = vmatprep.subr.bf16.mxu1 %v13977_v25  ;;  %v14059_v24 = vld [vmem:[%s19104_s11 + $0x2c8] ss:$16 sps:$4 sm:$0xff]   ;;  %v14064_v25 = vld [vmem:[%s19104_s11 + $0x2e4] ss:$16 sps:$4 sm:$0xff]  }
 0x397   : > { %12439 = vmatmul.mubr.msk.bf16.vlgmr.msra.gmra.mrb[4].mxu0 %vm568_vm1, %v15934_v4  ;;  %12440 = vmatmul.mubr.msk.bf16.vlgmr.msra.gmra.mrb[4].mxu1 %vm568_vm1, %v15934_v4 }
 0x398   : > { %2970 = vmatpush1.bf16.msra.mxu0 %v13972_v26  ;;  %3011 = vmatpush1.bf16.msra.mxu1 %v13975_v27  ;;  %v14067_v26 = vld [vmem:[%s19104_s11 + $0x2ec] ss:$16 sps:$4 sm:$0xff]   ;;  %v14062_v27 = vld [vmem:[%s19104_s11 + $0x2e0] ss:$16 sps:$4 sm:$0xff]  }
 0x399   : > { %2971 = vmatprep.subr.bf16.mxu0 %v13980_v28  ;;  %3012 = vmatprep.subr.bf16.mxu1 %v13983_v29  ;;  %v14065_v28 = vld [vmem:[%s19104_s11 + $0x2e8] ss:$16 sps:$4 sm:$0xff]   ;;  %v14070_v29 = vld [vmem:[%s19104_s11 + $0x304] ss:$16 sps:$4 sm:$0xff]  }
 0x39a   : > { %3001 = vmatprep.mubr.bf16.mxu0 %v15226_v53  ;;  %3042 = vmatprep.mubr.bf16.mxu1 %v15226_v53 }
 0x39c   : > { %2972 = vmatpush1.bf16.msra.mxu0 %v13978_v21  ;;  %3013 = vmatpush1.bf16.msra.mxu1 %v13981_v30  ;;  %v14073_v21 = vld [vmem:[%s19104_s11 + $0x30c] ss:$16 sps:$4 sm:$0xff]   ;;  %v3418_v30 = vrot.slane %v16044_v38, 2 }
 0x39d   : > { %2973 = vmatprep.subr.bf16.mxu0 %v13986_v31  ;;  %3014 = vmatprep.subr.bf16.mxu1 %v13989_v32  ;;  %v14068_v31 = vld [vmem:[%s19104_s11 + $0x300] ss:$16 sps:$4 sm:$0xff]   ;;  %v14071_v32 = vld [vmem:[%s19104_s11 + $0x308] ss:$16 sps:$4 sm:$0xff]  }
 0x3a0   : > { %2974 = vmatpush1.bf16.msra.mxu0 %v13984_v33  ;;  %3015 = vmatpush1.bf16.msra.mxu1 %v13987_v34  ;;  %v14076_v33 = vld [vmem:[%s19104_s11 + $0x324] ss:$16 sps:$4 sm:$0xff]   ;;  %v14079_v34 = vld [vmem:[%s19104_s11 + $0x32c] ss:$16 sps:$4 sm:$0xff]  }
 0x3a1   : > { %2975 = vmatprep.subr.bf16.mxu0 %v13992_v35  ;;  %3016 = vmatprep.subr.bf16.mxu1 %v13995_v36  ;;  %v14074_v35 = vld [vmem:[%s19104_s11 + $0x320] ss:$16 sps:$4 sm:$0xff]   ;;  %v14077_v36 = vld [vmem:[%s19104_s11 + $0x328] ss:$16 sps:$4 sm:$0xff]  }
 0x3a4   : > { %2976 = vmatpush1.bf16.msra.mxu0 %v13990_v37  ;;  %3017 = vmatpush1.bf16.msra.mxu1 %v13993_v39  ;;  %v14082_v37 = vld [vmem:[%s19104_s11 + $0x344] ss:$16 sps:$4 sm:$0xff]   ;;  %v14080_v39 = vld [vmem:[%s19104_s11 + $0x340] ss:$16 sps:$4 sm:$0xff]  }
 0x3a5   : > { %3134 = vmatprep.subr.bf16.mxu0 %v13998_v40  ;;  %3175 = vmatprep.subr.bf16.mxu1 %v14001_v41  ;;  %v14083_v40 = vld [vmem:[%s19104_s11 + $0x348] ss:$16 sps:$4 sm:$0xff]   ;;  %v14088_v41 = vld [vmem:[%s19104_s11 + $0x364] ss:$16 sps:$4 sm:$0xff]  }
 0x3a7   : > { %12457 = vmatmul.mubr.msk.bf16.vlgmr.msra.gmra.mrb[8].mxu0 %vm568_vm1, %v2885_v42  ;;  %12458 = vmatmul.mubr.msk.bf16.vlgmr.msra.gmra.mrb[8].mxu1 %vm568_vm1, %v2885_v42  ;;  %v14091_v42 = vld [vmem:[%s19104_s11 + $0x36c] ss:$16 sps:$4 sm:$0xff]  }
 0x3a8   : > { %3135 = vmatpush1.bf16.msra.mxu0 %v13996_v43  ;;  %3176 = vmatpush1.bf16.msra.mxu1 %v13999_v44  ;;  %v14086_v43 = vld [vmem:[%s19104_s11 + $0x360] ss:$16 sps:$4 sm:$0xff]   ;;  %v14089_v44 = vld [vmem:[%s19104_s11 + $0x368] ss:$16 sps:$4 sm:$0xff]  }
 0x3a9   : > { %3136 = vmatprep.subr.bf16.mxu0 %v14004_v45  ;;  %3177 = vmatprep.subr.bf16.mxu1 %v14007_v46  ;;  %v14094_v45 = vld [vmem:[%s19104_s11 + $0x384] ss:$16 sps:$4 sm:$0xff]   ;;  %v14097_v46 = vld [vmem:[%s19104_s11 + $0x38c] ss:$16 sps:$4 sm:$0xff]  }
 0x3aa   : > { %3166 = vmatprep.mubr.bf16.mxu0 %v15226_v53  ;;  %3207 = vmatprep.mubr.bf16.mxu1 %v15226_v53 }
 0x3ac   : > { %3137 = vmatpush1.bf16.msra.mxu0 %v14002_v47  ;;  %3178 = vmatpush1.bf16.msra.mxu1 %v14005_v48  ;;  %v3604_v47 = vrot.slane %v15934_v4, 3  ;;  %v14092_v48 = vld [vmem:[%s19104_s11 + $0x380] ss:$16 sps:$4 sm:$0xff]   ;;  %v14103_v4 = vld [vmem:[%s19104_s11 + $0x3ac] ss:$16 sps:$4 sm:$0xff]  }
 0x3ad   : > { %3138 = vmatprep.subr.bf16.mxu0 %v14010_v49  ;;  %3179 = vmatprep.subr.bf16.mxu1 %v14013_v50  ;;  %v14095_v49 = vld [vmem:[%s19104_s11 + $0x388] ss:$16 sps:$4 sm:$0xff]   ;;  %v14100_v50 = vld [vmem:[%s19104_s11 + $0x3a4] ss:$16 sps:$4 sm:$0xff]  }
 0x3b0   : > { %3139 = vmatpush1.bf16.msra.mxu0 %v14008_v51  ;;  %3180 = vmatpush1.bf16.msra.mxu1 %v14011_v52  ;;  %v14098_v51 = vld [vmem:[%s19104_s11 + $0x3a0] ss:$16 sps:$4 sm:$0xff]   ;;  %v14101_v52 = vld [vmem:[%s19104_s11 + $0x3a8] ss:$16 sps:$4 sm:$0xff]  }
 0x3b1   : > { %3140 = vmatprep.subr.bf16.mxu0 %v14016_v54  ;;  %3181 = vmatprep.subr.bf16.mxu1 %v14019_v55  ;;  %v14106_v54 = vld [vmem:[%s19104_s11 + $0x3c4] ss:$16 sps:$4 sm:$0xff]   ;;  %v14109_v55 = vld [vmem:[%s19104_s11 + $0x3cc] ss:$16 sps:$4 sm:$0xff]  }
 0x3b4   : > { %3141 = vmatpush1.bf16.msra.mxu0 %v14014_v56  ;;  %3182 = vmatpush1.bf16.msra.mxu1 %v14017_v57  ;;  %v14104_v56 = vld [vmem:[%s19104_s11 + $0x3c0] ss:$16 sps:$4 sm:$0xff]   ;;  %v14107_v57 = vld [vmem:[%s19104_s11 + $0x3c8] ss:$16 sps:$4 sm:$0xff]  }
 0x3b5   : > { %3316 = vmatprep.subr.bf16.mxu0 %v14022_v58  ;;  %3357 = vmatprep.subr.bf16.mxu1 %v14025_v59  ;;  %v14112_v58 = vld [vmem:[%s19104_s11 + $0x3e4] ss:$16 sps:$4 sm:$0xff]   ;;  %v14115_v59 = vld [vmem:[%s19104_s11 + $0x3ec] ss:$16 sps:$4 sm:$0xff]  }
 0x3b7   : > { %12475 = vmatmul.mubr.msk.bf16.vlgmr.msra.gmra.mrb[12].mxu0 %vm568_vm1, %v16044_v38  ;;  %12476 = vmatmul.mubr.msk.bf16.vlgmr.msra.gmra.mrb[12].mxu1 %vm568_vm1, %v16044_v38  ;;  %v14085_v38 = vld [vmem:[%s19104_s11 + $0x34c] ss:$16 sps:$4 sm:$0xff]  }
 0x3b8   : > { %3317 = vmatpush1.bf16.msra.mxu0 %v14020_v60  ;;  %3358 = vmatpush1.bf16.msra.mxu1 %v14023_v61  ;;  %v14110_v60 = vld [vmem:[%s19104_s11 + $0x3e0] ss:$16 sps:$4 sm:$0xff]   ;;  %v14113_v61 = vld [vmem:[%s19104_s11 + $0x3e8] ss:$16 sps:$4 sm:$0xff]  }
 0x3b9   : > { %3318 = vmatprep.subr.bf16.mxu0 %v14028_v62  ;;  %3359 = vmatprep.subr.bf16.mxu1 %v14031_v63  ;;  %v3775_v62 = vld [vmem:[#allocation4 + $0x8] sm:$0x7f]  ;;  %v14118_v63 = vld [vmem:[%s19104_s11 + $0x404] ss:$16 sps:$4 sm:$0xff]  }
 0x3ba   : > { %3348 = vmatprep.mubr.bf16.mxu0 %v15226_v53  ;;  %3389 = vmatprep.mubr.bf16.mxu1 %v15226_v53 }
 0x3bc   : > { %3319 = vmatpush1.bf16.msra.mxu0 %v14026_v0  ;;  %3360 = vmatpush1.bf16.msra.mxu1 %v14029_v1  ;;  %v14121_v0 = vld [vmem:[%s19104_s11 + $0x40c] ss:$16 sps:$4 sm:$0xff]   ;;  %v16321_v1 = vpack.c.bf16 %v3775_v62, %v3775_v62  ;;  %v14200_v62 = vld [vmem:[%s19104_s11 + $0x5c0] ss:$16 sps:$4 sm:$0xff]  }
 0x3bd   : > { %3320 = vmatprep.subr.bf16.mxu0 %v14034_v2  ;;  %3361 = vmatprep.subr.bf16.mxu1 %v14037_v3  ;;  %v14116_v2 = vld [vmem:[%s19104_s11 + $0x400] ss:$16 sps:$4 sm:$0xff]   ;;  %v14119_v3 = vld [vmem:[%s19104_s11 + $0x408] ss:$16 sps:$4 sm:$0xff]  }
 0x3c0   : > { %3321 = vmatpush1.bf16.msra.mxu0 %v14032_v6  ;;  %3362 = vmatpush1.bf16.msra.mxu1 %v14035_v7  ;;  %v14124_v6 = vld [vmem:[%s19104_s11 + $0x424] ss:$16 sps:$4 sm:$0xff]   ;;  %v14127_v7 = vld [vmem:[%s19104_s11 + $0x42c] ss:$16 sps:$4 sm:$0xff]  }
 0x3c1   : > { %3322 = vmatprep.subr.bf16.mxu0 %v14040_v8  ;;  %3363 = vmatprep.subr.bf16.mxu1 %v14043_v9  ;;  %v14122_v8 = vld [vmem:[%s19104_s11 + $0x420] ss:$16 sps:$4 sm:$0xff]   ;;  %v14125_v9 = vld [vmem:[%s19104_s11 + $0x428] ss:$16 sps:$4 sm:$0xff]  }
 0x3c4   : > { %3323 = vmatpush1.bf16.msra.mxu0 %v14038_v10  ;;  %3364 = vmatpush1.bf16.msra.mxu1 %v14041_v11  ;;  %v14130_v10 = vld [vmem:[%s19104_s11 + $0x444] ss:$16 sps:$4 sm:$0xff]   ;;  %v14133_v11 = vld [vmem:[%s19104_s11 + $0x44c] ss:$16 sps:$4 sm:$0xff]  }
 0x3c5   : > { %3502 = vmatprep.subr.bf16.mxu0 %v14046_v12  ;;  %3543 = vmatprep.subr.bf16.mxu1 %v14049_v13  ;;  %v14128_v12 = vld [vmem:[%s19104_s11 + $0x440] ss:$16 sps:$4 sm:$0xff]   ;;  %v14131_v13 = vld [vmem:[%s19104_s11 + $0x448] ss:$16 sps:$4 sm:$0xff]  }
 0x3c7   : > { %12493 = vmatmul.mubr.msk.bf16.vlgmr.msra.gmra.mrb[16].mxu0 %vm568_vm1, %v3232_v14  ;;  %12494 = vmatmul.mubr.msk.bf16.vlgmr.msra.gmra.mrb[16].mxu1 %vm568_vm1, %v3232_v14  ;;  %v14136_v14 = vld [vmem:[%s19104_s11 + $0x464] ss:$16 sps:$4 sm:$0xff]  }
 0x3c8   : > { %3503 = vmatpush1.bf16.msra.mxu0 %v14044_v15  ;;  %3544 = vmatpush1.bf16.msra.mxu1 %v14047_v16  ;;  %v14139_v15 = vld [vmem:[%s19104_s11 + $0x46c] ss:$16 sps:$4 sm:$0xff]   ;;  %v14134_v16 = vld [vmem:[%s19104_s11 + $0x460] ss:$16 sps:$4 sm:$0xff]  }
 0x3c9   : > { %3504 = vmatprep.subr.bf16.mxu0 %v14052_v17  ;;  %3545 = vmatprep.subr.bf16.mxu1 %v14055_v18  ;;  %v14137_v17 = vld [vmem:[%s19104_s11 + $0x468] ss:$16 sps:$4 sm:$0xff]   ;;  %v14142_v18 = vld [vmem:[%s19104_s11 + $0x484] ss:$16 sps:$4 sm:$0xff]  }
 0x3ca   : > { %3534 = vmatprep.mubr.bf16.mxu0 %v15226_v53  ;;  %3575 = vmatprep.mubr.bf16.mxu1 %v15226_v53 }
 0x3cc   : > { %3505 = vmatpush1.bf16.msra.mxu0 %v14050_v19  ;;  %3546 = vmatpush1.bf16.msra.mxu1 %v14053_v5  ;;  %v14145_v19 = vld [vmem:[%s19104_s11 + $0x48c] ss:$16 sps:$4 sm:$0xff]   ;;  %v16378_v5 = vshrl.u32 %v16321_v1, 16 }
 0x3cd   : > { %3506 = vmatprep.subr.bf16.mxu0 %v14058_v20  ;;  %3547 = vmatprep.subr.bf16.mxu1 %v14061_v22  ;;  %v14140_v20 = vld [vmem:[%s19104_s11 + $0x480] ss:$16 sps:$4 sm:$0xff]   ;;  %v14143_v22 = vld [vmem:[%s19104_s11 + $0x488] ss:$16 sps:$4 sm:$0xff]  }
 0x3d0   : > { %3507 = vmatpush1.bf16.msra.mxu0 %v14056_v23  ;;  %3548 = vmatpush1.bf16.msra.mxu1 %v14059_v24  ;;  %v14148_v23 = vld [vmem:[%s19104_s11 + $0x4a4] ss:$16 sps:$4 sm:$0xff]   ;;  %v14151_v24 = vld [vmem:[%s19104_s11 + $0x4ac] ss:$16 sps:$4 sm:$0xff]  }
 0x3d1   : > { %3508 = vmatprep.subr.bf16.mxu0 %v14064_v25  ;;  %3549 = vmatprep.subr.bf16.mxu1 %v14067_v26  ;;  %v14146_v25 = vld [vmem:[%s19104_s11 + $0x4a0] ss:$16 sps:$4 sm:$0xff]   ;;  %v14149_v26 = vld [vmem:[%s19104_s11 + $0x4a8] ss:$16 sps:$4 sm:$0xff]  }
 0x3d4   : > { %3509 = vmatpush1.bf16.msra.mxu0 %v14062_v27  ;;  %3550 = vmatpush1.bf16.msra.mxu1 %v14065_v28  ;;  %v14154_v27 = vld [vmem:[%s19104_s11 + $0x4c4] ss:$16 sps:$4 sm:$0xff]   ;;  %v14157_v28 = vld [vmem:[%s19104_s11 + $0x4cc] ss:$16 sps:$4 sm:$0xff]  }
 0x3d5   : > { %3688 = vmatprep.subr.bf16.mxu0 %v14070_v29  ;;  %3729 = vmatprep.subr.bf16.mxu1 %v14073_v21  ;;  %v14152_v29 = vld [vmem:[%s19104_s11 + $0x4c0] ss:$16 sps:$4 sm:$0xff]   ;;  %v14155_v21 = vld [vmem:[%s19104_s11 + $0x4c8] ss:$16 sps:$4 sm:$0xff]  }
 0x3d7   : > { %12511 = vmatmul.mubr.msk.bf16.vlgmr.msra.gmra.mrb[20].mxu0 %vm568_vm1, %v3418_v30  ;;  %12512 = vmatmul.mubr.msk.bf16.vlgmr.msra.gmra.mrb[20].mxu1 %vm568_vm1, %v3418_v30  ;;  %v14160_v30 = vld [vmem:[%s19104_s11 + $0x4e4] ss:$16 sps:$4 sm:$0xff]  }
 0x3d8   : > { %3689 = vmatpush1.bf16.msra.mxu0 %v14068_v31  ;;  %3730 = vmatpush1.bf16.msra.mxu1 %v14071_v32  ;;  %v14163_v31 = vld [vmem:[%s19104_s11 + $0x4ec] ss:$16 sps:$4 sm:$0xff]   ;;  %v14158_v32 = vld [vmem:[%s19104_s11 + $0x4e0] ss:$16 sps:$4 sm:$0xff]  }
 0x3d9   : > { %3690 = vmatprep.subr.bf16.mxu0 %v14076_v33  ;;  %3731 = vmatprep.subr.bf16.mxu1 %v14079_v34  ;;  %v14161_v33 = vld [vmem:[%s19104_s11 + $0x4e8] ss:$16 sps:$4 sm:$0xff]   ;;  %v14166_v34 = vld [vmem:[%s19104_s11 + $0x504] ss:$16 sps:$4 sm:$0xff]  }
 0x3da   : > { %3720 = vmatprep.mubr.bf16.mxu0 %v15226_v53  ;;  %3761 = vmatprep.mubr.bf16.mxu1 %v15226_v53 }
 0x3dc   : > { %3691 = vmatpush1.bf16.msra.mxu0 %v14074_v35  ;;  %3732 = vmatpush1.bf16.msra.mxu1 %v14077_v36  ;;  %v14169_v35 = vld [vmem:[%s19104_s11 + $0x50c] ss:$16 sps:$4 sm:$0xff]   ;;  %v4166_v36 = vrot.slane %v16321_v1, 1 }
 0x3dd   : > { %3692 = vmatprep.subr.bf16.mxu0 %v14082_v37  ;;  %3733 = vmatprep.subr.bf16.mxu1 %v14085_v38  ;;  %v14164_v37 = vld [vmem:[%s19104_s11 + $0x500] ss:$16 sps:$4 sm:$0xff]   ;;  %v14167_v38 = vld [vmem:[%s19104_s11 + $0x508] ss:$16 sps:$4 sm:$0xff]  }
 0x3e0   : > { %3693 = vmatpush1.bf16.msra.mxu0 %v14080_v39  ;;  %3734 = vmatpush1.bf16.msra.mxu1 %v14083_v40  ;;  %v14172_v39 = vld [vmem:[%s19104_s11 + $0x524] ss:$16 sps:$4 sm:$0xff]   ;;  %v14175_v40 = vld [vmem:[%s19104_s11 + $0x52c] ss:$16 sps:$4 sm:$0xff]  }
 0x3e1   : > { %3694 = vmatprep.subr.bf16.mxu0 %v14088_v41  ;;  %3735 = vmatprep.subr.bf16.mxu1 %v14091_v42  ;;  %v14170_v41 = vld [vmem:[%s19104_s11 + $0x520] ss:$16 sps:$4 sm:$0xff]   ;;  %v14173_v42 = vld [vmem:[%s19104_s11 + $0x528] ss:$16 sps:$4 sm:$0xff]  }
 0x3e4   : > { %3695 = vmatpush1.bf16.msra.mxu0 %v14086_v43  ;;  %3736 = vmatpush1.bf16.msra.mxu1 %v14089_v44  ;;  %v14178_v43 = vld [vmem:[%s19104_s11 + $0x544] ss:$16 sps:$4 sm:$0xff]   ;;  %v14181_v44 = vld [vmem:[%s19104_s11 + $0x54c] ss:$16 sps:$4 sm:$0xff]  }
 0x3e5   : > { %3876 = vmatprep.subr.bf16.mxu0 %v14094_v45  ;;  %3917 = vmatprep.subr.bf16.mxu1 %v14097_v46  ;;  %v14176_v45 = vld [vmem:[%s19104_s11 + $0x540] ss:$16 sps:$4 sm:$0xff]   ;;  %v14179_v46 = vld [vmem:[%s19104_s11 + $0x548] ss:$16 sps:$4 sm:$0xff]  }
 0x3e7   : > { %12529 = vmatmul.mubr.msk.bf16.vlgmr.msra.gmra.mrb[24].mxu0 %vm568_vm1, %v3604_v47  ;;  %12530 = vmatmul.mubr.msk.bf16.vlgmr.msra.gmra.mrb[24].mxu1 %vm568_vm1, %v3604_v47  ;;  %v14184_v47 = vld [vmem:[%s19104_s11 + $0x564] ss:$16 sps:$4 sm:$0xff]  }
 0x3e8   : > { %3877 = vmatpush1.bf16.msra.mxu0 %v14092_v48  ;;  %3918 = vmatpush1.bf16.msra.mxu1 %v14095_v49  ;;  %v14187_v48 = vld [vmem:[%s19104_s11 + $0x56c] ss:$16 sps:$4 sm:$0xff]   ;;  %v14182_v49 = vld [vmem:[%s19104_s11 + $0x560] ss:$16 sps:$4 sm:$0xff]  }
 0x3e9   : > { %3878 = vmatprep.subr.bf16.mxu0 %v14100_v50  ;;  %3919 = vmatprep.subr.bf16.mxu1 %v14103_v4  ;;  %v14185_v50 = vld [vmem:[%s19104_s11 + $0x568] ss:$16 sps:$4 sm:$0xff]   ;;  %v14190_v4 = vld [vmem:[%s19104_s11 + $0x584] ss:$16 sps:$4 sm:$0xff]  }
 0x3ea   : > { %3908 = vmatprep.mubr.bf16.mxu0 %v15226_v53  ;;  %3949 = vmatprep.mubr.bf16.mxu1 %v15226_v53 }
 0x3ec   : > { %3879 = vmatpush1.bf16.msra.mxu0 %v14098_v51  ;;  %3920 = vmatpush1.bf16.msra.mxu1 %v14101_v52  ;;  %v14193_v51 = vld [vmem:[%s19104_s11 + $0x58c] ss:$16 sps:$4 sm:$0xff]   ;;  %v4352_v52 = vrot.slane %v16378_v5, 1 }
 0x3ed   : > { %3880 = vmatprep.subr.bf16.mxu0 %v14106_v54  ;;  %3921 = vmatprep.subr.bf16.mxu1 %v14109_v55  ;;  %v14188_v54 = vld [vmem:[%s19104_s11 + $0x580] ss:$16 sps:$4 sm:$0xff]   ;;  %v14191_v55 = vld [vmem:[%s19104_s11 + $0x588] ss:$16 sps:$4 sm:$0xff]  }
 0x3f0   : > { %3881 = vmatpush1.bf16.msra.mxu0 %v14104_v56  ;;  %3922 = vmatpush1.bf16.msra.mxu1 %v14107_v57  ;;  %v14196_v56 = vld [vmem:[%s19104_s11 + $0x5a4] ss:$16 sps:$4 sm:$0xff]   ;;  %v14199_v57 = vld [vmem:[%s19104_s11 + $0x5ac] ss:$16 sps:$4 sm:$0xff]  }
 0x3f1   : > { %3882 = vmatprep.subr.bf16.mxu0 %v14112_v58  ;;  %3923 = vmatprep.subr.bf16.mxu1 %v14115_v59  ;;  %v14194_v58 = vld [vmem:[%s19104_s11 + $0x5a0] ss:$16 sps:$4 sm:$0xff]   ;;  %v14197_v59 = vld [vmem:[%s19104_s11 + $0x5a8] ss:$16 sps:$4 sm:$0xff]  }
 0x3f4   : > { %3883 = vmatpush1.bf16.msra.mxu0 %v14110_v60  ;;  %3924 = vmatpush1.bf16.msra.mxu1 %v14113_v61  ;;  %v14202_v60 = vld [vmem:[%s19104_s11 + $0x5c4] ss:$16 sps:$4 sm:$0xff]   ;;  %v14205_v61 = vld [vmem:[%s19104_s11 + $0x5cc] ss:$16 sps:$4 sm:$0xff]  }
 0x3f5   : > { %4063 = vmatprep.subr.bf16.mxu0 %v14118_v63  ;;  %4104 = vmatprep.subr.bf16.mxu1 %v14121_v0  ;;  %v14203_v63 = vld [vmem:[%s19104_s11 + $0x5c8] ss:$16 sps:$4 sm:$0xff]   ;;  %v14208_v0 = vld [vmem:[%s19104_s11 + $0x5e4] ss:$16 sps:$4 sm:$0xff]  }
 0x3f7   : > { %12547 = vmatmul.mubr.msk.bf16.vlgmr.msra.gmra.mrb[28].mxu0 %vm568_vm1, %v16321_v1  ;;  %12548 = vmatmul.mubr.msk.bf16.vlgmr.msra.gmra.mrb[28].mxu1 %vm568_vm1, %v16321_v1 }
 0x3f8   : > { %4064 = vmatpush1.bf16.msra.mxu0 %v14116_v2  ;;  %4105 = vmatpush1.bf16.msra.mxu1 %v14119_v3  ;;  %v14211_v2 = vld [vmem:[%s19104_s11 + $0x5ec] ss:$16 sps:$4 sm:$0xff]   ;;  %v14206_v3 = vld [vmem:[%s19104_s11 + $0x5e0] ss:$16 sps:$4 sm:$0xff]  }
 0x3f9   : > { %4065 = vmatprep.subr.bf16.mxu0 %v14124_v6  ;;  %4106 = vmatprep.subr.bf16.mxu1 %v14127_v7  ;;  %v14209_v6 = vld [vmem:[%s19104_s11 + $0x5e8] ss:$16 sps:$4 sm:$0xff]   ;;  %v14214_v7 = vld [vmem:[%s19104_s11 + $0x604] ss:$16 sps:$4 sm:$0xff]  }
 0x3fa   : > { %4095 = vmatprep.mubr.bf16.mxu0 %v15226_v53  ;;  %4136 = vmatprep.mubr.bf16.mxu1 %v15226_v53 }
 0x3fc   : > { %4066 = vmatpush1.bf16.msra.mxu0 %v14122_v8  ;;  %4107 = vmatpush1.bf16.msra.mxu1 %v14125_v9  ;;  %v14217_v8 = vld [vmem:[%s19104_s11 + $0x60c] ss:$16 sps:$4 sm:$0xff]   ;;  %v4538_v9 = vrot.slane %v16321_v1, 2 }
 0x3fd   : > { %4067 = vmatprep.subr.bf16.mxu0 %v14130_v10  ;;  %4108 = vmatprep.subr.bf16.mxu1 %v14133_v11  ;;  %v14212_v10 = vld [vmem:[%s19104_s11 + $0x600] ss:$16 sps:$4 sm:$0xff]   ;;  %v14215_v11 = vld [vmem:[%s19104_s11 + $0x608] ss:$16 sps:$4 sm:$0xff]  }
 0x400   : > { %4068 = vmatpush1.bf16.msra.mxu0 %v14128_v12  ;;  %4109 = vmatpush1.bf16.msra.mxu1 %v14131_v13  ;;  %v14220_v12 = vld [vmem:[%s19104_s11 + $0x624] ss:$16 sps:$4 sm:$0xff]   ;;  %v14223_v13 = vld [vmem:[%s19104_s11 + $0x62c] ss:$16 sps:$4 sm:$0xff]  }
 0x401   : > { %4069 = vmatprep.subr.bf16.mxu0 %v14136_v14  ;;  %4110 = vmatprep.subr.bf16.mxu1 %v14139_v15  ;;  %v14218_v14 = vld [vmem:[%s19104_s11 + $0x620] ss:$16 sps:$4 sm:$0xff]   ;;  %v14221_v15 = vld [vmem:[%s19104_s11 + $0x628] ss:$16 sps:$4 sm:$0xff]  }
 0x404   : > { %4070 = vmatpush1.bf16.msra.mxu0 %v14134_v16  ;;  %4111 = vmatpush1.bf16.msra.mxu1 %v14137_v17  ;;  %v14226_v16 = vld [vmem:[%s19104_s11 + $0x644] ss:$16 sps:$4 sm:$0xff]   ;;  %v14229_v17 = vld [vmem:[%s19104_s11 + $0x64c] ss:$16 sps:$4 sm:$0xff]  }
 0x405   : > { %4250 = vmatprep.subr.bf16.mxu0 %v14142_v18  ;;  %4291 = vmatprep.subr.bf16.mxu1 %v14145_v19  ;;  %v14224_v18 = vld [vmem:[%s19104_s11 + $0x640] ss:$16 sps:$4 sm:$0xff]   ;;  %v14227_v19 = vld [vmem:[%s19104_s11 + $0x648] ss:$16 sps:$4 sm:$0xff]  }
 0x407   : > { %12565 = vmatmul.mubr.msk.bf16.vlgmr.msra.gmra.mrb[32].mxu0 %vm568_vm1, %v16378_v5  ;;  %12566 = vmatmul.mubr.msk.bf16.vlgmr.msra.gmra.mrb[32].mxu1 %vm568_vm1, %v16378_v5 }
 0x408   : > { %4251 = vmatpush1.bf16.msra.mxu0 %v14140_v20  ;;  %4292 = vmatpush1.bf16.msra.mxu1 %v14143_v22  ;;  %v14232_v20 = vld [vmem:[%s19104_s11 + $0x664] ss:$16 sps:$4 sm:$0xff]   ;;  %v14235_v22 = vld [vmem:[%s19104_s11 + $0x66c] ss:$16 sps:$4 sm:$0xff]  }
 0x409   : > { %4252 = vmatprep.subr.bf16.mxu0 %v14148_v23  ;;  %4293 = vmatprep.subr.bf16.mxu1 %v14151_v24  ;;  %v14230_v23 = vld [vmem:[%s19104_s11 + $0x660] ss:$16 sps:$4 sm:$0xff]   ;;  %v14233_v24 = vld [vmem:[%s19104_s11 + $0x668] ss:$16 sps:$4 sm:$0xff]  }
 0x40a   : > { %4282 = vmatprep.mubr.bf16.mxu0 %v15226_v53  ;;  %4323 = vmatprep.mubr.bf16.mxu1 %v15226_v53 }
 0x40c   : > { %4253 = vmatpush1.bf16.msra.mxu0 %v14146_v25  ;;  %4294 = vmatpush1.bf16.msra.mxu1 %v14149_v26  ;;  %v14238_v25 = vld [vmem:[%s19104_s11 + $0x684] ss:$16 sps:$4 sm:$0xff]   ;;  %v14241_v26 = vld [vmem:[%s19104_s11 + $0x68c] ss:$16 sps:$4 sm:$0xff]  }
 0x40d   : > { %4254 = vmatprep.subr.bf16.mxu0 %v14154_v27  ;;  %4295 = vmatprep.subr.bf16.mxu1 %v14157_v28  ;;  %v4724_v27 = vrot.slane %v16378_v5, 2  ;;  %v14236_v28 = vld [vmem:[%s19104_s11 + $0x680] ss:$16 sps:$4 sm:$0xff]   ;;  %v14247_v5 = vld [vmem:[%s19104_s11 + $0x6ac] ss:$16 sps:$4 sm:$0xff]  }
 0x410   : > { %4255 = vmatpush1.bf16.msra.mxu0 %v14152_v29  ;;  %4296 = vmatpush1.bf16.msra.mxu1 %v14155_v21  ;;  %v14239_v29 = vld [vmem:[%s19104_s11 + $0x688] ss:$16 sps:$4 sm:$0xff]   ;;  %v14244_v21 = vld [vmem:[%s19104_s11 + $0x6a4] ss:$16 sps:$4 sm:$0xff]  }
 0x411   : > { %4256 = vmatprep.subr.bf16.mxu0 %v14160_v30  ;;  %4297 = vmatprep.subr.bf16.mxu1 %v14163_v31  ;;  %v14242_v30 = vld [vmem:[%s19104_s11 + $0x6a0] ss:$16 sps:$4 sm:$0xff]   ;;  %v14245_v31 = vld [vmem:[%s19104_s11 + $0x6a8] ss:$16 sps:$4 sm:$0xff]  }
 0x414   : > { %4257 = vmatpush1.bf16.msra.mxu0 %v14158_v32  ;;  %4298 = vmatpush1.bf16.msra.mxu1 %v14161_v33  ;;  %v14250_v32 = vld [vmem:[%s19104_s11 + $0x6c4] ss:$16 sps:$4 sm:$0xff]   ;;  %v14253_v33 = vld [vmem:[%s19104_s11 + $0x6cc] ss:$16 sps:$4 sm:$0xff]  }
 0x415   : > { %4436 = vmatprep.subr.bf16.mxu0 %v14166_v34  ;;  %4477 = vmatprep.subr.bf16.mxu1 %v14169_v35  ;;  %v14248_v34 = vld [vmem:[%s19104_s11 + $0x6c0] ss:$16 sps:$4 sm:$0xff]   ;;  %v14251_v35 = vld [vmem:[%s19104_s11 + $0x6c8] ss:$16 sps:$4 sm:$0xff]  }
 0x417   : > { %12583 = vmatmul.mubr.msk.bf16.vlgmr.msra.gmra.mrb[36].mxu0 %vm568_vm1, %v4166_v36  ;;  %12584 = vmatmul.mubr.msk.bf16.vlgmr.msra.gmra.mrb[36].mxu1 %vm568_vm1, %v4166_v36  ;;  %v14256_v36 = vld [vmem:[%s19104_s11 + $0x6e4] ss:$16 sps:$4 sm:$0xff]  }
 0x418   : > { %4437 = vmatpush1.bf16.msra.mxu0 %v14164_v37  ;;  %4478 = vmatpush1.bf16.msra.mxu1 %v14167_v38  ;;  %v14259_v37 = vld [vmem:[%s19104_s11 + $0x6ec] ss:$16 sps:$4 sm:$0xff]   ;;  %v14254_v38 = vld [vmem:[%s19104_s11 + $0x6e0] ss:$16 sps:$4 sm:$0xff]  }
 0x419   : > { %4438 = vmatprep.subr.bf16.mxu0 %v14172_v39  ;;  %4479 = vmatprep.subr.bf16.mxu1 %v14175_v40  ;;  %v14257_v39 = vld [vmem:[%s19104_s11 + $0x6e8] ss:$16 sps:$4 sm:$0xff]   ;;  %v14262_v40 = vld [vmem:[%s19104_s11 + $0x704] ss:$16 sps:$4 sm:$0xff]  }
 0x41a   : > { %4468 = vmatprep.mubr.bf16.mxu0 %v15226_v53  ;;  %4509 = vmatprep.mubr.bf16.mxu1 %v15226_v53 }
 0x41c   : > { %4439 = vmatpush1.bf16.msra.mxu0 %v14170_v41  ;;  %4480 = vmatpush1.bf16.msra.mxu1 %v14173_v42  ;;  %v14265_v41 = vld [vmem:[%s19104_s11 + $0x70c] ss:$16 sps:$4 sm:$0xff]   ;;  %v4910_v42 = vrot.slane %v16321_v1, 3 }
 0x41d   : > { %4440 = vmatprep.subr.bf16.mxu0 %v14178_v43  ;;  %4481 = vmatprep.subr.bf16.mxu1 %v14181_v44  ;;  %v14260_v43 = vld [vmem:[%s19104_s11 + $0x700] ss:$16 sps:$4 sm:$0xff]   ;;  %v14263_v44 = vld [vmem:[%s19104_s11 + $0x708] ss:$16 sps:$4 sm:$0xff]   ;;  %v14271_v1 = vld [vmem:[%s19104_s11 + $0x72c] ss:$16 sps:$4 sm:$0xff]  }
 0x420   : > { %4441 = vmatpush1.bf16.msra.mxu0 %v14176_v45  ;;  %4482 = vmatpush1.bf16.msra.mxu1 %v14179_v46  ;;  %v14268_v45 = vld [vmem:[%s19104_s11 + $0x724] ss:$16 sps:$4 sm:$0xff]   ;;  %v14266_v46 = vld [vmem:[%s19104_s11 + $0x720] ss:$16 sps:$4 sm:$0xff]  }
 0x421   : > { %4442 = vmatprep.subr.bf16.mxu0 %v14184_v47  ;;  %4483 = vmatprep.subr.bf16.mxu1 %v14187_v48  ;;  %v14269_v47 = vld [vmem:[%s19104_s11 + $0x728] ss:$16 sps:$4 sm:$0xff]   ;;  %v14274_v48 = vld [vmem:[%s19104_s11 + $0x744] ss:$16 sps:$4 sm:$0xff]  }
 0x424   : > { %4443 = vmatpush1.bf16.msra.mxu0 %v14182_v49  ;;  %4484 = vmatpush1.bf16.msra.mxu1 %v14185_v50  ;;  %v14277_v49 = vld [vmem:[%s19104_s11 + $0x74c] ss:$16 sps:$4 sm:$0xff]  }
 0x425   : > { %4622 = vmatprep.subr.bf16.mxu0 %v14190_v4  ;;  %4663 = vmatprep.subr.bf16.mxu1 %v14193_v51 }
 0x427   : > { %12601 = vmatmul.mubr.msk.bf16.vlgmr.msra.gmra.mrb[40].mxu0 %vm568_vm1, %v4352_v52  ;;  %12602 = vmatmul.mubr.msk.bf16.vlgmr.msra.gmra.mrb[40].mxu1 %vm568_vm1, %v4352_v52 }
 0x428   : > { %4623 = vmatpush1.bf16.msra.mxu0 %v14188_v54  ;;  %4664 = vmatpush1.bf16.msra.mxu1 %v14191_v55  ;;  %v14272_v54 = vld [vmem:[%s19104_s11 + $0x740] ss:$16 sps:$4 sm:$0xff]   ;;  %v14275_v55 = vld [vmem:[%s19104_s11 + $0x748] ss:$16 sps:$4 sm:$0xff]  }
 0x429   : > { %4624 = vmatprep.subr.bf16.mxu0 %v14196_v56  ;;  %4665 = vmatprep.subr.bf16.mxu1 %v14199_v57 }
 0x42a   : > { %4654 = vmatprep.mubr.bf16.mxu0 %v15226_v53  ;;  %4695 = vmatprep.mubr.bf16.mxu1 %v15226_v53 }
 0x42c   : > { %4625 = vmatpush1.bf16.msra.mxu0 %v14194_v58  ;;  %4666 = vmatpush1.bf16.msra.mxu1 %v14197_v59  ;;  %v14280_v58 = vld [vmem:[%s19104_s11 + $0x764] ss:$16 sps:$4 sm:$0xff]  }
 0x42d   : > { %4626 = vmatprep.subr.bf16.mxu0 %v14202_v60  ;;  %4667 = vmatprep.subr.bf16.mxu1 %v14205_v61  ;;  %v14283_v61 = vld [vmem:[%s19104_s11 + $0x76c] ss:$16 sps:$4 sm:$0xff]  }
 0x430   : > { %4627 = vmatpush1.bf16.msra.mxu0 %v14200_v62  ;;  %4668 = vmatpush1.bf16.msra.mxu1 %v14203_v63  ;;  %v14278_v62 = vld [vmem:[%s19104_s11 + $0x760] ss:$16 sps:$4 sm:$0xff]   ;;  %v14281_v63 = vld [vmem:[%s19104_s11 + $0x768] ss:$16 sps:$4 sm:$0xff]  }
 0x431   : > { %4628 = vmatprep.subr.bf16.mxu0 %v14208_v0  ;;  %4669 = vmatprep.subr.bf16.mxu1 %v14211_v2  ;;  %v5081_v0 = vld [vmem:[#allocation4 + $0x10] sm:$0x7f] }
 0x432   : > { %v14286_v2 = vld [vmem:[%s19104_s11 + $0x784] ss:$16 sps:$4 sm:$0xff]  }
 0x434   : > { %4629 = vmatpush1.bf16.msra.mxu0 %v14206_v3  ;;  %4670 = vmatpush1.bf16.msra.mxu1 %v14209_v6  ;;  %v14289_v3 = vld [vmem:[%s19104_s11 + $0x78c] ss:$16 sps:$4 sm:$0xff]   ;;  %v16699_v6 = vpack.c.bf16 %v5081_v0, %v5081_v0  ;;  %v14341_v0 = vld [vmem:[%s19104_s11 + $0x8a8] ss:$16 sps:$4 sm:$0xff]  }
 0x435   : > { %4808 = vmatprep.subr.bf16.mxu0 %v14214_v7  ;;  %4849 = vmatprep.subr.bf16.mxu1 %v14217_v8  ;;  %v14284_v7 = vld [vmem:[%s19104_s11 + $0x780] ss:$16 sps:$4 sm:$0xff]   ;;  %v14287_v8 = vld [vmem:[%s19104_s11 + $0x788] ss:$16 sps:$4 sm:$0xff]  }
 0x437   : > { %12619 = vmatmul.mubr.msk.bf16.vlgmr.msra.gmra.mrb[44].mxu0 %vm568_vm1, %v4538_v9  ;;  %12620 = vmatmul.mubr.msk.bf16.vlgmr.msra.gmra.mrb[44].mxu1 %vm568_vm1, %v4538_v9  ;;  %v14292_v9 = vld [vmem:[%s19104_s11 + $0x7a4] ss:$16 sps:$4 sm:$0xff]  }
 0x438   : > { %4809 = vmatpush1.bf16.msra.mxu0 %v14212_v10  ;;  %4850 = vmatpush1.bf16.msra.mxu1 %v14215_v11  ;;  %v14295_v10 = vld [vmem:[%s19104_s11 + $0x7ac] ss:$16 sps:$4 sm:$0xff]   ;;  %v14290_v11 = vld [vmem:[%s19104_s11 + $0x7a0] ss:$16 sps:$4 sm:$0xff]  }
 0x439   : > { %4810 = vmatprep.subr.bf16.mxu0 %v14220_v12  ;;  %4851 = vmatprep.subr.bf16.mxu1 %v14223_v13  ;;  %v14293_v12 = vld [vmem:[%s19104_s11 + $0x7a8] ss:$16 sps:$4 sm:$0xff]   ;;  %v14298_v13 = vld [vmem:[%s19104_s11 + $0x7c4] ss:$16 sps:$4 sm:$0xff]  }
 0x43a   : > { %4840 = vmatprep.mubr.bf16.mxu0 %v15226_v53  ;;  %4881 = vmatprep.mubr.bf16.mxu1 %v15226_v53 }
 0x43c   : > { %4811 = vmatpush1.bf16.msra.mxu0 %v14218_v14  ;;  %4852 = vmatpush1.bf16.msra.mxu1 %v14221_v15  ;;  %v14301_v14 = vld [vmem:[%s19104_s11 + $0x7cc] ss:$16 sps:$4 sm:$0xff]  }
 0x43d   : > { %4812 = vmatprep.subr.bf16.mxu0 %v14226_v16  ;;  %4853 = vmatprep.subr.bf16.mxu1 %v14229_v17 }
 0x440   : > { %4813 = vmatpush1.bf16.msra.mxu0 %v14224_v18  ;;  %4854 = vmatpush1.bf16.msra.mxu1 %v14227_v19 }
 0x441   : > { %4814 = vmatprep.subr.bf16.mxu0 %v14232_v20  ;;  %4855 = vmatprep.subr.bf16.mxu1 %v14235_v22  ;;  %v14296_v22 = vld [vmem:[%s19104_s11 + $0x7c0] ss:$16 sps:$4 sm:$0xff]  }
 0x444   : > { %4815 = vmatpush1.bf16.msra.mxu0 %v14230_v23  ;;  %4856 = vmatpush1.bf16.msra.mxu1 %v14233_v24 }
 0x445   : > { %4994 = vmatprep.subr.bf16.mxu0 %v14238_v25  ;;  %5035 = vmatprep.subr.bf16.mxu1 %v14241_v26 }
 0x447   : > { %12637 = vmatmul.mubr.msk.bf16.vlgmr.msra.gmra.mrb[48].mxu0 %vm568_vm1, %v4724_v27  ;;  %12638 = vmatmul.mubr.msk.bf16.vlgmr.msra.gmra.mrb[48].mxu1 %vm568_vm1, %v4724_v27  ;;  %v14299_v27 = vld [vmem:[%s19104_s11 + $0x7c8] ss:$16 sps:$4 sm:$0xff]  }
 0x448   : > { %4995 = vmatpush1.bf16.msra.mxu0 %v14236_v28  ;;  %5036 = vmatpush1.bf16.msra.mxu1 %v14239_v29  ;;  %v14304_v28 = vld [vmem:[%s19104_s11 + $0x7e4] ss:$16 sps:$4 sm:$0xff]  }
 0x449   : > { %4996 = vmatprep.subr.bf16.mxu0 %v14244_v21  ;;  %5037 = vmatprep.subr.bf16.mxu1 %v14247_v5  ;;  %v14307_v5 = vld [vmem:[%s19104_s11 + $0x7ec] ss:$16 sps:$4 sm:$0xff]  }
 0x44a   : > { %5026 = vmatprep.mubr.bf16.mxu0 %v15226_v53  ;;  %5067 = vmatprep.mubr.bf16.mxu1 %v15226_v53 }
 0x44c   : > { %4997 = vmatpush1.bf16.msra.mxu0 %v14242_v30  ;;  %5038 = vmatpush1.bf16.msra.mxu1 %v14245_v31  ;;  %v14302_v30 = vld [vmem:[%s19104_s11 + $0x7e0] ss:$16 sps:$4 sm:$0xff]   ;;  %v14305_v31 = vld [vmem:[%s19104_s11 + $0x7e8] ss:$16 sps:$4 sm:$0xff]  }
 0x44d   : > { %4998 = vmatprep.subr.bf16.mxu0 %v14250_v32  ;;  %5039 = vmatprep.subr.bf16.mxu1 %v14253_v33  ;;  %v14310_v32 = vld [vmem:[%s19104_s11 + $0x804] ss:$16 sps:$4 sm:$0xff]   ;;  %v14313_v33 = vld [vmem:[%s19104_s11 + $0x80c] ss:$16 sps:$4 sm:$0xff]  }
 0x450   : > { %4999 = vmatpush1.bf16.msra.mxu0 %v14248_v34  ;;  %5040 = vmatpush1.bf16.msra.mxu1 %v14251_v35  ;;  %v16764_v34 = vshrl.u32 %v16699_v6, 16  ;;  %v14308_v35 = vld [vmem:[%s19104_s11 + $0x800] ss:$16 sps:$4 sm:$0xff]  }
 0x451   : > { %5000 = vmatprep.subr.bf16.mxu0 %v14256_v36  ;;  %5041 = vmatprep.subr.bf16.mxu1 %v14259_v37  ;;  %v14311_v36 = vld [vmem:[%s19104_s11 + $0x808] ss:$16 sps:$4 sm:$0xff]   ;;  %v14316_v37 = vld [vmem:[%s19104_s11 + $0x824] ss:$16 sps:$4 sm:$0xff]  }
 0x454   : > { %5001 = vmatpush1.bf16.msra.mxu0 %v14254_v38  ;;  %5042 = vmatpush1.bf16.msra.mxu1 %v14257_v39  ;;  %v14319_v38 = vld [vmem:[%s19104_s11 + $0x82c] ss:$16 sps:$4 sm:$0xff]   ;;  %v14314_v39 = vld [vmem:[%s19104_s11 + $0x820] ss:$16 sps:$4 sm:$0xff]  }
 0x455   : > { %5182 = vmatprep.subr.bf16.mxu0 %v14262_v40  ;;  %5223 = vmatprep.subr.bf16.mxu1 %v14265_v41  ;;  %v14317_v40 = vld [vmem:[%s19104_s11 + $0x828] ss:$16 sps:$4 sm:$0xff]   ;;  %v14322_v41 = vld [vmem:[%s19104_s11 + $0x844] ss:$16 sps:$4 sm:$0xff]  }
 0x457   : > { %12655 = vmatmul.mubr.msk.bf16.vlgmr.msra.gmra.mrb[52].mxu0 %vm568_vm1, %v4910_v42  ;;  %12656 = vmatmul.mubr.msk.bf16.vlgmr.msra.gmra.mrb[52].mxu1 %vm568_vm1, %v4910_v42  ;;  %v14325_v42 = vld [vmem:[%s19104_s11 + $0x84c] ss:$16 sps:$4 sm:$0xff]  }
 0x458   : > { %5183 = vmatpush1.bf16.msra.mxu0 %v14260_v43  ;;  %5224 = vmatpush1.bf16.msra.mxu1 %v14263_v44 }
 0x459   : > { %5184 = vmatprep.subr.bf16.mxu0 %v14268_v45  ;;  %5225 = vmatprep.subr.bf16.mxu1 %v14271_v1 }
 0x45a   : > { %v2654_v50 = vpop.f32.mrb[0].mxu0  ;;  %v2695_v4 = vpop.f32.mrb[0].mxu1  ;;  %5214 = vmatprep.mubr.bf16.mxu0 %v15226_v53  ;;  %5255 = vmatprep.mubr.bf16.mxu1 %v15226_v53 }
 0x45b   : > { %v2656_v51 = vpop.f32.mrb[1].mxu0  ;;  %v2697_v52 = vpop.f32.mrb[1].mxu1 }
 0x45c   : > { %v2658_v56 = vpop.f32.mrb[2].mxu0  ;;  %v2699_v57 = vpop.f32.mrb[2].mxu1  ;;  %5185 = vmatpush1.bf16.msra.mxu0 %v14266_v46  ;;  %5226 = vmatpush1.bf16.msra.mxu1 %v14269_v47  ;;  %v14320_v46 = vld [vmem:[%s19104_s11 + $0x840] ss:$16 sps:$4 sm:$0xff]   ;;  %v14323_v47 = vld [vmem:[%s19104_s11 + $0x848] ss:$16 sps:$4 sm:$0xff]  }
 0x45d   : > { %v2659_v59 = vpop.f32.mrb[3].mxu0  ;;  %v2700_v60 = vpop.f32.mrb[3].mxu1  ;;  %5186 = vmatprep.subr.bf16.mxu0 %v14274_v48  ;;  %5227 = vmatprep.subr.bf16.mxu1 %v14277_v49  ;;  %v14334_v56 = vld [vmem:[%s19104_s11 + $0x884] ss:$16 sps:$4 sm:$0xff]   ;;  %v14337_v57 = vld [vmem:[%s19104_s11 + $0x88c] ss:$16 sps:$4 sm:$0xff]  }
 0x45e   : > { %v14335_v59 = vld [vmem:[%s19104_s11 + $0x888] ss:$16 sps:$4 sm:$0xff]   ;;  %v5472_v60 = vrot.slane %v16699_v6, 1 }
 0x460   : > { %5187 = vmatpush1.bf16.msra.mxu0 %v14272_v54  ;;  %5228 = vmatpush1.bf16.msra.mxu1 %v14275_v55  ;;  %v14326_v54 = vld [vmem:[%s19104_s11 + $0x860] ss:$16 sps:$4 sm:$0xff]   ;;  %v14329_v55 = vld [vmem:[%s19104_s11 + $0x868] ss:$16 sps:$4 sm:$0xff]  }
 0x461   : > { %5188 = vmatprep.subr.bf16.mxu0 %v14280_v58  ;;  %5229 = vmatprep.subr.bf16.mxu1 %v14283_v61  ;;  %v14332_v58 = vld [vmem:[%s19104_s11 + $0x880] ss:$16 sps:$4 sm:$0xff]   ;;  %v14340_v61 = vld [vmem:[%s19104_s11 + $0x8a4] ss:$16 sps:$4 sm:$0xff]  }
 0x464   : > { %5189 = vmatpush1.bf16.msra.mxu0 %v14278_v62  ;;  %5230 = vmatpush1.bf16.msra.mxu1 %v14281_v63  ;;  %v14343_v62 = vld [vmem:[%s19104_s11 + $0x8ac] ss:$16 sps:$4 sm:$0xff]   ;;  %v14338_v63 = vld [vmem:[%s19104_s11 + $0x8a0] ss:$16 sps:$4 sm:$0xff]  }
 0x465   : > { %5369 = vmatprep.subr.bf16.mxu0 %v14286_v2  ;;  %5410 = vmatprep.subr.bf16.mxu1 %v14289_v3  ;;  %v14346_v2 = vld [vmem:[%s19104_s11 + $0x8c4] ss:$16 sps:$4 sm:$0xff]   ;;  %v14349_v3 = vld [vmem:[%s19104_s11 + $0x8cc] ss:$16 sps:$4 sm:$0xff]  }
 0x467   : > { %12673 = vmatmul.mubr.msk.bf16.vlgmr.msra.gmra.mrb[56].mxu0 %vm568_vm1, %v16699_v6  ;;  %12674 = vmatmul.mubr.msk.bf16.vlgmr.msra.gmra.mrb[56].mxu1 %vm568_vm1, %v16699_v6 }
 0x468   : > { %5370 = vmatpush1.bf16.msra.mxu0 %v14284_v7  ;;  %5411 = vmatpush1.bf16.msra.mxu1 %v14287_v8 }
 0x469   : > { %5371 = vmatprep.subr.bf16.mxu0 %v14292_v9  ;;  %5412 = vmatprep.subr.bf16.mxu1 %v14295_v10  ;;  %v14344_v9 = vld [vmem:[%s19104_s11 + $0x8c0] ss:$16 sps:$4 sm:$0xff]   ;;  %v14347_v10 = vld [vmem:[%s19104_s11 + $0x8c8] ss:$16 sps:$4 sm:$0xff]  }
 0x46a   : > { %v2819_v15 = vpop.f32.mrb[4].mxu0  ;;  %v2860_v16 = vpop.f32.mrb[4].mxu1  ;;  %5401 = vmatprep.mubr.bf16.mxu0 %v15226_v53  ;;  %5442 = vmatprep.mubr.bf16.mxu1 %v15226_v53 }
 0x46b   : > { %v16731_v17 = vadd.f32 %v2819_v15, %v2654_v50  ;;  %v16733_v18 = vadd.f32 %v2860_v16, %v2695_v4  ;;  %v2821_v19 = vpop.f32.mrb[5].mxu0  ;;  %v2862_v20 = vpop.f32.mrb[5].mxu1 }
 0x46c   : > { %v16738_v23 = vadd.f32 %v2821_v19, %v2656_v51  ;;  %v16740_v24 = vadd.f32 %v2862_v20, %v2697_v52  ;;  %v2823_v25 = vpop.f32.mrb[6].mxu0  ;;  %v2864_v26 = vpop.f32.mrb[6].mxu1  ;;  %5372 = vmatpush1.bf16.msra.mxu0 %v14290_v11  ;;  %5413 = vmatpush1.bf16.msra.mxu1 %v14293_v12  ;;  %v14328_v51 = vld [vmem:[%s19104_s11 + $0x864] ss:$16 sps:$4 sm:$0xff]   ;;  %v14331_v52 = vld [vmem:[%s19104_s11 + $0x86c] ss:$16 sps:$4 sm:$0xff]  }
 0x46d   : > { %v2824_v29 = vpop.f32.mrb[7].mxu0  ;;  %v2865_v21 = vpop.f32.mrb[7].mxu1  ;;  %5373 = vmatprep.subr.bf16.mxu0 %v14298_v13  ;;  %5414 = vmatprep.subr.bf16.mxu1 %v14301_v14  ;;  %v14352_v26 = vld [vmem:[%s19104_s11 + $0x8e4] ss:$16 sps:$4 sm:$0xff]  }
 0x46e   : > { %v14353_v29 = vld [vmem:[%s19104_s11 + $0x8e8] ss:$16 sps:$4 sm:$0xff]   ;;  %v14358_v21 = vld [vmem:[%s19104_s11 + $0x904] ss:$16 sps:$4 sm:$0xff]  }
 0x470   : > { %5374 = vmatpush1.bf16.msra.mxu0 %v14296_v22  ;;  %5415 = vmatpush1.bf16.msra.mxu1 %v14299_v27  ;;  %v14355_v27 = vld [vmem:[%s19104_s11 + $0x8ec] ss:$16 sps:$4 sm:$0xff]  }
 0x471   : > { %5375 = vmatprep.subr.bf16.mxu0 %v14304_v28  ;;  %5416 = vmatprep.subr.bf16.mxu1 %v14307_v5  ;;  %v14350_v28 = vld [vmem:[%s19104_s11 + $0x8e0] ss:$16 sps:$4 sm:$0xff]   ;;  %v14361_v5 = vld [vmem:[%s19104_s11 + $0x90c] ss:$16 sps:$4 sm:$0xff]  }
 0x474   : > { %5376 = vmatpush1.bf16.msra.mxu0 %v14302_v30  ;;  %5417 = vmatpush1.bf16.msra.mxu1 %v14305_v31  ;;  %v14356_v30 = vld [vmem:[%s19104_s11 + $0x900] ss:$16 sps:$4 sm:$0xff]   ;;  %v14359_v31 = vld [vmem:[%s19104_s11 + $0x908] ss:$16 sps:$4 sm:$0xff]  }
 0x475   : > { %5556 = vmatprep.subr.bf16.mxu0 %v14310_v32  ;;  %5597 = vmatprep.subr.bf16.mxu1 %v14313_v33  ;;  %v5658_v32 = vrot.slane %v16764_v34, 1  ;;  %v14364_v33 = vld [vmem:[%s19104_s11 + $0x924] ss:$16 sps:$4 sm:$0xff]  }
 0x477   : > { %12691 = vmatmul.mubr.msk.bf16.vlgmr.msra.gmra.mrb[60].mxu0 %vm568_vm1, %v16764_v34  ;;  %12692 = vmatmul.mubr.msk.bf16.vlgmr.msra.gmra.mrb[60].mxu1 %vm568_vm1, %v16764_v34 }
 0x478   : > { %5557 = vmatpush1.bf16.msra.mxu0 %v14308_v35  ;;  %5598 = vmatpush1.bf16.msra.mxu1 %v14311_v36  ;;  %v14367_v35 = vld [vmem:[%s19104_s11 + $0x92c] ss:$16 sps:$4 sm:$0xff]   ;;  %v14362_v36 = vld [vmem:[%s19104_s11 + $0x920] ss:$16 sps:$4 sm:$0xff]  }
 0x479   : > { %5558 = vmatprep.subr.bf16.mxu0 %v14316_v37  ;;  %5599 = vmatprep.subr.bf16.mxu1 %v14319_v38  ;;  %v14365_v37 = vld [vmem:[%s19104_s11 + $0x928] ss:$16 sps:$4 sm:$0xff]   ;;  %v14370_v38 = vld [vmem:[%s19104_s11 + $0x944] ss:$16 sps:$4 sm:$0xff]  }
 0x47a   : > { %v3003_v43 = vpop.f32.mrb[8].mxu0  ;;  %v3044_v44 = vpop.f32.mrb[8].mxu1  ;;  %5588 = vmatprep.mubr.bf16.mxu0 %v15226_v53  ;;  %5629 = vmatprep.mubr.bf16.mxu1 %v15226_v53 }
 0x47b   : > { %v3005_v45 = vpop.f32.mrb[9].mxu0  ;;  %v3046_v1 = vpop.f32.mrb[9].mxu1 }
 0x47c   : > { %v3007_v48 = vpop.f32.mrb[10].mxu0  ;;  %v3048_v49 = vpop.f32.mrb[10].mxu1  ;;  %5559 = vmatpush1.bf16.msra.mxu0 %v14314_v39  ;;  %5600 = vmatpush1.bf16.msra.mxu1 %v14317_v40  ;;  %v14373_v39 = vld [vmem:[%s19104_s11 + $0x94c] ss:$16 sps:$4 sm:$0xff]  }
 0x47d   : > { %v3008_v50 = vpop.f32.mrb[11].mxu0  ;;  %v3049_v4 = vpop.f32.mrb[11].mxu1  ;;  %5560 = vmatprep.subr.bf16.mxu0 %v14322_v41  ;;  %5601 = vmatprep.subr.bf16.mxu1 %v14325_v42  ;;  %v14368_v42 = vld [vmem:[%s19104_s11 + $0x940] ss:$16 sps:$4 sm:$0xff]  }
 0x480   : > { %5561 = vmatpush1.bf16.msra.mxu0 %v14320_v46  ;;  %5602 = vmatpush1.bf16.msra.mxu1 %v14323_v47 }
 0x481   : > { %5562 = vmatprep.subr.bf16.mxu0 %v14328_v51  ;;  %5603 = vmatprep.subr.bf16.mxu1 %v14331_v52  ;;  %v14382_v52 = vld [vmem:[%s19104_s11 + $0x984] ss:$16 sps:$4 sm:$0xff]  }
 0x484   : > { %5563 = vmatpush1.bf16.msra.mxu0 %v14326_v54  ;;  %5604 = vmatpush1.bf16.msra.mxu1 %v14329_v55  ;;  %v14385_v54 = vld [vmem:[%s19104_s11 + $0x98c] ss:$16 sps:$4 sm:$0xff]   ;;  %v14380_v55 = vld [vmem:[%s19104_s11 + $0x980] ss:$16 sps:$4 sm:$0xff]  }
 0x485   : > { %5742 = vmatprep.subr.bf16.mxu0 %v14334_v56  ;;  %5783 = vmatprep.subr.bf16.mxu1 %v14337_v57  ;;  %v14383_v56 = vld [vmem:[%s19104_s11 + $0x988] ss:$16 sps:$4 sm:$0xff]   ;;  %v5844_v57 = vrot.slane %v16699_v6, 2 }
 0x487   : > { %12709 = vmatmul.mubr.msk.bf16.vlgmr.msra.gmra.mrb[64].mxu0 %vm568_vm1, %v5472_v60  ;;  %12710 = vmatmul.mubr.msk.bf16.vlgmr.msra.gmra.mrb[64].mxu1 %vm568_vm1, %v5472_v60  ;;  %v14386_v60 = vld [vmem:[%s19104_s11 + $0x9a0] ss:$16 sps:$4 sm:$0xff]  }
 0x488   : > { %5743 = vmatpush1.bf16.msra.mxu0 %v14332_v58  ;;  %5784 = vmatpush1.bf16.msra.mxu1 %v14335_v59  ;;  %v14388_v58 = vld [vmem:[%s19104_s11 + $0x9a4] ss:$16 sps:$4 sm:$0xff]   ;;  %v14391_v59 = vld [vmem:[%s19104_s11 + $0x9ac] ss:$16 sps:$4 sm:$0xff]  }
 0x489   : > { %5744 = vmatprep.subr.bf16.mxu0 %v14340_v61  ;;  %5785 = vmatprep.subr.bf16.mxu1 %v14343_v62  ;;  %v14389_v61 = vld [vmem:[%s19104_s11 + $0x9a8] ss:$16 sps:$4 sm:$0xff]   ;;  %v14394_v62 = vld [vmem:[%s19104_s11 + $0x9c4] ss:$16 sps:$4 sm:$0xff]  }
 0x48a   : > { %v3168_v7 = vpop.f32.mrb[12].mxu0  ;;  %v3209_v8 = vpop.f32.mrb[12].mxu1  ;;  %5774 = vmatprep.mubr.bf16.mxu0 %v15226_v53  ;;  %5815 = vmatprep.mubr.bf16.mxu1 %v15226_v53 }
 0x48b   : > { %v16855_v11 = vadd.f32 %v3168_v7, %v3003_v43  ;;  %v16857_v12 = vadd.f32 %v3209_v8, %v3044_v44  ;;  %v3170_v13 = vpop.f32.mrb[13].mxu0  ;;  %v3211_v14 = vpop.f32.mrb[13].mxu1  ;;  %v14371_v43 = vld [vmem:[%s19104_s11 + $0x948] ss:$16 sps:$4 sm:$0xff]  }
 0x48c   : > { %v16859_v15 = vadd.f32 %v3170_v13, %v3005_v45  ;;  %v16861_v16 = vadd.f32 %v3211_v14, %v3046_v1  ;;  %v3172_v19 = vpop.f32.mrb[14].mxu0  ;;  %v3213_v20 = vpop.f32.mrb[14].mxu1  ;;  %5745 = vmatpush1.bf16.msra.mxu0 %v14338_v63  ;;  %5786 = vmatpush1.bf16.msra.mxu1 %v14341_v0  ;;  %v14397_v63 = vld [vmem:[%s19104_s11 + $0x9cc] ss:$16 sps:$4 sm:$0xff]   ;;  %v14395_v7 = vld [vmem:[%s19104_s11 + $0x9c8] ss:$16 sps:$4 sm:$0xff]  }
 0x48d   : > { %v3173_v22 = vpop.f32.mrb[15].mxu0  ;;  %v3214_v25 = vpop.f32.mrb[15].mxu1  ;;  %5746 = vmatprep.subr.bf16.mxu0 %v14346_v2  ;;  %5787 = vmatprep.subr.bf16.mxu1 %v14349_v3  ;;  %v14392_v3 = vld [vmem:[%s19104_s11 + $0x9c0] ss:$16 sps:$4 sm:$0xff]  }
 0x490   : > { %5747 = vmatpush1.bf16.msra.mxu0 %v14344_v9  ;;  %5788 = vmatpush1.bf16.msra.mxu1 %v14347_v10 }
 0x491   : > { %5748 = vmatprep.subr.bf16.mxu0 %v14352_v26  ;;  %5789 = vmatprep.subr.bf16.mxu1 %v14355_v27  ;;  %v14406_v27 = vld [vmem:[%s19104_s11 + $0xa04] ss:$16 sps:$4 sm:$0xff]  }
 0x494   : > { %5749 = vmatpush1.bf16.msra.mxu0 %v14350_v28  ;;  %5790 = vmatpush1.bf16.msra.mxu1 %v14353_v29  ;;  %v14409_v28 = vld [vmem:[%s19104_s11 + $0xa0c] ss:$16 sps:$4 sm:$0xff]   ;;  %v14404_v29 = vld [vmem:[%s19104_s11 + $0xa00] ss:$16 sps:$4 sm:$0xff]  }
 0x495   : > { %5928 = vmatprep.subr.bf16.mxu0 %v14358_v21  ;;  %5969 = vmatprep.subr.bf16.mxu1 %v14361_v5  ;;  %v14407_v21 = vld [vmem:[%s19104_s11 + $0xa08] ss:$16 sps:$4 sm:$0xff]   ;;  %v6030_v5 = vrot.slane %v16764_v34, 2 }
 0x496   : > { %v14413_v34 = vld [vmem:[%s19104_s11 + $0xa28] ss:$16 sps:$4 sm:$0xff]  }
 0x497   : > { %12727 = vmatmul.mubr.msk.bf16.vlgmr.msra.gmra.mrb[68].mxu0 %vm568_vm1, %v5658_v32  ;;  %12728 = vmatmul.mubr.msk.bf16.vlgmr.msra.gmra.mrb[68].mxu1 %vm568_vm1, %v5658_v32  ;;  %v14410_v32 = vld [vmem:[%s19104_s11 + $0xa20] ss:$16 sps:$4 sm:$0xff]  }
 0x498   : > { %5929 = vmatpush1.bf16.msra.mxu0 %v14356_v30  ;;  %5970 = vmatpush1.bf16.msra.mxu1 %v14359_v31  ;;  %v14412_v30 = vld [vmem:[%s19104_s11 + $0xa24] ss:$16 sps:$4 sm:$0xff]   ;;  %v14415_v31 = vld [vmem:[%s19104_s11 + $0xa2c] ss:$16 sps:$4 sm:$0xff]  }
 0x499   : > { %5930 = vmatprep.subr.bf16.mxu0 %v14364_v33  ;;  %5971 = vmatprep.subr.bf16.mxu1 %v14367_v35  ;;  %v14418_v33 = vld [vmem:[%s19104_s11 + $0xa44] ss:$16 sps:$4 sm:$0xff]   ;;  %v14421_v35 = vld [vmem:[%s19104_s11 + $0xa4c] ss:$16 sps:$4 sm:$0xff]  }
 0x49a   : > { %v3350_v40 = vpop.f32.mrb[16].mxu0  ;;  %v3391_v41 = vpop.f32.mrb[16].mxu1  ;;  %5960 = vmatprep.mubr.bf16.mxu0 %v15226_v53  ;;  %6001 = vmatprep.mubr.bf16.mxu1 %v15226_v53 }
 0x49b   : > { %v16917_v44 = vadd.f32 %v3350_v40, %v16731_v17  ;;  %v16920_v45 = vadd.f32 %v3391_v41, %v16733_v18  ;;  %v3352_v1 = vpop.f32.mrb[17].mxu0  ;;  %v3393_v46 = vpop.f32.mrb[17].mxu1  ;;  %v14376_v17 = vld [vmem:[%s19104_s11 + $0x964] ss:$16 sps:$4 sm:$0xff]   ;;  %v14379_v18 = vld [vmem:[%s19104_s11 + $0x96c] ss:$16 sps:$4 sm:$0xff]  }
 0x49c   : > { %v16923_v47 = vadd.f32 %v3352_v1, %v16738_v23  ;;  %v16926_v48 = vadd.f32 %v3393_v46, %v16740_v24  ;;  %v3354_v49 = vpop.f32.mrb[18].mxu0  ;;  %v3395_v50 = vpop.f32.mrb[18].mxu1  ;;  %5931 = vmatpush1.bf16.msra.mxu0 %v14362_v36  ;;  %5972 = vmatpush1.bf16.msra.mxu1 %v14365_v37  ;;  %v14374_v23 = vld [vmem:[%s19104_s11 + $0x960] ss:$16 sps:$4 sm:$0xff]   ;;  %v14377_v24 = vld [vmem:[%s19104_s11 + $0x968] ss:$16 sps:$4 sm:$0xff]  }
 0x49d   : > { %v3355_v4 = vpop.f32.mrb[19].mxu0  ;;  %v3396_v51 = vpop.f32.mrb[19].mxu1  ;;  %5932 = vmatprep.subr.bf16.mxu0 %v14370_v38  ;;  %5973 = vmatprep.subr.bf16.mxu1 %v14373_v39  ;;  %v14416_v38 = vld [vmem:[%s19104_s11 + $0xa40] ss:$16 sps:$4 sm:$0xff]   ;;  %v14419_v39 = vld [vmem:[%s19104_s11 + $0xa48] ss:$16 sps:$4 sm:$0xff]  }
 0x4a0   : > { %5933 = vmatpush1.bf16.msra.mxu0 %v14368_v42  ;;  %5974 = vmatpush1.bf16.msra.mxu1 %v14371_v43 }
 0x4a1   : > { %5934 = vmatprep.subr.bf16.mxu0 %v14376_v17  ;;  %5975 = vmatprep.subr.bf16.mxu1 %v14379_v18  ;;  %v14430_v17 = vld [vmem:[%s19104_s11 + $0xa84] ss:$16 sps:$4 sm:$0xff]   ;;  %v14433_v18 = vld [vmem:[%s19104_s11 + $0xa8c] ss:$16 sps:$4 sm:$0xff]  }
 0x4a4   : > { %5935 = vmatpush1.bf16.msra.mxu0 %v14374_v23  ;;  %5976 = vmatpush1.bf16.msra.mxu1 %v14377_v24  ;;  %v14428_v23 = vld [vmem:[%s19104_s11 + $0xa80] ss:$16 sps:$4 sm:$0xff]   ;;  %v6216_v24 = vrot.slane %v16699_v6, 3 }
 0x4a5   : > { %6114 = vmatprep.subr.bf16.mxu0 %v14382_v52  ;;  %6155 = vmatprep.subr.bf16.mxu1 %v14385_v54  ;;  %v14431_v52 = vld [vmem:[%s19104_s11 + $0xa88] ss:$16 sps:$4 sm:$0xff]   ;;  %v14436_v54 = vld [vmem:[%s19104_s11 + $0xaa4] ss:$16 sps:$4 sm:$0xff]   ;;  %v14434_v6 = vld [vmem:[%s19104_s11 + $0xaa0] ss:$16 sps:$4 sm:$0xff]  }
 0x4a7   : > { %12745 = vmatmul.mubr.msk.bf16.vlgmr.msra.gmra.mrb[72].mxu0 %vm568_vm1, %v5844_v57  ;;  %12746 = vmatmul.mubr.msk.bf16.vlgmr.msra.gmra.mrb[72].mxu1 %vm568_vm1, %v5844_v57  ;;  %v14442_v57 = vld [vmem:[%s19104_s11 + $0xac4] ss:$16 sps:$4 sm:$0xff]  }
 0x4a8   : > { %6115 = vmatpush1.bf16.msra.mxu0 %v14380_v55  ;;  %6156 = vmatpush1.bf16.msra.mxu1 %v14383_v56  ;;  %v14439_v55 = vld [vmem:[%s19104_s11 + $0xaac] ss:$16 sps:$4 sm:$0xff]   ;;  %v14437_v56 = vld [vmem:[%s19104_s11 + $0xaa8] ss:$16 sps:$4 sm:$0xff]  }
 0x4a9   : > { %6116 = vmatprep.subr.bf16.mxu0 %v14388_v58  ;;  %6157 = vmatprep.subr.bf16.mxu1 %v14391_v59  ;;  %v14445_v58 = vld [vmem:[%s19104_s11 + $0xacc] ss:$16 sps:$4 sm:$0xff]  }
 0x4aa   : > { %v3536_v0 = vpop.f32.mrb[20].mxu0  ;;  %v3577_v2 = vpop.f32.mrb[20].mxu1  ;;  %6146 = vmatprep.mubr.bf16.mxu0 %v15226_v53  ;;  %6187 = vmatprep.mubr.bf16.mxu1 %v15226_v53 }
 0x4ab   : > { %v16982_v8 = vadd.f32 %v3536_v0, %v16855_v11  ;;  %v16985_v9 = vadd.f32 %v3577_v2, %v16857_v12  ;;  %v3538_v10 = vpop.f32.mrb[21].mxu0  ;;  %v3579_v13 = vpop.f32.mrb[21].mxu1  ;;  %v14400_v11 = vld [vmem:[%s19104_s11 + $0x9e4] ss:$16 sps:$4 sm:$0xff]   ;;  %v14403_v12 = vld [vmem:[%s19104_s11 + $0x9ec] ss:$16 sps:$4 sm:$0xff]  }
 0x4ac   : > { %v16988_v14 = vadd.f32 %v3538_v10, %v16859_v15  ;;  %v16991_v19 = vadd.f32 %v3579_v13, %v16861_v16  ;;  %v3540_v20 = vpop.f32.mrb[22].mxu0  ;;  %v3581_v22 = vpop.f32.mrb[22].mxu1  ;;  %6117 = vmatpush1.bf16.msra.mxu0 %v14386_v60  ;;  %6158 = vmatpush1.bf16.msra.mxu1 %v14389_v61  ;;  %v14398_v15 = vld [vmem:[%s19104_s11 + $0x9e0] ss:$16 sps:$4 sm:$0xff]   ;;  %v14401_v16 = vld [vmem:[%s19104_s11 + $0x9e8] ss:$16 sps:$4 sm:$0xff]  }
 0x4ad   : > { %v3541_v25 = vpop.f32.mrb[23].mxu0  ;;  %v3582_v26 = vpop.f32.mrb[23].mxu1  ;;  %6118 = vmatprep.subr.bf16.mxu0 %v14394_v62  ;;  %6159 = vmatprep.subr.bf16.mxu1 %v14397_v63  ;;  %v14440_v61 = vld [vmem:[%s19104_s11 + $0xac0] ss:$16 sps:$4 sm:$0xff]   ;;  %v14443_v62 = vld [vmem:[%s19104_s11 + $0xac8] ss:$16 sps:$4 sm:$0xff]  }
 0x4ae   : > { %v6387_v26 = vld [vmem:[#allocation4 + $0x18] sm:$0x7f] }
 0x4b0   : > { %6119 = vmatpush1.bf16.msra.mxu0 %v14392_v3  ;;  %6160 = vmatpush1.bf16.msra.mxu1 %v14395_v7 }
 0x4b1   : > { %6120 = vmatprep.subr.bf16.mxu0 %v14400_v11  ;;  %6161 = vmatprep.subr.bf16.mxu1 %v14403_v12  ;;  %v14454_v11 = vld [vmem:[%s19104_s11 + $0xb04] ss:$16 sps:$4 sm:$0xff]   ;;  %v14457_v12 = vld [vmem:[%s19104_s11 + $0xb0c] ss:$16 sps:$4 sm:$0xff]  }
 0x4b4   : > { %6121 = vmatpush1.bf16.msra.mxu0 %v14398_v15  ;;  %6162 = vmatpush1.bf16.msra.mxu1 %v14401_v16  ;;  %v14452_v15 = vld [vmem:[%s19104_s11 + $0xb00] ss:$16 sps:$4 sm:$0xff]   ;;  %v14455_v16 = vld [vmem:[%s19104_s11 + $0xb08] ss:$16 sps:$4 sm:$0xff]  }
 0x4b5   : > { %6300 = vmatprep.subr.bf16.mxu0 %v14406_v27  ;;  %6341 = vmatprep.subr.bf16.mxu1 %v14409_v28  ;;  %v17147_v27 = vpack.c.bf16 %v6387_v26, %v6387_v26  ;;  %v14460_v28 = vld [vmem:[%s19104_s11 + $0xb24] ss:$16 sps:$4 sm:$0xff]  }
 0x4b7   : > { %12763 = vmatmul.mubr.msk.bf16.vlgmr.msra.gmra.mrb[76].mxu0 %vm568_vm1, %v6030_v5  ;;  %12764 = vmatmul.mubr.msk.bf16.vlgmr.msra.gmra.mrb[76].mxu1 %vm568_vm1, %v6030_v5  ;;  %v14461_v5 = vld [vmem:[%s19104_s11 + $0xb28] ss:$16 sps:$4 sm:$0xff]   ;;  %v6778_v26 = vrot.slane %v17147_v27, 1 }
 0x4b8   : > { %6301 = vmatpush1.bf16.msra.mxu0 %v14404_v29  ;;  %6342 = vmatpush1.bf16.msra.mxu1 %v14407_v21  ;;  %v14463_v29 = vld [vmem:[%s19104_s11 + $0xb2c] ss:$16 sps:$4 sm:$0xff]   ;;  %v14458_v21 = vld [vmem:[%s19104_s11 + $0xb20] ss:$16 sps:$4 sm:$0xff]  }
 0x4b9   : > { %6302 = vmatprep.subr.bf16.mxu0 %v14412_v30  ;;  %6343 = vmatprep.subr.bf16.mxu1 %v14415_v31  ;;  %v14466_v30 = vld [vmem:[%s19104_s11 + $0xb44] ss:$16 sps:$4 sm:$0xff]   ;;  %v14469_v31 = vld [vmem:[%s19104_s11 + $0xb4c] ss:$16 sps:$4 sm:$0xff]  }
 0x4ba   : > { %v3722_v36 = vpop.f32.mrb[24].mxu0  ;;  %v3763_v37 = vpop.f32.mrb[24].mxu1  ;;  %6332 = vmatprep.mubr.bf16.mxu0 %v15226_v53  ;;  %6373 = vmatprep.mubr.bf16.mxu1 %v15226_v53 }
 0x4bb   : > { %v17047_v40 = vadd.f32 %v3722_v36, %v16917_v44  ;;  %v17050_v41 = vadd.f32 %v3763_v37, %v16920_v45  ;;  %v3724_v42 = vpop.f32.mrb[25].mxu0  ;;  %v3765_v43 = vpop.f32.mrb[25].mxu1  ;;  %v14424_v44 = vld [vmem:[%s19104_s11 + $0xa64] ss:$16 sps:$4 sm:$0xff]   ;;  %v14427_v45 = vld [vmem:[%s19104_s11 + $0xa6c] ss:$16 sps:$4 sm:$0xff]  }
 0x4bc   : > { %v17053_v1 = vadd.f32 %v3724_v42, %v16923_v47  ;;  %v17056_v46 = vadd.f32 %v3765_v43, %v16926_v48  ;;  %v3726_v49 = vpop.f32.mrb[26].mxu0  ;;  %v3767_v50 = vpop.f32.mrb[26].mxu1  ;;  %6303 = vmatpush1.bf16.msra.mxu0 %v14410_v32  ;;  %6344 = vmatpush1.bf16.msra.mxu1 %v14413_v34  ;;  %v14422_v47 = vld [vmem:[%s19104_s11 + $0xa60] ss:$16 sps:$4 sm:$0xff]   ;;  %v14425_v48 = vld [vmem:[%s19104_s11 + $0xa68] ss:$16 sps:$4 sm:$0xff]  }
 0x4bd   : > { %v3727_v4 = vpop.f32.mrb[27].mxu0  ;;  %v3768_v51 = vpop.f32.mrb[27].mxu1  ;;  %6304 = vmatprep.subr.bf16.mxu0 %v14418_v33  ;;  %6345 = vmatprep.subr.bf16.mxu1 %v14421_v35  ;;  %v14464_v33 = vld [vmem:[%s19104_s11 + $0xb40] ss:$16 sps:$4 sm:$0xff]   ;;  %v14467_v35 = vld [vmem:[%s19104_s11 + $0xb48] ss:$16 sps:$4 sm:$0xff]  }
 0x4c0   : > { %6305 = vmatpush1.bf16.msra.mxu0 %v14416_v38  ;;  %6346 = vmatpush1.bf16.msra.mxu1 %v14419_v39 }
 0x4c1   : > { %6306 = vmatprep.subr.bf16.mxu0 %v14424_v44  ;;  %6347 = vmatprep.subr.bf16.mxu1 %v14427_v45  ;;  %v14478_v44 = vld [vmem:[%s19104_s11 + $0xb84] ss:$16 sps:$4 sm:$0xff]   ;;  %v14481_v45 = vld [vmem:[%s19104_s11 + $0xb8c] ss:$16 sps:$4 sm:$0xff]  }
 0x4c4   : > { %6307 = vmatpush1.bf16.msra.mxu0 %v14422_v47  ;;  %6348 = vmatpush1.bf16.msra.mxu1 %v14425_v48  ;;  %v14476_v47 = vld [vmem:[%s19104_s11 + $0xb80] ss:$16 sps:$4 sm:$0xff]   ;;  %v14479_v48 = vld [vmem:[%s19104_s11 + $0xb88] ss:$16 sps:$4 sm:$0xff]  }
 0x4c5   : > { %6488 = vmatprep.subr.bf16.mxu0 %v14430_v17  ;;  %6529 = vmatprep.subr.bf16.mxu1 %v14433_v18  ;;  %v17216_v17 = vshrl.u32 %v17147_v27, 16  ;;  %v14484_v18 = vld [vmem:[%s19104_s11 + $0xba4] ss:$16 sps:$4 sm:$0xff]  }
 0x4c7   : > { %12781 = vmatmul.mubr.msk.bf16.vlgmr.msra.gmra.mrb[80].mxu0 %vm568_vm1, %v6216_v24  ;;  %12782 = vmatmul.mubr.msk.bf16.vlgmr.msra.gmra.mrb[80].mxu1 %vm568_vm1, %v6216_v24  ;;  %v14482_v24 = vld [vmem:[%s19104_s11 + $0xba0] ss:$16 sps:$4 sm:$0xff]  }
 0x4c8   : > { %6489 = vmatpush1.bf16.msra.mxu0 %v14428_v23  ;;  %6530 = vmatpush1.bf16.msra.mxu1 %v14431_v52  ;;  %v14487_v23 = vld [vmem:[%s19104_s11 + $0xbac] ss:$16 sps:$4 sm:$0xff]   ;;  %v14485_v52 = vld [vmem:[%s19104_s11 + $0xba8] ss:$16 sps:$4 sm:$0xff]  }
 0x4c9   : > { %6490 = vmatprep.subr.bf16.mxu0 %v14436_v54  ;;  %6531 = vmatprep.subr.bf16.mxu1 %v14439_v55  ;;  %v14490_v54 = vld [vmem:[%s19104_s11 + $0xbc4] ss:$16 sps:$4 sm:$0xff]   ;;  %v14493_v55 = vld [vmem:[%s19104_s11 + $0xbcc] ss:$16 sps:$4 sm:$0xff]  }
 0x4ca   : > { %v3910_v59 = vpop.f32.mrb[28].mxu0  ;;  %v3951_v60 = vpop.f32.mrb[28].mxu1  ;;  %6520 = vmatprep.mubr.bf16.mxu0 %v15226_v53  ;;  %6561 = vmatprep.mubr.bf16.mxu1 %v15226_v53 }
 0x4cb   : > { %v17112_v63 = vadd.f32 %v3910_v59, %v16982_v8  ;;  %v17115_v0 = vadd.f32 %v3951_v60, %v16985_v9  ;;  %v3912_v2 = vpop.f32.mrb[29].mxu0  ;;  %v3953_v3 = vpop.f32.mrb[29].mxu1  ;;  %v14448_v8 = vld [vmem:[%s19104_s11 + $0xae4] ss:$16 sps:$4 sm:$0xff]   ;;  %v14451_v9 = vld [vmem:[%s19104_s11 + $0xaec] ss:$16 sps:$4 sm:$0xff]  }
 0x4cc   : > { %v17118_v7 = vadd.f32 %v3912_v2, %v16988_v14  ;;  %v17121_v10 = vadd.f32 %v3953_v3, %v16991_v19  ;;  %v3914_v13 = vpop.f32.mrb[30].mxu0  ;;  %v3955_v20 = vpop.f32.mrb[30].mxu1  ;;  %6491 = vmatpush1.bf16.msra.mxu0 %v14434_v6  ;;  %6532 = vmatpush1.bf16.msra.mxu1 %v14437_v56  ;;  %v14446_v14 = vld [vmem:[%s19104_s11 + $0xae0] ss:$16 sps:$4 sm:$0xff]   ;;  %v14449_v19 = vld [vmem:[%s19104_s11 + $0xae8] ss:$16 sps:$4 sm:$0xff]  }
 0x4cd   : > { %v3915_v22 = vpop.f32.mrb[31].mxu0  ;;  %v3956_v25 = vpop.f32.mrb[31].mxu1  ;;  %6492 = vmatprep.subr.bf16.mxu0 %v14442_v57  ;;  %6533 = vmatprep.subr.bf16.mxu1 %v14445_v58  ;;  %v14488_v57 = vld [vmem:[%s19104_s11 + $0xbc0] ss:$16 sps:$4 sm:$0xff]   ;;  %v14491_v58 = vld [vmem:[%s19104_s11 + $0xbc8] ss:$16 sps:$4 sm:$0xff]  }
 0x4d0   : > { %6493 = vmatpush1.bf16.msra.mxu0 %v14440_v61  ;;  %6534 = vmatpush1.bf16.msra.mxu1 %v14443_v62 }
 0x4d1   : > { %6494 = vmatprep.subr.bf16.mxu0 %v14448_v8  ;;  %6535 = vmatprep.subr.bf16.mxu1 %v14451_v9  ;;  %v14502_v8 = vld [vmem:[%s19104_s11 + $0xc04] ss:$16 sps:$4 sm:$0xff]   ;;  %v14505_v9 = vld [vmem:[%s19104_s11 + $0xc0c] ss:$16 sps:$4 sm:$0xff]  }
 0x4d4   : > { %6495 = vmatpush1.bf16.msra.mxu0 %v14446_v14  ;;  %6536 = vmatpush1.bf16.msra.mxu1 %v14449_v19  ;;  %v14500_v14 = vld [vmem:[%s19104_s11 + $0xc00] ss:$16 sps:$4 sm:$0xff]   ;;  %v14503_v19 = vld [vmem:[%s19104_s11 + $0xc08] ss:$16 sps:$4 sm:$0xff]  }
 0x4d5   : > { %6675 = vmatprep.subr.bf16.mxu0 %v14454_v11  ;;  %6716 = vmatprep.subr.bf16.mxu1 %v14457_v12  ;;  %v14508_v11 = vld [vmem:[%s19104_s11 + $0xc24] ss:$16 sps:$4 sm:$0xff]   ;;  %v14511_v12 = vld [vmem:[%s19104_s11 + $0xc2c] ss:$16 sps:$4 sm:$0xff]  }
 0x4d7   : > { %12799 = vmatmul.mubr.msk.bf16.vlgmr.msra.gmra.mrb[84].mxu0 %vm568_vm1, %v17147_v27  ;;  %12800 = vmatmul.mubr.msk.bf16.vlgmr.msra.gmra.mrb[84].mxu1 %vm568_vm1, %v17147_v27 }
 0x4d8   : > { %6676 = vmatpush1.bf16.msra.mxu0 %v14452_v15  ;;  %6717 = vmatpush1.bf16.msra.mxu1 %v14455_v16  ;;  %v14506_v15 = vld [vmem:[%s19104_s11 + $0xc20] ss:$16 sps:$4 sm:$0xff]   ;;  %v14509_v16 = vld [vmem:[%s19104_s11 + $0xc28] ss:$16 sps:$4 sm:$0xff]  }
 0x4d9   : > { %6677 = vmatprep.subr.bf16.mxu0 %v14460_v28  ;;  %6718 = vmatprep.subr.bf16.mxu1 %v14463_v29  ;;  %v14514_v28 = vld [vmem:[%s19104_s11 + $0xc44] ss:$16 sps:$4 sm:$0xff]   ;;  %v14517_v29 = vld [vmem:[%s19104_s11 + $0xc4c] ss:$16 sps:$4 sm:$0xff]  }
 0x4da   : > { %v4097_v32 = vpop.f32.mrb[32].mxu0  ;;  %v4138_v34 = vpop.f32.mrb[32].mxu1  ;;  %6707 = vmatprep.mubr.bf16.mxu0 %v15226_v53  ;;  %6748 = vmatprep.mubr.bf16.mxu1 %v15226_v53 }
 0x4db   : > { %v17180_v36 = vadd.f32 %v4097_v32, %v17047_v40  ;;  %v17183_v37 = vadd.f32 %v4138_v34, %v17050_v41  ;;  %v4099_v38 = vpop.f32.mrb[33].mxu0  ;;  %v4140_v39 = vpop.f32.mrb[33].mxu1  ;;  %v14472_v40 = vld [vmem:[%s19104_s11 + $0xb64] ss:$16 sps:$4 sm:$0xff]   ;;  %v14475_v41 = vld [vmem:[%s19104_s11 + $0xb6c] ss:$16 sps:$4 sm:$0xff]  }
 0x4dc   : > { %v17186_v42 = vadd.f32 %v4099_v38, %v17053_v1  ;;  %v17189_v43 = vadd.f32 %v4140_v39, %v17056_v46  ;;  %v4101_v49 = vpop.f32.mrb[34].mxu0  ;;  %v4142_v50 = vpop.f32.mrb[34].mxu1  ;;  %6678 = vmatpush1.bf16.msra.mxu0 %v14458_v21  ;;  %6719 = vmatpush1.bf16.msra.mxu1 %v14461_v5  ;;  %v14470_v1 = vld [vmem:[%s19104_s11 + $0xb60] ss:$16 sps:$4 sm:$0xff]   ;;  %v14473_v46 = vld [vmem:[%s19104_s11 + $0xb68] ss:$16 sps:$4 sm:$0xff]  }
 0x4dd   : > { %v4102_v4 = vpop.f32.mrb[35].mxu0  ;;  %v4143_v51 = vpop.f32.mrb[35].mxu1  ;;  %6679 = vmatprep.subr.bf16.mxu0 %v14466_v30  ;;  %6720 = vmatprep.subr.bf16.mxu1 %v14469_v31  ;;  %v14512_v30 = vld [vmem:[%s19104_s11 + $0xc40] ss:$16 sps:$4 sm:$0xff]   ;;  %v14515_v31 = vld [vmem:[%s19104_s11 + $0xc48] ss:$16 sps:$4 sm:$0xff]  }
 0x4e0   : > { %6680 = vmatpush1.bf16.msra.mxu0 %v14464_v33  ;;  %6721 = vmatpush1.bf16.msra.mxu1 %v14467_v35 }
 0x4e1   : > { %6681 = vmatprep.subr.bf16.mxu0 %v14472_v40  ;;  %6722 = vmatprep.subr.bf16.mxu1 %v14475_v41  ;;  %v14526_v40 = vld [vmem:[%s19104_s11 + $0xc84] ss:$16 sps:$4 sm:$0xff]   ;;  %v14529_v41 = vld [vmem:[%s19104_s11 + $0xc8c] ss:$16 sps:$4 sm:$0xff]  }
 0x4e4   : > { %6682 = vmatpush1.bf16.msra.mxu0 %v14470_v1  ;;  %6723 = vmatpush1.bf16.msra.mxu1 %v14473_v46  ;;  %v14524_v1 = vld [vmem:[%s19104_s11 + $0xc80] ss:$16 sps:$4 sm:$0xff]   ;;  %v14527_v46 = vld [vmem:[%s19104_s11 + $0xc88] ss:$16 sps:$4 sm:$0xff]  }
 0x4e5   : > { %6862 = vmatprep.subr.bf16.mxu0 %v14478_v44  ;;  %6903 = vmatprep.subr.bf16.mxu1 %v14481_v45  ;;  %v6964_v44 = vrot.slane %v17216_v17, 1  ;;  %v14532_v45 = vld [vmem:[%s19104_s11 + $0xca4] ss:$16 sps:$4 sm:$0xff]  }
 0x4e7   : > { %12817 = vmatmul.mubr.msk.bf16.vlgmr.msra.gmra.mrb[88].mxu0 %vm568_vm1, %v17216_v17  ;;  %12818 = vmatmul.mubr.msk.bf16.vlgmr.msra.gmra.mrb[88].mxu1 %vm568_vm1, %v17216_v17 }
 0x4e8   : > { %6863 = vmatpush1.bf16.msra.mxu0 %v14476_v47  ;;  %6904 = vmatpush1.bf16.msra.mxu1 %v14479_v48  ;;  %v14535_v47 = vld [vmem:[%s19104_s11 + $0xcac] ss:$16 sps:$4 sm:$0xff]   ;;  %v14530_v48 = vld [vmem:[%s19104_s11 + $0xca0] ss:$16 sps:$4 sm:$0xff]  }
 0x4e9   : > { %6864 = vmatprep.subr.bf16.mxu0 %v14484_v18  ;;  %6905 = vmatprep.subr.bf16.mxu1 %v14487_v23  ;;  %v14533_v18 = vld [vmem:[%s19104_s11 + $0xca8] ss:$16 sps:$4 sm:$0xff]   ;;  %v14538_v23 = vld [vmem:[%s19104_s11 + $0xcc4] ss:$16 sps:$4 sm:$0xff]  }
 0x4ea   : > { %v4284_v6 = vpop.f32.mrb[36].mxu0  ;;  %v4325_v56 = vpop.f32.mrb[36].mxu1  ;;  %6894 = vmatprep.mubr.bf16.mxu0 %v15226_v53  ;;  %6935 = vmatprep.mubr.bf16.mxu1 %v15226_v53 }
 0x4eb   : > { %v17249_v59 = vadd.f32 %v4284_v6, %v17112_v63  ;;  %v17252_v60 = vadd.f32 %v4325_v56, %v17115_v0  ;;  %v4286_v61 = vpop.f32.mrb[37].mxu0  ;;  %v4327_v62 = vpop.f32.mrb[37].mxu1  ;;  %v14496_v63 = vld [vmem:[%s19104_s11 + $0xbe4] ss:$16 sps:$4 sm:$0xff]   ;;  %v14499_v0 = vld [vmem:[%s19104_s11 + $0xbec] ss:$16 sps:$4 sm:$0xff]  }
 0x4ec   : > { %v17255_v2 = vadd.f32 %v4286_v61, %v17118_v7  ;;  %v17258_v3 = vadd.f32 %v4327_v62, %v17121_v10  ;;  %v4288_v13 = vpop.f32.mrb[38].mxu0  ;;  %v4329_v20 = vpop.f32.mrb[38].mxu1  ;;  %6865 = vmatpush1.bf16.msra.mxu0 %v14482_v24  ;;  %6906 = vmatpush1.bf16.msra.mxu1 %v14485_v52  ;;  %v14494_v7 = vld [vmem:[%s19104_s11 + $0xbe0] ss:$16 sps:$4 sm:$0xff]   ;;  %v14497_v10 = vld [vmem:[%s19104_s11 + $0xbe8] ss:$16 sps:$4 sm:$0xff]  }
 0x4ed   : > { %v4289_v22 = vpop.f32.mrb[39].mxu0  ;;  %v4330_v25 = vpop.f32.mrb[39].mxu1  ;;  %6866 = vmatprep.subr.bf16.mxu0 %v14490_v54  ;;  %6907 = vmatprep.subr.bf16.mxu1 %v14493_v55  ;;  %v14541_v24 = vld [vmem:[%s19104_s11 + $0xccc] ss:$16 sps:$4 sm:$0xff]   ;;  %v14536_v55 = vld [vmem:[%s19104_s11 + $0xcc0] ss:$16 sps:$4 sm:$0xff]  }
 0x4ee   : > { %v14539_v6 = vld [vmem:[%s19104_s11 + $0xcc8] ss:$16 sps:$4 sm:$0xff]  }
 0x4f0   : > { %6867 = vmatpush1.bf16.msra.mxu0 %v14488_v57  ;;  %6908 = vmatpush1.bf16.msra.mxu1 %v14491_v58 }
 0x4f1   : > { %6868 = vmatprep.subr.bf16.mxu0 %v14496_v63  ;;  %6909 = vmatprep.subr.bf16.mxu1 %v14499_v0  ;;  %v14550_v0 = vld [vmem:[%s19104_s11 + $0xd04] ss:$16 sps:$4 sm:$0xff]  }
 0x4f4   : > { %6869 = vmatpush1.bf16.msra.mxu0 %v14494_v7  ;;  %6910 = vmatpush1.bf16.msra.mxu1 %v14497_v10  ;;  %v14553_v7 = vld [vmem:[%s19104_s11 + $0xd0c] ss:$16 sps:$4 sm:$0xff]   ;;  %v14548_v10 = vld [vmem:[%s19104_s11 + $0xd00] ss:$16 sps:$4 sm:$0xff]  }
 0x4f5   : > { %7048 = vmatprep.subr.bf16.mxu0 %v14502_v8  ;;  %7089 = vmatprep.subr.bf16.mxu1 %v14505_v9  ;;  %v14551_v8 = vld [vmem:[%s19104_s11 + $0xd08] ss:$16 sps:$4 sm:$0xff]   ;;  %v7150_v9 = vrot.slane %v17147_v27, 2 }
 0x4f7   : > { %12835 = vmatmul.mubr.msk.bf16.vlgmr.msra.gmra.mrb[92].mxu0 %vm568_vm1, %v6778_v26  ;;  %12836 = vmatmul.mubr.msk.bf16.vlgmr.msra.gmra.mrb[92].mxu1 %vm568_vm1, %v6778_v26  ;;  %v14554_v26 = vld [vmem:[%s19104_s11 + $0xd20] ss:$16 sps:$4 sm:$0xff]  }
 0x4f8   : > { %7049 = vmatpush1.bf16.msra.mxu0 %v14500_v14  ;;  %7090 = vmatpush1.bf16.msra.mxu1 %v14503_v19  ;;  %v14556_v14 = vld [vmem:[%s19104_s11 + $0xd24] ss:$16 sps:$4 sm:$0xff]   ;;  %v14559_v19 = vld [vmem:[%s19104_s11 + $0xd2c] ss:$16 sps:$4 sm:$0xff]  }
 0x4f9   : > { %7050 = vmatprep.subr.bf16.mxu0 %v14508_v11  ;;  %7091 = vmatprep.subr.bf16.mxu1 %v14511_v12  ;;  %v14557_v11 = vld [vmem:[%s19104_s11 + $0xd28] ss:$16 sps:$4 sm:$0xff]   ;;  %v14562_v12 = vld [vmem:[%s19104_s11 + $0xd44] ss:$16 sps:$4 sm:$0xff]  }
 0x4fa   : > { %v4470_v21 = vpop.f32.mrb[40].mxu0  ;;  %v4511_v5 = vpop.f32.mrb[40].mxu1  ;;  %7080 = vmatprep.mubr.bf16.mxu0 %v15226_v53  ;;  %7121 = vmatprep.mubr.bf16.mxu1 %v15226_v53 }
 0x4fb   : > { %v17314_v32 = vadd.f32 %v4470_v21, %v17180_v36  ;;  %v17317_v34 = vadd.f32 %v4511_v5, %v17183_v37  ;;  %v4472_v33 = vpop.f32.mrb[41].mxu0  ;;  %v4513_v35 = vpop.f32.mrb[41].mxu1  ;;  %v14520_v36 = vld [vmem:[%s19104_s11 + $0xc64] ss:$16 sps:$4 sm:$0xff]   ;;  %v14523_v37 = vld [vmem:[%s19104_s11 + $0xc6c] ss:$16 sps:$4 sm:$0xff]  }
 0x4fc   : > { %v17320_v38 = vadd.f32 %v4472_v33, %v17186_v42  ;;  %v17323_v39 = vadd.f32 %v4513_v35, %v17189_v43  ;;  %v4474_v49 = vpop.f32.mrb[42].mxu0  ;;  %v4515_v50 = vpop.f32.mrb[42].mxu1  ;;  %7051 = vmatpush1.bf16.msra.mxu0 %v14506_v15  ;;  %7092 = vmatpush1.bf16.msra.mxu1 %v14509_v16  ;;  %v14518_v42 = vld [vmem:[%s19104_s11 + $0xc60] ss:$16 sps:$4 sm:$0xff]   ;;  %v14521_v43 = vld [vmem:[%s19104_s11 + $0xc68] ss:$16 sps:$4 sm:$0xff]  }
 0x4fd   : > { %v4475_v4 = vpop.f32.mrb[43].mxu0  ;;  %v4516_v51 = vpop.f32.mrb[43].mxu1  ;;  %7052 = vmatprep.subr.bf16.mxu0 %v14514_v28  ;;  %7093 = vmatprep.subr.bf16.mxu1 %v14517_v29  ;;  %v14565_v15 = vld [vmem:[%s19104_s11 + $0xd4c] ss:$16 sps:$4 sm:$0xff]   ;;  %v14560_v29 = vld [vmem:[%s19104_s11 + $0xd40] ss:$16 sps:$4 sm:$0xff]  }
 0x4fe   : > { %v14563_v21 = vld [vmem:[%s19104_s11 + $0xd48] ss:$16 sps:$4 sm:$0xff]  }
 0x500   : > { %7053 = vmatpush1.bf16.msra.mxu0 %v14512_v30  ;;  %7094 = vmatpush1.bf16.msra.mxu1 %v14515_v31 }
 0x501   : > { %7054 = vmatprep.subr.bf16.mxu0 %v14520_v36  ;;  %7095 = vmatprep.subr.bf16.mxu1 %v14523_v37  ;;  %v14574_v37 = vld [vmem:[%s19104_s11 + $0xd84] ss:$16 sps:$4 sm:$0xff]  }
 0x504   : > { %7055 = vmatpush1.bf16.msra.mxu0 %v14518_v42  ;;  %7096 = vmatpush1.bf16.msra.mxu1 %v14521_v43  ;;  %v14577_v42 = vld [vmem:[%s19104_s11 + $0xd8c] ss:$16 sps:$4 sm:$0xff]   ;;  %v14572_v43 = vld [vmem:[%s19104_s11 + $0xd80] ss:$16 sps:$4 sm:$0xff]  }
 0x505   : > { %7234 = vmatprep.subr.bf16.mxu0 %v14526_v40  ;;  %7275 = vmatprep.subr.bf16.mxu1 %v14529_v41  ;;  %v14575_v40 = vld [vmem:[%s19104_s11 + $0xd88] ss:$16 sps:$4 sm:$0xff]   ;;  %v7336_v41 = vrot.slane %v17216_v17, 2 }
 0x506   : > { %v14581_v17 = vld [vmem:[%s19104_s11 + $0xda8] ss:$16 sps:$4 sm:$0xff]  }
 0x507   : > { %12853 = vmatmul.mubr.msk.bf16.vlgmr.msra.gmra.mrb[96].mxu0 %vm568_vm1, %v6964_v44  ;;  %12854 = vmatmul.mubr.msk.bf16.vlgmr.msra.gmra.mrb[96].mxu1 %vm568_vm1, %v6964_v44  ;;  %v14578_v44 = vld [vmem:[%s19104_s11 + $0xda0] ss:$16 sps:$4 sm:$0xff]  }
 0x508   : > { %7235 = vmatpush1.bf16.msra.mxu0 %v14524_v1  ;;  %7276 = vmatpush1.bf16.msra.mxu1 %v14527_v46  ;;  %v14580_v1 = vld [vmem:[%s19104_s11 + $0xda4] ss:$16 sps:$4 sm:$0xff]   ;;  %v14583_v46 = vld [vmem:[%s19104_s11 + $0xdac] ss:$16 sps:$4 sm:$0xff]  }
 0x509   : > { %7236 = vmatprep.subr.bf16.mxu0 %v14532_v45  ;;  %7277 = vmatprep.subr.bf16.mxu1 %v14535_v47  ;;  %v14586_v45 = vld [vmem:[%s19104_s11 + $0xdc4] ss:$16 sps:$4 sm:$0xff]   ;;  %v14589_v47 = vld [vmem:[%s19104_s11 + $0xdcc] ss:$16 sps:$4 sm:$0xff]  }
 0x50a   : > { %v4656_v52 = vpop.f32.mrb[44].mxu0  ;;  %v4697_v54 = vpop.f32.mrb[44].mxu1  ;;  %7266 = vmatprep.mubr.bf16.mxu0 %v15226_v53  ;;  %7307 = vmatprep.mubr.bf16.mxu1 %v15226_v53 }
 0x50b   : > { %v17379_v56 = vadd.f32 %v4656_v52, %v17249_v59  ;;  %v17382_v57 = vadd.f32 %v4697_v54, %v17252_v60  ;;  %v4658_v58 = vpop.f32.mrb[45].mxu0  ;;  %v4699_v61 = vpop.f32.mrb[45].mxu1  ;;  %v14544_v59 = vld [vmem:[%s19104_s11 + $0xce4] ss:$16 sps:$4 sm:$0xff]   ;;  %v14547_v60 = vld [vmem:[%s19104_s11 + $0xcec] ss:$16 sps:$4 sm:$0xff]  }
 0x50c   : > { %v17385_v62 = vadd.f32 %v4658_v58, %v17255_v2  ;;  %v17388_v13 = vadd.f32 %v4699_v61, %v17258_v3  ;;  %v4660_v20 = vpop.f32.mrb[46].mxu0  ;;  %v4701_v22 = vpop.f32.mrb[46].mxu1  ;;  %7237 = vmatpush1.bf16.msra.mxu0 %v14530_v48  ;;  %7278 = vmatpush1.bf16.msra.mxu1 %v14533_v18  ;;  %v14542_v2 = vld [vmem:[%s19104_s11 + $0xce0] ss:$16 sps:$4 sm:$0xff]   ;;  %v14545_v3 = vld [vmem:[%s19104_s11 + $0xce8] ss:$16 sps:$4 sm:$0xff]  }
 0x50d   : > { %v4661_v25 = vpop.f32.mrb[47].mxu0  ;;  %v4702_v63 = vpop.f32.mrb[47].mxu1  ;;  %7238 = vmatprep.subr.bf16.mxu0 %v14538_v23  ;;  %7279 = vmatprep.subr.bf16.mxu1 %v14541_v24  ;;  %v14584_v23 = vld [vmem:[%s19104_s11 + $0xdc0] ss:$16 sps:$4 sm:$0xff]   ;;  %v14587_v24 = vld [vmem:[%s19104_s11 + $0xdc8] ss:$16 sps:$4 sm:$0xff]  }
 0x510   : > { %7239 = vmatpush1.bf16.msra.mxu0 %v14536_v55  ;;  %7280 = vmatpush1.bf16.msra.mxu1 %v14539_v6 }
 0x511   : > { %7240 = vmatprep.subr.bf16.mxu0 %v14544_v59  ;;  %7281 = vmatprep.subr.bf16.mxu1 %v14547_v60  ;;  %v14598_v59 = vld [vmem:[%s19104_s11 + $0xe04] ss:$16 sps:$4 sm:$0xff]   ;;  %v14601_v60 = vld [vmem:[%s19104_s11 + $0xe0c] ss:$16 sps:$4 sm:$0xff]  }
 0x514   : > { %7241 = vmatpush1.bf16.msra.mxu0 %v14542_v2  ;;  %7282 = vmatpush1.bf16.msra.mxu1 %v14545_v3  ;;  %v14596_v2 = vld [vmem:[%s19104_s11 + $0xe00] ss:$16 sps:$4 sm:$0xff]   ;;  %v7522_v3 = vrot.slane %v17147_v27, 3 }
 0x515   : > { %7420 = vmatprep.subr.bf16.mxu0 %v14550_v0  ;;  %7461 = vmatprep.subr.bf16.mxu1 %v14553_v7  ;;  %v14599_v0 = vld [vmem:[%s19104_s11 + $0xe08] ss:$16 sps:$4 sm:$0xff]   ;;  %v14604_v7 = vld [vmem:[%s19104_s11 + $0xe24] ss:$16 sps:$4 sm:$0xff]   ;;  %v14602_v27 = vld [vmem:[%s19104_s11 + $0xe20] ss:$16 sps:$4 sm:$0xff]  }
 0x517   : > { %12871 = vmatmul.mubr.msk.bf16.vlgmr.msra.gmra.mrb[100].mxu0 %vm568_vm1, %v7150_v9  ;;  %12872 = vmatmul.mubr.msk.bf16.vlgmr.msra.gmra.mrb[100].mxu1 %vm568_vm1, %v7150_v9  ;;  %v14610_v9 = vld [vmem:[%s19104_s11 + $0xe44] ss:$16 sps:$4 sm:$0xff]  }
 0x518   : > { %7421 = vmatpush1.bf16.msra.mxu0 %v14548_v10  ;;  %7462 = vmatpush1.bf16.msra.mxu1 %v14551_v8  ;;  %v14607_v10 = vld [vmem:[%s19104_s11 + $0xe2c] ss:$16 sps:$4 sm:$0xff]   ;;  %v14605_v8 = vld [vmem:[%s19104_s11 + $0xe28] ss:$16 sps:$4 sm:$0xff]  }
 0x519   : > { %7422 = vmatprep.subr.bf16.mxu0 %v14556_v14  ;;  %7463 = vmatprep.subr.bf16.mxu1 %v14559_v19  ;;  %v14613_v14 = vld [vmem:[%s19104_s11 + $0xe4c] ss:$16 sps:$4 sm:$0xff]  }
 0x51a   : > { %v4842_v16 = vpop.f32.mrb[48].mxu0  ;;  %v4883_v28 = vpop.f32.mrb[48].mxu1  ;;  %7452 = vmatprep.mubr.bf16.mxu0 %v15226_v53  ;;  %7493 = vmatprep.mubr.bf16.mxu1 %v15226_v53 }
 0x51b   : > { %v17444_v5 = vadd.f32 %v4842_v16, %v17314_v32  ;;  %v17447_v30 = vadd.f32 %v4883_v28, %v17317_v34  ;;  %v4844_v31 = vpop.f32.mrb[49].mxu0  ;;  %v4885_v33 = vpop.f32.mrb[49].mxu1  ;;  %v14568_v32 = vld [vmem:[%s19104_s11 + $0xd64] ss:$16 sps:$4 sm:$0xff]   ;;  %v14571_v34 = vld [vmem:[%s19104_s11 + $0xd6c] ss:$16 sps:$4 sm:$0xff]  }
 0x51c   : > { %v17450_v35 = vadd.f32 %v4844_v31, %v17320_v38  ;;  %v17453_v49 = vadd.f32 %v4885_v33, %v17323_v39  ;;  %v4846_v50 = vpop.f32.mrb[50].mxu0  ;;  %v4887_v4 = vpop.f32.mrb[50].mxu1  ;;  %7423 = vmatpush1.bf16.msra.mxu0 %v14554_v26  ;;  %7464 = vmatpush1.bf16.msra.mxu1 %v14557_v11  ;;  %v14566_v38 = vld [vmem:[%s19104_s11 + $0xd60] ss:$16 sps:$4 sm:$0xff]   ;;  %v14569_v39 = vld [vmem:[%s19104_s11 + $0xd68] ss:$16 sps:$4 sm:$0xff]  }
 0x51d   : > { %v4847_v51 = vpop.f32.mrb[51].mxu0  ;;  %v4888_v36 = vpop.f32.mrb[51].mxu1  ;;  %7424 = vmatprep.subr.bf16.mxu0 %v14562_v12  ;;  %7465 = vmatprep.subr.bf16.mxu1 %v14565_v15  ;;  %v14608_v11 = vld [vmem:[%s19104_s11 + $0xe40] ss:$16 sps:$4 sm:$0xff]   ;;  %v14611_v12 = vld [vmem:[%s19104_s11 + $0xe48] ss:$16 sps:$4 sm:$0xff]  }
 0x51e   : > { %v7693_v36 = vld [vmem:[#allocation4 + $0x20] sm:$0x7f] }
 0x520   : > { %7425 = vmatpush1.bf16.msra.mxu0 %v14560_v29  ;;  %7466 = vmatpush1.bf16.msra.mxu1 %v14563_v21 }
 0x521   : > { %7426 = vmatprep.subr.bf16.mxu0 %v14568_v32  ;;  %7467 = vmatprep.subr.bf16.mxu1 %v14571_v34  ;;  %v14622_v32 = vld [vmem:[%s19104_s11 + $0xe84] ss:$16 sps:$4 sm:$0xff]   ;;  %v14625_v34 = vld [vmem:[%s19104_s11 + $0xe8c] ss:$16 sps:$4 sm:$0xff]  }
 0x524   : > { %7427 = vmatpush1.bf16.msra.mxu0 %v14566_v38  ;;  %7468 = vmatpush1.bf16.msra.mxu1 %v14569_v39  ;;  %v14620_v38 = vld [vmem:[%s19104_s11 + $0xe80] ss:$16 sps:$4 sm:$0xff]   ;;  %v14623_v39 = vld [vmem:[%s19104_s11 + $0xe88] ss:$16 sps:$4 sm:$0xff]  }
 0x525   : > { %7606 = vmatprep.subr.bf16.mxu0 %v14574_v37  ;;  %7647 = vmatprep.subr.bf16.mxu1 %v14577_v42  ;;  %v17609_v37 = vpack.c.bf16 %v7693_v36, %v7693_v36  ;;  %v14628_v42 = vld [vmem:[%s19104_s11 + $0xea4] ss:$16 sps:$4 sm:$0xff]   ;;  %v14671_v36 = vld [vmem:[%s19104_s11 + $0xf88] ss:$16 sps:$4 sm:$0xff]  }
 0x527   : > { %12889 = vmatmul.mubr.msk.bf16.vlgmr.msra.gmra.mrb[104].mxu0 %vm568_vm1, %v7336_v41  ;;  %12890 = vmatmul.mubr.msk.bf16.vlgmr.msra.gmra.mrb[104].mxu1 %vm568_vm1, %v7336_v41  ;;  %v14629_v41 = vld [vmem:[%s19104_s11 + $0xea8] ss:$16 sps:$4 sm:$0xff]  }
 0x528   : > { %7607 = vmatpush1.bf16.msra.mxu0 %v14572_v43  ;;  %7648 = vmatpush1.bf16.msra.mxu1 %v14575_v40  ;;  %v14631_v43 = vld [vmem:[%s19104_s11 + $0xeac] ss:$16 sps:$4 sm:$0xff]   ;;  %v14626_v40 = vld [vmem:[%s19104_s11 + $0xea0] ss:$16 sps:$4 sm:$0xff]  }
 0x529   : > { %7608 = vmatprep.subr.bf16.mxu0 %v14580_v1  ;;  %7649 = vmatprep.subr.bf16.mxu1 %v14583_v46  ;;  %v14634_v1 = vld [vmem:[%s19104_s11 + $0xec4] ss:$16 sps:$4 sm:$0xff]   ;;  %v14637_v46 = vld [vmem:[%s19104_s11 + $0xecc] ss:$16 sps:$4 sm:$0xff]  }
 0x52a   : > { %v5028_v48 = vpop.f32.mrb[52].mxu0  ;;  %v5069_v18 = vpop.f32.mrb[52].mxu1  ;;  %7638 = vmatprep.mubr.bf16.mxu0 %v15226_v53  ;;  %7679 = vmatprep.mubr.bf16.mxu1 %v15226_v53 }
 0x52b   : > { %v17509_v52 = vadd.f32 %v5028_v48, %v17379_v56  ;;  %v17512_v54 = vadd.f32 %v5069_v18, %v17382_v57  ;;  %v5030_v55 = vpop.f32.mrb[53].mxu0  ;;  %v5071_v6 = vpop.f32.mrb[53].mxu1  ;;  %v14592_v56 = vld [vmem:[%s19104_s11 + $0xde4] ss:$16 sps:$4 sm:$0xff]   ;;  %v14595_v57 = vld [vmem:[%s19104_s11 + $0xdec] ss:$16 sps:$4 sm:$0xff]  }
 0x52c   : > { %v17515_v58 = vadd.f32 %v5030_v55, %v17385_v62  ;;  %v17518_v61 = vadd.f32 %v5071_v6, %v17388_v13  ;;  %v5032_v20 = vpop.f32.mrb[54].mxu0  ;;  %v5073_v22 = vpop.f32.mrb[54].mxu1  ;;  %7609 = vmatpush1.bf16.msra.mxu0 %v14578_v44  ;;  %7650 = vmatpush1.bf16.msra.mxu1 %v14581_v17  ;;  %v14590_v62 = vld [vmem:[%s19104_s11 + $0xde0] ss:$16 sps:$4 sm:$0xff]   ;;  %v14593_v13 = vld [vmem:[%s19104_s11 + $0xde8] ss:$16 sps:$4 sm:$0xff]  }
 0x52d   : > { %v5033_v25 = vpop.f32.mrb[55].mxu0  ;;  %v5074_v63 = vpop.f32.mrb[55].mxu1  ;;  %7610 = vmatprep.subr.bf16.mxu0 %v14586_v45  ;;  %7651 = vmatprep.subr.bf16.mxu1 %v14589_v47  ;;  %v14632_v45 = vld [vmem:[%s19104_s11 + $0xec0] ss:$16 sps:$4 sm:$0xff]   ;;  %v14635_v47 = vld [vmem:[%s19104_s11 + $0xec8] ss:$16 sps:$4 sm:$0xff]  }
 0x530   : > { %7611 = vmatpush1.bf16.msra.mxu0 %v14584_v23  ;;  %7652 = vmatpush1.bf16.msra.mxu1 %v14587_v24 }
 0x531   : > { %7612 = vmatprep.subr.bf16.mxu0 %v14592_v56  ;;  %7653 = vmatprep.subr.bf16.mxu1 %v14595_v57  ;;  %v17666_v56 = vshrl.u32 %v17609_v37, 16  ;;  %v14646_v57 = vld [vmem:[%s19104_s11 + $0xf04] ss:$16 sps:$4 sm:$0xff]  }
 0x534   : > { %7613 = vmatpush1.bf16.msra.mxu0 %v14590_v62  ;;  %7654 = vmatpush1.bf16.msra.mxu1 %v14593_v13  ;;  %v14649_v62 = vld [vmem:[%s19104_s11 + $0xf0c] ss:$16 sps:$4 sm:$0xff]   ;;  %v14644_v13 = vld [vmem:[%s19104_s11 + $0xf00] ss:$16 sps:$4 sm:$0xff]  }
 0x535   : > { %7794 = vmatprep.subr.bf16.mxu0 %v14598_v59  ;;  %7835 = vmatprep.subr.bf16.mxu1 %v14601_v60  ;;  %v14647_v59 = vld [vmem:[%s19104_s11 + $0xf08] ss:$16 sps:$4 sm:$0xff]   ;;  %v14652_v60 = vld [vmem:[%s19104_s11 + $0xf24] ss:$16 sps:$4 sm:$0xff]  }
 0x537   : > { %12907 = vmatmul.mubr.msk.bf16.vlgmr.msra.gmra.mrb[108].mxu0 %vm568_vm1, %v7522_v3  ;;  %12908 = vmatmul.mubr.msk.bf16.vlgmr.msra.gmra.mrb[108].mxu1 %vm568_vm1, %v7522_v3  ;;  %v14650_v3 = vld [vmem:[%s19104_s11 + $0xf20] ss:$16 sps:$4 sm:$0xff]  }
 0x538   : > { %7795 = vmatpush1.bf16.msra.mxu0 %v14596_v2  ;;  %7836 = vmatpush1.bf16.msra.mxu1 %v14599_v0  ;;  %v14655_v2 = vld [vmem:[%s19104_s11 + $0xf2c] ss:$16 sps:$4 sm:$0xff]   ;;  %v14653_v0 = vld [vmem:[%s19104_s11 + $0xf28] ss:$16 sps:$4 sm:$0xff]  }
 0x539   : > { %7796 = vmatprep.subr.bf16.mxu0 %v14604_v7  ;;  %7837 = vmatprep.subr.bf16.mxu1 %v14607_v10  ;;  %v14658_v7 = vld [vmem:[%s19104_s11 + $0xf44] ss:$16 sps:$4 sm:$0xff]   ;;  %v14661_v10 = vld [vmem:[%s19104_s11 + $0xf4c] ss:$16 sps:$4 sm:$0xff]  }
 0x53a   : > { %v5216_v19 = vpop.f32.mrb[56].mxu0  ;;  %v5257_v26 = vpop.f32.mrb[56].mxu1  ;;  %7826 = vmatprep.mubr.bf16.mxu0 %v15226_v53  ;;  %7867 = vmatprep.mubr.bf16.mxu1 %v15226_v53 }
 0x53b   : > { %v17574_v15 = vadd.f32 %v5216_v19, %v17444_v5  ;;  %v17577_v16 = vadd.f32 %v5257_v26, %v17447_v30  ;;  %v5218_v28 = vpop.f32.mrb[57].mxu0  ;;  %v5259_v29 = vpop.f32.mrb[57].mxu1  ;;  %v14616_v5 = vld [vmem:[%s19104_s11 + $0xe64] ss:$16 sps:$4 sm:$0xff]   ;;  %v14619_v30 = vld [vmem:[%s19104_s11 + $0xe6c] ss:$16 sps:$4 sm:$0xff]  }
 0x53c   : > { %v17580_v21 = vadd.f32 %v5218_v28, %v17450_v35  ;;  %v17583_v31 = vadd.f32 %v5259_v29, %v17453_v49  ;;  %v5220_v33 = vpop.f32.mrb[58].mxu0  ;;  %v5261_v50 = vpop.f32.mrb[58].mxu1  ;;  %7797 = vmatpush1.bf16.msra.mxu0 %v14602_v27  ;;  %7838 = vmatpush1.bf16.msra.mxu1 %v14605_v8  ;;  %v14614_v35 = vld [vmem:[%s19104_s11 + $0xe60] ss:$16 sps:$4 sm:$0xff]   ;;  %v14617_v49 = vld [vmem:[%s19104_s11 + $0xe68] ss:$16 sps:$4 sm:$0xff]  }
 0x53d   : > { %v5221_v4 = vpop.f32.mrb[59].mxu0  ;;  %v5262_v51 = vpop.f32.mrb[59].mxu1  ;;  %7798 = vmatprep.subr.bf16.mxu0 %v14610_v9  ;;  %7839 = vmatprep.subr.bf16.mxu1 %v14613_v14  ;;  %v14656_v9 = vld [vmem:[%s19104_s11 + $0xf40] ss:$16 sps:$4 sm:$0xff]   ;;  %v14659_v14 = vld [vmem:[%s19104_s11 + $0xf48] ss:$16 sps:$4 sm:$0xff]  }
 0x540   : > { %7799 = vmatpush1.bf16.msra.mxu0 %v14608_v11  ;;  %7840 = vmatpush1.bf16.msra.mxu1 %v14611_v12 }
 0x541   : > { %7800 = vmatprep.subr.bf16.mxu0 %v14616_v5  ;;  %7841 = vmatprep.subr.bf16.mxu1 %v14619_v30  ;;  %v8084_v5 = vrot.slane %v17609_v37, 1  ;;  %v14670_v30 = vld [vmem:[%s19104_s11 + $0xf84] ss:$16 sps:$4 sm:$0xff]  }
 0x544   : > { %7801 = vmatpush1.bf16.msra.mxu0 %v14614_v35  ;;  %7842 = vmatpush1.bf16.msra.mxu1 %v14617_v49  ;;  %v14673_v35 = vld [vmem:[%s19104_s11 + $0xf8c] ss:$16 sps:$4 sm:$0xff]   ;;  %v14668_v49 = vld [vmem:[%s19104_s11 + $0xf80] ss:$16 sps:$4 sm:$0xff]  }
 0x545   : > { %7981 = vmatprep.subr.bf16.mxu0 %v14622_v32  ;;  %8022 = vmatprep.subr.bf16.mxu1 %v14625_v34  ;;  %v14676_v32 = vld [vmem:[%s19104_s11 + $0xfa4] ss:$16 sps:$4 sm:$0xff]   ;;  %v14679_v34 = vld [vmem:[%s19104_s11 + $0xfac] ss:$16 sps:$4 sm:$0xff]  }
 0x547   : > { %12925 = vmatmul.mubr.msk.bf16.vlgmr.msra.gmra.mrb[112].mxu0 %vm568_vm1, %v17609_v37  ;;  %12926 = vmatmul.mubr.msk.bf16.vlgmr.msra.gmra.mrb[112].mxu1 %vm568_vm1, %v17609_v37 }
 0x548   : > { %7982 = vmatpush1.bf16.msra.mxu0 %v14620_v38  ;;  %8023 = vmatpush1.bf16.msra.mxu1 %v14623_v39  ;;  %v14674_v38 = vld [vmem:[%s19104_s11 + $0xfa0] ss:$16 sps:$4 sm:$0xff]   ;;  %v14677_v39 = vld [vmem:[%s19104_s11 + $0xfa8] ss:$16 sps:$4 sm:$0xff]  }
 0x549   : > { %7983 = vmatprep.subr.bf16.mxu0 %v14628_v42  ;;  %8024 = vmatprep.subr.bf16.mxu1 %v14631_v43  ;;  %v14682_v42 = vld [vmem:[%s19104_s11 + $0xfc4] ss:$16 sps:$4 sm:$0xff]   ;;  %v14685_v43 = vld [vmem:[%s19104_s11 + $0xfcc] ss:$16 sps:$4 sm:$0xff]  }
 0x54a   : > { %v5403_v44 = vpop.f32.mrb[60].mxu0  ;;  %v5444_v17 = vpop.f32.mrb[60].mxu1  ;;  %8013 = vmatprep.mubr.bf16.mxu0 %v15226_v53  ;;  %8054 = vmatprep.mubr.bf16.mxu1 %v15226_v53 }
 0x54b   : > { %v17642_v48 = vadd.f32 %v5403_v44, %v17509_v52  ;;  %v17645_v18 = vadd.f32 %v5444_v17, %v17512_v54  ;;  %v5405_v23 = vpop.f32.mrb[61].mxu0  ;;  %v5446_v24 = vpop.f32.mrb[61].mxu1  ;;  %v14640_v52 = vld [vmem:[%s19104_s11 + $0xee4] ss:$16 sps:$4 sm:$0xff]   ;;  %v14643_v54 = vld [vmem:[%s19104_s11 + $0xeec] ss:$16 sps:$4 sm:$0xff]  }
 0x54c   : > { %v17648_v55 = vadd.f32 %v5405_v23, %v17515_v58  ;;  %v17651_v6 = vadd.f32 %v5446_v24, %v17518_v61  ;;  %v5407_v20 = vpop.f32.mrb[62].mxu0  ;;  %v5448_v22 = vpop.f32.mrb[62].mxu1  ;;  %7984 = vmatpush1.bf16.msra.mxu0 %v14626_v40  ;;  %8025 = vmatpush1.bf16.msra.mxu1 %v14629_v41  ;;  %v14638_v58 = vld [vmem:[%s19104_s11 + $0xee0] ss:$16 sps:$4 sm:$0xff]   ;;  %v14641_v61 = vld [vmem:[%s19104_s11 + $0xee8] ss:$16 sps:$4 sm:$0xff]  }
 0x54d   : > { %v5408_v25 = vpop.f32.mrb[63].mxu0  ;;  %v5449_v63 = vpop.f32.mrb[63].mxu1  ;;  %7985 = vmatprep.subr.bf16.mxu0 %v14634_v1  ;;  %8026 = vmatprep.subr.bf16.mxu1 %v14637_v46  ;;  %v14680_v1 = vld [vmem:[%s19104_s11 + $0xfc0] ss:$16 sps:$4 sm:$0xff]   ;;  %v14683_v46 = vld [vmem:[%s19104_s11 + $0xfc8] ss:$16 sps:$4 sm:$0xff]  }
 0x550   : > { %7986 = vmatpush1.bf16.msra.mxu0 %v14632_v45  ;;  %8027 = vmatpush1.bf16.msra.mxu1 %v14635_v47 }
 0x551   : > { %7987 = vmatprep.subr.bf16.mxu0 %v14640_v52  ;;  %8028 = vmatprep.subr.bf16.mxu1 %v14643_v54  ;;  %v14694_v52 = vld [vmem:[%s19104_s11 + $0x1004] ss:$16 sps:$4 sm:$0xff]   ;;  %v14697_v54 = vld [vmem:[%s19104_s11 + $0x100c] ss:$16 sps:$4 sm:$0xff]  }
 0x554   : > { %7988 = vmatpush1.bf16.msra.mxu0 %v14638_v58  ;;  %8029 = vmatpush1.bf16.msra.mxu1 %v14641_v61  ;;  %v8270_v58 = vrot.slane %v17666_v56, 1  ;;  %v14692_v61 = vld [vmem:[%s19104_s11 + $0x1000] ss:$16 sps:$4 sm:$0xff]  }
 0x555   : > { %8168 = vmatprep.subr.bf16.mxu0 %v14646_v57  ;;  %8209 = vmatprep.subr.bf16.mxu1 %v14649_v62  ;;  %v14695_v57 = vld [vmem:[%s19104_s11 + $0x1008] ss:$16 sps:$4 sm:$0xff]   ;;  %v14700_v62 = vld [vmem:[%s19104_s11 + $0x1024] ss:$16 sps:$4 sm:$0xff]  }
 0x557   : > { %12943 = vmatmul.mubr.msk.bf16.vlgmr.msra.gmra.mrb[116].mxu0 %vm568_vm1, %v17666_v56  ;;  %12944 = vmatmul.mubr.msk.bf16.vlgmr.msra.gmra.mrb[116].mxu1 %vm568_vm1, %v17666_v56 }
 0x558   : > { %8169 = vmatpush1.bf16.msra.mxu0 %v14644_v13  ;;  %8210 = vmatpush1.bf16.msra.mxu1 %v14647_v59  ;;  %v14703_v13 = vld [vmem:[%s19104_s11 + $0x102c] ss:$16 sps:$4 sm:$0xff]   ;;  %v14698_v59 = vld [vmem:[%s19104_s11 + $0x1020] ss:$16 sps:$4 sm:$0xff]  }
 0x559   : > { %8170 = vmatprep.subr.bf16.mxu0 %v14652_v60  ;;  %8211 = vmatprep.subr.bf16.mxu1 %v14655_v2  ;;  %v14701_v60 = vld [vmem:[%s19104_s11 + $0x1028] ss:$16 sps:$4 sm:$0xff]   ;;  %v14706_v2 = vld [vmem:[%s19104_s11 + $0x1044] ss:$16 sps:$4 sm:$0xff]  }
 0x55a   : > { %v5590_v27 = vpop.f32.mrb[64].mxu0  ;;  %v5631_v8 = vpop.f32.mrb[64].mxu1  ;;  %8200 = vmatprep.mubr.bf16.mxu0 %v15226_v53  ;;  %8241 = vmatprep.mubr.bf16.mxu1 %v15226_v53 }
 0x55b   : > { %v17711_v19 = vadd.f32 %v5590_v27, %v17574_v15  ;;  %v17714_v26 = vadd.f32 %v5631_v8, %v17577_v16  ;;  %v5592_v11 = vpop.f32.mrb[65].mxu0  ;;  %v5633_v12 = vpop.f32.mrb[65].mxu1  ;;  %v14664_v15 = vld [vmem:[%s19104_s11 + $0xf64] ss:$16 sps:$4 sm:$0xff]   ;;  %v14667_v16 = vld [vmem:[%s19104_s11 + $0xf6c] ss:$16 sps:$4 sm:$0xff]  }
 0x55c   : > { %v17717_v28 = vadd.f32 %v5592_v11, %v17580_v21  ;;  %v17720_v29 = vadd.f32 %v5633_v12, %v17583_v31  ;;  %v5594_v33 = vpop.f32.mrb[66].mxu0  ;;  %v5635_v50 = vpop.f32.mrb[66].mxu1  ;;  %8171 = vmatpush1.bf16.msra.mxu0 %v14650_v3  ;;  %8212 = vmatpush1.bf16.msra.mxu1 %v14653_v0  ;;  %v14662_v21 = vld [vmem:[%s19104_s11 + $0xf60] ss:$16 sps:$4 sm:$0xff]   ;;  %v14665_v31 = vld [vmem:[%s19104_s11 + $0xf68] ss:$16 sps:$4 sm:$0xff]  }
 0x55d   : > { %v5595_v4 = vpop.f32.mrb[67].mxu0  ;;  %v5636_v51 = vpop.f32.mrb[67].mxu1  ;;  %8172 = vmatprep.subr.bf16.mxu0 %v14658_v7  ;;  %8213 = vmatprep.subr.bf16.mxu1 %v14661_v10  ;;  %v14709_v3 = vld [vmem:[%s19104_s11 + $0x104c] ss:$16 sps:$4 sm:$0xff]  }
 0x55e   : > { %v14710_v51 = vld [vmem:[%s19104_s11 + $0x1060] ss:$16 sps:$4 sm:$0xff]  }
 0x560   : > { %8173 = vmatpush1.bf16.msra.mxu0 %v14656_v9  ;;  %8214 = vmatpush1.bf16.msra.mxu1 %v14659_v14 }
 0x561   : > { %8174 = vmatprep.subr.bf16.mxu0 %v14664_v15  ;;  %8215 = vmatprep.subr.bf16.mxu1 %v14667_v16  ;;  %v14713_v15 = vld [vmem:[%s19104_s11 + $0x1068] ss:$16 sps:$4 sm:$0xff]   ;;  %v14718_v16 = vld [vmem:[%s19104_s11 + $0x1084] ss:$16 sps:$4 sm:$0xff]  }
 0x564   : > { %8175 = vmatpush1.bf16.msra.mxu0 %v14662_v21  ;;  %8216 = vmatpush1.bf16.msra.mxu1 %v14665_v31  ;;  %v14721_v21 = vld [vmem:[%s19104_s11 + $0x108c] ss:$16 sps:$4 sm:$0xff]   ;;  %v8456_v31 = vrot.slane %v17609_v37, 2 }
 0x565   : > { %8354 = vmatprep.subr.bf16.mxu0 %v14670_v30  ;;  %8395 = vmatprep.subr.bf16.mxu1 %v14673_v35  ;;  %v14719_v30 = vld [vmem:[%s19104_s11 + $0x1088] ss:$16 sps:$4 sm:$0xff]   ;;  %v14724_v35 = vld [vmem:[%s19104_s11 + $0x10a4] ss:$16 sps:$4 sm:$0xff]  }
 0x567   : > { %12961 = vmatmul.mubr.msk.bf16.vlgmr.msra.gmra.mrb[120].mxu0 %vm568_vm1, %v8084_v5  ;;  %12962 = vmatmul.mubr.msk.bf16.vlgmr.msra.gmra.mrb[120].mxu1 %vm568_vm1, %v8084_v5  ;;  %v14716_v5 = vld [vmem:[%s19104_s11 + $0x1080] ss:$16 sps:$4 sm:$0xff]  }
 0x568   : > { %8355 = vmatpush1.bf16.msra.mxu0 %v14668_v49  ;;  %8396 = vmatpush1.bf16.msra.mxu1 %v14671_v36  ;;  %v14727_v49 = vld [vmem:[%s19104_s11 + $0x10ac] ss:$16 sps:$4 sm:$0xff]   ;;  %v14722_v36 = vld [vmem:[%s19104_s11 + $0x10a0] ss:$16 sps:$4 sm:$0xff]  }
 0x569   : > { %8356 = vmatprep.subr.bf16.mxu0 %v14676_v32  ;;  %8397 = vmatprep.subr.bf16.mxu1 %v14679_v34  ;;  %v14725_v32 = vld [vmem:[%s19104_s11 + $0x10a8] ss:$16 sps:$4 sm:$0xff]   ;;  %v14730_v34 = vld [vmem:[%s19104_s11 + $0x10c4] ss:$16 sps:$4 sm:$0xff]  }
 0x56a   : > { %v5776_v40 = vpop.f32.mrb[68].mxu0  ;;  %v5817_v41 = vpop.f32.mrb[68].mxu1  ;;  %8386 = vmatprep.mubr.bf16.mxu0 %v15226_v53  ;;  %8427 = vmatprep.mubr.bf16.mxu1 %v15226_v53 }
 0x56b   : > { %v17776_v44 = vadd.f32 %v5776_v40, %v17642_v48  ;;  %v17779_v17 = vadd.f32 %v5817_v41, %v17645_v18  ;;  %v5778_v45 = vpop.f32.mrb[69].mxu0  ;;  %v5819_v47 = vpop.f32.mrb[69].mxu1  ;;  %v14688_v48 = vld [vmem:[%s19104_s11 + $0xfe4] ss:$16 sps:$4 sm:$0xff]   ;;  %v14691_v18 = vld [vmem:[%s19104_s11 + $0xfec] ss:$16 sps:$4 sm:$0xff]  }
 0x56c   : > { %v17782_v23 = vadd.f32 %v5778_v45, %v17648_v55  ;;  %v17785_v24 = vadd.f32 %v5819_v47, %v17651_v6  ;;  %v5780_v20 = vpop.f32.mrb[70].mxu0  ;;  %v5821_v22 = vpop.f32.mrb[70].mxu1  ;;  %8357 = vmatpush1.bf16.msra.mxu0 %v14674_v38  ;;  %8398 = vmatpush1.bf16.msra.mxu1 %v14677_v39  ;;  %v14686_v55 = vld [vmem:[%s19104_s11 + $0xfe0] ss:$16 sps:$4 sm:$0xff]   ;;  %v14689_v6 = vld [vmem:[%s19104_s11 + $0xfe8] ss:$16 sps:$4 sm:$0xff]  }
 0x56d   : > { %v5781_v25 = vpop.f32.mrb[71].mxu0  ;;  %v5822_v63 = vpop.f32.mrb[71].mxu1  ;;  %8358 = vmatprep.subr.bf16.mxu0 %v14682_v42  ;;  %8399 = vmatprep.subr.bf16.mxu1 %v14685_v43  ;;  %v14733_v38 = vld [vmem:[%s19104_s11 + $0x10cc] ss:$16 sps:$4 sm:$0xff]  }
 0x56e   : > { %v14734_v63 = vld [vmem:[%s19104_s11 + $0x10e0] ss:$16 sps:$4 sm:$0xff]  }
 0x570   : > { %8359 = vmatpush1.bf16.msra.mxu0 %v14680_v1  ;;  %8400 = vmatpush1.bf16.msra.mxu1 %v14683_v46 }
 0x571   : > { %8360 = vmatprep.subr.bf16.mxu0 %v14688_v48  ;;  %8401 = vmatprep.subr.bf16.mxu1 %v14691_v18  ;;  %v14737_v48 = vld [vmem:[%s19104_s11 + $0x10e8] ss:$16 sps:$4 sm:$0xff]   ;;  %v14742_v18 = vld [vmem:[%s19104_s11 + $0x1104] ss:$16 sps:$4 sm:$0xff]  }
 0x574   : > { %8361 = vmatpush1.bf16.msra.mxu0 %v14686_v55  ;;  %8402 = vmatpush1.bf16.msra.mxu1 %v14689_v6  ;;  %v14745_v55 = vld [vmem:[%s19104_s11 + $0x110c] ss:$16 sps:$4 sm:$0xff]   ;;  %v8642_v6 = vrot.slane %v17666_v56, 2 }
 0x575   : > { %8540 = vmatprep.subr.bf16.mxu0 %v14694_v52  ;;  %8581 = vmatprep.subr.bf16.mxu1 %v14697_v54  ;;  %v14740_v52 = vld [vmem:[%s19104_s11 + $0x1100] ss:$16 sps:$4 sm:$0xff]   ;;  %v14743_v54 = vld [vmem:[%s19104_s11 + $0x1108] ss:$16 sps:$4 sm:$0xff]   ;;  %v14751_v56 = vld [vmem:[%s19104_s11 + $0x112c] ss:$16 sps:$4 sm:$0xff]  }
 0x577   : > { %12979 = vmatmul.mubr.msk.bf16.vlgmr.msra.gmra.mrb[124].mxu0 %vm568_vm1, %v8270_v58  ;;  %12980 = vmatmul.mubr.msk.bf16.vlgmr.msra.gmra.mrb[124].mxu1 %vm568_vm1, %v8270_v58  ;;  %v14748_v58 = vld [vmem:[%s19104_s11 + $0x1124] ss:$16 sps:$4 sm:$0xff]  }
 0x578   : > { %8541 = vmatpush1.bf16.msra.mxu0 %v14692_v61  ;;  %8582 = vmatpush1.bf16.msra.mxu1 %v14695_v57  ;;  %v14746_v61 = vld [vmem:[%s19104_s11 + $0x1120] ss:$16 sps:$4 sm:$0xff]   ;;  %v14749_v57 = vld [vmem:[%s19104_s11 + $0x1128] ss:$16 sps:$4 sm:$0xff]  }
 0x579   : > { %8542 = vmatprep.subr.bf16.mxu0 %v14700_v62  ;;  %8583 = vmatprep.subr.bf16.mxu1 %v14703_v13  ;;  %v14754_v62 = vld [vmem:[%s19104_s11 + $0x1144] ss:$16 sps:$4 sm:$0xff]   ;;  %v14757_v13 = vld [vmem:[%s19104_s11 + $0x114c] ss:$16 sps:$4 sm:$0xff]  }
 0x57a   : > { %v5962_v0 = vpop.f32.mrb[72].mxu0  ;;  %v6003_v7 = vpop.f32.mrb[72].mxu1  ;;  %8572 = vmatprep.mubr.bf16.mxu0 %v15226_v53  ;;  %8613 = vmatprep.mubr.bf16.mxu1 %v15226_v53 }
 0x57b   : > { %v17835_v10 = vadd.f32 %v5962_v0, %v17711_v19  ;;  %v17838_v27 = vadd.f32 %v6003_v7, %v17714_v26  ;;  %v5964_v8 = vpop.f32.mrb[73].mxu0  ;;  %v6005_v9 = vpop.f32.mrb[73].mxu1  ;;  %v14704_v19 = vld [vmem:[%s19104_s11 + $0x1040] ss:$16 sps:$4 sm:$0xff]   ;;  %v14707_v26 = vld [vmem:[%s19104_s11 + $0x1048] ss:$16 sps:$4 sm:$0xff]  }
 0x57c   : > { %v17841_v14 = vadd.f32 %v5964_v8, %v17717_v28  ;;  %v17844_v11 = vadd.f32 %v6005_v9, %v17720_v29  ;;  %v5966_v12 = vpop.f32.mrb[74].mxu0  ;;  %v6007_v33 = vpop.f32.mrb[74].mxu1  ;;  %8543 = vmatpush1.bf16.msra.mxu0 %v14698_v59  ;;  %8584 = vmatpush1.bf16.msra.mxu1 %v14701_v60  ;;  %v14712_v28 = vld [vmem:[%s19104_s11 + $0x1064] ss:$16 sps:$4 sm:$0xff]   ;;  %v14715_v29 = vld [vmem:[%s19104_s11 + $0x106c] ss:$16 sps:$4 sm:$0xff]  }
 0x57d   : > { %v5967_v50 = vpop.f32.mrb[75].mxu0  ;;  %v6008_v4 = vpop.f32.mrb[75].mxu1  ;;  %8544 = vmatprep.subr.bf16.mxu0 %v14706_v2  ;;  %8585 = vmatprep.subr.bf16.mxu1 %v14709_v3 }
 0x57e   : > { %v14758_v50 = vld [vmem:[%s19104_s11 + $0x1160] ss:$16 sps:$4 sm:$0xff]   ;;  %v14761_v4 = vld [vmem:[%s19104_s11 + $0x1168] ss:$16 sps:$4 sm:$0xff]  }
 0x580   : > { %8545 = vmatpush1.bf16.msra.mxu0 %v14704_v19  ;;  %8586 = vmatpush1.bf16.msra.mxu1 %v14707_v26 }
 0x581   : > { %8546 = vmatprep.subr.bf16.mxu0 %v14712_v28  ;;  %8587 = vmatprep.subr.bf16.mxu1 %v14715_v29  ;;  %v14766_v28 = vld [vmem:[%s19104_s11 + $0x1184] ss:$16 sps:$4 sm:$0xff]   ;;  %v14769_v29 = vld [vmem:[%s19104_s11 + $0x118c] ss:$16 sps:$4 sm:$0xff]  }
 0x584   : > { %8547 = vmatpush1.bf16.msra.mxu0 %v14710_v51  ;;  %8588 = vmatpush1.bf16.msra.mxu1 %v14713_v15  ;;  %v8828_v51 = vrot.slane %v17609_v37, 3  ;;  %v14764_v15 = vld [vmem:[%s19104_s11 + $0x1180] ss:$16 sps:$4 sm:$0xff]   ;;  %v14775_v37 = vld [vmem:[%s19104_s11 + $0x11ac] ss:$16 sps:$4 sm:$0xff]  }
 0x585   : > { %8726 = vmatprep.subr.bf16.mxu0 %v14718_v16  ;;  %8767 = vmatprep.subr.bf16.mxu1 %v14721_v21  ;;  %v14767_v16 = vld [vmem:[%s19104_s11 + $0x1188] ss:$16 sps:$4 sm:$0xff]   ;;  %v14772_v21 = vld [vmem:[%s19104_s11 + $0x11a4] ss:$16 sps:$4 sm:$0xff]  }
 0x587   : > { %12997 = vmatmul.mubr.msk.bf16.vlgmr.msra.gmra.mrb[128].mxu0 %vm568_vm1, %v8456_v31  ;;  %12998 = vmatmul.mubr.msk.bf16.vlgmr.msra.gmra.mrb[128].mxu1 %vm568_vm1, %v8456_v31  ;;  %v14770_v31 = vld [vmem:[%s19104_s11 + $0x11a0] ss:$16 sps:$4 sm:$0xff]  }
 0x588   : > { %8727 = vmatpush1.bf16.msra.mxu0 %v14716_v5  ;;  %8768 = vmatpush1.bf16.msra.mxu1 %v14719_v30  ;;  %v14773_v5 = vld [vmem:[%s19104_s11 + $0x11a8] ss:$16 sps:$4 sm:$0xff]   ;;  %v14778_v30 = vld [vmem:[%s19104_s11 + $0x11c4] ss:$16 sps:$4 sm:$0xff]  }
 0x589   : > { %8728 = vmatprep.subr.bf16.mxu0 %v14724_v35  ;;  %8769 = vmatprep.subr.bf16.mxu1 %v14727_v49  ;;  %v14781_v35 = vld [vmem:[%s19104_s11 + $0x11cc] ss:$16 sps:$4 sm:$0xff]  }
 0x58a   : > { %v6148_v39 = vpop.f32.mrb[76].mxu0  ;;  %v6189_v42 = vpop.f32.mrb[76].mxu1  ;;  %8758 = vmatprep.mubr.bf16.mxu0 %v15226_v53  ;;  %8799 = vmatprep.mubr.bf16.mxu1 %v15226_v53 }
 0x58b   : > { %v17900_v43 = vadd.f32 %v6148_v39, %v17776_v44  ;;  %v17903_v40 = vadd.f32 %v6189_v42, %v17779_v17  ;;  %v6150_v41 = vpop.f32.mrb[77].mxu0  ;;  %v6191_v1 = vpop.f32.mrb[77].mxu1  ;;  %v14728_v44 = vld [vmem:[%s19104_s11 + $0x10c0] ss:$16 sps:$4 sm:$0xff]   ;;  %v14731_v17 = vld [vmem:[%s19104_s11 + $0x10c8] ss:$16 sps:$4 sm:$0xff]  }
 0x58c   : > { %v17906_v46 = vadd.f32 %v6150_v41, %v17782_v23  ;;  %v17909_v45 = vadd.f32 %v6191_v1, %v17785_v24  ;;  %v6152_v47 = vpop.f32.mrb[78].mxu0  ;;  %v6193_v20 = vpop.f32.mrb[78].mxu1  ;;  %8729 = vmatpush1.bf16.msra.mxu0 %v14722_v36  ;;  %8770 = vmatpush1.bf16.msra.mxu1 %v14725_v32  ;;  %v14736_v23 = vld [vmem:[%s19104_s11 + $0x10e4] ss:$16 sps:$4 sm:$0xff]   ;;  %v14739_v24 = vld [vmem:[%s19104_s11 + $0x10ec] ss:$16 sps:$4 sm:$0xff]  }
 0x58d   : > { %v6153_v22 = vpop.f32.mrb[79].mxu0  ;;  %v6194_v25 = vpop.f32.mrb[79].mxu1  ;;  %8730 = vmatprep.subr.bf16.mxu0 %v14730_v34  ;;  %8771 = vmatprep.subr.bf16.mxu1 %v14733_v38 }
 0x58e   : > { %v14785_v22 = vld [vmem:[%s19104_s11 + $0x11e8] ss:$16 sps:$4 sm:$0xff]  }
 0x58f   : > { %v8999_v25 = vld [vmem:[#allocation4 + $0x28] sm:$0x7f] }
 0x590   : > { %8731 = vmatpush1.bf16.msra.mxu0 %v14728_v44  ;;  %8772 = vmatpush1.bf16.msra.mxu1 %v14731_v17  ;;  %v14782_v17 = vld [vmem:[%s19104_s11 + $0x11e0] ss:$16 sps:$4 sm:$0xff]  }
 0x591   : > { %8732 = vmatprep.subr.bf16.mxu0 %v14736_v23  ;;  %8773 = vmatprep.subr.bf16.mxu1 %v14739_v24  ;;  %v14790_v23 = vld [vmem:[%s19104_s11 + $0x1204] ss:$16 sps:$4 sm:$0xff]   ;;  %v14793_v24 = vld [vmem:[%s19104_s11 + $0x120c] ss:$16 sps:$4 sm:$0xff]  }
 0x594   : > { %8733 = vmatpush1.bf16.msra.mxu0 %v14734_v63  ;;  %8774 = vmatpush1.bf16.msra.mxu1 %v14737_v48  ;;  %v18065_v63 = vpack.c.bf16 %v8999_v25, %v8999_v25  ;;  %v14788_v48 = vld [vmem:[%s19104_s11 + $0x1200] ss:$16 sps:$4 sm:$0xff]   ;;  %v14839_v25 = vld [vmem:[%s19104_s11 + $0x1308] ss:$16 sps:$4 sm:$0xff]  }
 0x595   : > { %8912 = vmatprep.subr.bf16.mxu0 %v14742_v18  ;;  %8953 = vmatprep.subr.bf16.mxu1 %v14745_v55  ;;  %v14791_v18 = vld [vmem:[%s19104_s11 + $0x1208] ss:$16 sps:$4 sm:$0xff]   ;;  %v14796_v55 = vld [vmem:[%s19104_s11 + $0x1224] ss:$16 sps:$4 sm:$0xff]  }
 0x597   : > { %13015 = vmatmul.mubr.msk.bf16.vlgmr.msra.gmra.mrb[132].mxu0 %vm568_vm1, %v8642_v6  ;;  %13016 = vmatmul.mubr.msk.bf16.vlgmr.msra.gmra.mrb[132].mxu1 %vm568_vm1, %v8642_v6  ;;  %v14799_v6 = vld [vmem:[%s19104_s11 + $0x122c] ss:$16 sps:$4 sm:$0xff]  }
 0x598   : > { %8913 = vmatpush1.bf16.msra.mxu0 %v14740_v52  ;;  %8954 = vmatpush1.bf16.msra.mxu1 %v14743_v54  ;;  %v14794_v52 = vld [vmem:[%s19104_s11 + $0x1220] ss:$16 sps:$4 sm:$0xff]   ;;  %v14797_v54 = vld [vmem:[%s19104_s11 + $0x1228] ss:$16 sps:$4 sm:$0xff]  }
 0x599   : > { %8914 = vmatprep.subr.bf16.mxu0 %v14748_v58  ;;  %8955 = vmatprep.subr.bf16.mxu1 %v14751_v56  ;;  %v14802_v58 = vld [vmem:[%s19104_s11 + $0x1244] ss:$16 sps:$4 sm:$0xff]   ;;  %v14805_v56 = vld [vmem:[%s19104_s11 + $0x124c] ss:$16 sps:$4 sm:$0xff]  }
 0x59a   : > { %v6334_v59 = vpop.f32.mrb[80].mxu0  ;;  %v6375_v60 = vpop.f32.mrb[80].mxu1  ;;  %8944 = vmatprep.mubr.bf16.mxu0 %v15226_v53  ;;  %8985 = vmatprep.mubr.bf16.mxu1 %v15226_v53 }
 0x59b   : > { %v17965_v2 = vadd.f32 %v6334_v59, %v17835_v10  ;;  %v17968_v3 = vadd.f32 %v6375_v60, %v17838_v27  ;;  %v6336_v0 = vpop.f32.mrb[81].mxu0  ;;  %v6377_v7 = vpop.f32.mrb[81].mxu1  ;;  %v14752_v10 = vld [vmem:[%s19104_s11 + $0x1140] ss:$16 sps:$4 sm:$0xff]   ;;  %v14755_v27 = vld [vmem:[%s19104_s11 + $0x1148] ss:$16 sps:$4 sm:$0xff]  }
 0x59c   : > { %v17971_v8 = vadd.f32 %v6336_v0, %v17841_v14  ;;  %v17974_v9 = vadd.f32 %v6377_v7, %v17844_v11  ;;  %v6338_v12 = vpop.f32.mrb[82].mxu0  ;;  %v6379_v33 = vpop.f32.mrb[82].mxu1  ;;  %8915 = vmatpush1.bf16.msra.mxu0 %v14746_v61  ;;  %8956 = vmatpush1.bf16.msra.mxu1 %v14749_v57  ;;  %v14760_v14 = vld [vmem:[%s19104_s11 + $0x1164] ss:$16 sps:$4 sm:$0xff]   ;;  %v14763_v11 = vld [vmem:[%s19104_s11 + $0x116c] ss:$16 sps:$4 sm:$0xff]  }
 0x59d   : > { %v6339_v19 = vpop.f32.mrb[83].mxu0  ;;  %v6380_v26 = vpop.f32.mrb[83].mxu1  ;;  %8916 = vmatprep.subr.bf16.mxu0 %v14754_v62  ;;  %8957 = vmatprep.subr.bf16.mxu1 %v14757_v13 }
 0x59e   : > { %v14806_v19 = vld [vmem:[%s19104_s11 + $0x1260] ss:$16 sps:$4 sm:$0xff]   ;;  %v14809_v26 = vld [vmem:[%s19104_s11 + $0x1268] ss:$16 sps:$4 sm:$0xff]  }
 0x5a0   : > { %8917 = vmatpush1.bf16.msra.mxu0 %v14752_v10  ;;  %8958 = vmatpush1.bf16.msra.mxu1 %v14755_v27 }
 0x5a1   : > { %8918 = vmatprep.subr.bf16.mxu0 %v14760_v14  ;;  %8959 = vmatprep.subr.bf16.mxu1 %v14763_v11  ;;  %v14814_v14 = vld [vmem:[%s19104_s11 + $0x1284] ss:$16 sps:$4 sm:$0xff]   ;;  %v14817_v11 = vld [vmem:[%s19104_s11 + $0x128c] ss:$16 sps:$4 sm:$0xff]  }
 0x5a4   : > { %8919 = vmatpush1.bf16.msra.mxu0 %v14758_v50  ;;  %8960 = vmatpush1.bf16.msra.mxu1 %v14761_v4  ;;  %v18134_v50 = vshrl.u32 %v18065_v63, 16  ;;  %v14812_v4 = vld [vmem:[%s19104_s11 + $0x1280] ss:$16 sps:$4 sm:$0xff]  }
 0x5a5   : > { %9100 = vmatprep.subr.bf16.mxu0 %v14766_v28  ;;  %9141 = vmatprep.subr.bf16.mxu1 %v14769_v29  ;;  %v14815_v28 = vld [vmem:[%s19104_s11 + $0x1288] ss:$16 sps:$4 sm:$0xff]   ;;  %v14820_v29 = vld [vmem:[%s19104_s11 + $0x12a4] ss:$16 sps:$4 sm:$0xff]  }
 0x5a7   : > { %13033 = vmatmul.mubr.msk.bf16.vlgmr.msra.gmra.mrb[136].mxu0 %vm568_vm1, %v8828_v51  ;;  %13034 = vmatmul.mubr.msk.bf16.vlgmr.msra.gmra.mrb[136].mxu1 %vm568_vm1, %v8828_v51  ;;  %v14823_v51 = vld [vmem:[%s19104_s11 + $0x12ac] ss:$16 sps:$4 sm:$0xff]  }
 0x5a8   : > { %9101 = vmatpush1.bf16.msra.mxu0 %v14764_v15  ;;  %9142 = vmatpush1.bf16.msra.mxu1 %v14767_v16  ;;  %v14818_v15 = vld [vmem:[%s19104_s11 + $0x12a0] ss:$16 sps:$4 sm:$0xff]   ;;  %v14821_v16 = vld [vmem:[%s19104_s11 + $0x12a8] ss:$16 sps:$4 sm:$0xff]  }
 0x5a9   : > { %9102 = vmatprep.subr.bf16.mxu0 %v14772_v21  ;;  %9143 = vmatprep.subr.bf16.mxu1 %v14775_v37  ;;  %v14826_v21 = vld [vmem:[%s19104_s11 + $0x12c4] ss:$16 sps:$4 sm:$0xff]   ;;  %v14829_v37 = vld [vmem:[%s19104_s11 + $0x12cc] ss:$16 sps:$4 sm:$0xff]  }
 0x5aa   : > { %v6522_v49 = vpop.f32.mrb[84].mxu0  ;;  %v6563_v36 = vpop.f32.mrb[84].mxu1  ;;  %9132 = vmatprep.mubr.bf16.mxu0 %v15226_v53  ;;  %9173 = vmatprep.mubr.bf16.mxu1 %v15226_v53 }
 0x5ab   : > { %v18030_v32 = vadd.f32 %v6522_v49, %v17900_v43  ;;  %v18033_v34 = vadd.f32 %v6563_v36, %v17903_v40  ;;  %v6524_v38 = vpop.f32.mrb[85].mxu0  ;;  %v6565_v39 = vpop.f32.mrb[85].mxu1  ;;  %v14776_v43 = vld [vmem:[%s19104_s11 + $0x11c0] ss:$16 sps:$4 sm:$0xff]   ;;  %v14779_v40 = vld [vmem:[%s19104_s11 + $0x11c8] ss:$16 sps:$4 sm:$0xff]  }
 0x5ac   : > { %v18036_v42 = vadd.f32 %v6524_v38, %v17906_v46  ;;  %v18039_v41 = vadd.f32 %v6565_v39, %v17909_v45  ;;  %v6526_v1 = vpop.f32.mrb[86].mxu0  ;;  %v6567_v47 = vpop.f32.mrb[86].mxu1  ;;  %9103 = vmatpush1.bf16.msra.mxu0 %v14770_v31  ;;  %9144 = vmatpush1.bf16.msra.mxu1 %v14773_v5  ;;  %v14784_v46 = vld [vmem:[%s19104_s11 + $0x11e4] ss:$16 sps:$4 sm:$0xff]   ;;  %v14787_v45 = vld [vmem:[%s19104_s11 + $0x11ec] ss:$16 sps:$4 sm:$0xff]  }
 0x5ad   : > { %v6527_v20 = vpop.f32.mrb[87].mxu0  ;;  %v6568_v44 = vpop.f32.mrb[87].mxu1  ;;  %9104 = vmatprep.subr.bf16.mxu0 %v14778_v30  ;;  %9145 = vmatprep.subr.bf16.mxu1 %v14781_v35 }
 0x5ae   : > { %v14830_v20 = vld [vmem:[%s19104_s11 + $0x12e0] ss:$16 sps:$4 sm:$0xff]   ;;  %v14833_v44 = vld [vmem:[%s19104_s11 + $0x12e8] ss:$16 sps:$4 sm:$0xff]  }
 0x5b0   : > { %9105 = vmatpush1.bf16.msra.mxu0 %v14776_v43  ;;  %9146 = vmatpush1.bf16.msra.mxu1 %v14779_v40 }
 0x5b1   : > { %9106 = vmatprep.subr.bf16.mxu0 %v14784_v46  ;;  %9147 = vmatprep.subr.bf16.mxu1 %v14787_v45  ;;  %v14838_v46 = vld [vmem:[%s19104_s11 + $0x1304] ss:$16 sps:$4 sm:$0xff]   ;;  %v14841_v45 = vld [vmem:[%s19104_s11 + $0x130c] ss:$16 sps:$4 sm:$0xff]  }
 0x5b4   : > { %9107 = vmatpush1.bf16.msra.mxu0 %v14782_v17  ;;  %9148 = vmatpush1.bf16.msra.mxu1 %v14785_v22  ;;  %v9390_v17 = vrot.slane %v18065_v63, 1  ;;  %v14836_v22 = vld [vmem:[%s19104_s11 + $0x1300] ss:$16 sps:$4 sm:$0xff]  }
 0x5b5   : > { %9287 = vmatprep.subr.bf16.mxu0 %v14790_v23  ;;  %9328 = vmatprep.subr.bf16.mxu1 %v14793_v24  ;;  %v14844_v23 = vld [vmem:[%s19104_s11 + $0x1324] ss:$16 sps:$4 sm:$0xff]   ;;  %v14847_v24 = vld [vmem:[%s19104_s11 + $0x132c] ss:$16 sps:$4 sm:$0xff]  }
 0x5b7   : > { %13051 = vmatmul.mubr.msk.bf16.vlgmr.msra.gmra.mrb[140].mxu0 %vm568_vm1, %v18065_v63  ;;  %13052 = vmatmul.mubr.msk.bf16.vlgmr.msra.gmra.mrb[140].mxu1 %vm568_vm1, %v18065_v63 }
 0x5b8   : > { %9288 = vmatpush1.bf16.msra.mxu0 %v14788_v48  ;;  %9329 = vmatpush1.bf16.msra.mxu1 %v14791_v18  ;;  %v14842_v48 = vld [vmem:[%s19104_s11 + $0x1320] ss:$16 sps:$4 sm:$0xff]   ;;  %v14845_v18 = vld [vmem:[%s19104_s11 + $0x1328] ss:$16 sps:$4 sm:$0xff]  }
 0x5b9   : > { %9289 = vmatprep.subr.bf16.mxu0 %v14796_v55  ;;  %9330 = vmatprep.subr.bf16.mxu1 %v14799_v6  ;;  %v14850_v55 = vld [vmem:[%s19104_s11 + $0x1344] ss:$16 sps:$4 sm:$0xff]   ;;  %v14853_v6 = vld [vmem:[%s19104_s11 + $0x134c] ss:$16 sps:$4 sm:$0xff]  }
 0x5ba   : > { %v6709_v61 = vpop.f32.mrb[88].mxu0  ;;  %v6750_v57 = vpop.f32.mrb[88].mxu1  ;;  %9319 = vmatprep.mubr.bf16.mxu0 %v15226_v53  ;;  %9360 = vmatprep.mubr.bf16.mxu1 %v15226_v53 }
 0x5bb   : > { %v18098_v62 = vadd.f32 %v6709_v61, %v17965_v2  ;;  %v18101_v13 = vadd.f32 %v6750_v57, %v17968_v3  ;;  %v6711_v59 = vpop.f32.mrb[89].mxu0  ;;  %v6752_v60 = vpop.f32.mrb[89].mxu1  ;;  %v14800_v2 = vld [vmem:[%s19104_s11 + $0x1240] ss:$16 sps:$4 sm:$0xff]   ;;  %v14803_v3 = vld [vmem:[%s19104_s11 + $0x1248] ss:$16 sps:$4 sm:$0xff]  }
 0x5bc   : > { %v18104_v0 = vadd.f32 %v6711_v59, %v17971_v8  ;;  %v18107_v7 = vadd.f32 %v6752_v60, %v17974_v9  ;;  %v6713_v12 = vpop.f32.mrb[90].mxu0  ;;  %v6754_v33 = vpop.f32.mrb[90].mxu1  ;;  %9290 = vmatpush1.bf16.msra.mxu0 %v14794_v52  ;;  %9331 = vmatpush1.bf16.msra.mxu1 %v14797_v54  ;;  %v14808_v8 = vld [vmem:[%s19104_s11 + $0x1264] ss:$16 sps:$4 sm:$0xff]   ;;  %v14811_v9 = vld [vmem:[%s19104_s11 + $0x126c] ss:$16 sps:$4 sm:$0xff]  }
 0x5bd   : > { %v6714_v10 = vpop.f32.mrb[91].mxu0  ;;  %v6755_v27 = vpop.f32.mrb[91].mxu1  ;;  %9291 = vmatprep.subr.bf16.mxu0 %v14802_v58  ;;  %9332 = vmatprep.subr.bf16.mxu1 %v14805_v56 }
 0x5be   : > { %v14854_v10 = vld [vmem:[%s19104_s11 + $0x1360] ss:$16 sps:$4 sm:$0xff]   ;;  %v14857_v27 = vld [vmem:[%s19104_s11 + $0x1368] ss:$16 sps:$4 sm:$0xff]  }
 0x5c0   : > { %9292 = vmatpush1.bf16.msra.mxu0 %v14800_v2  ;;  %9333 = vmatpush1.bf16.msra.mxu1 %v14803_v3 }
 0x5c1   : > { %9293 = vmatprep.subr.bf16.mxu0 %v14808_v8  ;;  %9334 = vmatprep.subr.bf16.mxu1 %v14811_v9  ;;  %v14862_v8 = vld [vmem:[%s19104_s11 + $0x1384] ss:$16 sps:$4 sm:$0xff]   ;;  %v14865_v9 = vld [vmem:[%s19104_s11 + $0x138c] ss:$16 sps:$4 sm:$0xff]  }
 0x5c4   : > { %9294 = vmatpush1.bf16.msra.mxu0 %v14806_v19  ;;  %9335 = vmatpush1.bf16.msra.mxu1 %v14809_v26  ;;  %v9576_v19 = vrot.slane %v18134_v50, 1  ;;  %v14860_v26 = vld [vmem:[%s19104_s11 + $0x1380] ss:$16 sps:$4 sm:$0xff]  }
 0x5c5   : > { %9474 = vmatprep.subr.bf16.mxu0 %v14814_v14  ;;  %9515 = vmatprep.subr.bf16.mxu1 %v14817_v11  ;;  %v14863_v14 = vld [vmem:[%s19104_s11 + $0x1388] ss:$16 sps:$4 sm:$0xff]   ;;  %v14868_v11 = vld [vmem:[%s19104_s11 + $0x13a4] ss:$16 sps:$4 sm:$0xff]  }
 0x5c7   : > { %13069 = vmatmul.mubr.msk.bf16.vlgmr.msra.gmra.mrb[144].mxu0 %vm568_vm1, %v18134_v50  ;;  %13070 = vmatmul.mubr.msk.bf16.vlgmr.msra.gmra.mrb[144].mxu1 %vm568_vm1, %v18134_v50 }
 0x5c8   : > { %9475 = vmatpush1.bf16.msra.mxu0 %v14812_v4  ;;  %9516 = vmatpush1.bf16.msra.mxu1 %v14815_v28  ;;  %v14871_v4 = vld [vmem:[%s19104_s11 + $0x13ac] ss:$16 sps:$4 sm:$0xff]   ;;  %v14866_v28 = vld [vmem:[%s19104_s11 + $0x13a0] ss:$16 sps:$4 sm:$0xff]  }
 0x5c9   : > { %9476 = vmatprep.subr.bf16.mxu0 %v14820_v29  ;;  %9517 = vmatprep.subr.bf16.mxu1 %v14823_v51  ;;  %v14869_v29 = vld [vmem:[%s19104_s11 + $0x13a8] ss:$16 sps:$4 sm:$0xff]   ;;  %v14874_v51 = vld [vmem:[%s19104_s11 + $0x13c4] ss:$16 sps:$4 sm:$0xff]  }
 0x5ca   : > { %v6896_v31 = vpop.f32.mrb[92].mxu0  ;;  %v6937_v5 = vpop.f32.mrb[92].mxu1  ;;  %9506 = vmatprep.mubr.bf16.mxu0 %v15226_v53  ;;  %9547 = vmatprep.mubr.bf16.mxu1 %v15226_v53 }
 0x5cb   : > { %v18167_v30 = vadd.f32 %v6896_v31, %v18030_v32  ;;  %v18170_v35 = vadd.f32 %v6937_v5, %v18033_v34  ;;  %v6898_v49 = vpop.f32.mrb[93].mxu0  ;;  %v6939_v36 = vpop.f32.mrb[93].mxu1  ;;  %v14824_v32 = vld [vmem:[%s19104_s11 + $0x12c0] ss:$16 sps:$4 sm:$0xff]   ;;  %v14827_v34 = vld [vmem:[%s19104_s11 + $0x12c8] ss:$16 sps:$4 sm:$0xff]  }
 0x5cc   : > { %v18173_v38 = vadd.f32 %v6898_v49, %v18036_v42  ;;  %v18176_v39 = vadd.f32 %v6939_v36, %v18039_v41  ;;  %v6900_v1 = vpop.f32.mrb[94].mxu0  ;;  %v6941_v47 = vpop.f32.mrb[94].mxu1  ;;  %9477 = vmatpush1.bf16.msra.mxu0 %v14818_v15  ;;  %9518 = vmatpush1.bf16.msra.mxu1 %v14821_v16  ;;  %v14832_v42 = vld [vmem:[%s19104_s11 + $0x12e4] ss:$16 sps:$4 sm:$0xff]   ;;  %v14835_v41 = vld [vmem:[%s19104_s11 + $0x12ec] ss:$16 sps:$4 sm:$0xff]  }
 0x5cd   : > { %v6901_v43 = vpop.f32.mrb[95].mxu0  ;;  %v6942_v40 = vpop.f32.mrb[95].mxu1  ;;  %9478 = vmatprep.subr.bf16.mxu0 %v14826_v21  ;;  %9519 = vmatprep.subr.bf16.mxu1 %v14829_v37  ;;  %v14877_v15 = vld [vmem:[%s19104_s11 + $0x13cc] ss:$16 sps:$4 sm:$0xff]  }
 0x5ce   : > { %v14878_v40 = vld [vmem:[%s19104_s11 + $0x13e0] ss:$16 sps:$4 sm:$0xff]  }
 0x5d0   : > { %9479 = vmatpush1.bf16.msra.mxu0 %v14824_v32  ;;  %9520 = vmatpush1.bf16.msra.mxu1 %v14827_v34 }
 0x5d1   : > { %9480 = vmatprep.subr.bf16.mxu0 %v14832_v42  ;;  %9521 = vmatprep.subr.bf16.mxu1 %v14835_v41  ;;  %v14881_v42 = vld [vmem:[%s19104_s11 + $0x13e8] ss:$16 sps:$4 sm:$0xff]   ;;  %v14886_v41 = vld [vmem:[%s19104_s11 + $0x1404] ss:$16 sps:$4 sm:$0xff]  }
 0x5d4   : > { %9481 = vmatpush1.bf16.msra.mxu0 %v14830_v20  ;;  %9522 = vmatpush1.bf16.msra.mxu1 %v14833_v44  ;;  %v14889_v20 = vld [vmem:[%s19104_s11 + $0x140c] ss:$16 sps:$4 sm:$0xff]   ;;  %v9762_v44 = vrot.slane %v18065_v63, 2 }
 0x5d5   : > { %9660 = vmatprep.subr.bf16.mxu0 %v14838_v46  ;;  %9701 = vmatprep.subr.bf16.mxu1 %v14841_v45  ;;  %v14884_v46 = vld [vmem:[%s19104_s11 + $0x1400] ss:$16 sps:$4 sm:$0xff]   ;;  %v14887_v45 = vld [vmem:[%s19104_s11 + $0x1408] ss:$16 sps:$4 sm:$0xff]  }
 0x5d7   : > { %13087 = vmatmul.mubr.msk.bf16.vlgmr.msra.gmra.mrb[148].mxu0 %vm568_vm1, %v9390_v17  ;;  %13088 = vmatmul.mubr.msk.bf16.vlgmr.msra.gmra.mrb[148].mxu1 %vm568_vm1, %v9390_v17  ;;  %v14892_v17 = vld [vmem:[%s19104_s11 + $0x1424] ss:$16 sps:$4 sm:$0xff]  }
 0x5d8   : > { %9661 = vmatpush1.bf16.msra.mxu0 %v14836_v22  ;;  %9702 = vmatpush1.bf16.msra.mxu1 %v14839_v25  ;;  %v14895_v22 = vld [vmem:[%s19104_s11 + $0x142c] ss:$16 sps:$4 sm:$0xff]   ;;  %v14890_v25 = vld [vmem:[%s19104_s11 + $0x1420] ss:$16 sps:$4 sm:$0xff]  }
 0x5d9   : > { %9662 = vmatprep.subr.bf16.mxu0 %v14844_v23  ;;  %9703 = vmatprep.subr.bf16.mxu1 %v14847_v24  ;;  %v14893_v23 = vld [vmem:[%s19104_s11 + $0x1428] ss:$16 sps:$4 sm:$0xff]   ;;  %v14898_v24 = vld [vmem:[%s19104_s11 + $0x1444] ss:$16 sps:$4 sm:$0xff]  }
 0x5da   : > { %v7082_v52 = vpop.f32.mrb[96].mxu0  ;;  %v7123_v54 = vpop.f32.mrb[96].mxu1  ;;  %9692 = vmatprep.mubr.bf16.mxu0 %v15226_v53  ;;  %9733 = vmatprep.mubr.bf16.mxu1 %v15226_v53 }
 0x5db   : > { %v18232_v58 = vadd.f32 %v7082_v52, %v18098_v62  ;;  %v18235_v56 = vadd.f32 %v7123_v54, %v18101_v13  ;;  %v7084_v61 = vpop.f32.mrb[97].mxu0  ;;  %v7125_v57 = vpop.f32.mrb[97].mxu1  ;;  %v14848_v62 = vld [vmem:[%s19104_s11 + $0x1340] ss:$16 sps:$4 sm:$0xff]   ;;  %v14851_v13 = vld [vmem:[%s19104_s11 + $0x1348] ss:$16 sps:$4 sm:$0xff]  }
 0x5dc   : > { %v18238_v59 = vadd.f32 %v7084_v61, %v18104_v0  ;;  %v18241_v60 = vadd.f32 %v7125_v57, %v18107_v7  ;;  %v7086_v12 = vpop.f32.mrb[98].mxu0  ;;  %v7127_v33 = vpop.f32.mrb[98].mxu1  ;;  %9663 = vmatpush1.bf16.msra.mxu0 %v14842_v48  ;;  %9704 = vmatpush1.bf16.msra.mxu1 %v14845_v18  ;;  %v14856_v0 = vld [vmem:[%s19104_s11 + $0x1364] ss:$16 sps:$4 sm:$0xff]   ;;  %v14859_v7 = vld [vmem:[%s19104_s11 + $0x136c] ss:$16 sps:$4 sm:$0xff]  }
 0x5dd   : > { %v7087_v2 = vpop.f32.mrb[99].mxu0  ;;  %v7128_v3 = vpop.f32.mrb[99].mxu1  ;;  %9664 = vmatprep.subr.bf16.mxu0 %v14850_v55  ;;  %9705 = vmatprep.subr.bf16.mxu1 %v14853_v6  ;;  %v14901_v48 = vld [vmem:[%s19104_s11 + $0x144c] ss:$16 sps:$4 sm:$0xff]  }
 0x5de   : > { %v14902_v3 = vld [vmem:[%s19104_s11 + $0x1460] ss:$16 sps:$4 sm:$0xff]  }
 0x5e0   : > { %9665 = vmatpush1.bf16.msra.mxu0 %v14848_v62  ;;  %9706 = vmatpush1.bf16.msra.mxu1 %v14851_v13 }
 0x5e1   : > { %9666 = vmatprep.subr.bf16.mxu0 %v14856_v0  ;;  %9707 = vmatprep.subr.bf16.mxu1 %v14859_v7  ;;  %v14905_v0 = vld [vmem:[%s19104_s11 + $0x1468] ss:$16 sps:$4 sm:$0xff]   ;;  %v14910_v7 = vld [vmem:[%s19104_s11 + $0x1484] ss:$16 sps:$4 sm:$0xff]  }
 0x5e4   : > { %9667 = vmatpush1.bf16.msra.mxu0 %v14854_v10  ;;  %9708 = vmatpush1.bf16.msra.mxu1 %v14857_v27  ;;  %v14913_v10 = vld [vmem:[%s19104_s11 + $0x148c] ss:$16 sps:$4 sm:$0xff]   ;;  %v9948_v27 = vrot.slane %v18134_v50, 2 }
 0x5e5   : > { %9846 = vmatprep.subr.bf16.mxu0 %v14862_v8  ;;  %9887 = vmatprep.subr.bf16.mxu1 %v14865_v9  ;;  %v14908_v8 = vld [vmem:[%s19104_s11 + $0x1480] ss:$16 sps:$4 sm:$0xff]   ;;  %v14911_v9 = vld [vmem:[%s19104_s11 + $0x1488] ss:$16 sps:$4 sm:$0xff]   ;;  %v14919_v50 = vld [vmem:[%s19104_s11 + $0x14ac] ss:$16 sps:$4 sm:$0xff]  }
 0x5e7   : > { %13105 = vmatmul.mubr.msk.bf16.vlgmr.msra.gmra.mrb[152].mxu0 %vm568_vm1, %v9576_v19  ;;  %13106 = vmatmul.mubr.msk.bf16.vlgmr.msra.gmra.mrb[152].mxu1 %vm568_vm1, %v9576_v19  ;;  %v14916_v19 = vld [vmem:[%s19104_s11 + $0x14a4] ss:$16 sps:$4 sm:$0xff]  }
 0x5e8   : > { %9847 = vmatpush1.bf16.msra.mxu0 %v14860_v26  ;;  %9888 = vmatpush1.bf16.msra.mxu1 %v14863_v14  ;;  %v14914_v26 = vld [vmem:[%s19104_s11 + $0x14a0] ss:$16 sps:$4 sm:$0xff]   ;;  %v14917_v14 = vld [vmem:[%s19104_s11 + $0x14a8] ss:$16 sps:$4 sm:$0xff]  }
 0x5e9   : > { %9848 = vmatprep.subr.bf16.mxu0 %v14868_v11  ;;  %9889 = vmatprep.subr.bf16.mxu1 %v14871_v4  ;;  %v14922_v11 = vld [vmem:[%s19104_s11 + $0x14c4] ss:$16 sps:$4 sm:$0xff]   ;;  %v14925_v4 = vld [vmem:[%s19104_s11 + $0x14cc] ss:$16 sps:$4 sm:$0xff]  }
 0x5ea   : > { %v7268_v16 = vpop.f32.mrb[100].mxu0  ;;  %v7309_v21 = vpop.f32.mrb[100].mxu1  ;;  %9878 = vmatprep.mubr.bf16.mxu0 %v15226_v53  ;;  %9919 = vmatprep.mubr.bf16.mxu1 %v15226_v53 }
 0x5eb   : > { %v18297_v37 = vadd.f32 %v7268_v16, %v18167_v30  ;;  %v18300_v31 = vadd.f32 %v7309_v21, %v18170_v35  ;;  %v7270_v5 = vpop.f32.mrb[101].mxu0  ;;  %v7311_v49 = vpop.f32.mrb[101].mxu1  ;;  %v14872_v30 = vld [vmem:[%s19104_s11 + $0x13c0] ss:$16 sps:$4 sm:$0xff]   ;;  %v14875_v35 = vld [vmem:[%s19104_s11 + $0x13c8] ss:$16 sps:$4 sm:$0xff]  }
 0x5ec   : > { %v18303_v36 = vadd.f32 %v7270_v5, %v18173_v38  ;;  %v18306_v1 = vadd.f32 %v7311_v49, %v18176_v39  ;;  %v7272_v47 = vpop.f32.mrb[102].mxu0  ;;  %v7313_v32 = vpop.f32.mrb[102].mxu1  ;;  %9849 = vmatpush1.bf16.msra.mxu0 %v14866_v28  ;;  %9890 = vmatpush1.bf16.msra.mxu1 %v14869_v29  ;;  %v14880_v38 = vld [vmem:[%s19104_s11 + $0x13e4] ss:$16 sps:$4 sm:$0xff]   ;;  %v14883_v39 = vld [vmem:[%s19104_s11 + $0x13ec] ss:$16 sps:$4 sm:$0xff]  }
 0x5ed   : > { %v7273_v34 = vpop.f32.mrb[103].mxu0  ;;  %v7314_v43 = vpop.f32.mrb[103].mxu1  ;;  %9850 = vmatprep.subr.bf16.mxu0 %v14874_v51  ;;  %9891 = vmatprep.subr.bf16.mxu1 %v14877_v15 }
 0x5ee   : > { %v14926_v34 = vld [vmem:[%s19104_s11 + $0x14e0] ss:$16 sps:$4 sm:$0xff]   ;;  %v14929_v43 = vld [vmem:[%s19104_s11 + $0x14e8] ss:$16 sps:$4 sm:$0xff]  }
 0x5f0   : > { %9851 = vmatpush1.bf16.msra.mxu0 %v14872_v30  ;;  %9892 = vmatpush1.bf16.msra.mxu1 %v14875_v35 }
 0x5f1   : > { %9852 = vmatprep.subr.bf16.mxu0 %v14880_v38  ;;  %9893 = vmatprep.subr.bf16.mxu1 %v14883_v39  ;;  %v14934_v38 = vld [vmem:[%s19104_s11 + $0x1504] ss:$16 sps:$4 sm:$0xff]   ;;  %v14937_v39 = vld [vmem:[%s19104_s11 + $0x150c] ss:$16 sps:$4 sm:$0xff]  }
 0x5f4   : > { %9853 = vmatpush1.bf16.msra.mxu0 %v14878_v40  ;;  %9894 = vmatpush1.bf16.msra.mxu1 %v14881_v42  ;;  %v10134_v40 = vrot.slane %v18065_v63, 3  ;;  %v14932_v42 = vld [vmem:[%s19104_s11 + $0x1500] ss:$16 sps:$4 sm:$0xff]   ;;  %v14943_v63 = vld [vmem:[%s19104_s11 + $0x152c] ss:$16 sps:$4 sm:$0xff]  }
 0x5f5   : > { %10032 = vmatprep.subr.bf16.mxu0 %v14886_v41  ;;  %10073 = vmatprep.subr.bf16.mxu1 %v14889_v20  ;;  %v14935_v41 = vld [vmem:[%s19104_s11 + $0x1508] ss:$16 sps:$4 sm:$0xff]   ;;  %v14940_v20 = vld [vmem:[%s19104_s11 + $0x1524] ss:$16 sps:$4 sm:$0xff]  }
 0x5f7   : > { %13123 = vmatmul.mubr.msk.bf16.vlgmr.msra.gmra.mrb[156].mxu0 %vm568_vm1, %v9762_v44  ;;  %13124 = vmatmul.mubr.msk.bf16.vlgmr.msra.gmra.mrb[156].mxu1 %vm568_vm1, %v9762_v44  ;;  %v14938_v44 = vld [vmem:[%s19104_s11 + $0x1520] ss:$16 sps:$4 sm:$0xff]  }
 0x5f8   : > { %10033 = vmatpush1.bf16.msra.mxu0 %v14884_v46  ;;  %10074 = vmatpush1.bf16.msra.mxu1 %v14887_v45  ;;  %v14941_v46 = vld [vmem:[%s19104_s11 + $0x1528] ss:$16 sps:$4 sm:$0xff]   ;;  %v14946_v45 = vld [vmem:[%s19104_s11 + $0x1544] ss:$16 sps:$4 sm:$0xff]  }
 0x5f9   : > { %10034 = vmatprep.subr.bf16.mxu0 %v14892_v17  ;;  %10075 = vmatprep.subr.bf16.mxu1 %v14895_v22  ;;  %v14949_v17 = vld [vmem:[%s19104_s11 + $0x154c] ss:$16 sps:$4 sm:$0xff]  }
 0x5fa   : > { %v7454_v18 = vpop.f32.mrb[104].mxu0  ;;  %v7495_v55 = vpop.f32.mrb[104].mxu1  ;;  %10064 = vmatprep.mubr.bf16.mxu0 %v15226_v53  ;;  %10105 = vmatprep.mubr.bf16.mxu1 %v15226_v53 }
 0x5fb   : > { %v18362_v6 = vadd.f32 %v7454_v18, %v18232_v58  ;;  %v18365_v52 = vadd.f32 %v7495_v55, %v18235_v56  ;;  %v7456_v54 = vpop.f32.mrb[105].mxu0  ;;  %v7497_v61 = vpop.f32.mrb[105].mxu1  ;;  %v14896_v58 = vld [vmem:[%s19104_s11 + $0x1440] ss:$16 sps:$4 sm:$0xff]   ;;  %v14899_v56 = vld [vmem:[%s19104_s11 + $0x1448] ss:$16 sps:$4 sm:$0xff]  }
 0x5fc   : > { %v18368_v57 = vadd.f32 %v7456_v54, %v18238_v59  ;;  %v18371_v12 = vadd.f32 %v7497_v61, %v18241_v60  ;;  %v7458_v33 = vpop.f32.mrb[106].mxu0  ;;  %v7499_v62 = vpop.f32.mrb[106].mxu1  ;;  %10035 = vmatpush1.bf16.msra.mxu0 %v14890_v25  ;;  %10076 = vmatpush1.bf16.msra.mxu1 %v14893_v23  ;;  %v14904_v59 = vld [vmem:[%s19104_s11 + $0x1464] ss:$16 sps:$4 sm:$0xff]   ;;  %v14907_v60 = vld [vmem:[%s19104_s11 + $0x146c] ss:$16 sps:$4 sm:$0xff]  }
 0x5fd   : > { %v7459_v13 = vpop.f32.mrb[107].mxu0  ;;  %v7500_v2 = vpop.f32.mrb[107].mxu1  ;;  %10036 = vmatprep.subr.bf16.mxu0 %v14898_v24  ;;  %10077 = vmatprep.subr.bf16.mxu1 %v14901_v48 }
 0x5fe   : > { %v14953_v13 = vld [vmem:[%s19104_s11 + $0x1568] ss:$16 sps:$4 sm:$0xff]   ;;  %v10305_v2 = vld [vmem:[#allocation4 + $0x30] sm:$0x7f] }
 0x600   : > { %10037 = vmatpush1.bf16.msra.mxu0 %v14896_v58  ;;  %10078 = vmatpush1.bf16.msra.mxu1 %v14899_v56  ;;  %v14950_v56 = vld [vmem:[%s19104_s11 + $0x1560] ss:$16 sps:$4 sm:$0xff]  }
 0x601   : > { %10038 = vmatprep.subr.bf16.mxu0 %v14904_v59  ;;  %10079 = vmatprep.subr.bf16.mxu1 %v14907_v60  ;;  %v14958_v59 = vld [vmem:[%s19104_s11 + $0x1584] ss:$16 sps:$4 sm:$0xff]   ;;  %v14961_v60 = vld [vmem:[%s19104_s11 + $0x158c] ss:$16 sps:$4 sm:$0xff]  }
 0x604   : > { %10039 = vmatpush1.bf16.msra.mxu0 %v14902_v3  ;;  %10080 = vmatpush1.bf16.msra.mxu1 %v14905_v0  ;;  %v18527_v3 = vpack.c.bf16 %v10305_v2, %v10305_v2  ;;  %v14956_v0 = vld [vmem:[%s19104_s11 + $0x1580] ss:$16 sps:$4 sm:$0xff]   ;;  %v15007_v2 = vld [vmem:[%s19104_s11 + $0x1688] ss:$16 sps:$4 sm:$0xff]  }
 0x605   : > { %10218 = vmatprep.subr.bf16.mxu0 %v14910_v7  ;;  %10259 = vmatprep.subr.bf16.mxu1 %v14913_v10  ;;  %v14959_v7 = vld [vmem:[%s19104_s11 + $0x1588] ss:$16 sps:$4 sm:$0xff]   ;;  %v14964_v10 = vld [vmem:[%s19104_s11 + $0x15a4] ss:$16 sps:$4 sm:$0xff]  }
 0x607   : > { %13141 = vmatmul.mubr.msk.bf16.vlgmr.msra.gmra.mrb[160].mxu0 %vm568_vm1, %v9948_v27  ;;  %13142 = vmatmul.mubr.msk.bf16.vlgmr.msra.gmra.mrb[160].mxu1 %vm568_vm1, %v9948_v27  ;;  %v14967_v27 = vld [vmem:[%s19104_s11 + $0x15ac] ss:$16 sps:$4 sm:$0xff]  }
 0x608   : > { %10219 = vmatpush1.bf16.msra.mxu0 %v14908_v8  ;;  %10260 = vmatpush1.bf16.msra.mxu1 %v14911_v9  ;;  %v14962_v8 = vld [vmem:[%s19104_s11 + $0x15a0] ss:$16 sps:$4 sm:$0xff]   ;;  %v14965_v9 = vld [vmem:[%s19104_s11 + $0x15a8] ss:$16 sps:$4 sm:$0xff]  }
 0x609   : > { %10220 = vmatprep.subr.bf16.mxu0 %v14916_v19  ;;  %10261 = vmatprep.subr.bf16.mxu1 %v14919_v50  ;;  %v14970_v19 = vld [vmem:[%s19104_s11 + $0x15c4] ss:$16 sps:$4 sm:$0xff]   ;;  %v14973_v50 = vld [vmem:[%s19104_s11 + $0x15cc] ss:$16 sps:$4 sm:$0xff]  }
 0x60a   : > { %v7640_v28 = vpop.f32.mrb[108].mxu0  ;;  %v7681_v29 = vpop.f32.mrb[108].mxu1  ;;  %10250 = vmatprep.mubr.bf16.mxu0 %v15226_v53  ;;  %10291 = vmatprep.mubr.bf16.mxu1 %v15226_v53 }
 0x60b   : > { %v18427_v51 = vadd.f32 %v7640_v28, %v18297_v37  ;;  %v18430_v15 = vadd.f32 %v7681_v29, %v18300_v31  ;;  %v7642_v16 = vpop.f32.mrb[109].mxu0  ;;  %v7683_v21 = vpop.f32.mrb[109].mxu1  ;;  %v14920_v37 = vld [vmem:[%s19104_s11 + $0x14c0] ss:$16 sps:$4 sm:$0xff]   ;;  %v14923_v31 = vld [vmem:[%s19104_s11 + $0x14c8] ss:$16 sps:$4 sm:$0xff]  }
 0x60c   : > { %v18433_v5 = vadd.f32 %v7642_v16, %v18303_v36  ;;  %v18436_v49 = vadd.f32 %v7683_v21, %v18306_v1  ;;  %v7644_v47 = vpop.f32.mrb[110].mxu0  ;;  %v7685_v32 = vpop.f32.mrb[110].mxu1  ;;  %10221 = vmatpush1.bf16.msra.mxu0 %v14914_v26  ;;  %10262 = vmatpush1.bf16.msra.mxu1 %v14917_v14  ;;  %v14928_v36 = vld [vmem:[%s19104_s11 + $0x14e4] ss:$16 sps:$4 sm:$0xff]   ;;  %v14931_v1 = vld [vmem:[%s19104_s11 + $0x14ec] ss:$16 sps:$4 sm:$0xff]  }
 0x60d   : > { %v7645_v30 = vpop.f32.mrb[111].mxu0  ;;  %v7686_v35 = vpop.f32.mrb[111].mxu1  ;;  %10222 = vmatprep.subr.bf16.mxu0 %v14922_v11  ;;  %10263 = vmatprep.subr.bf16.mxu1 %v14925_v4 }
 0x60e   : > { %v14974_v30 = vld [vmem:[%s19104_s11 + $0x15e0] ss:$16 sps:$4 sm:$0xff]   ;;  %v14977_v35 = vld [vmem:[%s19104_s11 + $0x15e8] ss:$16 sps:$4 sm:$0xff]  }
 0x610   : > { %10223 = vmatpush1.bf16.msra.mxu0 %v14920_v37  ;;  %10264 = vmatpush1.bf16.msra.mxu1 %v14923_v31 }
 0x611   : > { %10224 = vmatprep.subr.bf16.mxu0 %v14928_v36  ;;  %10265 = vmatprep.subr.bf16.mxu1 %v14931_v1  ;;  %v14982_v36 = vld [vmem:[%s19104_s11 + $0x1604] ss:$16 sps:$4 sm:$0xff]   ;;  %v14985_v1 = vld [vmem:[%s19104_s11 + $0x160c] ss:$16 sps:$4 sm:$0xff]  }
 0x614   : > { %10225 = vmatpush1.bf16.msra.mxu0 %v14926_v34  ;;  %10266 = vmatpush1.bf16.msra.mxu1 %v14929_v43  ;;  %v18596_v34 = vshrl.u32 %v18527_v3, 16  ;;  %v14980_v43 = vld [vmem:[%s19104_s11 + $0x1600] ss:$16 sps:$4 sm:$0xff]  }
 0x615   : > { %10406 = vmatprep.subr.bf16.mxu0 %v14934_v38  ;;  %10447 = vmatprep.subr.bf16.mxu1 %v14937_v39  ;;  %v14983_v38 = vld [vmem:[%s19104_s11 + $0x1608] ss:$16 sps:$4 sm:$0xff]   ;;  %v14988_v39 = vld [vmem:[%s19104_s11 + $0x1624] ss:$16 sps:$4 sm:$0xff]  }
 0x617   : > { %13159 = vmatmul.mubr.msk.bf16.vlgmr.msra.gmra.mrb[164].mxu0 %vm568_vm1, %v10134_v40  ;;  %13160 = vmatmul.mubr.msk.bf16.vlgmr.msra.gmra.mrb[164].mxu1 %vm568_vm1, %v10134_v40  ;;  %v14991_v40 = vld [vmem:[%s19104_s11 + $0x162c] ss:$16 sps:$4 sm:$0xff]  }
 0x618   : > { %10407 = vmatpush1.bf16.msra.mxu0 %v14932_v42  ;;  %10448 = vmatpush1.bf16.msra.mxu1 %v14935_v41  ;;  %v14986_v42 = vld [vmem:[%s19104_s11 + $0x1620] ss:$16 sps:$4 sm:$0xff]   ;;  %v14989_v41 = vld [vmem:[%s19104_s11 + $0x1628] ss:$16 sps:$4 sm:$0xff]  }
 0x619   : > { %10408 = vmatprep.subr.bf16.mxu0 %v14940_v20  ;;  %10449 = vmatprep.subr.bf16.mxu1 %v14943_v63  ;;  %v14994_v20 = vld [vmem:[%s19104_s11 + $0x1644] ss:$16 sps:$4 sm:$0xff]   ;;  %v14997_v63 = vld [vmem:[%s19104_s11 + $0x164c] ss:$16 sps:$4 sm:$0xff]  }
 0x61a   : > { %v7828_v22 = vpop.f32.mrb[112].mxu0  ;;  %v7869_v25 = vpop.f32.mrb[112].mxu1  ;;  %10438 = vmatprep.mubr.bf16.mxu0 %v15226_v53  ;;  %10479 = vmatprep.mubr.bf16.mxu1 %v15226_v53 }
 0x61b   : > { %v18492_v23 = vadd.f32 %v7828_v22, %v18362_v6  ;;  %v18495_v24 = vadd.f32 %v7869_v25, %v18365_v52  ;;  %v7830_v48 = vpop.f32.mrb[113].mxu0  ;;  %v7871_v18 = vpop.f32.mrb[113].mxu1  ;;  %v14944_v6 = vld [vmem:[%s19104_s11 + $0x1540] ss:$16 sps:$4 sm:$0xff]   ;;  %v14947_v52 = vld [vmem:[%s19104_s11 + $0x1548] ss:$16 sps:$4 sm:$0xff]  }
 0x61c   : > { %v18498_v55 = vadd.f32 %v7830_v48, %v18368_v57  ;;  %v18501_v54 = vadd.f32 %v7871_v18, %v18371_v12  ;;  %v7832_v61 = vpop.f32.mrb[114].mxu0  ;;  %v7873_v33 = vpop.f32.mrb[114].mxu1  ;;  %10409 = vmatpush1.bf16.msra.mxu0 %v14938_v44  ;;  %10450 = vmatpush1.bf16.msra.mxu1 %v14941_v46  ;;  %v14952_v57 = vld [vmem:[%s19104_s11 + $0x1564] ss:$16 sps:$4 sm:$0xff]   ;;  %v14955_v12 = vld [vmem:[%s19104_s11 + $0x156c] ss:$16 sps:$4 sm:$0xff]  }
 0x61d   : > { %v7833_v62 = vpop.f32.mrb[115].mxu0  ;;  %v7874_v58 = vpop.f32.mrb[115].mxu1  ;;  %10410 = vmatprep.subr.bf16.mxu0 %v14946_v45  ;;  %10451 = vmatprep.subr.bf16.mxu1 %v14949_v17 }
 0x61e   : > { %v14998_v62 = vld [vmem:[%s19104_s11 + $0x1660] ss:$16 sps:$4 sm:$0xff]   ;;  %v15001_v58 = vld [vmem:[%s19104_s11 + $0x1668] ss:$16 sps:$4 sm:$0xff]  }
 0x620   : > { %10411 = vmatpush1.bf16.msra.mxu0 %v14944_v6  ;;  %10452 = vmatpush1.bf16.msra.mxu1 %v14947_v52 }
 0x621   : > { %10412 = vmatprep.subr.bf16.mxu0 %v14952_v57  ;;  %10453 = vmatprep.subr.bf16.mxu1 %v14955_v12  ;;  %v15006_v57 = vld [vmem:[%s19104_s11 + $0x1684] ss:$16 sps:$4 sm:$0xff]   ;;  %v15009_v12 = vld [vmem:[%s19104_s11 + $0x168c] ss:$16 sps:$4 sm:$0xff]  }
 0x624   : > { %10413 = vmatpush1.bf16.msra.mxu0 %v14950_v56  ;;  %10454 = vmatpush1.bf16.msra.mxu1 %v14953_v13  ;;  %v10696_v56 = vrot.slane %v18527_v3, 1  ;;  %v15004_v13 = vld [vmem:[%s19104_s11 + $0x1680] ss:$16 sps:$4 sm:$0xff]  }
 0x625   : > { %10593 = vmatprep.subr.bf16.mxu0 %v14958_v59  ;;  %10634 = vmatprep.subr.bf16.mxu1 %v14961_v60  ;;  %v15012_v59 = vld [vmem:[%s19104_s11 + $0x16a4] ss:$16 sps:$4 sm:$0xff]   ;;  %v15015_v60 = vld [vmem:[%s19104_s11 + $0x16ac] ss:$16 sps:$4 sm:$0xff]  }
 0x627   : > { %13177 = vmatmul.mubr.msk.bf16.vlgmr.msra.gmra.mrb[168].mxu0 %vm568_vm1, %v18527_v3  ;;  %13178 = vmatmul.mubr.msk.bf16.vlgmr.msra.gmra.mrb[168].mxu1 %vm568_vm1, %v18527_v3 }
 0x628   : > { %10594 = vmatpush1.bf16.msra.mxu0 %v14956_v0  ;;  %10635 = vmatpush1.bf16.msra.mxu1 %v14959_v7  ;;  %v15010_v0 = vld [vmem:[%s19104_s11 + $0x16a0] ss:$16 sps:$4 sm:$0xff]   ;;  %v15013_v7 = vld [vmem:[%s19104_s11 + $0x16a8] ss:$16 sps:$4 sm:$0xff]  }
 0x629   : > { %10595 = vmatprep.subr.bf16.mxu0 %v14964_v10  ;;  %10636 = vmatprep.subr.bf16.mxu1 %v14967_v27  ;;  %v15018_v10 = vld [vmem:[%s19104_s11 + $0x16c4] ss:$16 sps:$4 sm:$0xff]   ;;  %v15021_v27 = vld [vmem:[%s19104_s11 + $0x16cc] ss:$16 sps:$4 sm:$0xff]  }
 0x62a   : > { %v8015_v26 = vpop.f32.mrb[116].mxu0  ;;  %v8056_v14 = vpop.f32.mrb[116].mxu1  ;;  %10625 = vmatprep.mubr.bf16.mxu0 %v15226_v53  ;;  %10666 = vmatprep.mubr.bf16.mxu1 %v15226_v53 }
 0x62b   : > { %v18560_v11 = vadd.f32 %v8015_v26, %v18427_v51  ;;  %v18563_v4 = vadd.f32 %v8056_v14, %v18430_v15  ;;  %v8017_v28 = vpop.f32.mrb[117].mxu0  ;;  %v8058_v29 = vpop.f32.mrb[117].mxu1  ;;  %v14968_v51 = vld [vmem:[%s19104_s11 + $0x15c0] ss:$16 sps:$4 sm:$0xff]   ;;  %v14971_v15 = vld [vmem:[%s19104_s11 + $0x15c8] ss:$16 sps:$4 sm:$0xff]  }
 0x62c   : > { %v18566_v16 = vadd.f32 %v8017_v28, %v18433_v5  ;;  %v18569_v21 = vadd.f32 %v8058_v29, %v18436_v49  ;;  %v8019_v47 = vpop.f32.mrb[118].mxu0  ;;  %v8060_v32 = vpop.f32.mrb[118].mxu1  ;;  %10596 = vmatpush1.bf16.msra.mxu0 %v14962_v8  ;;  %10637 = vmatpush1.bf16.msra.mxu1 %v14965_v9  ;;  %v14976_v5 = vld [vmem:[%s19104_s11 + $0x15e4] ss:$16 sps:$4 sm:$0xff]   ;;  %v14979_v49 = vld [vmem:[%s19104_s11 + $0x15ec] ss:$16 sps:$4 sm:$0xff]  }
 0x62d   : > { %v8020_v37 = vpop.f32.mrb[119].mxu0  ;;  %v8061_v31 = vpop.f32.mrb[119].mxu1  ;;  %10597 = vmatprep.subr.bf16.mxu0 %v14970_v19  ;;  %10638 = vmatprep.subr.bf16.mxu1 %v14973_v50 }
 0x62e   : > { %v15022_v37 = vld [vmem:[%s19104_s11 + $0x16e0] ss:$16 sps:$4 sm:$0xff]   ;;  %v15025_v31 = vld [vmem:[%s19104_s11 + $0x16e8] ss:$16 sps:$4 sm:$0xff]  }
 0x630   : > { %10598 = vmatpush1.bf16.msra.mxu0 %v14968_v51  ;;  %10639 = vmatpush1.bf16.msra.mxu1 %v14971_v15 }
 0x631   : > { %10599 = vmatprep.subr.bf16.mxu0 %v14976_v5  ;;  %10640 = vmatprep.subr.bf16.mxu1 %v14979_v49  ;;  %v15030_v5 = vld [vmem:[%s19104_s11 + $0x1704] ss:$16 sps:$4 sm:$0xff]   ;;  %v15033_v49 = vld [vmem:[%s19104_s11 + $0x170c] ss:$16 sps:$4 sm:$0xff]  }
 0x634   : > { %10600 = vmatpush1.bf16.msra.mxu0 %v14974_v30  ;;  %10641 = vmatpush1.bf16.msra.mxu1 %v14977_v35  ;;  %v10882_v30 = vrot.slane %v18596_v34, 1  ;;  %v15028_v35 = vld [vmem:[%s19104_s11 + $0x1700] ss:$16 sps:$4 sm:$0xff]  }
 0x635   : > { %10780 = vmatprep.subr.bf16.mxu0 %v14982_v36  ;;  %10821 = vmatprep.subr.bf16.mxu1 %v14985_v1  ;;  %v15031_v36 = vld [vmem:[%s19104_s11 + $0x1708] ss:$16 sps:$4 sm:$0xff]   ;;  %v15036_v1 = vld [vmem:[%s19104_s11 + $0x1724] ss:$16 sps:$4 sm:$0xff]  }
 0x637   : > { %13195 = vmatmul.mubr.msk.bf16.vlgmr.msra.gmra.mrb[172].mxu0 %vm568_vm1, %v18596_v34  ;;  %13196 = vmatmul.mubr.msk.bf16.vlgmr.msra.gmra.mrb[172].mxu1 %vm568_vm1, %v18596_v34 }
 0x638   : > { %10781 = vmatpush1.bf16.msra.mxu0 %v14980_v43  ;;  %10822 = vmatpush1.bf16.msra.mxu1 %v14983_v38  ;;  %v15039_v43 = vld [vmem:[%s19104_s11 + $0x172c] ss:$16 sps:$4 sm:$0xff]   ;;  %v15034_v38 = vld [vmem:[%s19104_s11 + $0x1720] ss:$16 sps:$4 sm:$0xff]  }
 0x639   : > { %10782 = vmatprep.subr.bf16.mxu0 %v14988_v39  ;;  %10823 = vmatprep.subr.bf16.mxu1 %v14991_v40  ;;  %v15037_v39 = vld [vmem:[%s19104_s11 + $0x1728] ss:$16 sps:$4 sm:$0xff]   ;;  %v15042_v40 = vld [vmem:[%s19104_s11 + $0x1744] ss:$16 sps:$4 sm:$0xff]  }
 0x63a   : > { %v8202_v44 = vpop.f32.mrb[120].mxu0  ;;  %v8243_v46 = vpop.f32.mrb[120].mxu1  ;;  %10812 = vmatprep.mubr.bf16.mxu0 %v15226_v53  ;;  %10853 = vmatprep.mubr.bf16.mxu1 %v15226_v53 }
 0x63b   : > { %v18629_v45 = vadd.f32 %v8202_v44, %v18492_v23  ;;  %v18632_v17 = vadd.f32 %v8243_v46, %v18495_v24  ;;  %v8204_v22 = vpop.f32.mrb[121].mxu0  ;;  %v8245_v25 = vpop.f32.mrb[121].mxu1  ;;  %v14992_v23 = vld [vmem:[%s19104_s11 + $0x1640] ss:$16 sps:$4 sm:$0xff]   ;;  %v14995_v24 = vld [vmem:[%s19104_s11 + $0x1648] ss:$16 sps:$4 sm:$0xff]  }
 0x63c   : > { %v18635_v48 = vadd.f32 %v8204_v22, %v18498_v55  ;;  %v18638_v18 = vadd.f32 %v8245_v25, %v18501_v54  ;;  %v8206_v61 = vpop.f32.mrb[122].mxu0  ;;  %v8247_v33 = vpop.f32.mrb[122].mxu1  ;;  %10783 = vmatpush1.bf16.msra.mxu0 %v14986_v42  ;;  %10824 = vmatpush1.bf16.msra.mxu1 %v14989_v41  ;;  %v15000_v55 = vld [vmem:[%s19104_s11 + $0x1664] ss:$16 sps:$4 sm:$0xff]   ;;  %v15003_v54 = vld [vmem:[%s19104_s11 + $0x166c] ss:$16 sps:$4 sm:$0xff]  }
 0x63d   : > { %v8207_v6 = vpop.f32.mrb[123].mxu0  ;;  %v8248_v52 = vpop.f32.mrb[123].mxu1  ;;  %10784 = vmatprep.subr.bf16.mxu0 %v14994_v20  ;;  %10825 = vmatprep.subr.bf16.mxu1 %v14997_v63  ;;  %v15045_v42 = vld [vmem:[%s19104_s11 + $0x174c] ss:$16 sps:$4 sm:$0xff]  }
 0x63e   : > { %v15046_v52 = vld [vmem:[%s19104_s11 + $0x1760] ss:$16 sps:$4 sm:$0xff]  }
 0x640   : > { %10785 = vmatpush1.bf16.msra.mxu0 %v14992_v23  ;;  %10826 = vmatpush1.bf16.msra.mxu1 %v14995_v24 }
 0x641   : > { %10786 = vmatprep.subr.bf16.mxu0 %v15000_v55  ;;  %10827 = vmatprep.subr.bf16.mxu1 %v15003_v54  ;;  %v15049_v55 = vld [vmem:[%s19104_s11 + $0x1768] ss:$16 sps:$4 sm:$0xff]   ;;  %v15054_v54 = vld [vmem:[%s19104_s11 + $0x1784] ss:$16 sps:$4 sm:$0xff]  }
 0x644   : > { %10787 = vmatpush1.bf16.msra.mxu0 %v14998_v62  ;;  %10828 = vmatpush1.bf16.msra.mxu1 %v15001_v58  ;;  %v15057_v62 = vld [vmem:[%s19104_s11 + $0x178c] ss:$16 sps:$4 sm:$0xff]   ;;  %v11068_v58 = vrot.slane %v18527_v3, 2 }
 0x645   : > { %10966 = vmatprep.subr.bf16.mxu0 %v15006_v57  ;;  %11007 = vmatprep.subr.bf16.mxu1 %v15009_v12  ;;  %v15052_v57 = vld [vmem:[%s19104_s11 + $0x1780] ss:$16 sps:$4 sm:$0xff]   ;;  %v15055_v12 = vld [vmem:[%s19104_s11 + $0x1788] ss:$16 sps:$4 sm:$0xff]  }
 0x647   : > { %13213 = vmatmul.mubr.msk.bf16.vlgmr.msra.gmra.mrb[176].mxu0 %vm568_vm1, %v10696_v56  ;;  %13214 = vmatmul.mubr.msk.bf16.vlgmr.msra.gmra.mrb[176].mxu1 %vm568_vm1, %v10696_v56  ;;  %v15060_v56 = vld [vmem:[%s19104_s11 + $0x17a4] ss:$16 sps:$4 sm:$0xff]  }
 0x648   : > { %10967 = vmatpush1.bf16.msra.mxu0 %v15004_v13  ;;  %11008 = vmatpush1.bf16.msra.mxu1 %v15007_v2  ;;  %v15063_v13 = vld [vmem:[%s19104_s11 + $0x17ac] ss:$16 sps:$4 sm:$0xff]   ;;  %v15058_v2 = vld [vmem:[%s19104_s11 + $0x17a0] ss:$16 sps:$4 sm:$0xff]  }
 0x649   : > { %10968 = vmatprep.subr.bf16.mxu0 %v15012_v59  ;;  %11009 = vmatprep.subr.bf16.mxu1 %v15015_v60  ;;  %v15061_v59 = vld [vmem:[%s19104_s11 + $0x17a8] ss:$16 sps:$4 sm:$0xff]   ;;  %v15066_v60 = vld [vmem:[%s19104_s11 + $0x17c4] ss:$16 sps:$4 sm:$0xff]  }
 0x64a   : > { %v8388_v8 = vpop.f32.mrb[124].mxu0  ;;  %v8429_v9 = vpop.f32.mrb[124].mxu1  ;;  %10998 = vmatprep.mubr.bf16.mxu0 %v15226_v53  ;;  %11039 = vmatprep.mubr.bf16.mxu1 %v15226_v53 }
 0x64b   : > { %v18694_v19 = vadd.f32 %v8388_v8, %v18560_v11  ;;  %v18697_v50 = vadd.f32 %v8429_v9, %v18563_v4  ;;  %v8390_v26 = vpop.f32.mrb[125].mxu0  ;;  %v8431_v14 = vpop.f32.mrb[125].mxu1  ;;  %v15016_v11 = vld [vmem:[%s19104_s11 + $0x16c0] ss:$16 sps:$4 sm:$0xff]   ;;  %v15019_v4 = vld [vmem:[%s19104_s11 + $0x16c8] ss:$16 sps:$4 sm:$0xff]  }
 0x64c   : > { %v18700_v28 = vadd.f32 %v8390_v26, %v18566_v16  ;;  %v18703_v29 = vadd.f32 %v8431_v14, %v18569_v21  ;;  %v8392_v47 = vpop.f32.mrb[126].mxu0  ;;  %v8433_v32 = vpop.f32.mrb[126].mxu1  ;;  %10969 = vmatpush1.bf16.msra.mxu0 %v15010_v0  ;;  %11010 = vmatpush1.bf16.msra.mxu1 %v15013_v7  ;;  %v15024_v16 = vld [vmem:[%s19104_s11 + $0x16e4] ss:$16 sps:$4 sm:$0xff]   ;;  %v15027_v21 = vld [vmem:[%s19104_s11 + $0x16ec] ss:$16 sps:$4 sm:$0xff]  }
 0x64d   : > { %v8393_v51 = vpop.f32.mrb[127].mxu0  ;;  %v8434_v15 = vpop.f32.mrb[127].mxu1  ;;  %10970 = vmatprep.subr.bf16.mxu0 %v15018_v10  ;;  %11011 = vmatprep.subr.bf16.mxu1 %v15021_v27  ;;  %v15069_v0 = vld [vmem:[%s19104_s11 + $0x17cc] ss:$16 sps:$4 sm:$0xff]  }
 0x64e   : > { %v15070_v15 = vld [vmem:[%s19104_s11 + $0x17e0] ss:$16 sps:$4 sm:$0xff]  }
 0x650   : > { %10971 = vmatpush1.bf16.msra.mxu0 %v15016_v11  ;;  %11012 = vmatpush1.bf16.msra.mxu1 %v15019_v4 }
 0x651   : > { %10972 = vmatprep.subr.bf16.mxu0 %v15024_v16  ;;  %11013 = vmatprep.subr.bf16.mxu1 %v15027_v21  ;;  %v15073_v16 = vld [vmem:[%s19104_s11 + $0x17e8] ss:$16 sps:$4 sm:$0xff]   ;;  %v15078_v21 = vld [vmem:[%s19104_s11 + $0x1804] ss:$16 sps:$4 sm:$0xff]  }
 0x654   : > { %10973 = vmatpush1.bf16.msra.mxu0 %v15022_v37  ;;  %11014 = vmatpush1.bf16.msra.mxu1 %v15025_v31  ;;  %v15081_v37 = vld [vmem:[%s19104_s11 + $0x180c] ss:$16 sps:$4 sm:$0xff]   ;;  %v11254_v31 = vrot.slane %v18596_v34, 2 }
 0x655   : > { %11152 = vmatprep.subr.bf16.mxu0 %v15030_v5  ;;  %11193 = vmatprep.subr.bf16.mxu1 %v15033_v49  ;;  %v15076_v5 = vld [vmem:[%s19104_s11 + $0x1800] ss:$16 sps:$4 sm:$0xff]   ;;  %v15079_v49 = vld [vmem:[%s19104_s11 + $0x1808] ss:$16 sps:$4 sm:$0xff]   ;;  %v15087_v34 = vld [vmem:[%s19104_s11 + $0x182c] ss:$16 sps:$4 sm:$0xff]  }
 0x657   : > { %13231 = vmatmul.mubr.msk.bf16.vlgmr.msra.gmra.mrb[180].mxu0 %vm568_vm1, %v10882_v30  ;;  %13232 = vmatmul.mubr.msk.bf16.vlgmr.msra.gmra.mrb[180].mxu1 %vm568_vm1, %v10882_v30  ;;  %v15084_v30 = vld [vmem:[%s19104_s11 + $0x1824] ss:$16 sps:$4 sm:$0xff]  }
 0x658   : > { %11153 = vmatpush1.bf16.msra.mxu0 %v15028_v35  ;;  %11194 = vmatpush1.bf16.msra.mxu1 %v15031_v36  ;;  %v15082_v35 = vld [vmem:[%s19104_s11 + $0x1820] ss:$16 sps:$4 sm:$0xff]   ;;  %v15085_v36 = vld [vmem:[%s19104_s11 + $0x1828] ss:$16 sps:$4 sm:$0xff]  }
 0x659   : > { %11154 = vmatprep.subr.bf16.mxu0 %v15036_v1  ;;  %11195 = vmatprep.subr.bf16.mxu1 %v15039_v43  ;;  %v15090_v1 = vld [vmem:[%s19104_s11 + $0x1844] ss:$16 sps:$4 sm:$0xff]   ;;  %v15093_v43 = vld [vmem:[%s19104_s11 + $0x184c] ss:$16 sps:$4 sm:$0xff]  }
 0x65a   : > { %v8574_v41 = vpop.f32.mrb[128].mxu0  ;;  %v8615_v20 = vpop.f32.mrb[128].mxu1  ;;  %11184 = vmatprep.mubr.bf16.mxu0 %v15226_v53  ;;  %11225 = vmatprep.mubr.bf16.mxu1 %v15226_v53 }
 0x65b   : > { %v18759_v63 = vadd.f32 %v8574_v41, %v18629_v45  ;;  %v18762_v44 = vadd.f32 %v8615_v20, %v18632_v17  ;;  %v8576_v46 = vpop.f32.mrb[129].mxu0  ;;  %v8617_v22 = vpop.f32.mrb[129].mxu1  ;;  %v15040_v45 = vld [vmem:[%s19104_s11 + $0x1740] ss:$16 sps:$4 sm:$0xff]   ;;  %v15043_v17 = vld [vmem:[%s19104_s11 + $0x1748] ss:$16 sps:$4 sm:$0xff]  }
 0x65c   : > { %v18765_v25 = vadd.f32 %v8576_v46, %v18635_v48  ;;  %v18768_v61 = vadd.f32 %v8617_v22, %v18638_v18  ;;  %v8578_v33 = vpop.f32.mrb[130].mxu0  ;;  %v8619_v23 = vpop.f32.mrb[130].mxu1  ;;  %11155 = vmatpush1.bf16.msra.mxu0 %v15034_v38  ;;  %11196 = vmatpush1.bf16.msra.mxu1 %v15037_v39  ;;  %v15048_v48 = vld [vmem:[%s19104_s11 + $0x1764] ss:$16 sps:$4 sm:$0xff]   ;;  %v15051_v18 = vld [vmem:[%s19104_s11 + $0x176c] ss:$16 sps:$4 sm:$0xff]  }
 0x65d   : > { %v8579_v24 = vpop.f32.mrb[131].mxu0  ;;  %v8620_v6 = vpop.f32.mrb[131].mxu1  ;;  %11156 = vmatprep.subr.bf16.mxu0 %v15042_v40  ;;  %11197 = vmatprep.subr.bf16.mxu1 %v15045_v42 }
 0x65e   : > { %v15097_v24 = vld [vmem:[%s19104_s11 + $0x1868] ss:$16 sps:$4 sm:$0xff]   ;;  %v11440_v6 = vrot.slane %v18527_v3, 3 }
 0x660   : > { %11157 = vmatpush1.bf16.msra.mxu0 %v15040_v45  ;;  %11198 = vmatpush1.bf16.msra.mxu1 %v15043_v17  ;;  %v15088_v45 = vld [vmem:[%s19104_s11 + $0x1840] ss:$16 sps:$4 sm:$0xff]  }
 0x661   : > { %11158 = vmatprep.subr.bf16.mxu0 %v15048_v48  ;;  %11199 = vmatprep.subr.bf16.mxu1 %v15051_v18  ;;  %v15094_v17 = vld [vmem:[%s19104_s11 + $0x1860] ss:$16 sps:$4 sm:$0xff]  }
 0x664   : > { %11159 = vmatpush1.bf16.msra.mxu0 %v15046_v52  ;;  %11200 = vmatpush1.bf16.msra.mxu1 %v15049_v55 }
 0x665   : > { %11338 = vmatprep.subr.bf16.mxu0 %v15054_v54  ;;  %11379 = vmatprep.subr.bf16.mxu1 %v15057_v62 }
 0x667   : > { %13249 = vmatmul.mubr.msk.bf16.vlgmr.msra.gmra.mrb[184].mxu0 %vm568_vm1, %v11068_v58  ;;  %13250 = vmatmul.mubr.msk.bf16.vlgmr.msra.gmra.mrb[184].mxu1 %vm568_vm1, %v11068_v58 }
 0x668   : > { %11339 = vmatpush1.bf16.msra.mxu0 %v15052_v57  ;;  %11380 = vmatpush1.bf16.msra.mxu1 %v15055_v12 }
 0x669   : > { %11340 = vmatprep.subr.bf16.mxu0 %v15060_v56  ;;  %11381 = vmatprep.subr.bf16.mxu1 %v15063_v13 }
 0x66a   : > { %v8760_v7 = vpop.f32.mrb[132].mxu0  ;;  %v8801_v10 = vpop.f32.mrb[132].mxu1  ;;  %11370 = vmatprep.mubr.bf16.mxu0 %v15226_v53  ;;  %11411 = vmatprep.mubr.bf16.mxu1 %v15226_v53 }
 0x66b   : > { %v18824_v27 = vadd.f32 %v8760_v7, %v18694_v19  ;;  %v18827_v8 = vadd.f32 %v8801_v10, %v18697_v50  ;;  %v8762_v9 = vpop.f32.mrb[133].mxu0  ;;  %v8803_v26 = vpop.f32.mrb[133].mxu1  ;;  %v15064_v19 = vld [vmem:[%s19104_s11 + $0x17c0] ss:$16 sps:$4 sm:$0xff]   ;;  %v15067_v50 = vld [vmem:[%s19104_s11 + $0x17c8] ss:$16 sps:$4 sm:$0xff]  }
 0x66c   : > { %v18830_v14 = vadd.f32 %v8762_v9, %v18700_v28  ;;  %v18833_v47 = vadd.f32 %v8803_v26, %v18703_v29  ;;  %v8764_v32 = vpop.f32.mrb[134].mxu0  ;;  %v8805_v11 = vpop.f32.mrb[134].mxu1  ;;  %11341 = vmatpush1.bf16.msra.mxu0 %v15058_v2  ;;  %11382 = vmatpush1.bf16.msra.mxu1 %v15061_v59  ;;  %v15072_v28 = vld [vmem:[%s19104_s11 + $0x17e4] ss:$16 sps:$4 sm:$0xff]   ;;  %v15075_v29 = vld [vmem:[%s19104_s11 + $0x17ec] ss:$16 sps:$4 sm:$0xff]  }
 0x66d   : > { %v8765_v4 = vpop.f32.mrb[135].mxu0  ;;  %v8806_v51 = vpop.f32.mrb[135].mxu1  ;;  %11342 = vmatprep.subr.bf16.mxu0 %v15066_v60  ;;  %11383 = vmatprep.subr.bf16.mxu1 %v15069_v0 }
 0x670   : > { %11343 = vmatpush1.bf16.msra.mxu0 %v15064_v19  ;;  %11384 = vmatpush1.bf16.msra.mxu1 %v15067_v50 }
 0x671   : > { %11344 = vmatprep.subr.bf16.mxu0 %v15072_v28  ;;  %11385 = vmatprep.subr.bf16.mxu1 %v15075_v29 }
 0x674   : > { %11345 = vmatpush1.bf16.msra.mxu0 %v15070_v15  ;;  %11386 = vmatpush1.bf16.msra.mxu1 %v15073_v16 }
 0x675   : > { %11524 = vmatprep.subr.bf16.mxu0 %v15078_v21  ;;  %11565 = vmatprep.subr.bf16.mxu1 %v15081_v37 }
 0x677   : > { %13267 = vmatmul.mubr.msk.bf16.vlgmr.msra.gmra.mrb[188].mxu0 %vm568_vm1, %v11254_v31  ;;  %13268 = vmatmul.mubr.msk.bf16.vlgmr.msra.gmra.mrb[188].mxu1 %vm568_vm1, %v11254_v31 }
 0x678   : > { %11525 = vmatpush1.bf16.msra.mxu0 %v15076_v5  ;;  %11566 = vmatpush1.bf16.msra.mxu1 %v15079_v49 }
 0x679   : > { %11526 = vmatprep.subr.bf16.mxu0 %v15084_v30  ;;  %11567 = vmatprep.subr.bf16.mxu1 %v15087_v34 }
 0x67a   : > { %v8946_v38 = vpop.f32.mrb[136].mxu0  ;;  %v8987_v39 = vpop.f32.mrb[136].mxu1  ;;  %11556 = vmatprep.mubr.bf16.mxu0 %v15226_v53  ;;  %11597 = vmatprep.mubr.bf16.mxu1 %v15226_v53  ;;  %v15091_v53 = vld [vmem:[%s19104_s11 + $0x1848] ss:$16 sps:$4 sm:$0xff]  }
 0x67b   : > { %v8994_v40 = vadd.f32 %v8946_v38, %v18759_v63  ;;  %v8996_v42 = vadd.f32 %v8987_v39, %v18762_v44  ;;  %v8948_v41 = vpop.f32.mrb[137].mxu0  ;;  %v8989_v20 = vpop.f32.mrb[137].mxu1 }
 0x67c   : > { %v8995_v46 = vadd.f32 %v8948_v41, %v18765_v25  ;;  %v8997_v22 = vadd.f32 %v8989_v20, %v18768_v61  ;;  %v8950_v33 = vpop.f32.mrb[138].mxu0  ;;  %v8991_v23 = vpop.f32.mrb[138].mxu1  ;;  %11527 = vmatpush1.bf16.msra.mxu0 %v15082_v35  ;;  %11568 = vmatpush1.bf16.msra.mxu1 %v15085_v36  ;;  %v15096_v25 = vld [vmem:[%s19104_s11 + $0x1864] ss:$16 sps:$4 sm:$0xff]   ;;  %v15099_v61 = vld [vmem:[%s19104_s11 + $0x186c] ss:$16 sps:$4 sm:$0xff]  }
 0x67d   : > { %v8951_v63 = vpop.f32.mrb[139].mxu0  ;;  %v8992_v44 = vpop.f32.mrb[139].mxu1  ;;  %11528 = vmatprep.subr.bf16.mxu0 %v15090_v1  ;;  %11569 = vmatprep.subr.bf16.mxu1 %v15093_v43  ;;  %v15101_v41 = vld [vmem:[%s19106_s13 + $0xc0] sm:$0xff]   ;;  %v15105_v33 = vld [vmem:[%s19106_s13 + $0xc8] sm:$0xff]  }
 0x67e   : > { %v15102_v20 = vld [vmem:[%s19106_s13] sm:$0xff]   ;;  %v15106_v23 = vld [vmem:[%s19106_s13 + $0x8] sm:$0xff]  }
 0x680   : > { %11529 = vmatpush1.bf16.msra.mxu0 %v15088_v45  ;;  %11570 = vmatpush1.bf16.msra.mxu1 %v15091_v53  ;;  %v15107_v45 = vld [vmem:[%s19106_s13 + $0x88] sm:$0xff]  }
 0x681   : > { %11530 = vmatprep.subr.bf16.mxu0 %v15096_v25  ;;  %11571 = vmatprep.subr.bf16.mxu1 %v15099_v61 }
 0x684   : > { %11531 = vmatpush1.bf16.msra.mxu0 %v15094_v17  ;;  %11572 = vmatpush1.bf16.msra.mxu1 %v15097_v24  ;;  %v15108_v24 = vld [vmem:[%s19106_s13 + $0x50] sm:$0xff]  }
 0x685   : > { %13463 = vmatprep.subr.bf16.mxu1 %v15101_v41 }
 0x687   : > { %13285 = vmatmul.mubr.msk.bf16.vlgmr.msra.gmra.mrb[192].mxu0 %vm568_vm1, %v11440_v6  ;;  %13286 = vmatmul.mubr.msk.bf16.vlgmr.msra.gmra.mrb[192].mxu1 %vm568_vm1, %v11440_v6  ;;  %v15109_v6 = vld [vmem:[%s19106_s13 + $0xd0] sm:$0xff]  }
 0x68a   : > { %v9134_v48 = vpop.f32.mrb[140].mxu0  ;;  %v9175_v18 = vpop.f32.mrb[140].mxu1 }
 0x68b   : > { %v9182_v52 = vadd.f32 %v9134_v48, %v18824_v27  ;;  %v9184_v55 = vadd.f32 %v9175_v18, %v18827_v8  ;;  %v9136_v54 = vpop.f32.mrb[141].mxu0  ;;  %v9177_v62 = vpop.f32.mrb[141].mxu1 }
 0x68c   : > { %v9183_v58 = vadd.f32 %v9136_v54, %v18830_v14  ;;  %v9185_v57 = vadd.f32 %v9177_v62, %v18833_v47  ;;  %v9138_v12 = vpop.f32.mrb[142].mxu0  ;;  %v9179_v3 = vpop.f32.mrb[142].mxu1  ;;  %v15110_v54 = vld [vmem:[%s19106_s13 + $0x10] sm:$0xff]  }
 0x68d   : > { %v9139_v56 = vpop.f32.mrb[143].mxu0  ;;  %v9180_v13 = vpop.f32.mrb[143].mxu1  ;;  %v15111_v62 = vld [vmem:[%s19106_s13 + $0x90] sm:$0xff]   ;;  %v15112_v12 = vld [vmem:[%s19106_s13 + $0x58] sm:$0xff]  }
 0x68e   : > { %v15113_v3 = vld [vmem:[%s19106_s13 + $0xd8] sm:$0xff]  }
 0x68f   : > { %v15114_v56 = vld [vmem:[%s19106_s13 + $0x18] sm:$0xff]  }
 0x690   : > { %v15115_v13 = vld [vmem:[%s19106_s13 + $0x98] sm:$0xff]  }
 0x69a   : > { %v9321_v2 = vpop.f32.mrb[144].mxu0  ;;  %v9362_v59 = vpop.f32.mrb[144].mxu1 }
 0x69b   : > { %v9369_v60 = vadd.f32 %v9321_v2, %v8994_v40  ;;  %v9371_v0 = vadd.f32 %v9362_v59, %v8996_v42  ;;  %v9323_v7 = vpop.f32.mrb[145].mxu0  ;;  %v9364_v10 = vpop.f32.mrb[145].mxu1  ;;  %v15100_v42 = vld [vmem:[%s19106_s13 + $0x40] sm:$0xff]  }
 0x69c   : > { %v9370_v9 = vadd.f32 %v9323_v7, %v8995_v46  ;;  %v9372_v27 = vadd.f32 %v9364_v10, %v8997_v22  ;;  %v9325_v26 = vpop.f32.mrb[146].mxu0  ;;  %v9366_v8 = vpop.f32.mrb[146].mxu1  ;;  %v15103_v46 = vld [vmem:[%s19106_s13 + $0x80] sm:$0xff]   ;;  %v15104_v22 = vld [vmem:[%s19106_s13 + $0x48] sm:$0xff]   ;;  %13441 = vmatprep.subr.bf16.mxu0 %v15100_v42 }
 0x69d   : > { %v9326_v32 = vpop.f32.mrb[147].mxu0  ;;  %v9367_v11 = vpop.f32.mrb[147].mxu1  ;;  %13442 = vmatpush3.bf16.msra.mxu0 %v15102_v20  ;;  %13464 = vmatpush3.bf16.msra.mxu1 %v15103_v46  ;;  %v15116_v2 = vld [vmem:[%s19106_s13 + $0x60] sm:$0xff]   ;;  %v15120_v7 = vld [vmem:[%s19106_s13 + $0x68] sm:$0xff]  }
 0x69e   : > { %13443 = vmatprep.subr.bf16.mxu0 %v15104_v22  ;;  %13465 = vmatprep.subr.bf16.mxu1 %v15105_v33  ;;  %v15117_v59 = vld [vmem:[%s19106_s13 + $0xe0] sm:$0xff]   ;;  %v15121_v10 = vld [vmem:[%s19106_s13 + $0xe8] sm:$0xff]  }
 0x6a1   : > { %13444 = vmatpush3.bf16.msra.mxu0 %v15106_v23  ;;  %13466 = vmatpush3.bf16.msra.mxu1 %v15107_v45 }
 0x6a2   : > { %13445 = vmatprep.subr.bf16.mxu0 %v15108_v24  ;;  %13467 = vmatprep.subr.bf16.mxu1 %v15109_v6 }
 0x6a5   : > { %13446 = vmatpush3.bf16.msra.mxu0 %v15110_v54  ;;  %13468 = vmatpush3.bf16.msra.mxu1 %v15111_v62 }
 0x6a6   : > { %13447 = vmatprep.subr.bf16.mxu0 %v15112_v12  ;;  %13469 = vmatprep.subr.bf16.mxu1 %v15113_v3 }
 0x6a9   : > { %13448 = vmatpush3.bf16.msra.mxu0 %v15114_v56  ;;  %13470 = vmatpush3.bf16.msra.mxu1 %v15115_v13 }
 0x6aa   : > { %v9508_v19 = vpop.f32.mrb[148].mxu0  ;;  %v9549_v14 = vpop.f32.mrb[148].mxu1  ;;  %13449 = vmatprep.subr.bf16.mxu0 %v15116_v2  ;;  %13471 = vmatprep.subr.bf16.mxu1 %v15117_v59 }
 0x6ab   : > { %v9556_v50 = vadd.f32 %v9508_v19, %v9182_v52  ;;  %v9558_v47 = vadd.f32 %v9549_v14, %v9184_v55  ;;  %v9510_v4 = vpop.f32.mrb[149].mxu0  ;;  %v9551_v51 = vpop.f32.mrb[149].mxu1 }
 0x6ac   : > { %v9557_v28 = vadd.f32 %v9510_v4, %v9183_v58  ;;  %v9559_v29 = vadd.f32 %v9551_v51, %v9185_v57  ;;  %v9512_v15 = vpop.f32.mrb[150].mxu0  ;;  %v9553_v16 = vpop.f32.mrb[150].mxu1 }
 0x6ad   : > { %v9513_v21 = vpop.f32.mrb[151].mxu0  ;;  %v9554_v37 = vpop.f32.mrb[151].mxu1  ;;  %v15126_v15 = vld [vmem:[%s19106_s13 + $0x30] sm:$0xff]  }
 0x6ae   : > { %v15127_v16 = vld [vmem:[%s19106_s13 + $0xb0] sm:$0xff]  }
 0x6ba   : > { %v9694_v31 = vpop.f32.mrb[152].mxu0  ;;  %v9735_v5 = vpop.f32.mrb[152].mxu1 }
 0x6bb   : > { %v18917_v49 = vadd.f32 %v9694_v31, %v9369_v60  ;;  %v18919_v30 = vadd.f32 %v9735_v5, %v9371_v0  ;;  %v9696_v34 = vpop.f32.mrb[153].mxu0  ;;  %v9737_v35 = vpop.f32.mrb[153].mxu1  ;;  %v15118_v60 = vld [vmem:[%s19106_s13 + $0x20] sm:$0xff]   ;;  %v15128_v31 = vld [vmem:[%s19106_s13 + $0x78] sm:$0xff]  }
 0x6bc   : > { %v18921_v36 = vadd.f32 %v9696_v34, %v9370_v9  ;;  %v18923_v1 = vadd.f32 %v9737_v35, %v9372_v27  ;;  %v9698_v43 = vpop.f32.mrb[154].mxu0  ;;  %v9739_v38 = vpop.f32.mrb[154].mxu1  ;;  %v15119_v0 = vld [vmem:[%s19106_s13 + $0xa0] sm:$0xff]   ;;  %13450 = vmatpush3.bf16.msra.mxu0 %v15118_v60  ;;  %v15122_v9 = vld [vmem:[%s19106_s13 + $0x28] sm:$0xff]   ;;  %v15129_v5 = vld [vmem:[%s19106_s13 + $0xf8] sm:$0xff]  }
 0x6bd   : > { %v9699_v39 = vpop.f32.mrb[155].mxu0  ;;  %v9740_v40 = vpop.f32.mrb[155].mxu1  ;;  %13472 = vmatpush3.bf16.msra.mxu1 %v15119_v0  ;;  %13451 = vmatprep.subr.bf16.mxu0 %v15120_v7  ;;  %v15123_v27 = vld [vmem:[%s19106_s13 + $0xa8] sm:$0xff]  }
 0x6be   : > { %13473 = vmatprep.subr.bf16.mxu1 %v15121_v10 }
 0x6c0   : > { %13452 = vmatpush3.bf16.msra.mxu0 %v15122_v9 }
 0x6c1   : > { %13474 = vmatpush3.bf16.msra.mxu1 %v15123_v27 }
 0x6ca   : > { %v9880_v53 = vpop.f32.mrb[156].mxu0  ;;  %v9921_v63 = vpop.f32.mrb[156].mxu1 }
 0x6cb   : > { %v18949_v44 = vadd.f32 %v9880_v53, %v9556_v50  ;;  %v18951_v25 = vadd.f32 %v9921_v63, %v9558_v47  ;;  %v9882_v61 = vpop.f32.mrb[157].mxu0  ;;  %v9923_v17 = vpop.f32.mrb[157].mxu1  ;;  %v15124_v50 = vld [vmem:[%s19106_s13 + $0x70] sm:$0xff]  }
 0x6cc   : > { %v18959_v48 = vadd.f32 %v9882_v61, %v9557_v28  ;;  %v18961_v18 = vadd.f32 %v9923_v17, %v9559_v29  ;;  %v9884_v52 = vpop.f32.mrb[158].mxu0  ;;  %v9925_v55 = vpop.f32.mrb[158].mxu1  ;;  %v15125_v47 = vld [vmem:[%s19106_s13 + $0xf0] sm:$0xff]   ;;  %13453 = vmatprep.subr.bf16.mxu0 %v15124_v50 }
 0x6cd   : > { %v9885_v58 = vpop.f32.mrb[159].mxu0  ;;  %v9926_v57 = vpop.f32.mrb[159].mxu1  ;;  %13475 = vmatprep.subr.bf16.mxu1 %v15125_v47  ;;  %13454 = vmatpush3.bf16.msra.mxu0 %v15126_v15 }
 0x6ce   : > { %13476 = vmatpush3.bf16.msra.mxu1 %v15127_v16  ;;  %13455 = vmatprep.subr.bf16.mxu0 %v15128_v31 }
 0x6cf   : > { %13477 = vmatprep.subr.bf16.mxu1 %v15129_v5 }
 0x6da   : > { %v10066_v26 = vpop.f32.mrb[160].mxu0  ;;  %v10107_v8 = vpop.f32.mrb[160].mxu1 }
 0x6db   : > { %v10114_v32 = vadd.f32 %v10066_v26, %v18917_v49  ;;  %v10116_v11 = vadd.f32 %v10107_v8, %v18919_v30  ;;  %v10068_v19 = vpop.f32.mrb[161].mxu0  ;;  %v10109_v14 = vpop.f32.mrb[161].mxu1  ;;  %v15130_v49 = vld [vmem:[%s19106_s13 + $0x38] sm:$0xff]  }
 0x6dc   : > { %v10115_v4 = vadd.f32 %v10068_v19, %v18921_v36  ;;  %v10117_v51 = vadd.f32 %v10109_v14, %v18923_v1  ;;  %v10070_v28 = vpop.f32.mrb[162].mxu0  ;;  %v10111_v29 = vpop.f32.mrb[162].mxu1  ;;  %v15131_v30 = vld [vmem:[%s19106_s13 + $0xb8] sm:$0xff]   ;;  %13456 = vmatpush3.bf16.msra.mxu0 %v15130_v49 }
 0x6dd   : > { %v10071_v21 = vpop.f32.mrb[163].mxu0  ;;  %v10112_v37 = vpop.f32.mrb[163].mxu1  ;;  %13478 = vmatpush3.bf16.msra.mxu1 %v15131_v30 }
 0x6ea   : > { %v10252_v34 = vpop.f32.mrb[164].mxu0  ;;  %v10293_v35 = vpop.f32.mrb[164].mxu1 }
 0x6eb   : > { %v10300_v36 = vadd.f32 %v10252_v34, %v18949_v44  ;;  %v10302_v1 = vadd.f32 %v10293_v35, %v18951_v25  ;;  %v10254_v43 = vpop.f32.mrb[165].mxu0  ;;  %v10295_v38 = vpop.f32.mrb[165].mxu1 }
 0x6ec   : > { %v10301_v39 = vadd.f32 %v10254_v43, %v18959_v48  ;;  %v10303_v40 = vadd.f32 %v10295_v38, %v18961_v18  ;;  %v10256_v42 = vpop.f32.mrb[166].mxu0  ;;  %v10297_v41 = vpop.f32.mrb[166].mxu1 }
 0x6ed   : > { %v10257_v20 = vpop.f32.mrb[167].mxu0  ;;  %v10298_v46 = vpop.f32.mrb[167].mxu1 }
 0x6fa   : > { %v10440_v22 = vpop.f32.mrb[168].mxu0  ;;  %v10481_v33 = vpop.f32.mrb[168].mxu1 }
 0x6fb   : > { %v10488_v23 = vadd.f32 %v10440_v22, %v10114_v32  ;;  %v10490_v45 = vadd.f32 %v10481_v33, %v10116_v11  ;;  %v10442_v53 = vpop.f32.mrb[169].mxu0  ;;  %v10483_v63 = vpop.f32.mrb[169].mxu1 }
 0x6fc   : > { %v10489_v61 = vadd.f32 %v10442_v53, %v10115_v4  ;;  %v10491_v44 = vadd.f32 %v10483_v63, %v10117_v51  ;;  %v10444_v17 = vpop.f32.mrb[170].mxu0  ;;  %v10485_v25 = vpop.f32.mrb[170].mxu1 }
 0x6fd   : > { %v10445_v24 = vpop.f32.mrb[171].mxu0  ;;  %v10486_v6 = vpop.f32.mrb[171].mxu1  ;;  %v11616_v17 = vlaneseq }
 0x6ff   : > { %v11617_v25 = vshrl.u32 %v11616_v17, 7 }
 0x701   : > { %v11618_v24 = vsub.s32 0, %v11617_v25  ;;  %v11626_v6 = vsub.s32 2, %v11617_v25 }
 0x70a   : > { %v10627_v52 = vpop.f32.mrb[172].mxu0  ;;  %v10668_v48 = vpop.f32.mrb[172].mxu1 }
 0x70b   : > { %v10675_v55 = vadd.f32 %v10627_v52, %v10300_v36  ;;  %v10677_v18 = vadd.f32 %v10668_v48, %v10302_v1  ;;  %v10629_v54 = vpop.f32.mrb[173].mxu0  ;;  %v10670_v62 = vpop.f32.mrb[173].mxu1  ;;  %v11614_v52 = vld [vmem:[%s19105_s12] sm:$0xf]  ;;  %v11622_v48 = vsub.s32 1, %v11617_v25 }
 0x70c   : > { %v10676_v58 = vadd.f32 %v10629_v54, %v10301_v39  ;;  %v10678_v57 = vadd.f32 %v10670_v62, %v10303_v40  ;;  %v10631_v12 = vpop.f32.mrb[174].mxu0  ;;  %v10672_v3 = vpop.f32.mrb[174].mxu1 }
 0x70d   : > { %v10632_v56 = vpop.f32.mrb[175].mxu0  ;;  %v10673_v13 = vpop.f32.mrb[175].mxu1  ;;  %v11627_v12 = vrot.slane %v11614_v52, %v11626_v6 }
 0x71a   : > { %v10814_v2 = vpop.f32.mrb[176].mxu0  ;;  %v10855_v59 = vpop.f32.mrb[176].mxu1 }
 0x71b   : > { %v10862_v60 = vadd.f32 %v10814_v2, %v10488_v23  ;;  %v10864_v0 = vadd.f32 %v10855_v59, %v10490_v45  ;;  %v10816_v7 = vpop.f32.mrb[177].mxu0  ;;  %v10857_v10 = vpop.f32.mrb[177].mxu1 }
 0x71c   : > { %v10863_v9 = vadd.f32 %v10816_v7, %v10489_v61  ;;  %v10865_v27 = vadd.f32 %v10857_v10, %v10491_v44  ;;  %v10818_v26 = vpop.f32.mrb[178].mxu0  ;;  %v10859_v8 = vpop.f32.mrb[178].mxu1 }
 0x71d   : > { %v10819_v32 = vpop.f32.mrb[179].mxu0  ;;  %v10860_v11 = vpop.f32.mrb[179].mxu1 }
 0x72a   : > { %v11000_v19 = vpop.f32.mrb[180].mxu0  ;;  %v11041_v14 = vpop.f32.mrb[180].mxu1 }
 0x72b   : > { %v11048_v50 = vadd.f32 %v11000_v19, %v10675_v55  ;;  %v11050_v47 = vadd.f32 %v11041_v14, %v10677_v18  ;;  %v11002_v4 = vpop.f32.mrb[181].mxu0  ;;  %v11043_v51 = vpop.f32.mrb[181].mxu1  ;;  %v11630_v55 = vsub.s32 3, %v11617_v25 }
 0x72c   : > { %v11049_v28 = vadd.f32 %v11002_v4, %v10676_v58  ;;  %v11051_v29 = vadd.f32 %v11043_v51, %v10678_v57  ;;  %v11004_v15 = vpop.f32.mrb[182].mxu0  ;;  %v11045_v16 = vpop.f32.mrb[182].mxu1  ;;  %v11619_v58 = vrot.slane %v11614_v52, %v11618_v24 }
 0x72d   : > { %v11005_v21 = vpop.f32.mrb[183].mxu0  ;;  %v11046_v37 = vpop.f32.mrb[183].mxu1  ;;  %v11631_v7 = vrot.slane %v11614_v52, %v11630_v55  ;;  %v11708_v16 = vld [vmem:[%s19107_s14] sm:$0x1] }
 0x73a   : > { %v11186_v31 = vpop.f32.mrb[184].mxu0  ;;  %v11227_v5 = vpop.f32.mrb[184].mxu1 }
 0x73b   : > { %v11234_v49 = vadd.f32 %v11186_v31, %v10862_v60  ;;  %v11236_v30 = vadd.f32 %v11227_v5, %v10864_v0  ;;  %v11188_v34 = vpop.f32.mrb[185].mxu0  ;;  %v11229_v35 = vpop.f32.mrb[185].mxu1  ;;  %v11623_v0 = vrot.slane %v11614_v52, %v11622_v48 }
 0x73c   : > { %v11235_v36 = vadd.f32 %v11188_v34, %v10863_v9  ;;  %v11237_v1 = vadd.f32 %v11229_v35, %v10865_v27  ;;  %v11190_v43 = vpop.f32.mrb[186].mxu0  ;;  %v11231_v38 = vpop.f32.mrb[186].mxu1 }
 0x73d   : > { %v11191_v39 = vpop.f32.mrb[187].mxu0  ;;  %v11232_v40 = vpop.f32.mrb[187].mxu1 }
 0x74a   : > { %v11372_v42 = vpop.f32.mrb[188].mxu0  ;;  %v11413_v41 = vpop.f32.mrb[188].mxu1 }
 0x74b   : > { %v11420_v20 = vadd.f32 %v11372_v42, %v11048_v50  ;;  %v11422_v46 = vadd.f32 %v11413_v41, %v11050_v47  ;;  %v11374_v22 = vpop.f32.mrb[189].mxu0  ;;  %v11415_v33 = vpop.f32.mrb[189].mxu1 }
 0x74c   : > { %v11421_v23 = vadd.f32 %v11374_v22, %v11049_v28  ;;  %v11423_v45 = vadd.f32 %v11415_v33, %v11051_v29  ;;  %v11376_v53 = vpop.f32.mrb[190].mxu0  ;;  %v11417_v63 = vpop.f32.mrb[190].mxu1 }
 0x74d   : > { %v11377_v61 = vpop.f32.mrb[191].mxu0  ;;  %v11418_v44 = vpop.f32.mrb[191].mxu1 }
 0x75a   : > { %v11558_v18 = vpop.f32.mrb[192].mxu0  ;;  %v11599_v54 = vpop.f32.mrb[192].mxu1 }
 0x75b   : > { %v11606_v62 = vadd.f32 %v11558_v18, %v11234_v49  ;;  %v11608_v57 = vadd.f32 %v11599_v54, %v11236_v30  ;;  %v11560_v3 = vpop.f32.mrb[193].mxu0  ;;  %v11601_v56 = vpop.f32.mrb[193].mxu1 }
 0x75c   : > { %v11607_v13 = vadd.f32 %v11560_v3, %v11235_v36  ;;  %v11609_v2 = vadd.f32 %v11601_v56, %v11237_v1  ;;  %v11562_v59 = vpop.f32.mrb[194].mxu0  ;;  %v11603_v60 = vpop.f32.mrb[194].mxu1 }
 0x75d   : > { %v11610_v10 = vadd.f32 %v11606_v62, %v11420_v20  ;;  %v11612_v9 = vadd.f32 %v11608_v57, %v11422_v46  ;;  %v11563_v27 = vpop.f32.mrb[195].mxu0  ;;  %v11604_v26 = vpop.f32.mrb[195].mxu1 }
 0x75e   : > { %v11611_v8 = vadd.f32 %v11607_v13, %v11421_v23  ;;  %v11613_v32 = vadd.f32 %v11609_v2, %v11423_v45 }
 0x75f   : > { %v11636_v11 = vadd.f32 %v11619_v58, %v11610_v10  ;;  %v11638_v19 = vadd.f32 %v11627_v12, %v11612_v9 }
 0x760   : > { %v11637_v14 = vadd.f32 %v11623_v0, %v11611_v8  ;;  %v11639_v50 = vadd.f32 %v11631_v7, %v11613_v32 }
 0x761   : > { %v11640_v51 = vpack.c.bf16 %v11636_v11, %v11636_v11  ;;  %v11642_v28 = vpack.c.bf16 %v11638_v19, %v11638_v19 }
 0x762   : > { %v11641_v47 = vpack.c.bf16 %v11637_v14, %v11637_v14  ;;  %v11643_v4 = vpack.c.bf16 %v11639_v50, %v11639_v50 }
 0x764   : > { %11933 = vmatprep.mubr.bf16.mxu0 %v11641_v47  ;;  %11973 = vmatprep.mubr.bf16.mxu1 %v11643_v4 }
 0x765   : > { %11934 = vmatmul.mubr.bf16.vlgmr.msra.gmra.mrb[196].mxu0 %v11640_v51  ;;  %11974 = vmatmul.mubr.bf16.vlgmr.msra.gmra.mrb[196].mxu1 %v11642_v28 }
 0x838   : > { %v13457_v29 = vpop.f32.mrb[196].mxu0  ;;  %v13479_v15 = vpop.f32.mrb[196].mxu1 }
 0x839   : > { %v13458_v21 = vpop.f32.mrb[197].mxu0  ;;  %v13480_v37 = vpop.f32.mrb[197].mxu1 }
 0x83a   : > { %v13459_v31 = vadd.f32 %v13458_v21, %v13457_v29  ;;  %v13481_v5 = vadd.f32 %v13480_v37, %v13479_v15  ;;  %v13460_v49 = vpop.f32.mrb[198].mxu0  ;;  %v13482_v30 = vpop.f32.mrb[198].mxu1 }
 0x83b   : > { %v13461_v34 = vpop.f32.mrb[199].mxu0  ;;  %v13483_v35 = vpop.f32.mrb[199].mxu1 }
 0x83c   : > { %v11936_v36 = vadd.f32 %v13459_v31, %v11708_v16 }
 0x83e   : > { %v11976_v1 = vadd.f32 %v13481_v5, %v11936_v36 }
 0x840   : > { %11981 = vst [vmem:[%s15371_s29] sm:$0x1] %v11976_v1 }
 0x841   : > { %15145 = shalt.err (!%p15142_p8)
}
 0x842   : > { %s15146_s29 = scalar_lea.hbm %s19048_s30, 16  ;;  %s15150_s16 = scalar_lea.hbm %s19108_s15, 32 }
 0x843   : > { %p15147_p9 = scmp.ne.s32.totalorder %s19048_s30, %s15146_s29  ;;  %p15151_p12 = scmp.lt.u32.totalorder %s19048_s30, %s19108_s15 }
 0x844   : > { %p15152_p13 = scmp.lt.u32.totalorder %s15150_s16, %s15146_s29  ;;  %p15154_p1 = scmp.lt.u32.totalorder %s15146_s29, %s19048_s30 }
 0x845   : > { %p15148_p10 = pnand %p15147_p9, %p15346_p5 }
 0x846   : > { %p15153_p0 = por %p15152_p13, %p15151_p12 }
 0x847   : > { %p15149_p11 = pneg %p15148_p10 }
 0x848   : > { %p15155_p2 = por %p15154_p1, %p15153_p0 }
 0x84a   : > { %p15156_p3 = pnand %p15155_p2, %p15149_p11 }
 0x84c   : > { %15159 = shalt.err (!%p15156_p3)
}
 0x84d   : > { %13762 = dma.vmem_to_hbm [thread:$0]  (%p15346_p5), %s19050_s17, 16, %s19048_s30, %s11983_s0  }
 0x84e PF: > { %s19127_s23 = sld [smem:[#allocation10_spill]]  ;;  %s19128_s21 = sld [smem:[#allocation8_spill]] }
 0x854   : > { %p13768_p4 = scmp.ge.s32.totalorder %s19127_s23, 2  ;;  %s12007_s24 = sand.u32 1, %s19128_s21  }
 0x855   : > { %s12008_s18 = scalar_lea.sflag [#allocation6], %s12007_s24 }
 0x856   : > { %p13765_p7 = pnand %p13768_p4, %p15350_p6 }
 0x858   : > { %15189 = dma.done.wait (!%p13765_p7), %s12008_s18, 16  }
 0x859   : > { %15191 = vsyncadd (!%p13765_p7), %s12008_s18, 4294967280  ;;  %s19130_s21 = sld [smem:[#allocation11_spill]]  ;;  %s19131_s29 = sld [smem:[#allocation9_spill]] }
 0x85a   : > { %s19132_s20 = sld [smem:[#allocation12_spill]]  ;;  %s19133_s18 = smov %s15198_s19 }
 0x85f   : > { %p25_p8 = scmp.ge.s32.totalorder %s19130_s21, 4   ;;  %s19134_s19 = smov %s19131_s29 }
 0x861   :  { %27 = sbr.rel (!%p25_p8) target bundleno = 5 (0x5), region = 209 }
 0x868   :  { %12012 = vsyncpa [#allocation6], 1 }
 0x869   :  { %12014 = vsyncpa [#allocation6 + $0x1], 1 }

</bundles_post_ra>
